<compile_context>
chip_gen: v7x
topology: tpu7x:2x2x1
jax: 0.10.0
libtpu: 0.0.40
codegen_flags: <defaults>
</compile_context>

<pallas_src>
import functools
import math

import jax
import jax.numpy as jnp
import numpy as np
from jax.experimental import pallas as pl
from jax.experimental.pallas import tpu as pltpu

_VMEM_LIMIT = 32 * 1024 * 1024


# ----------------------------- Pallas kernels ------------------------------

def _patch_embed_kernel(x_ref, w_ref, b_ref, pos_ref, o_ref):
    # (P, K) @ (K, E) + bias + positional embedding, one batch element per step.
    acc = jnp.dot(x_ref[0].astype(jnp.bfloat16), w_ref[...],
                  preferred_element_type=jnp.float32)
    o_ref[0] = (acc + b_ref[...] + pos_ref[...]).astype(o_ref.dtype)


def patch_embed(x_patches, w, b, pos):
    """x_patches:(N,P,K) f32, w:(K,E) bf16, b:(1,E) f32, pos:(P,E) f32 -> (N,P,E) f32."""
    N, P, K = x_patches.shape
    E = w.shape[1]
    return pl.pallas_call(
        _patch_embed_kernel,
        out_shape=jax.ShapeDtypeStruct((N, P, E), jnp.float32),
        grid_spec=pltpu.PrefetchScalarGridSpec(
            num_scalar_prefetch=0,
            grid=(N,),
            in_specs=[
                pl.BlockSpec((1, P, K), lambda n: (n, 0, 0)),
                pl.BlockSpec((K, E), lambda n: (0, 0)),
                pl.BlockSpec((1, E), lambda n: (0, 0)),
                pl.BlockSpec((P, E), lambda n: (0, 0)),
            ],
            out_specs=pl.BlockSpec((1, P, E), lambda n: (n, 0, 0)),
        ),
        compiler_params=pltpu.CompilerParams(
            dimension_semantics=("parallel",),
            vmem_limit_bytes=_VMEM_LIMIT),
    )(x_patches, w, b, pos)


def _layernorm_f32(x, g, b, eps):
    mean = jnp.mean(x, axis=-1, keepdims=True)
    xc = x - mean
    var = jnp.mean(xc * xc, axis=-1, keepdims=True)
    return xc * jax.lax.rsqrt(var + eps) * g + b


def _layer_stack_kernel(h0_ref, ln1g_ref, ln1b_ref, wqkv_ref, bqkv_ref,
                        wo_ref, bo_ref, ln2g_ref, ln2b_ref,
                        w1_ref, b1_ref, w2_ref, b2_ref,
                        out_ref, h_sc, ctx_sc,
                        *, num_heads, head_dim, n_batch, n_patch, eps):
    """One grid step == one full TransformerBlock; hidden stays in VMEM (h_sc)."""
    @pl.when(pl.program_id(0) == 0)
    def _():
        h_sc[...] = h0_ref[...]

    E = num_heads * head_dim
    h = h_sc[...]                                                 # (M, E) f32 residual

    # -- attention sub-block: LN -> fused QKV GEMM -> MHA -> out proj -> +residual
    xn = _layernorm_f32(h, ln1g_ref[0], ln1b_ref[0], eps)
    qkv = jnp.dot(xn.astype(jnp.bfloat16), wqkv_ref[0],
                  preferred_element_type=jnp.float32) + bqkv_ref[0]   # (M, 3E) f32
    scale = 1.0 / math.sqrt(head_dim)
    for n in range(n_batch):                                      # static unroll (tiny)
        rows = slice(n * n_patch, (n + 1) * n_patch)
        for hh in range(num_heads):
            cq = slice(hh * head_dim, (hh + 1) * head_dim)
            ck = slice(E + hh * head_dim, E + (hh + 1) * head_dim)
            cv = slice(2 * E + hh * head_dim, 2 * E + (hh + 1) * head_dim)
            qh = qkv[rows, cq].astype(jnp.bfloat16)
            kh = qkv[rows, ck].astype(jnp.bfloat16)
            vh = qkv[rows, cv].astype(jnp.bfloat16)
            # scores = qh @ kh.T  (NT matmul on the MXU), softmax in f32
            s = jax.lax.dot_general(
                qh, kh, (((1,), (1,)), ((), ())),
                preferred_element_type=jnp.float32) * scale
            s = s - jnp.max(s, axis=-1, keepdims=True)
            p = jnp.exp(s)
            p = p * pl.reciprocal(jnp.sum(p, axis=-1, keepdims=True), approx=True)
            ctx_h = jnp.dot(p.astype(jnp.bfloat16), vh,
                            preferred_element_type=jnp.float32)
            ctx_sc[rows, cq] = ctx_h                              # head slice, no concat
    attn = jnp.dot(ctx_sc[...].astype(jnp.bfloat16), wo_ref[0],
                   preferred_element_type=jnp.float32) + bo_ref[0]
    h = h + attn

    # -- MLP sub-block: LN -> w1 -> ReLU -> w2 -> +residual
    xn2 = _layernorm_f32(h, ln2g_ref[0], ln2b_ref[0], eps)
    y = jnp.dot(xn2.astype(jnp.bfloat16), w1_ref[0],
                preferred_element_type=jnp.float32) + b1_ref[0]
    y = jnp.maximum(y, 0.0)
    h = h + jnp.dot(y.astype(jnp.bfloat16), w2_ref[0],
                    preferred_element_type=jnp.float32) + b2_ref[0]

    h_sc[...] = h
    out_ref[0] = h.astype(out_ref.dtype)


def transformer_stack(hidden0, pk, *, num_heads, n_batch, n_patch, eps=1e-6):
    """Runs ALL transformer layers in one pallas_call; returns (L, M, E) hidden states."""
    M, E = hidden0.shape
    assert M == n_batch * n_patch
    assert E % num_heads == 0
    L, _, F = pk["w1"].shape

    kernel = functools.partial(
        _layer_stack_kernel, num_heads=num_heads, head_dim=E // num_heads,
        n_batch=n_batch, n_patch=n_patch, eps=eps)

    def lspec(shape):
        return pl.BlockSpec((1,) + shape, lambda l: (l, 0, 0))

    return pl.pallas_call(
        kernel,
        out_shape=jax.ShapeDtypeStruct((L, M, E), jnp.float32),
        grid_spec=pltpu.PrefetchScalarGridSpec(
            num_scalar_prefetch=0,
            grid=(L,),
            in_specs=[
                pl.BlockSpec((M, E), lambda l: (0, 0)),   # hidden0 (grid-invariant)
                lspec((1, E)),          # ln1_g
                lspec((1, E)),          # ln1_b
                lspec((E, 3 * E)),      # wqkv  (bf16)
                lspec((1, 3 * E)),      # bqkv
                lspec((E, E)),          # wo    (bf16)
                lspec((1, E)),          # bo
                lspec((1, E)),          # ln2_g
                lspec((1, E)),          # ln2_b
                lspec((E, F)),          # w1    (bf16)
                lspec((1, F)),          # b1
                lspec((F, E)),          # w2    (bf16)
                lspec((1, E)),          # b2
            ],
            out_specs=pl.BlockSpec((1, M, E), lambda l: (l, 0, 0)),
            scratch_shapes=[pltpu.VMEM((M, E), jnp.float32),   # residual stream
                            pltpu.VMEM((M, E), jnp.float32)],  # attention context
        ),
        compiler_params=pltpu.CompilerParams(
            dimension_semantics=("arbitrary",),
            vmem_limit_bytes=_VMEM_LIMIT),
    )(hidden0, pk["ln1_g"], pk["ln1_b"], pk["wqkv"], pk["bqkv"],
      pk["wo"], pk["bo"], pk["ln2_g"], pk["ln2_b"],
      pk["w1"], pk["b1"], pk["w2"], pk["b2"])


# --------------------------- Weight repacking (one-time) ---------------------------

def pack_params(params, *, weight_dtype=jnp.bfloat16):
    """One-time repack of PyTorch-layout params into kernel layout (called OUTSIDE jit).

    Transposes to (in,out), concatenates QKV, stacks layers on a leading L axis and
    casts the large weight matrices to bf16; biases / LN params stay f32.
    """
    E = params["patch_b"].shape[0]
    pw = jnp.asarray(params["patch_w"])
    K = int(np.prod(pw.shape[1:]))

    packed = {
        "patch_w": pw.reshape(E, K).T.astype(weight_dtype),                  # (K, E)
        "patch_b": jnp.asarray(params["patch_b"], jnp.float32).reshape(1, E),
        "pos": jnp.asarray(params["pos"], jnp.float32).reshape(-1, E),       # (P, E)
    }

    def stack(fn, dtype=jnp.float32):
        return jnp.stack([fn(lp) for lp in params["layers"]]).astype(dtype)

    packed["ln1_g"] = stack(lambda lp: lp["ln1_g"].reshape(1, E))
    packed["ln1_b"] = stack(lambda lp: lp["ln1_b"].reshape(1, E))
    packed["wqkv"] = stack(lambda lp: jnp.concatenate(
        [lp["wq"].T, lp["wk"].T, lp["wv"].T], axis=1), weight_dtype)          # (L, E, 3E)
    packed["bqkv"] = stack(lambda lp: jnp.concatenate(
        [lp["bq"], lp["bk"], lp["bv"]]).reshape(1, 3 * E))
    packed["wo"] = stack(lambda lp: lp["wo"].T, weight_dtype)                 # (L, E, E)
    packed["bo"] = stack(lambda lp: lp["bo"].reshape(1, E))
    packed["ln2_g"] = stack(lambda lp: lp["ln2_g"].reshape(1, E))
    packed["ln2_b"] = stack(lambda lp: lp["ln2_b"].reshape(1, E))
    packed["w1"] = stack(lambda lp: lp["w1"].T, weight_dtype)                 # (L, E, F)
    packed["b1"] = stack(lambda lp: lp["b1"].reshape(1, -1))
    packed["w2"] = stack(lambda lp: lp["w2"].T, weight_dtype)                 # (L, F, E)
    packed["b2"] = stack(lambda lp: lp["b2"].reshape(1, E))
    return packed


# ------------------------------- Forward pass -------------------------------

def transformer2d_forward(x_nchw, pk, *, patch_size, num_heads, extract_layers):
    """Transformer2D.forward. x_nchw:(N,Cin,H,W) f32 -> tuple of (N,P,E) hidden states."""
    N, C, H, W = x_nchw.shape
    p = patch_size
    Hp, Wp = H // p, W // p
    P = Hp * Wp
    E = pk["patch_b"].shape[-1]

    # ---- Embeddings2D: non-overlapping patch conv == per-patch GEMM.
    #      Patchify is a pure reshape/transpose of the (small) input.
    xp = x_nchw.reshape(N, C, Hp, p, Wp, p)
    xp = xp.transpose(0, 2, 4, 1, 3, 5).reshape(N, P, C * p * p)     # (N, P, C*p*p)
    hidden0 = patch_embed(xp, pk["patch_w"], pk["patch_b"], pk["pos"]).reshape(N * P, E)
    # TODO(synk): all nn.Dropout layers are treated as identity (inference semantics);
    #             no torch-RNG-compatible dropout in the kernels.

    # ---- all transformer layers in a single fused pallas_call.
    layer_out = transformer_stack(hidden0, pk, num_heads=num_heads,
                                  n_batch=N, n_patch=P)              # (L, N*P, E)
    L = layer_out.shape[0]
    return tuple(layer_out[d].reshape(N, P, E)
                 for d in range(L) if (d + 1) in extract_layers)


# ------------------------------ NumPy reference ------------------------------

def _ln_ref(x, g, b, eps=1e-6):
    mu = x.mean(-1, keepdims=True)
    var = x.var(-1, keepdims=True)
    return (x - mu) / np.sqrt(var + eps) * g + b


def reference(x, params, *, patch_size, num_heads, extract_layers):
    x = np.asarray(x, np.float64)
    N, C, H, W = x.shape
    p = patch_size
    Hp, Wp = H // p, W // p
    P = Hp * Wp
    w_pe = np.asarray(params["patch_w"], np.float64)
    E = w_pe.shape[0]
    hd = E // num_heads

    xp = x.reshape(N, C, Hp, p, Wp, p).transpose(0, 2, 4, 1, 3, 5).reshape(N, P, -1)
    h = xp @ w_pe.reshape(E, -1).T + np.asarray(params["patch_b"], np.float64)
    h = h + np.asarray(params["pos"], np.float64).reshape(1, P, E)

    outs = []
    for depth, lp_j in enumerate(params["layers"]):
        lp = {k: np.asarray(v, np.float64) for k, v in lp_j.items()}
        res = h
        xn = _ln_ref(h, lp["ln1_g"], lp["ln1_b"])
        q = xn @ lp["wq"].T + lp["bq"]
        k = xn @ lp["wk"].T + lp["bk"]
        v = xn @ lp["wv"].T + lp["bv"]
        qh = q.reshape(N, P, num_heads, hd).transpose(0, 2, 1, 3)
        kh = k.reshape(N, P, num_heads, hd).transpose(0, 2, 1, 3)
        vh = v.reshape(N, P, num_heads, hd).transpose(0, 2, 1, 3)
        s = qh @ kh.transpose(0, 1, 3, 2) / math.sqrt(hd)
        s = s - s.max(-1, keepdims=True)
        pr = np.exp(s)
        pr = pr / pr.sum(-1, keepdims=True)
        ctx = (pr @ vh).transpose(0, 2, 1, 3).reshape(N, P, E)
        h = ctx @ lp["wo"].T + lp["bo"] + res
        res = h
        xn = _ln_ref(h, lp["ln2_g"], lp["ln2_b"])
        y = np.maximum(xn @ lp["w1"].T + lp["b1"], 0.0)
        h = y @ lp["w2"].T + lp["b2"] + res
        if depth + 1 in extract_layers:
            outs.append(h)
    return outs


# ------------------------------------ Main ------------------------------------

if __name__ == "__main__":
    # Small but representative config: lane-dense embed_dim (multiple of 128).
    N, C, H, W = 2, 4, 32, 32
    patch_size = 4
    embed_dim = 128
    num_heads = 4
    num_layers = 3
    d_ff = 2048                      # PositionwiseFeedForward default in the module
    extract_layers = (1, 3)
    P = (H // patch_size) * (W // patch_size)

    keys = iter(jax.random.split(jax.random.PRNGKey(0), 64))

    def rnd(shape, scale=0.05):
        return jax.random.normal(next(keys), shape, jnp.float32) * scale

    x = jax.random.normal(next(keys), (N, C, H, W), jnp.float32)
    params = {
        # PyTorch parameter shapes: Conv2d(E,C,p,p), Linear(out,in), etc.
        "patch_w": rnd((embed_dim, C, patch_size, patch_size)),
        "patch_b": rnd((embed_dim,)),
        # position_embeddings is zero-initialized in the module; randomized here
        # so the add path is actually exercised.
        "pos": rnd((1, P, embed_dim)),
        "layers": [],
    }
    for _ in range(num_layers):
        params["layers"].append({
            "ln1_g": jnp.ones((embed_dim,), jnp.float32),
            "ln1_b": jnp.zeros((embed_dim,), jnp.float32),
            "wq": rnd((embed_dim, embed_dim)), "bq": rnd((embed_dim,)),
            "wk": rnd((embed_dim, embed_dim)), "bk": rnd((embed_dim,)),
            "wv": rnd((embed_dim, embed_dim)), "bv": rnd((embed_dim,)),
            "wo": rnd((embed_dim, embed_dim)), "bo": rnd((embed_dim,)),
            "ln2_g": jnp.ones((embed_dim,), jnp.float32),
            "ln2_b": jnp.zeros((embed_dim,), jnp.float32),
            "w1": rnd((d_ff, embed_dim)), "b1": rnd((d_ff,)),
            "w2": rnd((embed_dim, d_ff)), "b2": rnd((embed_dim,)),
        })

    # One-time weight repacking (outside jit): transpose/concat/stack/bf16-cast.
    packed = pack_params(params)

    fwd = jax.jit(functools.partial(transformer2d_forward,
                                    patch_size=patch_size,
                                    num_heads=num_heads,
                                    extract_layers=extract_layers))
    outs = jax.block_until_ready(fwd(x, packed))

    refs = reference(x, params, patch_size=patch_size,
                     num_heads=num_heads, extract_layers=extract_layers)
    assert len(outs) == len(refs) == len(extract_layers)
    # Tolerance reflects bf16 weight/activation storage (f32 accumulation) vs the
    # f64 reference with f32 weights; genuine bugs produce O(1) errors, far above this.
    for o, r in zip(outs, refs):
        np.testing.assert_allclose(np.asarray(o), r, rtol=3e-2, atol=3e-2)
    print("KERNEL_OK")
</pallas_src>

<mosaic_0001>
module attributes {stable_mosaic.version = 11 : i64} {
  func.func @_patch_embed_kernel(%arg0: i32, %arg1: memref<1x64x64xf32, #tpu.memory_space<vmem>>, %arg2: memref<64x128xbf16, #tpu.memory_space<vmem>>, %arg3: memref<1x128xf32, #tpu.memory_space<vmem>>, %arg4: memref<64x128xf32, #tpu.memory_space<vmem>>, %arg5: memref<1x64x128xf32, #tpu.memory_space<vmem>>) attributes {dimension_semantics = [#tpu.dimension_semantics<parallel>], iteration_bounds = array<i64: 2>, scalar_prefetch = 0 : i64, scratch_operands = 0 : i64, tpu.core_type = #tpu.core_type<tc>, window_params = [{transform_indices = @transform_0, window_bounds = array<i64: 1, 64, 64>}, {pipeline_mode = #tpu.pipeline_mode<synchronous>, transform_indices = @transform_1, window_bounds = array<i64: 64, 128>}, {pipeline_mode = #tpu.pipeline_mode<synchronous>, transform_indices = @transform_2, window_bounds = array<i64: 1, 128>}, {pipeline_mode = #tpu.pipeline_mode<synchronous>, transform_indices = @transform_3, window_bounds = array<i64: 64, 128>}, {transform_indices = @transform_4, window_bounds = array<i64: 1, 64, 128>}]} {
    %c0 = arith.constant 0 : index
    %c0_0 = arith.constant 0 : index
    %c0_1 = arith.constant 0 : index
    %0 = vector.load %arg1[%c0, %c0_0, %c0_1] : memref<1x64x64xf32, #tpu.memory_space<vmem>>, vector<1x64x64xf32>
    %1 = vector.shape_cast %0 : vector<1x64x64xf32> to vector<64x64xf32>
    %2 = arith.truncf %1 : vector<64x64xf32> to vector<64x64xbf16>
    %c0_2 = arith.constant 0 : index
    %c0_3 = arith.constant 0 : index
    %3 = vector.load %arg2[%c0_2, %c0_3] : memref<64x128xbf16, #tpu.memory_space<vmem>>, vector<64x128xbf16>
    %cst = arith.constant dense<0.000000e+00> : vector<64x128xf32>
    %4 = tpu.matmul %2, %3, %cst {dimension_numbers = #tpu.dot_dimension_numbers<[1], [0], [0], [1], [0, 0, 1, 1], [], []>} : vector<64x64xbf16>, vector<64x128xbf16>, vector<64x128xf32> -> vector<64x128xf32>
    %c0_4 = arith.constant 0 : index
    %c0_5 = arith.constant 0 : index
    %5 = vector.load %arg3[%c0_4, %c0_5] : memref<1x128xf32, #tpu.memory_space<vmem>>, vector<1x128xf32>
    %6 = vector.broadcast %5 : vector<1x128xf32> to vector<64x128xf32>
    %7 = arith.addf %4, %6 : vector<64x128xf32>
    %c0_6 = arith.constant 0 : index
    %c0_7 = arith.constant 0 : index
    %8 = vector.load %arg4[%c0_6, %c0_7] : memref<64x128xf32, #tpu.memory_space<vmem>>, vector<64x128xf32>
    %9 = arith.addf %7, %8 : vector<64x128xf32>
    %c0_8 = arith.constant 0 : index
    %c0_9 = arith.constant 0 : index
    %c0_10 = arith.constant 0 : index
    %10 = vector.load %arg5[%c0_8, %c0_9, %c0_10] : memref<1x64x128xf32, #tpu.memory_space<vmem>>, vector<1x64x128xf32>
    %11 = vector.shape_cast %10 : vector<1x64x128xf32> to vector<64x128xf32>
    %12 = vector.shape_cast %9 : vector<64x128xf32> to vector<1x64x128xf32>
    tpu.vector_store %arg5[%c0_8, %c0_9, %c0_10], %12 {strides = array<i32>} : memref<1x64x128xf32, #tpu.memory_space<vmem>>, vector<1x64x128xf32>,
    return
  }
  func.func @transform_0(%arg0: i32) -> (i32, i32, i32) {
    %c0_i32 = arith.constant 0 : i32
    %c0_i32_0 = arith.constant 0 : i32
    %c0_i32_1 = arith.constant 0 : i32
    return %arg0, %c0_i32, %c0_i32_0 : i32, i32, i32
  }
  func.func @transform_1(%arg0: i32) -> (i32, i32) {
    %c0_i32 = arith.constant 0 : i32
    %c0_i32_0 = arith.constant 0 : i32
    %c0_i32_1 = arith.constant 0 : i32
    return %c0_i32, %c0_i32_0 : i32, i32
  }
  func.func @transform_2(%arg0: i32) -> (i32, i32) {
    %c0_i32 = arith.constant 0 : i32
    %c0_i32_0 = arith.constant 0 : i32
    %c0_i32_1 = arith.constant 0 : i32
    return %c0_i32, %c0_i32_0 : i32, i32
  }
  func.func @transform_3(%arg0: i32) -> (i32, i32) {
    %c0_i32 = arith.constant 0 : i32
    %c0_i32_0 = arith.constant 0 : i32
    %c0_i32_1 = arith.constant 0 : i32
    return %c0_i32, %c0_i32_0 : i32, i32
  }
  func.func @transform_4(%arg0: i32) -> (i32, i32, i32) {
    %c0_i32 = arith.constant 0 : i32
    %c0_i32_0 = arith.constant 0 : i32
    %c0_i32_1 = arith.constant 0 : i32
    return %arg0, %c0_i32, %c0_i32_0 : i32, i32, i32
  }
}

module attributes {stable_mosaic.version = 11 : i64} {
  func.func @_layer_stack_kernel(%arg0: i32, %arg1: memref<128x128xf32, #tpu.memory_space<vmem>>, %arg2: memref<1x1x128xf32, #tpu.memory_space<vmem>>, %arg3: memref<1x1x128xf32, #tpu.memory_space<vmem>>, %arg4: memref<1x128x384xbf16, #tpu.memory_space<vmem>>, %arg5: memref<1x1x384xf32, #tpu.memory_space<vmem>>, %arg6: memref<1x128x128xbf16, #tpu.memory_space<vmem>>, %arg7: memref<1x1x128xf32, #tpu.memory_space<vmem>>, %arg8: memref<1x1x128xf32, #tpu.memory_space<vmem>>, %arg9: memref<1x1x128xf32, #tpu.memory_space<vmem>>, %arg10: memref<1x128x2048xbf16, #tpu.memory_space<vmem>>, %arg11: memref<1x1x2048xf32, #tpu.memory_space<vmem>>, %arg12: memref<1x2048x128xbf16, #tpu.memory_space<vmem>>, %arg13: memref<1x1x128xf32, #tpu.memory_space<vmem>>, %arg14: memref<1x128x128xf32, #tpu.memory_space<vmem>>, %arg15: memref<128x128xf32, #tpu.memory_space<vmem>>, %arg16: memref<128x128xf32, #tpu.memory_space<vmem>>) attributes {dimension_semantics = [#tpu.dimension_semantics<arbitrary>], iteration_bounds = array<i64: 3>, scalar_prefetch = 0 : i64, scratch_operands = 2 : i64, tpu.core_type = #tpu.core_type<tc>, window_params = [{pipeline_mode = #tpu.pipeline_mode<synchronous>, transform_indices = @transform_0, window_bounds = array<i64: 128, 128>}, {transform_indices = @transform_1, window_bounds = array<i64: 1, 1, 128>}, {transform_indices = @transform_2, window_bounds = array<i64: 1, 1, 128>}, {transform_indices = @transform_3, window_bounds = array<i64: 1, 128, 384>}, {transform_indices = @transform_4, window_bounds = array<i64: 1, 1, 384>}, {transform_indices = @transform_5, window_bounds = array<i64: 1, 128, 128>}, {transform_indices = @transform_6, window_bounds = array<i64: 1, 1, 128>}, {transform_indices = @transform_7, window_bounds = array<i64: 1, 1, 128>}, {transform_indices = @transform_8, window_bounds = array<i64: 1, 1, 128>}, {transform_indices = @transform_9, window_bounds = array<i64: 1, 128, 2048>}, {transform_indices = @transform_10, window_bounds = array<i64: 1, 1, 2048>}, {transform_indices = @transform_11, window_bounds = array<i64: 1, 2048, 128>}, {transform_indices = @transform_12, window_bounds = array<i64: 1, 1, 128>}, {transform_indices = @transform_13, window_bounds = array<i64: 1, 128, 128>}]} {
    %c0_i32 = arith.constant 0 : i32
    %0 = arith.cmpi eq, %arg0, %c0_i32 : i32
    %1 = arith.extui %0 : i1 to i32
    %c0_i32_0 = arith.constant 0 : i32
    %2 = arith.cmpi ne, %1, %c0_i32_0 : i32
    scf.if %2 {
      %c0_112 = arith.constant 0 : index
      %c0_113 = arith.constant 0 : index
      %269 = vector.load %arg1[%c0_112, %c0_113] : memref<128x128xf32, #tpu.memory_space<vmem>>, vector<128x128xf32>
      %c0_114 = arith.constant 0 : index
      %c0_115 = arith.constant 0 : index
      %270 = vector.load %arg15[%c0_114, %c0_115] : memref<128x128xf32, #tpu.memory_space<vmem>>, vector<128x128xf32>
      tpu.vector_store %arg15[%c0_114, %c0_115], %269 {strides = array<i32>} : memref<128x128xf32, #tpu.memory_space<vmem>>, vector<128x128xf32>,
    } else {
    }
    %c0 = arith.constant 0 : index
    %c0_1 = arith.constant 0 : index
    %3 = vector.load %arg15[%c0, %c0_1] : memref<128x128xf32, #tpu.memory_space<vmem>>, vector<128x128xf32>
    %c0_2 = arith.constant 0 : index
    %c0_3 = arith.constant 0 : index
    %c0_4 = arith.constant 0 : index
    %4 = vector.load %arg2[%c0_2, %c0_3, %c0_4] : memref<1x1x128xf32, #tpu.memory_space<vmem>>, vector<1x1x128xf32>
    %5 = vector.shape_cast %4 : vector<1x1x128xf32> to vector<1x128xf32>
    %c0_5 = arith.constant 0 : index
    %c0_6 = arith.constant 0 : index
    %c0_7 = arith.constant 0 : index
    %6 = vector.load %arg3[%c0_5, %c0_6, %c0_7] : memref<1x1x128xf32, #tpu.memory_space<vmem>>, vector<1x1x128xf32>
    %7 = vector.shape_cast %6 : vector<1x1x128xf32> to vector<1x128xf32>
    %cst = arith.constant dense<0.000000e+00> : vector<128xf32>
    %8 = vector.multi_reduction <add>, %3, %cst [1] : vector<128x128xf32> to vector<128xf32>
    %9 = vector.shape_cast %8 : vector<128xf32> to vector<128x1xf32>
    %cst_8 = arith.constant 1.280000e+02 : f32
    %10 = vector.broadcast %cst_8 : f32 to vector<128x1xf32>
    %11 = arith.divf %9, %10 : vector<128x1xf32>
    %12 = vector.broadcast %11 : vector<128x1xf32> to vector<128x128xf32>
    %13 = arith.subf %3, %12 : vector<128x128xf32>
    %14 = arith.mulf %13, %13 : vector<128x128xf32>
    %cst_9 = arith.constant dense<0.000000e+00> : vector<128xf32>
    %15 = vector.multi_reduction <add>, %14, %cst_9 [1] : vector<128x128xf32> to vector<128xf32>
    %16 = vector.shape_cast %15 : vector<128xf32> to vector<128x1xf32>
    %cst_10 = arith.constant 1.280000e+02 : f32
    %17 = vector.broadcast %cst_10 : f32 to vector<128x1xf32>
    %18 = arith.divf %16, %17 : vector<128x1xf32>
    %cst_11 = arith.constant 9.99999997E-7 : f32
    %19 = vector.broadcast %cst_11 : f32 to vector<128x1xf32>
    %20 = arith.addf %18, %19 : vector<128x1xf32>
    %21 = math.rsqrt %20 : vector<128x1xf32>
    %22 = vector.broadcast %21 : vector<128x1xf32> to vector<128x128xf32>
    %23 = arith.mulf %13, %22 : vector<128x128xf32>
    %24 = vector.broadcast %5 : vector<1x128xf32> to vector<128x128xf32>
    %25 = arith.mulf %23, %24 : vector<128x128xf32>
    %26 = vector.broadcast %7 : vector<1x128xf32> to vector<128x128xf32>
    %27 = arith.addf %25, %26 : vector<128x128xf32>
    %28 = arith.truncf %27 : vector<128x128xf32> to vector<128x128xbf16>
    %c0_12 = arith.constant 0 : index
    %c0_13 = arith.constant 0 : index
    %c0_14 = arith.constant 0 : index
    %29 = vector.load %arg4[%c0_12, %c0_13, %c0_14] : memref<1x128x384xbf16, #tpu.memory_space<vmem>>, vector<1x128x384xbf16>
    %30 = vector.shape_cast %29 : vector<1x128x384xbf16> to vector<128x384xbf16>
    %cst_15 = arith.constant dense<0.000000e+00> : vector<128x384xf32>
    %31 = tpu.matmul %28, %30, %cst_15 {dimension_numbers = #tpu.dot_dimension_numbers<[1], [0], [0], [1], [0, 0, 1, 1], [], []>} : vector<128x128xbf16>, vector<128x384xbf16>, vector<128x384xf32> -> vector<128x384xf32>
    %c0_16 = arith.constant 0 : index
    %c0_17 = arith.constant 0 : index
    %c0_18 = arith.constant 0 : index
    %32 = vector.load %arg5[%c0_16, %c0_17, %c0_18] : memref<1x1x384xf32, #tpu.memory_space<vmem>>, vector<1x1x384xf32>
    %33 = vector.shape_cast %32 : vector<1x1x384xf32> to vector<1x384xf32>
    %34 = vector.broadcast %33 : vector<1x384xf32> to vector<128x384xf32>
    %35 = arith.addf %31, %34 : vector<128x384xf32>
    %36 = vector.extract_strided_slice %35 {offsets = [0, 0], sizes = [64, 32], strides = [1, 1]} : vector<128x384xf32> to vector<64x32xf32>
    %37 = arith.truncf %36 : vector<64x32xf32> to vector<64x32xbf16>
    %38 = vector.extract_strided_slice %35 {offsets = [0, 128], sizes = [64, 32], strides = [1, 1]} : vector<128x384xf32> to vector<64x32xf32>
    %39 = arith.truncf %38 : vector<64x32xf32> to vector<64x32xbf16>
    %40 = vector.extract_strided_slice %35 {offsets = [0, 256], sizes = [64, 32], strides = [1, 1]} : vector<128x384xf32> to vector<64x32xf32>
    %41 = arith.truncf %40 : vector<64x32xf32> to vector<64x32xbf16>
    %cst_19 = arith.constant dense<0.000000e+00> : vector<64x64xf32>
    %42 = tpu.matmul %37, %39, %cst_19 {dimension_numbers = #tpu.dot_dimension_numbers<[1], [1], [0], [0], [0, 0, 1, 0], [], []>} : vector<64x32xbf16>, vector<64x32xbf16>, vector<64x64xf32> -> vector<64x64xf32>
    %cst_20 = arith.constant 0.176776692 : f32
    %43 = vector.broadcast %cst_20 : f32 to vector<64x64xf32>
    %44 = arith.mulf %42, %43 : vector<64x64xf32>
    %cst_21 = arith.constant dense<0xFF800000> : vector<64xf32>
    %45 = vector.multi_reduction <maximumf>, %44, %cst_21 [1] : vector<64x64xf32> to vector<64xf32>
    %46 = vector.shape_cast %45 : vector<64xf32> to vector<64x1xf32>
    %47 = vector.broadcast %46 : vector<64x1xf32> to vector<64x64xf32>
    %48 = arith.subf %44, %47 : vector<64x64xf32>
    %49 = math.exp %48 : vector<64x64xf32>
    %cst_22 = arith.constant dense<0.000000e+00> : vector<64xf32>
    %50 = vector.multi_reduction <add>, %49, %cst_22 [1] : vector<64x64xf32> to vector<64xf32>
    %51 = vector.shape_cast %50 : vector<64xf32> to vector<64x1xf32>
    %52 = tpu.reciprocal %51 {approx = true} : vector<64x1xf32> -> vector<64x1xf32>
    %53 = vector.broadcast %52 : vector<64x1xf32> to vector<64x64xf32>
    %54 = arith.mulf %49, %53 : vector<64x64xf32>
    %55 = arith.truncf %54 : vector<64x64xf32> to vector<64x64xbf16>
    %cst_23 = arith.constant dense<0.000000e+00> : vector<64x32xf32>
    %56 = tpu.matmul %55, %41, %cst_23 {dimension_numbers = #tpu.dot_dimension_numbers<[1], [0], [0], [1], [0, 0, 1, 1], [], []>} : vector<64x64xbf16>, vector<64x32xbf16>, vector<64x32xf32> -> vector<64x32xf32>
    %c0_24 = arith.constant 0 : index
    %c0_25 = arith.constant 0 : index
    %57 = vector.load %arg16[%c0_24, %c0_25] : memref<128x128xf32, #tpu.memory_space<vmem>>, vector<64x32xf32>
    tpu.vector_store %arg16[%c0_24, %c0_25], %56 {strides = array<i32>} : memref<128x128xf32, #tpu.memory_space<vmem>>, vector<64x32xf32>,
    %58 = vector.extract_strided_slice %35 {offsets = [0, 32], sizes = [64, 32], strides = [1, 1]} : vector<128x384xf32> to vector<64x32xf32>
    %59 = arith.truncf %58 : vector<64x32xf32> to vector<64x32xbf16>
    %60 = vector.extract_strided_slice %35 {offsets = [0, 160], sizes = [64, 32], strides = [1, 1]} : vector<128x384xf32> to vector<64x32xf32>
    %61 = arith.truncf %60 : vector<64x32xf32> to vector<64x32xbf16>
    %62 = vector.extract_strided_slice %35 {offsets = [0, 288], sizes = [64, 32], strides = [1, 1]} : vector<128x384xf32> to vector<64x32xf32>
    %63 = arith.truncf %62 : vector<64x32xf32> to vector<64x32xbf16>
    %cst_26 = arith.constant dense<0.000000e+00> : vector<64x64xf32>
    %64 = tpu.matmul %59, %61, %cst_26 {dimension_numbers = #tpu.dot_dimension_numbers<[1], [1], [0], [0], [0, 0, 1, 0], [], []>} : vector<64x32xbf16>, vector<64x32xbf16>, vector<64x64xf32> -> vector<64x64xf32>
    %cst_27 = arith.constant 0.176776692 : f32
    %65 = vector.broadcast %cst_27 : f32 to vector<64x64xf32>
    %66 = arith.mulf %64, %65 : vector<64x64xf32>
    %cst_28 = arith.constant dense<0xFF800000> : vector<64xf32>
    %67 = vector.multi_reduction <maximumf>, %66, %cst_28 [1] : vector<64x64xf32> to vector<64xf32>
    %68 = vector.shape_cast %67 : vector<64xf32> to vector<64x1xf32>
    %69 = vector.broadcast %68 : vector<64x1xf32> to vector<64x64xf32>
    %70 = arith.subf %66, %69 : vector<64x64xf32>
    %71 = math.exp %70 : vector<64x64xf32>
    %cst_29 = arith.constant dense<0.000000e+00> : vector<64xf32>
    %72 = vector.multi_reduction <add>, %71, %cst_29 [1] : vector<64x64xf32> to vector<64xf32>
    %73 = vector.shape_cast %72 : vector<64xf32> to vector<64x1xf32>
    %74 = tpu.reciprocal %73 {approx = true} : vector<64x1xf32> -> vector<64x1xf32>
    %75 = vector.broadcast %74 : vector<64x1xf32> to vector<64x64xf32>
    %76 = arith.mulf %71, %75 : vector<64x64xf32>
    %77 = arith.truncf %76 : vector<64x64xf32> to vector<64x64xbf16>
    %cst_30 = arith.constant dense<0.000000e+00> : vector<64x32xf32>
    %78 = tpu.matmul %77, %63, %cst_30 {dimension_numbers = #tpu.dot_dimension_numbers<[1], [0], [0], [1], [0, 0, 1, 1], [], []>} : vector<64x64xbf16>, vector<64x32xbf16>, vector<64x32xf32> -> vector<64x32xf32>
    %c0_31 = arith.constant 0 : index
    %c32 = arith.constant 32 : index
    %79 = vector.load %arg16[%c0_31, %c32] : memref<128x128xf32, #tpu.memory_space<vmem>>, vector<64x32xf32>
    tpu.vector_store %arg16[%c0_31, %c32], %78 {strides = array<i32>} : memref<128x128xf32, #tpu.memory_space<vmem>>, vector<64x32xf32>,
    %80 = vector.extract_strided_slice %35 {offsets = [0, 64], sizes = [64, 32], strides = [1, 1]} : vector<128x384xf32> to vector<64x32xf32>
    %81 = arith.truncf %80 : vector<64x32xf32> to vector<64x32xbf16>
    %82 = vector.extract_strided_slice %35 {offsets = [0, 192], sizes = [64, 32], strides = [1, 1]} : vector<128x384xf32> to vector<64x32xf32>
    %83 = arith.truncf %82 : vector<64x32xf32> to vector<64x32xbf16>
    %84 = vector.extract_strided_slice %35 {offsets = [0, 320], sizes = [64, 32], strides = [1, 1]} : vector<128x384xf32> to vector<64x32xf32>
    %85 = arith.truncf %84 : vector<64x32xf32> to vector<64x32xbf16>
    %cst_32 = arith.constant dense<0.000000e+00> : vector<64x64xf32>
    %86 = tpu.matmul %81, %83, %cst_32 {dimension_numbers = #tpu.dot_dimension_numbers<[1], [1], [0], [0], [0, 0, 1, 0], [], []>} : vector<64x32xbf16>, vector<64x32xbf16>, vector<64x64xf32> -> vector<64x64xf32>
    %cst_33 = arith.constant 0.176776692 : f32
    %87 = vector.broadcast %cst_33 : f32 to vector<64x64xf32>
    %88 = arith.mulf %86, %87 : vector<64x64xf32>
    %cst_34 = arith.constant dense<0xFF800000> : vector<64xf32>
    %89 = vector.multi_reduction <maximumf>, %88, %cst_34 [1] : vector<64x64xf32> to vector<64xf32>
    %90 = vector.shape_cast %89 : vector<64xf32> to vector<64x1xf32>
    %91 = vector.broadcast %90 : vector<64x1xf32> to vector<64x64xf32>
    %92 = arith.subf %88, %91 : vector<64x64xf32>
    %93 = math.exp %92 : vector<64x64xf32>
    %cst_35 = arith.constant dense<0.000000e+00> : vector<64xf32>
    %94 = vector.multi_reduction <add>, %93, %cst_35 [1] : vector<64x64xf32> to vector<64xf32>
    %95 = vector.shape_cast %94 : vector<64xf32> to vector<64x1xf32>
    %96 = tpu.reciprocal %95 {approx = true} : vector<64x1xf32> -> vector<64x1xf32>
    %97 = vector.broadcast %96 : vector<64x1xf32> to vector<64x64xf32>
    %98 = arith.mulf %93, %97 : vector<64x64xf32>
    %99 = arith.truncf %98 : vector<64x64xf32> to vector<64x64xbf16>
    %cst_36 = arith.constant dense<0.000000e+00> : vector<64x32xf32>
    %100 = tpu.matmul %99, %85, %cst_36 {dimension_numbers = #tpu.dot_dimension_numbers<[1], [0], [0], [1], [0, 0, 1, 1], [], []>} : vector<64x64xbf16>, vector<64x32xbf16>, vector<64x32xf32> -> vector<64x32xf32>
    %c0_37 = arith.constant 0 : index
    %c64 = arith.constant 64 : index
    %101 = vector.load %arg16[%c0_37, %c64] : memref<128x128xf32, #tpu.memory_space<vmem>>, vector<64x32xf32>
    tpu.vector_store %arg16[%c0_37, %c64], %100 {strides = array<i32>} : memref<128x128xf32, #tpu.memory_space<vmem>>, vector<64x32xf32>,
    %102 = vector.extract_strided_slice %35 {offsets = [0, 96], sizes = [64, 32], strides = [1, 1]} : vector<128x384xf32> to vector<64x32xf32>
    %103 = arith.truncf %102 : vector<64x32xf32> to vector<64x32xbf16>
    %104 = vector.extract_strided_slice %35 {offsets = [0, 224], sizes = [64, 32], strides = [1, 1]} : vector<128x384xf32> to vector<64x32xf32>
    %105 = arith.truncf %104 : vector<64x32xf32> to vector<64x32xbf16>
    %106 = vector.extract_strided_slice %35 {offsets = [0, 352], sizes = [64, 32], strides = [1, 1]} : vector<128x384xf32> to vector<64x32xf32>
    %107 = arith.truncf %106 : vector<64x32xf32> to vector<64x32xbf16>
    %cst_38 = arith.constant dense<0.000000e+00> : vector<64x64xf32>
    %108 = tpu.matmul %103, %105, %cst_38 {dimension_numbers = #tpu.dot_dimension_numbers<[1], [1], [0], [0], [0, 0, 1, 0], [], []>} : vector<64x32xbf16>, vector<64x32xbf16>, vector<64x64xf32> -> vector<64x64xf32>
    %cst_39 = arith.constant 0.176776692 : f32
    %109 = vector.broadcast %cst_39 : f32 to vector<64x64xf32>
    %110 = arith.mulf %108, %109 : vector<64x64xf32>
    %cst_40 = arith.constant dense<0xFF800000> : vector<64xf32>
    %111 = vector.multi_reduction <maximumf>, %110, %cst_40 [1] : vector<64x64xf32> to vector<64xf32>
    %112 = vector.shape_cast %111 : vector<64xf32> to vector<64x1xf32>
    %113 = vector.broadcast %112 : vector<64x1xf32> to vector<64x64xf32>
    %114 = arith.subf %110, %113 : vector<64x64xf32>
    %115 = math.exp %114 : vector<64x64xf32>
    %cst_41 = arith.constant dense<0.000000e+00> : vector<64xf32>
    %116 = vector.multi_reduction <add>, %115, %cst_41 [1] : vector<64x64xf32> to vector<64xf32>
    %117 = vector.shape_cast %116 : vector<64xf32> to vector<64x1xf32>
    %118 = tpu.reciprocal %117 {approx = true} : vector<64x1xf32> -> vector<64x1xf32>
    %119 = vector.broadcast %118 : vector<64x1xf32> to vector<64x64xf32>
    %120 = arith.mulf %115, %119 : vector<64x64xf32>
    %121 = arith.truncf %120 : vector<64x64xf32> to vector<64x64xbf16>
    %cst_42 = arith.constant dense<0.000000e+00> : vector<64x32xf32>
    %122 = tpu.matmul %121, %107, %cst_42 {dimension_numbers = #tpu.dot_dimension_numbers<[1], [0], [0], [1], [0, 0, 1, 1], [], []>} : vector<64x64xbf16>, vector<64x32xbf16>, vector<64x32xf32> -> vector<64x32xf32>
    %c0_43 = arith.constant 0 : index
    %c96 = arith.constant 96 : index
    %123 = vector.load %arg16[%c0_43, %c96] : memref<128x128xf32, #tpu.memory_space<vmem>>, vector<64x32xf32>
    tpu.vector_store %arg16[%c0_43, %c96], %122 {strides = array<i32>} : memref<128x128xf32, #tpu.memory_space<vmem>>, vector<64x32xf32>,
    %124 = vector.extract_strided_slice %35 {offsets = [64, 0], sizes = [64, 32], strides = [1, 1]} : vector<128x384xf32> to vector<64x32xf32>
    %125 = arith.truncf %124 : vector<64x32xf32> to vector<64x32xbf16>
    %126 = vector.extract_strided_slice %35 {offsets = [64, 128], sizes = [64, 32], strides = [1, 1]} : vector<128x384xf32> to vector<64x32xf32>
    %127 = arith.truncf %126 : vector<64x32xf32> to vector<64x32xbf16>
    %128 = vector.extract_strided_slice %35 {offsets = [64, 256], sizes = [64, 32], strides = [1, 1]} : vector<128x384xf32> to vector<64x32xf32>
    %129 = arith.truncf %128 : vector<64x32xf32> to vector<64x32xbf16>
    %cst_44 = arith.constant dense<0.000000e+00> : vector<64x64xf32>
    %130 = tpu.matmul %125, %127, %cst_44 {dimension_numbers = #tpu.dot_dimension_numbers<[1], [1], [0], [0], [0, 0, 1, 0], [], []>} : vector<64x32xbf16>, vector<64x32xbf16>, vector<64x64xf32> -> vector<64x64xf32>
    %cst_45 = arith.constant 0.176776692 : f32
    %131 = vector.broadcast %cst_45 : f32 to vector<64x64xf32>
    %132 = arith.mulf %130, %131 : vector<64x64xf32>
    %cst_46 = arith.constant dense<0xFF800000> : vector<64xf32>
    %133 = vector.multi_reduction <maximumf>, %132, %cst_46 [1] : vector<64x64xf32> to vector<64xf32>
    %134 = vector.shape_cast %133 : vector<64xf32> to vector<64x1xf32>
    %135 = vector.broadcast %134 : vector<64x1xf32> to vector<64x64xf32>
    %136 = arith.subf %132, %135 : vector<64x64xf32>
    %137 = math.exp %136 : vector<64x64xf32>
    %cst_47 = arith.constant dense<0.000000e+00> : vector<64xf32>
    %138 = vector.multi_reduction <add>, %137, %cst_47 [1] : vector<64x64xf32> to vector<64xf32>
    %139 = vector.shape_cast %138 : vector<64xf32> to vector<64x1xf32>
    %140 = tpu.reciprocal %139 {approx = true} : vector<64x1xf32> -> vector<64x1xf32>
    %141 = vector.broadcast %140 : vector<64x1xf32> to vector<64x64xf32>
    %142 = arith.mulf %137, %141 : vector<64x64xf32>
    %143 = arith.truncf %142 : vector<64x64xf32> to vector<64x64xbf16>
    %cst_48 = arith.constant dense<0.000000e+00> : vector<64x32xf32>
    %144 = tpu.matmul %143, %129, %cst_48 {dimension_numbers = #tpu.dot_dimension_numbers<[1], [0], [0], [1], [0, 0, 1, 1], [], []>} : vector<64x64xbf16>, vector<64x32xbf16>, vector<64x32xf32> -> vector<64x32xf32>
    %c64_49 = arith.constant 64 : index
    %c0_50 = arith.constant 0 : index
    %145 = vector.load %arg16[%c64_49, %c0_50] : memref<128x128xf32, #tpu.memory_space<vmem>>, vector<64x32xf32>
    tpu.vector_store %arg16[%c64_49, %c0_50], %144 {strides = array<i32>} : memref<128x128xf32, #tpu.memory_space<vmem>>, vector<64x32xf32>,
    %146 = vector.extract_strided_slice %35 {offsets = [64, 32], sizes = [64, 32], strides = [1, 1]} : vector<128x384xf32> to vector<64x32xf32>
    %147 = arith.truncf %146 : vector<64x32xf32> to vector<64x32xbf16>
    %148 = vector.extract_strided_slice %35 {offsets = [64, 160], sizes = [64, 32], strides = [1, 1]} : vector<128x384xf32> to vector<64x32xf32>
    %149 = arith.truncf %148 : vector<64x32xf32> to vector<64x32xbf16>
    %150 = vector.extract_strided_slice %35 {offsets = [64, 288], sizes = [64, 32], strides = [1, 1]} : vector<128x384xf32> to vector<64x32xf32>
    %151 = arith.truncf %150 : vector<64x32xf32> to vector<64x32xbf16>
    %cst_51 = arith.constant dense<0.000000e+00> : vector<64x64xf32>
    %152 = tpu.matmul %147, %149, %cst_51 {dimension_numbers = #tpu.dot_dimension_numbers<[1], [1], [0], [0], [0, 0, 1, 0], [], []>} : vector<64x32xbf16>, vector<64x32xbf16>, vector<64x64xf32> -> vector<64x64xf32>
    %cst_52 = arith.constant 0.176776692 : f32
    %153 = vector.broadcast %cst_52 : f32 to vector<64x64xf32>
    %154 = arith.mulf %152, %153 : vector<64x64xf32>
    %cst_53 = arith.constant dense<0xFF800000> : vector<64xf32>
    %155 = vector.multi_reduction <maximumf>, %154, %cst_53 [1] : vector<64x64xf32> to vector<64xf32>
    %156 = vector.shape_cast %155 : vector<64xf32> to vector<64x1xf32>
    %157 = vector.broadcast %156 : vector<64x1xf32> to vector<64x64xf32>
    %158 = arith.subf %154, %157 : vector<64x64xf32>
    %159 = math.exp %158 : vector<64x64xf32>
    %cst_54 = arith.constant dense<0.000000e+00> : vector<64xf32>
    %160 = vector.multi_reduction <add>, %159, %cst_54 [1] : vector<64x64xf32> to vector<64xf32>
    %161 = vector.shape_cast %160 : vector<64xf32> to vector<64x1xf32>
    %162 = tpu.reciprocal %161 {approx = true} : vector<64x1xf32> -> vector<64x1xf32>
    %163 = vector.broadcast %162 : vector<64x1xf32> to vector<64x64xf32>
    %164 = arith.mulf %159, %163 : vector<64x64xf32>
    %165 = arith.truncf %164 : vector<64x64xf32> to vector<64x64xbf16>
    %cst_55 = arith.constant dense<0.000000e+00> : vector<64x32xf32>
    %166 = tpu.matmul %165, %151, %cst_55 {dimension_numbers = #tpu.dot_dimension_numbers<[1], [0], [0], [1], [0, 0, 1, 1], [], []>} : vector<64x64xbf16>, vector<64x32xbf16>, vector<64x32xf32> -> vector<64x32xf32>
    %c64_56 = arith.constant 64 : index
    %c32_57 = arith.constant 32 : index
    %167 = vector.load %arg16[%c64_56, %c32_57] : memref<128x128xf32, #tpu.memory_space<vmem>>, vector<64x32xf32>
    tpu.vector_store %arg16[%c64_56, %c32_57], %166 {strides = array<i32>} : memref<128x128xf32, #tpu.memory_space<vmem>>, vector<64x32xf32>,
    %168 = vector.extract_strided_slice %35 {offsets = [64, 64], sizes = [64, 32], strides = [1, 1]} : vector<128x384xf32> to vector<64x32xf32>
    %169 = arith.truncf %168 : vector<64x32xf32> to vector<64x32xbf16>
    %170 = vector.extract_strided_slice %35 {offsets = [64, 192], sizes = [64, 32], strides = [1, 1]} : vector<128x384xf32> to vector<64x32xf32>
    %171 = arith.truncf %170 : vector<64x32xf32> to vector<64x32xbf16>
    %172 = vector.extract_strided_slice %35 {offsets = [64, 320], sizes = [64, 32], strides = [1, 1]} : vector<128x384xf32> to vector<64x32xf32>
    %173 = arith.truncf %172 : vector<64x32xf32> to vector<64x32xbf16>
    %cst_58 = arith.constant dense<0.000000e+00> : vector<64x64xf32>
    %174 = tpu.matmul %169, %171, %cst_58 {dimension_numbers = #tpu.dot_dimension_numbers<[1], [1], [0], [0], [0, 0, 1, 0], [], []>} : vector<64x32xbf16>, vector<64x32xbf16>, vector<64x64xf32> -> vector<64x64xf32>
    %cst_59 = arith.constant 0.176776692 : f32
    %175 = vector.broadcast %cst_59 : f32 to vector<64x64xf32>
    %176 = arith.mulf %174, %175 : vector<64x64xf32>
    %cst_60 = arith.constant dense<0xFF800000> : vector<64xf32>
    %177 = vector.multi_reduction <maximumf>, %176, %cst_60 [1] : vector<64x64xf32> to vector<64xf32>
    %178 = vector.shape_cast %177 : vector<64xf32> to vector<64x1xf32>
    %179 = vector.broadcast %178 : vector<64x1xf32> to vector<64x64xf32>
    %180 = arith.subf %176, %179 : vector<64x64xf32>
    %181 = math.exp %180 : vector<64x64xf32>
    %cst_61 = arith.constant dense<0.000000e+00> : vector<64xf32>
    %182 = vector.multi_reduction <add>, %181, %cst_61 [1] : vector<64x64xf32> to vector<64xf32>
    %183 = vector.shape_cast %182 : vector<64xf32> to vector<64x1xf32>
    %184 = tpu.reciprocal %183 {approx = true} : vector<64x1xf32> -> vector<64x1xf32>
    %185 = vector.broadcast %184 : vector<64x1xf32> to vector<64x64xf32>
    %186 = arith.mulf %181, %185 : vector<64x64xf32>
    %187 = arith.truncf %186 : vector<64x64xf32> to vector<64x64xbf16>
    %cst_62 = arith.constant dense<0.000000e+00> : vector<64x32xf32>
    %188 = tpu.matmul %187, %173, %cst_62 {dimension_numbers = #tpu.dot_dimension_numbers<[1], [0], [0], [1], [0, 0, 1, 1], [], []>} : vector<64x64xbf16>, vector<64x32xbf16>, vector<64x32xf32> -> vector<64x32xf32>
    %c64_63 = arith.constant 64 : index
    %c64_64 = arith.constant 64 : index
    %189 = vector.load %arg16[%c64_63, %c64_64] : memref<128x128xf32, #tpu.memory_space<vmem>>, vector<64x32xf32>
    tpu.vector_store %arg16[%c64_63, %c64_64], %188 {strides = array<i32>} : memref<128x128xf32, #tpu.memory_space<vmem>>, vector<64x32xf32>,
    %190 = vector.extract_strided_slice %35 {offsets = [64, 96], sizes = [64, 32], strides = [1, 1]} : vector<128x384xf32> to vector<64x32xf32>
    %191 = arith.truncf %190 : vector<64x32xf32> to vector<64x32xbf16>
    %192 = vector.extract_strided_slice %35 {offsets = [64, 224], sizes = [64, 32], strides = [1, 1]} : vector<128x384xf32> to vector<64x32xf32>
    %193 = arith.truncf %192 : vector<64x32xf32> to vector<64x32xbf16>
    %194 = vector.extract_strided_slice %35 {offsets = [64, 352], sizes = [64, 32], strides = [1, 1]} : vector<128x384xf32> to vector<64x32xf32>
    %195 = arith.truncf %194 : vector<64x32xf32> to vector<64x32xbf16>
    %cst_65 = arith.constant dense<0.000000e+00> : vector<64x64xf32>
    %196 = tpu.matmul %191, %193, %cst_65 {dimension_numbers = #tpu.dot_dimension_numbers<[1], [1], [0], [0], [0, 0, 1, 0], [], []>} : vector<64x32xbf16>, vector<64x32xbf16>, vector<64x64xf32> -> vector<64x64xf32>
    %cst_66 = arith.constant 0.176776692 : f32
    %197 = vector.broadcast %cst_66 : f32 to vector<64x64xf32>
    %198 = arith.mulf %196, %197 : vector<64x64xf32>
    %cst_67 = arith.constant dense<0xFF800000> : vector<64xf32>
    %199 = vector.multi_reduction <maximumf>, %198, %cst_67 [1] : vector<64x64xf32> to vector<64xf32>
    %200 = vector.shape_cast %199 : vector<64xf32> to vector<64x1xf32>
    %201 = vector.broadcast %200 : vector<64x1xf32> to vector<64x64xf32>
    %202 = arith.subf %198, %201 : vector<64x64xf32>
    %203 = math.exp %202 : vector<64x64xf32>
    %cst_68 = arith.constant dense<0.000000e+00> : vector<64xf32>
    %204 = vector.multi_reduction <add>, %203, %cst_68 [1] : vector<64x64xf32> to vector<64xf32>
    %205 = vector.shape_cast %204 : vector<64xf32> to vector<64x1xf32>
    %206 = tpu.reciprocal %205 {approx = true} : vector<64x1xf32> -> vector<64x1xf32>
    %207 = vector.broadcast %206 : vector<64x1xf32> to vector<64x64xf32>
    %208 = arith.mulf %203, %207 : vector<64x64xf32>
    %209 = arith.truncf %208 : vector<64x64xf32> to vector<64x64xbf16>
    %cst_69 = arith.constant dense<0.000000e+00> : vector<64x32xf32>
    %210 = tpu.matmul %209, %195, %cst_69 {dimension_numbers = #tpu.dot_dimension_numbers<[1], [0], [0], [1], [0, 0, 1, 1], [], []>} : vector<64x64xbf16>, vector<64x32xbf16>, vector<64x32xf32> -> vector<64x32xf32>
    %c64_70 = arith.constant 64 : index
    %c96_71 = arith.constant 96 : index
    %211 = vector.load %arg16[%c64_70, %c96_71] : memref<128x128xf32, #tpu.memory_space<vmem>>, vector<64x32xf32>
    tpu.vector_store %arg16[%c64_70, %c96_71], %210 {strides = array<i32>} : memref<128x128xf32, #tpu.memory_space<vmem>>, vector<64x32xf32>,
    %c0_72 = arith.constant 0 : index
    %c0_73 = arith.constant 0 : index
    %212 = vector.load %arg16[%c0_72, %c0_73] : memref<128x128xf32, #tpu.memory_space<vmem>>, vector<128x128xf32>
    %213 = arith.truncf %212 : vector<128x128xf32> to vector<128x128xbf16>
    %c0_74 = arith.constant 0 : index
    %c0_75 = arith.constant 0 : index
    %c0_76 = arith.constant 0 : index
    %214 = vector.load %arg6[%c0_74, %c0_75, %c0_76] : memref<1x128x128xbf16, #tpu.memory_space<vmem>>, vector<1x128x128xbf16>
    %215 = vector.shape_cast %214 : vector<1x128x128xbf16> to vector<128x128xbf16>
    %cst_77 = arith.constant dense<0.000000e+00> : vector<128x128xf32>
    %216 = tpu.matmul %213, %215, %cst_77 {dimension_numbers = #tpu.dot_dimension_numbers<[1], [0], [0], [1], [0, 0, 1, 1], [], []>} : vector<128x128xbf16>, vector<128x128xbf16>, vector<128x128xf32> -> vector<128x128xf32>
    %c0_78 = arith.constant 0 : index
    %c0_79 = arith.constant 0 : index
    %c0_80 = arith.constant 0 : index
    %217 = vector.load %arg7[%c0_78, %c0_79, %c0_80] : memref<1x1x128xf32, #tpu.memory_space<vmem>>, vector<1x1x128xf32>
    %218 = vector.shape_cast %217 : vector<1x1x128xf32> to vector<1x128xf32>
    %219 = vector.broadcast %218 : vector<1x128xf32> to vector<128x128xf32>
    %220 = arith.addf %216, %219 : vector<128x128xf32>
    %221 = arith.addf %3, %220 : vector<128x128xf32>
    %c0_81 = arith.constant 0 : index
    %c0_82 = arith.constant 0 : index
    %c0_83 = arith.constant 0 : index
    %222 = vector.load %arg8[%c0_81, %c0_82, %c0_83] : memref<1x1x128xf32, #tpu.memory_space<vmem>>, vector<1x1x128xf32>
    %223 = vector.shape_cast %222 : vector<1x1x128xf32> to vector<1x128xf32>
    %c0_84 = arith.constant 0 : index
    %c0_85 = arith.constant 0 : index
    %c0_86 = arith.constant 0 : index
    %224 = vector.load %arg9[%c0_84, %c0_85, %c0_86] : memref<1x1x128xf32, #tpu.memory_space<vmem>>, vector<1x1x128xf32>
    %225 = vector.shape_cast %224 : vector<1x1x128xf32> to vector<1x128xf32>
    %cst_87 = arith.constant dense<0.000000e+00> : vector<128xf32>
    %226 = vector.multi_reduction <add>, %221, %cst_87 [1] : vector<128x128xf32> to vector<128xf32>
    %227 = vector.shape_cast %226 : vector<128xf32> to vector<128x1xf32>
    %cst_88 = arith.constant 1.280000e+02 : f32
    %228 = vector.broadcast %cst_88 : f32 to vector<128x1xf32>
    %229 = arith.divf %227, %228 : vector<128x1xf32>
    %230 = vector.broadcast %229 : vector<128x1xf32> to vector<128x128xf32>
    %231 = arith.subf %221, %230 : vector<128x128xf32>
    %232 = arith.mulf %231, %231 : vector<128x128xf32>
    %cst_89 = arith.constant dense<0.000000e+00> : vector<128xf32>
    %233 = vector.multi_reduction <add>, %232, %cst_89 [1] : vector<128x128xf32> to vector<128xf32>
    %234 = vector.shape_cast %233 : vector<128xf32> to vector<128x1xf32>
    %cst_90 = arith.constant 1.280000e+02 : f32
    %235 = vector.broadcast %cst_90 : f32 to vector<128x1xf32>
    %236 = arith.divf %234, %235 : vector<128x1xf32>
    %cst_91 = arith.constant 9.99999997E-7 : f32
    %237 = vector.broadcast %cst_91 : f32 to vector<128x1xf32>
    %238 = arith.addf %236, %237 : vector<128x1xf32>
    %239 = math.rsqrt %238 : vector<128x1xf32>
    %240 = vector.broadcast %239 : vector<128x1xf32> to vector<128x128xf32>
    %241 = arith.mulf %231, %240 : vector<128x128xf32>
    %242 = vector.broadcast %223 : vector<1x128xf32> to vector<128x128xf32>
    %243 = arith.mulf %241, %242 : vector<128x128xf32>
    %244 = vector.broadcast %225 : vector<1x128xf32> to vector<128x128xf32>
    %245 = arith.addf %243, %244 : vector<128x128xf32>
    %246 = arith.truncf %245 : vector<128x128xf32> to vector<128x128xbf16>
    %c0_92 = arith.constant 0 : index
    %c0_93 = arith.constant 0 : index
    %c0_94 = arith.constant 0 : index
    %247 = vector.load %arg10[%c0_92, %c0_93, %c0_94] : memref<1x128x2048xbf16, #tpu.memory_space<vmem>>, vector<1x128x2048xbf16>
    %248 = vector.shape_cast %247 : vector<1x128x2048xbf16> to vector<128x2048xbf16>
    %cst_95 = arith.constant dense<0.000000e+00> : vector<128x2048xf32>
    %249 = tpu.matmul %246, %248, %cst_95 {dimension_numbers = #tpu.dot_dimension_numbers<[1], [0], [0], [1], [0, 0, 1, 1], [], []>} : vector<128x128xbf16>, vector<128x2048xbf16>, vector<128x2048xf32> -> vector<128x2048xf32>
    %c0_96 = arith.constant 0 : index
    %c0_97 = arith.constant 0 : index
    %c0_98 = arith.constant 0 : index
    %250 = vector.load %arg11[%c0_96, %c0_97, %c0_98] : memref<1x1x2048xf32, #tpu.memory_space<vmem>>, vector<1x1x2048xf32>
    %251 = vector.shape_cast %250 : vector<1x1x2048xf32> to vector<1x2048xf32>
    %252 = vector.broadcast %251 : vector<1x2048xf32> to vector<128x2048xf32>
    %253 = arith.addf %249, %252 : vector<128x2048xf32>
    %cst_99 = arith.constant 0.000000e+00 : f32
    %254 = vector.broadcast %cst_99 : f32 to vector<128x2048xf32>
    %255 = arith.maximumf %253, %254 : vector<128x2048xf32>
    %256 = arith.truncf %255 : vector<128x2048xf32> to vector<128x2048xbf16>
    %c0_100 = arith.constant 0 : index
    %c0_101 = arith.constant 0 : index
    %c0_102 = arith.constant 0 : index
    %257 = vector.load %arg12[%c0_100, %c0_101, %c0_102] : memref<1x2048x128xbf16, #tpu.memory_space<vmem>>, vector<1x2048x128xbf16>
    %258 = vector.shape_cast %257 : vector<1x2048x128xbf16> to vector<2048x128xbf16>
    %cst_103 = arith.constant dense<0.000000e+00> : vector<128x128xf32>
    %259 = tpu.matmul %256, %258, %cst_103 {dimension_numbers = #tpu.dot_dimension_numbers<[1], [0], [0], [1], [0, 0, 1, 1], [], []>} : vector<128x2048xbf16>, vector<2048x128xbf16>, vector<128x128xf32> -> vector<128x128xf32>
    %260 = arith.addf %221, %259 : vector<128x128xf32>
    %c0_104 = arith.constant 0 : index
    %c0_105 = arith.constant 0 : index
    %c0_106 = arith.constant 0 : index
    %261 = vector.load %arg13[%c0_104, %c0_105, %c0_106] : memref<1x1x128xf32, #tpu.memory_space<vmem>>, vector<1x1x128xf32>
    %262 = vector.shape_cast %261 : vector<1x1x128xf32> to vector<1x128xf32>
    %263 = vector.broadcast %262 : vector<1x128xf32> to vector<128x128xf32>
    %264 = arith.addf %260, %263 : vector<128x128xf32>
    %c0_107 = arith.constant 0 : index
    %c0_108 = arith.constant 0 : index
    %265 = vector.load %arg15[%c0_107, %c0_108] : memref<128x128xf32, #tpu.memory_space<vmem>>, vector<128x128xf32>
    tpu.vector_store %arg15[%c0_107, %c0_108], %264 {strides = array<i32>} : memref<128x128xf32, #tpu.memory_space<vmem>>, vector<128x128xf32>,
    %c0_109 = arith.constant 0 : index
    %c0_110 = arith.constant 0 : index
    %c0_111 = arith.constant 0 : index
    %266 = vector.load %arg14[%c0_109, %c0_110, %c0_111] : memref<1x128x128xf32, #tpu.memory_space<vmem>>, vector<1x128x128xf32>
    %267 = vector.shape_cast %266 : vector<1x128x128xf32> to vector<128x128xf32>
    %268 = vector.shape_cast %264 : vector<128x128xf32> to vector<1x128x128xf32>
    tpu.vector_store %arg14[%c0_109, %c0_110, %c0_111], %268 {strides = array<i32>} : memref<1x128x128xf32, #tpu.memory_space<vmem>>, vector<1x128x128xf32>,
    return
  }
  func.func @transform_0(%arg0: i32) -> (i32, i32) {
    %c0_i32 = arith.constant 0 : i32
    %c0_i32_0 = arith.constant 0 : i32
    %c0_i32_1 = arith.constant 0 : i32
    return %c0_i32, %c0_i32_0 : i32, i32
  }
  func.func @transform_1(%arg0: i32) -> (i32, i32, i32) {
    %c0_i32 = arith.constant 0 : i32
    %c0_i32_0 = arith.constant 0 : i32
    %c0_i32_1 = arith.constant 0 : i32
    return %arg0, %c0_i32, %c0_i32_0 : i32, i32, i32
  }
  func.func @transform_2(%arg0: i32) -> (i32, i32, i32) {
    %c0_i32 = arith.constant 0 : i32
    %c0_i32_0 = arith.constant 0 : i32
    %c0_i32_1 = arith.constant 0 : i32
    return %arg0, %c0_i32, %c0_i32_0 : i32, i32, i32
  }
  func.func @transform_3(%arg0: i32) -> (i32, i32, i32) {
    %c0_i32 = arith.constant 0 : i32
    %c0_i32_0 = arith.constant 0 : i32
    %c0_i32_1 = arith.constant 0 : i32
    return %arg0, %c0_i32, %c0_i32_0 : i32, i32, i32
  }
  func.func @transform_4(%arg0: i32) -> (i32, i32, i32) {
    %c0_i32 = arith.constant 0 : i32
    %c0_i32_0 = arith.constant 0 : i32
    %c0_i32_1 = arith.constant 0 : i32
    return %arg0, %c0_i32, %c0_i32_0 : i32, i32, i32
  }
  func.func @transform_5(%arg0: i32) -> (i32, i32, i32) {
    %c0_i32 = arith.constant 0 : i32
    %c0_i32_0 = arith.constant 0 : i32
    %c0_i32_1 = arith.constant 0 : i32
    return %arg0, %c0_i32, %c0_i32_0 : i32, i32, i32
  }
  func.func @transform_6(%arg0: i32) -> (i32, i32, i32) {
    %c0_i32 = arith.constant 0 : i32
    %c0_i32_0 = arith.constant 0 : i32
    %c0_i32_1 = arith.constant 0 : i32
    return %arg0, %c0_i32, %c0_i32_0 : i32, i32, i32
  }
  func.func @transform_7(%arg0: i32) -> (i32, i32, i32) {
    %c0_i32 = arith.constant 0 : i32
    %c0_i32_0 = arith.constant 0 : i32
    %c0_i32_1 = arith.constant 0 : i32
    return %arg0, %c0_i32, %c0_i32_0 : i32, i32, i32
  }
  func.func @transform_8(%arg0: i32) -> (i32, i32, i32) {
    %c0_i32 = arith.constant 0 : i32
    %c0_i32_0 = arith.constant 0 : i32
    %c0_i32_1 = arith.constant 0 : i32
    return %arg0, %c0_i32, %c0_i32_0 : i32, i32, i32
  }
  func.func @transform_9(%arg0: i32) -> (i32, i32, i32) {
    %c0_i32 = arith.constant 0 : i32
    %c0_i32_0 = arith.constant 0 : i32
    %c0_i32_1 = arith.constant 0 : i32
    return %arg0, %c0_i32, %c0_i32_0 : i32, i32, i32
  }
  func.func @transform_10(%arg0: i32) -> (i32, i32, i32) {
    %c0_i32 = arith.constant 0 : i32
    %c0_i32_0 = arith.constant 0 : i32
    %c0_i32_1 = arith.constant 0 : i32
    return %arg0, %c0_i32, %c0_i32_0 : i32, i32, i32
  }
  func.func @transform_11(%arg0: i32) -> (i32, i32, i32) {
    %c0_i32 = arith.constant 0 : i32
    %c0_i32_0 = arith.constant 0 : i32
    %c0_i32_1 = arith.constant 0 : i32
    return %arg0, %c0_i32, %c0_i32_0 : i32, i32, i32
  }
  func.func @transform_12(%arg0: i32) -> (i32, i32, i32) {
    %c0_i32 = arith.constant 0 : i32
    %c0_i32_0 = arith.constant 0 : i32
    %c0_i32_1 = arith.constant 0 : i32
    return %arg0, %c0_i32, %c0_i32_0 : i32, i32, i32
  }
  func.func @transform_13(%arg0: i32) -> (i32, i32, i32) {
    %c0_i32 = arith.constant 0 : i32
    %c0_i32_0 = arith.constant 0 : i32
    %c0_i32_1 = arith.constant 0 : i32
    return %arg0, %c0_i32, %c0_i32_0 : i32, i32, i32
  }
}

</mosaic_0001>

<bundles_post_ra>
// kernel: transformer2d_forward.2
= control target key start
LH: loop header
LB: loop body
LE: loop exit
PB: predicated region body
PF: predicated region fallthrough
CT: control target
= control target key end

     0   :  { %s506_s15 = smov 0   ;;  %s573_s0 = inlined_call_operand.vmem [shape: f32[2,64,64], index: 0, kind: input, shape index: {}]   ;;  %s574_s1 = inlined_call_operand.vmem [shape: bf16[64,128], index: 1, kind: input, shape index: {}]   ;;  %s575_s2 = inlined_call_operand.vmem [shape: f32[1,128], index: 2, kind: input, shape index: {}]   ;;  %s576_s3 = inlined_call_operand.vmem [shape: f32[64,128], index: 3, kind: input, shape index: {}]   ;;  %s577_s4 = inlined_call_operand.vmem [shape: f32[2,64,128], index: 4, kind: output, shape index: {}]  }
   0x1 LB: > { %s407_s16 = sadd.s32 4294967295, %s479_s15   ;;  %p411_p0 = scmp.ge.s32.totalorder %s479_s15, 1  ;;  %s479_s15 = sphi %s506_s15, %s14_s15  }
   0x2   : > { %p162_p1 = scmp.lt.s32.totalorder %s479_s15, 3 }
   0x4   : > { %p163_p2 = pnand %p411_p0, %p162_p1 }
   0x5   : > { %v469_v0 = vld [vmem:[%s574_s1] sm:$0xff] (!%p163_p2)   ;;  %p188_p3 = scmp.lt.s32.totalorder (!%p163_p2), %s407_s16, 1  ;;  %v470_v1 = vld [vmem:[%s574_s1 + $0x8] sm:$0xff] (!%p163_p2)   ;;  %v471_v2 = vld [vmem:[%s574_s1 + $0x10] sm:$0xff] (!%p163_p2)   ;;  %vm250_vm0 = vcmask (!%p163_p2), 523264  }
   0x6   : > { %166 = sbr.rel (%p163_p2) target bundleno = 243 (0xf3), region = 36  ;;  %437 = vmatprep.subr.bf16.mxu0 (!%p163_p2), %v469_v0  ;;  %453 = vmatprep.subr.bf16.mxu1 (!%p163_p2), %v469_v0  ;;  %v472_v8 = vld [vmem:[%s574_s1 + $0x18] sm:$0xff] (!%p163_p2)   ;;  %v416_v16 = vld [vmem:[%s575_s2] ss:$0 sm:$0xff] (!%p163_p2)  ;;  %v330_v18 = vld [vmem:[%s576_s3 + $0x10] sm:$0xff] (!%p163_p2) }
   0x7   : > { %438 = vmatpush3.bf16.msra.mxu0 (!%p163_p2), %v469_v0  ;;  %457 = vmatpush3.bf16.msra.mxu1 (!%p163_p2), %v469_v0  ;;  %v334_v20 = vld [vmem:[%s576_s3 + $0x30] sm:$0xff] (!%p163_p2)  ;;  %v328_v24 = vld [vmem:[%s576_s3] sm:$0xff] (!%p163_p2)  ;;  %v331_v30 = vld [vmem:[%s576_s3 + $0x18] sm:$0xff] (!%p163_p2) }
   0x8   : > { %439 = vmatprep.subr.bf16.mxu0 (!%p163_p2), %v470_v1  ;;  %454 = vmatprep.subr.bf16.mxu1 (!%p163_p2), %v470_v1  ;;  %v332_v26 = vld [vmem:[%s576_s3 + $0x20] sm:$0xff] (!%p163_p2)  ;;  %v335_v32 = vld [vmem:[%s576_s3 + $0x38] sm:$0xff] (!%p163_p2)  ;;  %v329_v38 = vld [vmem:[%s576_s3 + $0x8] sm:$0xff] (!%p163_p2) }
   0x9   : > { %v333_v40 = vld [vmem:[%s576_s3 + $0x28] sm:$0xff] (!%p163_p2) }
   0xb   : > { %440 = vmatpush3.bf16.msra.mxu0 (!%p163_p2), %v470_v1  ;;  %458 = vmatpush3.bf16.msra.mxu1 (!%p163_p2), %v470_v1 }
   0xc   : > { %441 = vmatprep.subr.bf16.mxu0 (!%p163_p2), %v471_v2  ;;  %455 = vmatprep.subr.bf16.mxu1 (!%p163_p2), %v471_v2 }
   0xd   : > { %s579_s16 = smov (!%p188_p3, %s407_s16), 1 }
   0xe   : > { %s427_s23 = sshll.u32 %s579_s16, 6 }
   0xf   : > { %s192_s26 = scalar_lea.vmem %s573_s0, %s427_s23  ;;  %442 = vmatpush3.bf16.msra.mxu0 %v471_v2  ;;  %459 = vmatpush3.bf16.msra.mxu1 %v471_v2  ;;  %s197_s17 = scalar_lea.vmem %s577_s4, %s427_s23 }
  0x10   : > { %v199_v3 = vld [vmem:[%s192_s26] sm:$0xff]  ;;  %v200_v4 = vld [vmem:[%s192_s26 + $0x8] sm:$0xff]  ;;  %v201_v10 = vld [vmem:[%s192_s26 + $0x10] sm:$0xff]  ;;  %443 = vmatprep.subr.bf16.mxu0 %v472_v8  ;;  %456 = vmatprep.subr.bf16.mxu1 %v472_v8 }
  0x11   : > { %v203_v5 = vld [vmem:[%s192_s26 + $0x20] sm:$0xff]  ;;  %v207_v6 = vpack.c.bf16 %v200_v4, %v199_v3  ;;  %v204_v7 = vld [vmem:[%s192_s26 + $0x28] sm:$0xff]  ;;  %v202_v11 = vld [vmem:[%s192_s26 + $0x18] sm:$0xff] }
  0x12   : > { %v209_v9 = vpack.c.bf16 %v204_v7, %v203_v5  ;;  %v205_v12 = vld [vmem:[%s192_s26 + $0x30] sm:$0xff]  ;;  %v206_v13 = vld [vmem:[%s192_s26 + $0x38] sm:$0xff]  ;;  %v208_v14 = vpack.c.bf16 %v202_v11, %v201_v10 }
  0x13   : > { %445 = vmatprep.mubr.msk.bf16.mxu0 %vm250_vm0, %v207_v6  ;;  %v210_v15 = vpack.c.bf16 %v206_v13, %v205_v12  ;;  %444 = vmatpush3.bf16.msra.mxu0 %v472_v8 }
  0x14   : > { %449 = vmatprep.mubr.msk.bf16.mxu1 %vm250_vm0, %v209_v9  ;;  %460 = vmatpush3.bf16.msra.mxu1 %v472_v8 }
  0x16   : > { %446 = vmatmul.mubr.msk.bf16.vlgmr.msra.gmra.mrb[0].mxu0 %vm250_vm0, %v208_v14 }
  0x17   : > { %450 = vmatmul.mubr.msk.bf16.vlgmr.msra.gmra.mrb[0].mxu1 %vm250_vm0, %v210_v15 }
  0xe9   : > { %v447_v17 = vpop.f32.mrb[0].mxu0 }
  0xea   : > { %v451_v19 = vpop.f32.mrb[0].mxu1  ;;  %v306_v21 = vadd.f32 %v447_v17, %v416_v16  ;;  %v297_v23 = vpop.f32.mrb[1].mxu0 }
  0xeb   : > { %v322_v22 = vadd.f32 %v451_v19, %v416_v16  ;;  %v313_v25 = vpop.f32.mrb[1].mxu1  ;;  %v298_v27 = vadd.f32 %v416_v16, %v297_v23  ;;  %v448_v29 = vpop.f32.mrb[2].mxu0 }
  0xec   : > { %v314_v28 = vadd.f32 %v416_v16, %v313_v25  ;;  %v452_v31 = vpop.f32.mrb[2].mxu1  ;;  %v338_v33 = vadd.f32 %v330_v18, %v306_v21  ;;  %v309_v35 = vadd.f32 %v448_v29, %v416_v16  ;;  %v300_v37 = vpop.f32.mrb[3].mxu0 }
  0xed   : > { %v342_v34 = vadd.f32 %v334_v20, %v322_v22  ;;  %v325_v36 = vadd.f32 %v452_v31, %v416_v16  ;;  %v316_v39 = vpop.f32.mrb[3].mxu1  ;;  %v336_v41 = vadd.f32 %v328_v24, %v298_v27  ;;  %v301_v43 = vadd.f32 %v416_v16, %v300_v37 }
  0xee   : > { %v340_v42 = vadd.f32 %v332_v26, %v314_v28  ;;  %v317_v44 = vadd.f32 %v416_v16, %v316_v39  ;;  %346 = vst [vmem:[%s197_s17 + $0x10] sm:$0xff] %v338_v33  ;;  %v339_v45 = vadd.f32 %v331_v30, %v309_v35 }
  0xef   : > { %350 = vst [vmem:[%s197_s17 + $0x30] sm:$0xff] %v342_v34  ;;  %v343_v46 = vadd.f32 %v335_v32, %v325_v36  ;;  %344 = vst [vmem:[%s197_s17] sm:$0xff] %v336_v41  ;;  %v337_v47 = vadd.f32 %v329_v38, %v301_v43 }
  0xf0   : > { %348 = vst [vmem:[%s197_s17 + $0x20] sm:$0xff] %v340_v42  ;;  %v341_v48 = vadd.f32 %v333_v40, %v317_v44  ;;  %347 = vst [vmem:[%s197_s17 + $0x18] sm:$0xff] %v339_v45 }
  0xf1   : > { %351 = vst [vmem:[%s197_s17 + $0x38] sm:$0xff] %v343_v46  ;;  %345 = vst [vmem:[%s197_s17 + $0x8] sm:$0xff] %v337_v47 }
  0xf2   : > { %349 = vst [vmem:[%s197_s17 + $0x28] sm:$0xff] %v341_v48 }
  0xf3 PF: > { %s14_s15 = sadd.s32 1, %s479_s15  }
  0xf4   : > { %p11_p4 = scmp.ge.s32.totalorder %s14_s15, 4  }
  0xf6   :  { %13 = sbr.rel (!%p11_p4) target bundleno = 1 (0x1), region = 66 }

// kernel: transformer2d_forward.3
= control target key start
LH: loop header
LB: loop body
LE: loop exit
PB: predicated region body
PF: predicated region fallthrough
CT: control target
= control target key end

     0   :  { %s10517_s25 = smov 0   ;;  %s13734_s0 = inlined_call_operand.vmem [shape: f32[128,128], index: 0, kind: input, shape index: {}]   ;;  %s13735_s1 = inlined_call_operand.vmem [shape: f32[3,1,128], index: 1, kind: input, shape index: {}]   ;;  %s13736_s2 = inlined_call_operand.vmem [shape: f32[3,1,128], index: 2, kind: input, shape index: {}]   ;;  %s13737_s3 = inlined_call_operand.vmem [shape: bf16[3,128,384], index: 3, kind: input, shape index: {}]   ;;  %s13738_s4 = inlined_call_operand.vmem [shape: f32[3,1,384], index: 4, kind: input, shape index: {}]   ;;  %s13739_s5 = inlined_call_operand.vmem [shape: bf16[3,128,128], index: 5, kind: input, shape index: {}]   ;;  %s13740_s6 = inlined_call_operand.vmem [shape: f32[3,1,128], index: 6, kind: input, shape index: {}]   ;;  %s13741_s7 = inlined_call_operand.vmem [shape: f32[3,1,128], index: 7, kind: input, shape index: {}]   ;;  %s13742_s8 = inlined_call_operand.vmem [shape: f32[3,1,128], index: 8, kind: input, shape index: {}]   ;;  %s13743_s9 = inlined_call_operand.vmem [shape: bf16[3,128,2048], index: 9, kind: input, shape index: {}]   ;;  %s13744_s10 = inlined_call_operand.vmem [shape: f32[3,1,2048], index: 10, kind: input, shape index: {}]   ;;  %s13745_s11 = inlined_call_operand.vmem [shape: bf16[3,2048,128], index: 11, kind: input, shape index: {}]   ;;  %s13746_s12 = inlined_call_operand.vmem [shape: f32[3,1,128], index: 12, kind: input, shape index: {}]   ;;  %s13747_s13 = inlined_call_operand.vmem [shape: f32[3,128,128], index: 13, kind: output, shape index: {}]  }
   0x1   :  { %13796 = sst [smem:[#allocation25_spill]] %s13735_s1 }
   0x2   :  { %13797 = sst [smem:[#allocation26_spill]] %s13736_s2 }
   0x3   :  { %13798 = sst [smem:[#allocation27_spill]] %s13737_s3 }
   0x4   :  { %13799 = sst [smem:[#allocation28_spill]] %s13739_s5 }
   0x5 LB: > { %13800 = sst [smem:[#allocation4_spill]] %s10441_s25  ;;  %s8513_s26 = sadd.s32 4294967295, %s10441_s25   ;;  %s10441_s25 = sphi %s10517_s25, %s23_s25  }
   0x6   : > { %p8517_p0 = scmp.ge.s32.totalorder %s10441_s25, 1  ;;  %p483_p1 = scmp.lt.s32.totalorder %s10441_s25, 4 }
   0x8   : > { %p484_p2 = pnand %p8517_p0, %p483_p1 }
   0xa   : > { %487 = sbr.rel (%p484_p2) target bundleno = 5337 (0x14d9), region = 72 }
  0x11   : > { %p568_p3 = scmp.lt.s32.totalorder %s8513_s26, 2  ;;  %s13803_s5 = sld [smem:[#allocation28_spill]] }
  0x12   : > { %s13804_s3 = sld [smem:[#allocation27_spill]]  ;;  %p8528_p4 = scmp.ne.s32.totalorder %s8513_s26, 0 }
  0x13   : > { %s10525_s27 = scalar_select %p568_p3, %s8513_s26, 2 }
  0x14   : > { %v624_v0 = vld [vmem:[%s13734_s0] sm:$0xff] (!%p8528_p4)  ;;  %v625_v1 = vld [vmem:[%s13734_s0 + $0x8] sm:$0xff] (!%p8528_p4)  ;;  %v626_v2 = vld [vmem:[%s13734_s0 + $0x10] sm:$0xff] (!%p8528_p4) }
  0x15   : > { %s9917_s17 = smul.u32 192, %s10525_s27  ;;  %s8889_s18 = sshll.u32 %s10525_s27, 6  ;;  %640 = vst [vmem:[#allocation2] sm:$0xff] (!%p8528_p4), %v624_v0  ;;  %641 = vst [vmem:[#allocation2 + $0x8] sm:$0xff] (!%p8528_p4), %v625_v1  ;;  %v627_v3 = vld [vmem:[%s13734_s0 + $0x18] sm:$0xff] (!%p8528_p4)  ;;  %v628_v4 = vld [vmem:[%s13734_s0 + $0x20] sm:$0xff] (!%p8528_p4) }
  0x16   : > { %s9918_s19 = smul.u32 3, %s10525_s27  ;;  %s8890_s23 = sshll.u32 %s10525_s27, 10  ;;  %642 = vst [vmem:[#allocation2 + $0x10] sm:$0xff] (!%p8528_p4), %v626_v2  ;;  %v629_v5 = vld [vmem:[%s13734_s0 + $0x28] sm:$0xff] (!%p8528_p4)  ;;  %643 = vst [vmem:[#allocation2 + $0x18] sm:$0xff] (!%p8528_p4), %v627_v3  ;;  %v630_v6 = vld [vmem:[%s13734_s0 + $0x30] sm:$0xff] (!%p8528_p4) }
  0x17   : > { %s10541_s22 = scalar_lea.vmem %s13803_s5, %s8889_s18  ;;  %s8523_s30 = sshll.u32 %s10525_s27, 4  ;;  %644 = vst [vmem:[#allocation2 + $0x20] sm:$0xff] (!%p8528_p4), %v628_v4  ;;  %645 = vst [vmem:[#allocation2 + $0x28] sm:$0xff] (!%p8528_p4), %v629_v5  ;;  %v631_v7 = vld [vmem:[%s13734_s0 + $0x38] sm:$0xff] (!%p8528_p4)  ;;  %v632_v8 = vld [vmem:[%s13734_s0 + $0x40] sm:$0xff] (!%p8528_p4) }
  0x18   : > { %s10546_s28 = scalar_lea.vmem %s13804_s3, %s9917_s17  ;;  %s10555_s25 = scalar_lea.vmem %s13738_s4, %s9918_s19  ;;  %646 = vst [vmem:[#allocation2 + $0x30] sm:$0xff] (!%p8528_p4), %v630_v6  ;;  %647 = vst [vmem:[#allocation2 + $0x38] sm:$0xff] (!%p8528_p4), %v631_v7  ;;  %v633_v9 = vld [vmem:[%s13734_s0 + $0x48] sm:$0xff] (!%p8528_p4)  ;;  %v634_v10 = vld [vmem:[%s13734_s0 + $0x50] sm:$0xff] (!%p8528_p4) }
  0x19   : > { %s10569_s3 = scalar_lea.vmem %s13743_s9, %s8890_s23  ;;  %s10575_s16 = scalar_lea.vmem %s13744_s10, %s8523_s30  ;;  %648 = vst [vmem:[#allocation2 + $0x40] sm:$0xff] (!%p8528_p4), %v632_v8  ;;  %v635_v11 = vld [vmem:[%s13734_s0 + $0x58] sm:$0xff] (!%p8528_p4)  ;;  %649 = vst [vmem:[#allocation2 + $0x48] sm:$0xff] (!%p8528_p4), %v633_v9  ;;  %v636_v12 = vld [vmem:[%s13734_s0 + $0x60] sm:$0xff] (!%p8528_p4) }
  0x1a   : > { %s10580_s1 = scalar_lea.vmem %s13745_s11, %s8890_s23  ;;  %s613_s21 = scalar_lea.vmem %s13746_s12, %s10525_s27  ;;  %650 = vst [vmem:[#allocation2 + $0x50] sm:$0xff] (!%p8528_p4), %v634_v10  ;;  %651 = vst [vmem:[#allocation2 + $0x58] sm:$0xff] (!%p8528_p4), %v635_v11  ;;  %v637_v13 = vld [vmem:[%s13734_s0 + $0x68] sm:$0xff] (!%p8528_p4)  ;;  %v638_v14 = vld [vmem:[%s13734_s0 + $0x70] sm:$0xff] (!%p8528_p4) }
  0x1b   : > { %s8892_s5 = sshll.u32 %s10525_s27, 7  ;;  %623 = sbr.rel (%p8528_p4) target bundleno = 34 (0x22), region = 76  ;;  %652 = vst [vmem:[#allocation2 + $0x60] sm:$0xff] (!%p8528_p4), %v636_v12  ;;  %653 = vst [vmem:[#allocation2 + $0x68] sm:$0xff] (!%p8528_p4), %v637_v13  ;;  %v639_v15 = vld [vmem:[%s13734_s0 + $0x78] sm:$0xff] (!%p8528_p4) }
  0x1c   : > { %s10590_s24 = scalar_lea.vmem %s13747_s13, %s8892_s5  ;;  %654 = vst [vmem:[#allocation2 + $0x70] sm:$0xff] (!%p8528_p4), %v638_v14  ;;  %655 = vst [vmem:[#allocation2 + $0x78] sm:$0xff] (!%p8528_p4), %v639_v15 }
  0x22 PF: > { %v656_v16 = vld [vmem:[#allocation2] sm:$0xff]  ;;  %v658_v17 = vld [vmem:[#allocation2 + $0x10] sm:$0xff]  ;;  %v657_v18 = vld [vmem:[#allocation2 + $0x8] sm:$0xff]  ;;  %s13805_s2 = sld [smem:[#allocation25_spill]]  ;;  %s13807_s30 = sld [smem:[#allocation26_spill]]  ;;  %vm1302_vm0 = vcmask 261120  }
  0x23   : > { %674 = vadd.xlane.f32.xlu0 %v656_v16  ;;  %678 = vadd.xlane.f32.xlu1 %v658_v17  ;;  %v659_v19 = vld [vmem:[#allocation2 + $0x18] sm:$0xff]  ;;  %v660_v20 = vld [vmem:[#allocation2 + $0x20] sm:$0xff]  ;;  %v661_v21 = vld [vmem:[#allocation2 + $0x28] sm:$0xff]  ;;  %s10445_s19 = smov 64   ;;  %vm1400_vm1 = vcmask 523264   ;;  %s10446_s23 = smov 32  }
  0x24   : > { %v662_v22 = vld [vmem:[#allocation2 + $0x30] sm:$0xff]  ;;  %v663_v23 = vld [vmem:[#allocation2 + $0x38] sm:$0xff]  ;;  %v9933_v25 = vld [vmem:[%s10546_s28] ss:$12 sps:$4 sm:$0xff]   ;;  %vm1916_vm2 = vcmask 523520   ;;  %vm2251_vm3 = vcmask 785920   ;;  %s13846_s20 = scalar_lea.vmem %s13740_s6, %s10525_s27  ;;  %s13864_s26 = scalar_lea.vmem %s13741_s7, %s10525_s27 }
  0x25   : > { %v9931_v24 = vld [vmem:[%s10546_s28 + $0x4] ss:$12 sps:$4 sm:$0xff]   ;;  %v9934_v26 = vld [vmem:[%s10546_s28 + $0x1c] ss:$12 sps:$4 sm:$0xff]   ;;  %v9938_v62 = vld [vmem:[%s10546_s28 + $0x34] ss:$12 sps:$4 sm:$0xff]   ;;  %s13865_s17 = scalar_lea.vmem %s13742_s8, %s10525_s27 }
  0x26   : > { %v9936_v27 = vld [vmem:[%s10546_s28 + $0x8] ss:$12 sps:$4 sm:$0xff]   ;;  %1080 = vmatprep.subr.bf16.mxu0 %v9931_v24  ;;  %v9937_v60 = vld [vmem:[%s10546_s28 + $0x18] ss:$12 sps:$4 sm:$0xff]   ;;  %v9940_v63 = vld [vmem:[%s10546_s28 + $0x20] ss:$12 sps:$4 sm:$0xff]  }
  0x27   : > { %676 = vadd.xlane.f32.xlu0 %v657_v18  ;;  %680 = vadd.xlane.f32.xlu1 %v659_v19  ;;  %v10677_v61 = vld [vmem:[#allocation2 + $0x40] sm:$0xff]  ;;  %v10682_v0 = vld [vmem:[#allocation2 + $0x48] sm:$0xff]  ;;  %v10684_v1 = vld [vmem:[#allocation2 + $0x50] sm:$0xff]  ;;  %vm2586_vm4 = vcmask 1048320  }
  0x28   : > { %1081 = vmatpush1.bf16.msra.mxu0 %v9933_v25  ;;  %9565 = vmatprep.subr.bf16.mxu1 %v9936_v27  ;;  %v9941_v2 = vld [vmem:[%s10546_s28 + $0x30] ss:$12 sps:$4 sm:$0xff]   ;;  %v9942_v3 = vld [vmem:[%s10546_s28 + $0x4c] ss:$12 sps:$4 sm:$0xff]   ;;  %v10693_v6 = vld [vmem:[#allocation2 + $0x60] sm:$0xff]  ;;  %s13806_s18 = scalar_lea.vmem %s13805_s2, %s10525_s27  ;;  %s13808_s29 = scalar_lea.vmem %s13807_s30, %s10525_s27 }
  0x29   : > { %1082 = vmatprep.subr.bf16.mxu0 %v9934_v26  ;;  %9566 = vmatpush3.bf16.msra.mxu1 %v9936_v27  ;;  %v9944_v4 = vld [vmem:[%s10546_s28 + $0x38] ss:$12 sps:$4 sm:$0xff]   ;;  %v9945_v7 = vld [vmem:[%s10546_s28 + $0x48] ss:$12 sps:$4 sm:$0xff]   ;;  %v9948_v9 = vld [vmem:[%s10546_s28 + $0x50] ss:$12 sps:$4 sm:$0xff]  }
  0x2a   : > { %9567 = vmatprep.subr.bf16.mxu1 %v9940_v63  ;;  %v10691_v5 = vld [vmem:[#allocation2 + $0x58] sm:$0xff]  ;;  %v9946_v8 = vld [vmem:[%s10546_s28 + $0x64] ss:$12 sps:$4 sm:$0xff]   ;;  %v10700_v10 = vld [vmem:[#allocation2 + $0x68] sm:$0xff] }
  0x2b   : > { %682 = vadd.xlane.f32.xlu0 %v660_v20  ;;  %684 = vadd.xlane.f32.xlu1 %v661_v21  ;;  %v10702_v11 = vld [vmem:[#allocation2 + $0x70] sm:$0xff]  ;;  %v9949_v12 = vld [vmem:[%s10546_s28 + $0x60] ss:$12 sps:$4 sm:$0xff]   ;;  %v9950_v13 = vld [vmem:[%s10546_s28 + $0x7c] ss:$12 sps:$4 sm:$0xff]  }
  0x2c   : > { %1083 = vmatpush1.bf16.msra.mxu0 %v9937_v60  ;;  %v9952_v14 = vld [vmem:[%s10546_s28 + $0x68] ss:$12 sps:$4 sm:$0xff]   ;;  %v10709_v15 = vld [vmem:[#allocation2 + $0x78] sm:$0xff]  ;;  %v10727_v60 = vld [vmem:[%s13806_s18] ss:$0 sm:$0xff] }
  0x2d   : > { %1084 = vmatprep.subr.bf16.mxu0 %v9938_v62  ;;  %9568 = vmatpush3.bf16.msra.mxu1 %v9940_v63  ;;  %v9962_v24 = vld [vmem:[%s10546_s28 + $0xb0] ss:$12 sps:$4 sm:$0xff]  }
  0x2e   : > { %9569 = vmatprep.subr.bf16.mxu1 %v9944_v4 }
  0x2f   : > { %686 = vadd.xlane.f32.xlu0 %v662_v22  ;;  %688 = vadd.xlane.f32.xlu1 %v663_v23 }
  0x30   : > { %1085 = vmatpush1.bf16.msra.mxu0 %v9941_v2 }
  0x31   : > { %1086 = vmatprep.subr.bf16.mxu0 %v9942_v3  ;;  %9570 = vmatpush3.bf16.msra.mxu1 %v9944_v4 }
  0x32   : > { %9571 = vmatprep.subr.bf16.mxu1 %v9948_v9 }
  0x34   : > { %1087 = vmatpush1.bf16.msra.mxu0 %v9945_v7 }
  0x35   : > { %1088 = vmatprep.subr.bf16.mxu0 %v9946_v8  ;;  %9572 = vmatpush3.bf16.msra.mxu1 %v9948_v9 }
  0x36   : > { %9573 = vmatprep.subr.bf16.mxu1 %v9952_v14 }
  0x38   : > { %1089 = vmatpush1.bf16.msra.mxu0 %v9949_v12  ;;  %v10739_v12 = vld [vmem:[%s13808_s29] ss:$0 sm:$0xff] }
  0x39   : > { %1090 = vmatprep.subr.bf16.mxu0 %v9950_v13  ;;  %9574 = vmatpush3.bf16.msra.mxu1 %v9952_v14 }
  0xb0   : > { %v675_v28 = vpop.xlane.xlu0 %674  ;;  %v679_v29 = vpop.xlane.xlu1 %678 }
  0xb1   : > { %v707_v30 = vmul.f32 0.0078125, %v675_v28  ;;  %v709_v31 = vmul.f32 0.0078125, %v679_v29 }
  0xb3   : > { %v10644_v32 = vsub.f32 %v656_v16, %v707_v30  ;;  %v10646_v33 = vsub.f32 %v658_v17, %v709_v31  ;;  %v9953_v16 = vld [vmem:[%s10546_s28 + $0x78] ss:$12 sps:$4 sm:$0xff]   ;;  %v9954_v17 = vld [vmem:[%s10546_s28 + $0x94] ss:$12 sps:$4 sm:$0xff]  }
  0xb4   : > { %v677_v34 = vpop.xlane.xlu0 %676  ;;  %v681_v35 = vpop.xlane.xlu1 %680  ;;  %1091 = vmatpush1.bf16.msra.mxu0 %v9953_v16 }
  0xb5   : > { %v708_v36 = vmul.f32 0.0078125, %v677_v34  ;;  %v739_v37 = vmul.f32 %v10644_v32, %v10644_v32  ;;  %v710_v38 = vmul.f32 0.0078125, %v681_v35  ;;  %v741_v39 = vmul.f32 %v10646_v33, %v10646_v33  ;;  %1092 = vmatprep.subr.bf16.mxu0 %v9954_v17 }
  0xb7   : > { %755 = vadd.xlane.f32.xlu0 %v739_v37  ;;  %v10652_v40 = vsub.f32 %v657_v18, %v708_v36  ;;  %v10654_v41 = vsub.f32 %v659_v19, %v710_v38  ;;  %v9956_v18 = vld [vmem:[%s10546_s28 + $0x80] ss:$12 sps:$4 sm:$0xff]   ;;  %v9957_v19 = vld [vmem:[%s10546_s28 + $0x90] ss:$12 sps:$4 sm:$0xff]  }
  0xb8   : > { %v683_v42 = vpop.xlane.xlu0 %682  ;;  %v685_v43 = vpop.xlane.xlu1 %684  ;;  %9575 = vmatprep.subr.bf16.mxu1 %v9956_v18  ;;  %1093 = vmatpush1.bf16.msra.mxu0 %v9957_v19 }
  0xb9   : > { %v711_v44 = vmul.f32 0.0078125, %v683_v42  ;;  %v740_v45 = vmul.f32 %v10652_v40, %v10652_v40  ;;  %v712_v46 = vmul.f32 0.0078125, %v685_v43  ;;  %v742_v47 = vmul.f32 %v10654_v41, %v10654_v41  ;;  %9576 = vmatpush3.bf16.msra.mxu1 %v9956_v18 }
  0xbb   : > { %759 = vadd.xlane.f32.xlu0 %v741_v39  ;;  %757 = vadd.xlane.f32.xlu1 %v740_v45  ;;  %v10660_v48 = vsub.f32 %v660_v20, %v711_v44  ;;  %v10662_v49 = vsub.f32 %v661_v21, %v712_v46  ;;  %v9958_v20 = vld [vmem:[%s10546_s28 + $0xac] ss:$12 sps:$4 sm:$0xff]  }
  0xbc   : > { %v687_v50 = vpop.xlane.xlu0 %686  ;;  %v689_v51 = vpop.xlane.xlu1 %688  ;;  %v9960_v21 = vld [vmem:[%s10546_s28 + $0x98] ss:$12 sps:$4 sm:$0xff]   ;;  %1094 = vmatprep.subr.bf16.mxu0 %v9958_v20 }
  0xbd   : > { %v713_v52 = vmul.f32 0.0078125, %v687_v50  ;;  %v743_v53 = vmul.f32 %v10660_v48, %v10660_v48  ;;  %v714_v54 = vmul.f32 0.0078125, %v689_v51  ;;  %v744_v55 = vmul.f32 %v10662_v49, %v10662_v49  ;;  %9577 = vmatprep.subr.bf16.mxu1 %v9960_v21 }
  0xbe   : > { %9578 = vmatpush3.bf16.msra.mxu1 %v9960_v21 }
  0xbf   : > { %761 = vadd.xlane.f32.xlu1 %v742_v47  ;;  %763 = vadd.xlane.f32.xlu0 %v743_v53  ;;  %v10668_v56 = vsub.f32 %v662_v22, %v713_v52  ;;  %v10670_v57 = vsub.f32 %v663_v23, %v714_v54  ;;  %v9961_v22 = vld [vmem:[%s10546_s28 + $0xa8] ss:$12 sps:$4 sm:$0xff]   ;;  %v13749_v23 = vmov 0  }
  0xc0   : > { %1112 = vmatprep.mubr.bf16.mxu0 %v13749_v23  ;;  %1095 = vmatpush1.bf16.msra.mxu0 %v9961_v22 }
  0xc1   : > { %v745_v58 = vmul.f32 %v10668_v56, %v10668_v56  ;;  %v746_v59 = vmul.f32 %v10670_v57, %v10670_v57  ;;  %9579 = vmatprep.subr.bf16.mxu1 %v9962_v24 }
  0xc2   : > { %9580 = vmatpush3.bf16.msra.mxu1 %v9962_v24 }
  0xc3   : > { %765 = vadd.xlane.f32.xlu1 %v744_v55  ;;  %767 = vadd.xlane.f32.xlu0 %v745_v58 }
  0xc7   : > { %769 = vadd.xlane.f32.xlu1 %v746_v59  ;;  %690 = vadd.xlane.f32.xlu0 %v10677_v61 }
  0xcb   : > { %692 = vadd.xlane.f32.xlu1 %v10682_v0  ;;  %694 = vadd.xlane.f32.xlu0 %v10684_v1 }
  0xcf   : > { %696 = vadd.xlane.f32.xlu1 %v10691_v5  ;;  %698 = vadd.xlane.f32.xlu0 %v10693_v6 }
  0xd3   : > { %700 = vadd.xlane.f32.xlu1 %v10700_v10  ;;  %702 = vadd.xlane.f32.xlu0 %v10702_v11 }
  0xd7   : > { %704 = vadd.xlane.f32.xlu1 %v10709_v15 }
 0x144   : > { %v756_v25 = vpop.xlane.xlu0 %755 }
 0x145   : > { %v787_v26 = vmul.f32 0.0078125, %v756_v25 }
 0x147   : > { %v803_v27 = vadd.f32 1e-06, %v787_v26 }
 0x148   : > { %v758_v28 = vpop.xlane.xlu1 %757  ;;  %v760_v29 = vpop.xlane.xlu0 %759 }
 0x149   : > { %10099 = vrsqrt.f32 %v803_v27  ;;  %v788_v30 = vmul.f32 0.0078125, %v758_v28  ;;  %v789_v31 = vmul.f32 0.0078125, %v760_v29 }
 0x14b   : > { %v804_v34 = vadd.f32 1e-06, %v788_v30  ;;  %v805_v35 = vadd.f32 1e-06, %v789_v31 }
 0x14c   : > { %v762_v36 = vpop.xlane.xlu1 %761  ;;  %v764_v37 = vpop.xlane.xlu0 %763 }
 0x14d   : > { %10101 = vrsqrt.f32 %v804_v34  ;;  %v790_v38 = vmul.f32 0.0078125, %v762_v36  ;;  %v791_v39 = vmul.f32 0.0078125, %v764_v37 }
 0x14e   : > { %10103 = vrsqrt.f32 %v805_v35 }
 0x14f   : > { %v806_v42 = vadd.f32 1e-06, %v790_v38  ;;  %v807_v43 = vadd.f32 1e-06, %v791_v39 }
 0x150   : > { %v766_v44 = vpop.xlane.xlu1 %765  ;;  %v768_v45 = vpop.xlane.xlu0 %767 }
 0x151   : > { %10105 = vrsqrt.f32 %v806_v42  ;;  %v792_v46 = vmul.f32 0.0078125, %v766_v44  ;;  %v793_v47 = vmul.f32 0.0078125, %v768_v45 }
 0x152   : > { %10107 = vrsqrt.f32 %v807_v43 }
 0x153   : > { %v10100_v50 = vpop.eup %10099  ;;  %v808_v51 = vadd.f32 1e-06, %v792_v46  ;;  %v809_v52 = vadd.f32 1e-06, %v793_v47 }
 0x154   : > { %v770_v53 = vpop.xlane.xlu1 %769  ;;  %v691_v54 = vpop.xlane.xlu0 %690  ;;  %v835_v55 = vmul.f32 %v10100_v50, %v10644_v32 }
 0x155   : > { %10109 = vrsqrt.f32 %v808_v51  ;;  %v794_v58 = vmul.f32 0.0078125, %v770_v53  ;;  %v715_v59 = vmul.f32 0.0078125, %v691_v54 }
 0x156   : > { %10111 = vrsqrt.f32 %v809_v52  ;;  %v857_v7 = vmul.f32 %v10727_v60, %v835_v55 }
 0x157   : > { %v10102_v62 = vpop.eup %10101  ;;  %v810_v63 = vadd.f32 1e-06, %v794_v58  ;;  %v10730_v2 = vsub.f32 %v10677_v61, %v715_v59 }
 0x158   : > { %v10104_v3 = vpop.eup %10103  ;;  %v693_v4 = vpop.xlane.xlu1 %692  ;;  %v836_v32 = vmul.f32 %v10102_v62, %v10652_v40  ;;  %v879_v20 = vadd.f32 %v10739_v12, %v857_v7 }
 0x159   : > { %v695_v8 = vpop.xlane.xlu0 %694  ;;  %10113 = vrsqrt.f32 %v810_v63  ;;  %v716_v9 = vmul.f32 0.0078125, %v693_v4  ;;  %v747_v13 = vmul.f32 %v10730_v2, %v10730_v2  ;;  %v837_v16 = vmul.f32 %v10104_v3, %v10646_v33 }
 0x15a   : > { %v717_v61 = vmul.f32 0.0078125, %v695_v8  ;;  %v858_v14 = vmul.f32 %v10727_v60, %v836_v32 }
 0x15b   : > { %v10106_v40 = vpop.eup %10105  ;;  %v10746_v17 = vsub.f32 %v10682_v0, %v716_v9  ;;  %771 = vadd.xlane.f32.xlu0 %v747_v13  ;;  %v859_v25 = vmul.f32 %v10727_v60, %v837_v16 }
 0x15c   : > { %v10749_v18 = vsub.f32 %v10684_v1, %v717_v61  ;;  %v10108_v19 = vpop.eup %10107  ;;  %v880_v21 = vadd.f32 %v10739_v12, %v858_v14  ;;  %v697_v22 = vpop.xlane.xlu1 %696  ;;  %v838_v24 = vmul.f32 %v10106_v40, %v10654_v41 }
 0x15d   : > { %v699_v26 = vpop.xlane.xlu0 %698  ;;  %v748_v33 = vmul.f32 %v10746_v17, %v10746_v17  ;;  %v718_v0 = vmul.f32 0.0078125, %v697_v22  ;;  %v839_v27 = vmul.f32 %v10108_v19, %v10660_v48  ;;  %v881_v41 = vadd.f32 %v10739_v12, %v859_v25 }
 0x15e   : > { %v749_v1 = vmul.f32 %v10749_v18, %v10749_v18  ;;  %v895_v28 = vpack.c.bf16 %v880_v21, %v879_v20  ;;  %v860_v29 = vmul.f32 %v10727_v60, %v838_v24  ;;  %v719_v30 = vmul.f32 0.0078125, %v699_v26 }
 0x15f   : > { %v10110_v31 = vpop.eup %10109  ;;  %773 = vadd.xlane.f32.xlu1 %v748_v33  ;;  %v861_v34 = vmul.f32 %v10727_v60, %v839_v27  ;;  %v10764_v35 = vsub.f32 %v10691_v5, %v718_v0 }
 0x160   : > { %775 = vadd.xlane.f32.xlu0 %v749_v1  ;;  %v10112_v36 = vpop.eup %10111  ;;  %1113 = vmatmul.mubr.bf16.vlgmr.msra.gmra.mrb[0].mxu0 %v895_v28  ;;  %v882_v48 = vadd.f32 %v10739_v12, %v860_v29  ;;  %v840_v37 = vmul.f32 %v10110_v31, %v10662_v49  ;;  %v701_v38 = vpop.xlane.xlu1 %700  ;;  %v10769_v39 = vsub.f32 %v10693_v6, %v719_v30 }
 0x161   : > { %9581 = vmatprep.mubr.bf16.mxu1 %v895_v28  ;;  %v703_v42 = vpop.xlane.xlu0 %702  ;;  %1122 = vmatprep.mubr.bf16.mxu0 %v13749_v23  ;;  %v750_v43 = vmul.f32 %v10764_v35, %v10764_v35  ;;  %v720_v5 = vmul.f32 0.0078125, %v701_v38  ;;  %v841_v44 = vmul.f32 %v10112_v36, %v10668_v56  ;;  %v883_v6 = vadd.f32 %v10739_v12, %v861_v34 }
 0x162   : > { %v896_v45 = vpack.c.bf16 %v882_v48, %v881_v41  ;;  %v862_v46 = vmul.f32 %v10727_v60, %v840_v37  ;;  %v751_v47 = vmul.f32 %v10769_v39, %v10769_v39  ;;  %v721_v49 = vmul.f32 0.0078125, %v703_v42 }
 0x163   : > { %v10114_v50 = vpop.eup %10113  ;;  %777 = vadd.xlane.f32.xlu1 %v750_v43  ;;  %v863_v51 = vmul.f32 %v10727_v60, %v841_v44  ;;  %v10781_v52 = vsub.f32 %v10700_v10, %v720_v5 }
 0x164   : > { %9582 = vmatmul.mubr.bf16.vlgmr.msra.gmra.mrb[0].mxu1 %v896_v45  ;;  %v884_v53 = vadd.f32 %v10739_v12, %v862_v46  ;;  %v842_v56 = vmul.f32 %v10114_v50, %v10670_v57  ;;  %779 = vadd.xlane.f32.xlu0 %v751_v47  ;;  %v705_v54 = vpop.xlane.xlu1 %704  ;;  %v10786_v55 = vsub.f32 %v10702_v11, %v721_v49 }
 0x165   : > { %v752_v58 = vmul.f32 %v10781_v52, %v10781_v52  ;;  %v722_v59 = vmul.f32 0.0078125, %v705_v54  ;;  %v885_v57 = vadd.f32 %v10739_v12, %v863_v51 }
 0x166   : > { %v897_v62 = vpack.c.bf16 %v884_v53, %v883_v6  ;;  %v864_v63 = vmul.f32 %v10727_v60, %v842_v56  ;;  %v753_v10 = vmul.f32 %v10786_v55, %v10786_v55 }
 0x167   : > { %781 = vadd.xlane.f32.xlu1 %v752_v58  ;;  %v10794_v3 = vsub.f32 %v10709_v15, %v722_v59 }
 0x168   : > { %1123 = vmatmul.mubr.bf16.gmra.mrb[4].mxu0 %v896_v45  ;;  %9585 = vmatprep.mubr.bf16.mxu1 %v897_v62  ;;  %v886_v11 = vadd.f32 %v10739_v12, %v864_v63 }
 0x169   : > { %1132 = vmatprep.mubr.bf16.mxu0 %v13749_v23  ;;  %v754_v4 = vmul.f32 %v10794_v3, %v10794_v3  ;;  %783 = vadd.xlane.f32.xlu0 %v753_v10 }
 0x16a   : > { %v898_v32 = vpack.c.bf16 %v886_v11, %v885_v57 }
 0x16b   : > { %785 = vadd.xlane.f32.xlu1 %v754_v4 }
 0x16c   : > { %9586 = vmatmul.mubr.bf16.gmra.mrb[4].mxu1 %v898_v32 }
 0x170   : > { %1133 = vmatmul.mubr.bf16.gmra.mrb[8].mxu0 %v897_v62 }
 0x171   : > { %1142 = vmatprep.mubr.bf16.mxu0 %v13749_v23 }
 0x178   : > { %1143 = vmatmul.mubr.bf16.gmra.mrb[12].mxu0 %v898_v32 }
 0x179   : > { %1152 = vmatprep.mubr.bf16.mxu0 %v13749_v23 }
 0x1e8   : > { %v772_v15 = vpop.xlane.xlu0 %771 }
 0x1e9   : > { %v795_v7 = vmul.f32 0.0078125, %v772_v15 }
 0x1eb   : > { %v811_v8 = vadd.f32 1e-06, %v795_v7 }
 0x1ec   : > { %v774_v9 = vpop.xlane.xlu1 %773 }
 0x1ed   : > { %v776_v13 = vpop.xlane.xlu0 %775  ;;  %v796_v61 = vmul.f32 0.0078125, %v774_v9  ;;  %10115 = vrsqrt.f32 %v811_v8 }
 0x1ee   : > { %v797_v14 = vmul.f32 0.0078125, %v776_v13 }
 0x1ef   : > { %v812_v16 = vadd.f32 1e-06, %v796_v61 }
 0x1f0   : > { %v813_v40 = vadd.f32 1e-06, %v797_v14  ;;  %v778_v19 = vpop.xlane.xlu1 %777 }
 0x1f1   : > { %10117 = vrsqrt.f32 %v812_v16  ;;  %v798_v20 = vmul.f32 0.0078125, %v778_v19  ;;  %v780_v21 = vpop.xlane.xlu0 %779 }
 0x1f2   : > { %10119 = vrsqrt.f32 %v813_v40  ;;  %v799_v22 = vmul.f32 0.0078125, %v780_v21 }
 0x1f3   : > { %v814_v24 = vadd.f32 1e-06, %v798_v20 }
 0x1f4   : > { %v782_v25 = vpop.xlane.xlu1 %781  ;;  %v815_v26 = vadd.f32 1e-06, %v799_v22 }
 0x1f5   : > { %10121 = vrsqrt.f32 %v814_v24  ;;  %v800_v33 = vmul.f32 0.0078125, %v782_v25 }
 0x1f6   : > { %10123 = vrsqrt.f32 %v815_v26  ;;  %v784_v0 = vpop.xlane.xlu0 %783 }
 0x1f7   : > { %v10116_v27 = vpop.eup %10115  ;;  %v816_v1 = vadd.f32 1e-06, %v800_v33  ;;  %v801_v28 = vmul.f32 0.0078125, %v784_v0 }
 0x1f8   : > { %v786_v29 = vpop.xlane.xlu1 %785  ;;  %v843_v30 = vmul.f32 %v10116_v27, %v10730_v2 }
 0x1f9   : > { %10125 = vrsqrt.f32 %v816_v1  ;;  %v802_v31 = vmul.f32 0.0078125, %v786_v29  ;;  %v817_v41 = vadd.f32 1e-06, %v801_v28 }
 0x1fa   : > { %v865_v34 = vmul.f32 %v10727_v60, %v843_v30 }
 0x1fb   : > { %v10118_v36 = vpop.eup %10117  ;;  %v818_v48 = vadd.f32 1e-06, %v802_v31  ;;  %10127 = vrsqrt.f32 %v817_v41 }
 0x1fc   : > { %v10120_v37 = vpop.eup %10119  ;;  %v844_v38 = vmul.f32 %v10118_v36, %v10746_v17  ;;  %v887_v5 = vadd.f32 %v10739_v12, %v865_v34 }
 0x1fd   : > { %10129 = vrsqrt.f32 %v818_v48  ;;  %v845_v42 = vmul.f32 %v10120_v37, %v10749_v18 }
 0x1fe   : > { %v866_v43 = vmul.f32 %v10727_v60, %v844_v38 }
 0x1ff   : > { %v10122_v44 = vpop.eup %10121  ;;  %v867_v2 = vmul.f32 %v10727_v60, %v845_v42 }
 0x200   : > { %v10124_v45 = vpop.eup %10123  ;;  %v888_v46 = vadd.f32 %v10739_v12, %v866_v43  ;;  %v846_v47 = vmul.f32 %v10122_v44, %v10764_v35 }
 0x201   : > { %v847_v49 = vmul.f32 %v10124_v45, %v10769_v39  ;;  %v889_v6 = vadd.f32 %v10739_v12, %v867_v2 }
 0x202   : > { %v899_v50 = vpack.c.bf16 %v888_v46, %v887_v5  ;;  %v868_v17 = vmul.f32 %v10727_v60, %v846_v47 }
 0x203   : > { %v10126_v18 = vpop.eup %10125  ;;  %v869_v51 = vmul.f32 %v10727_v60, %v847_v49 }
 0x204   : > { %1153 = vmatmul.mubr.bf16.gmra.mrb[16].mxu0 %v899_v50  ;;  %v890_v53 = vadd.f32 %v10739_v12, %v868_v17  ;;  %9589 = vmatprep.mubr.bf16.mxu1 %v899_v50  ;;  %v848_v56 = vmul.f32 %v10126_v18, %v10781_v52 }
 0x205   : > { %v10128_v54 = vpop.eup %10127  ;;  %1162 = vmatprep.mubr.bf16.mxu0 %v13749_v23  ;;  %v891_v58 = vadd.f32 %v10739_v12, %v869_v51 }
 0x206   : > { %v900_v35 = vpack.c.bf16 %v890_v53, %v889_v6  ;;  %v870_v39 = vmul.f32 %v10727_v60, %v848_v56  ;;  %v849_v59 = vmul.f32 %v10128_v54, %v10786_v55 }
 0x207   : > { %v10130_v62 = vpop.eup %10129 }
 0x208   : > { %v892_v63 = vadd.f32 %v10739_v12, %v870_v39  ;;  %9590 = vmatmul.mubr.bf16.gmra.mrb[8].mxu1 %v900_v35  ;;  %v850_v10 = vmul.f32 %v10130_v62, %v10794_v3  ;;  %v871_v57 = vmul.f32 %v10727_v60, %v849_v59  ;;  %v937_v3 = vlaneseq }
 0x20a   : > { %v901_v52 = vpack.c.bf16 %v892_v63, %v891_v58  ;;  %v872_v11 = vmul.f32 %v10727_v60, %v850_v10  ;;  %v893_v4 = vadd.f32 %v10739_v12, %v871_v57  ;;  %v10830_v15 = vshrl.u32 %v937_v3, 7  ;;  %v935_v60 = vld [vmem:[%s10555_s25] sm:$0x7]  ;;  %s10444_s25 = smov 96  }
 0x20c   : > { %1163 = vmatmul.mubr.bf16.gmra.mrb[20].mxu0 %v900_v35  ;;  %9593 = vmatprep.mubr.bf16.mxu1 %v901_v52  ;;  %v894_v32 = vadd.f32 %v10739_v12, %v872_v11  ;;  %13809 = vst [vmem:[#allocation5_spill] sm:$0xff] %v10830_v15  ;;  %v10833_v7 = vsub.s32 0, %v10830_v15  ;;  %v10837_v8 = vsub.s32 1, %v10830_v15  ;;  %v10843_v9 = vsub.s32 2, %v10830_v15 }
 0x20d   : > { %1172 = vmatprep.mubr.bf16.mxu0 %v13749_v23 }
 0x20e   : > { %v902_v55 = vpack.c.bf16 %v894_v32, %v893_v4  ;;  %13810 = vst [vmem:[#allocation6_spill] sm:$0xff] %v10833_v7  ;;  %13811 = vst [vmem:[#allocation7_spill] sm:$0xff] %v10837_v8  ;;  %v10840_v12 = vrot.slane %v935_v60, %v10833_v7  ;;  %v10846_v61 = vrot.slane %v935_v60, %v10837_v8 }
 0x20f   : > { %13812 = vst [vmem:[#allocation8_spill] sm:$0xff] %v10843_v9  ;;  %v10851_v21 = vrot.slane %v935_v60, %v10843_v9 }
 0x210   : > { %9594 = vmatmul.mubr.bf16.gmra.mrb[12].mxu1 %v902_v55 }
 0x214   : > { %1173 = vmatmul.mubr.bf16.gmra.mrb[24].mxu0 %v901_v52 }
 0x215   : > { %1182 = vmatprep.mubr.bf16.mxu0 %v13749_v23 }
 0x21c   : > { %1183 = vmatmul.mubr.bf16.gmra.mrb[28].mxu0 %v902_v55 }
 0x233   : > { %v1114_v13 = vpop.f32.mrb[0].mxu0 }
 0x234   : > { %v1116_v14 = vpop.f32.mrb[1].mxu0  ;;  %v1115_v40 = vadd.f32 %v1114_v13, %v10840_v12 }
 0x235   : > { %v1118_v16 = vpop.f32.mrb[2].mxu0  ;;  %v1117_v22 = vadd.f32 %v1116_v14, %v10846_v61 }
 0x236   : > { %v1119_v19 = vadd.f32 %v1118_v16, %v10840_v12  ;;  %v1120_v20 = vpop.f32.mrb[3].mxu0 }
 0x237   : > { %v1121_v24 = vadd.f32 %v1120_v20, %v10846_v61  ;;  %v9583_v25 = vpop.f32.mrb[0].mxu1 }
 0x238   : > { %v10855_v26 = vpack.c.bf16 %v1119_v19, %v1115_v40  ;;  %v1227_v33 = vpop.f32.mrb[1].mxu1  ;;  %v1236_v1 = vadd.f32 %v9583_v25, %v10851_v21 }
 0x239   : > { %v10857_v0 = vpack.c.bf16 %v1121_v24, %v1117_v22  ;;  %v9584_v27 = vpop.f32.mrb[2].mxu1  ;;  %v1228_v30 = vadd.f32 %v1227_v33, %v10851_v21 }
 0x23a   : > { %v1239_v28 = vadd.f32 %v9584_v27, %v10851_v21  ;;  %v1230_v29 = vpop.f32.mrb[3].mxu1  ;;  %9605 = vmatprep.mubr.msk.bf16.mxu1 %vm1302_vm0, %v10855_v26 }
 0x23b   : > { %v1231_v31 = vadd.f32 %v1230_v29, %v10851_v21  ;;  %v1124_v41 = vpop.f32.mrb[4].mxu0  ;;  %9885 = vmatprep.subr.msk.bf16.mxu1 %vm1302_vm0, %v10857_v0  ;;  %1594 = vrot.lane.b32.xlu0 %v10857_v0, %s10444_s25  ;;  %v1316_v34 = vsel %vm1302_vm0, %v10857_v0, 0 }
 0x23c   : > { %v10871_v36 = vpack.c.bf16 %v1239_v28, %v1236_v1  ;;  %v1126_v48 = vpop.f32.mrb[5].mxu0  ;;  %9598 = vmatpush3.bf16.xpose.msra.mxu1 %v1316_v34  ;;  %v1125_v42 = vadd.f32 %v1124_v41, %v10840_v12 }
 0x23d   : > { %v10873_v37 = vpack.c.bf16 %v1231_v31, %v1228_v30  ;;  %v1128_v38 = vpop.f32.mrb[6].mxu0  ;;  %v1127_v44 = vadd.f32 %v1126_v48, %v10846_v61 }
 0x23e   : > { %v1129_v43 = vadd.f32 %v1128_v38, %v10840_v12  ;;  %v1130_v5 = vpop.f32.mrb[7].mxu0 }
 0x23f   : > { %v1131_v2 = vadd.f32 %v1130_v5, %v10846_v61  ;;  %v9587_v45 = vpop.f32.mrb[4].mxu1  ;;  %1582 = vrot.lane.b32.xlu0 %v10855_v26, %s10444_s25 }
 0x240   : > { %v10881_v46 = vpack.c.bf16 %v1129_v43, %v1125_v42  ;;  %v1243_v47 = vpop.f32.mrb[5].mxu1  ;;  %v1252_v17 = vadd.f32 %v9587_v45, %v10851_v21 }
 0x241   : > { %v10883_v49 = vpack.c.bf16 %v1131_v2, %v1127_v44  ;;  %v9588_v50 = vpop.f32.mrb[6].mxu1  ;;  %v1244_v51 = vadd.f32 %v1243_v47, %v10851_v21 }
 0x242   : > { %v1255_v6 = vadd.f32 %v9588_v50, %v10851_v21  ;;  %v1246_v18 = vpop.f32.mrb[7].mxu1 }
 0x243   : > { %v1247_v53 = vadd.f32 %v1246_v18, %v10851_v21  ;;  %1596 = vrot.lane.b32.xlu1 %v10883_v49, %s10444_s25  ;;  %v1134_v56 = vpop.f32.mrb[8].mxu0  ;;  %9886 = vmatprep.subr.msk.bf16.mxu1 %vm1302_vm0, %v10883_v49  ;;  %v1319_v54 = vsel %vm1302_vm0, %v10883_v49, 0 }
 0x244   : > { %v10895_v35 = vpack.c.bf16 %v1255_v6, %v1252_v17  ;;  %1584 = vrot.lane.b32.xlu0 %v10881_v46, %s10444_s25  ;;  %v1136_v39 = vpop.f32.mrb[9].mxu0  ;;  %9600 = vmatpush3.bf16.xpose.msra.mxu1 %v1319_v54  ;;  %v1135_v62 = vadd.f32 %v1134_v56, %v10840_v12 }
 0x245   : > { %v10899_v58 = vpack.c.bf16 %v1247_v53, %v1244_v51  ;;  %v1138_v59 = vpop.f32.mrb[10].mxu0  ;;  %v1137_v57 = vadd.f32 %v1136_v39, %v10846_v61 }
 0x246   : > { %v1139_v63 = vadd.f32 %v1138_v59, %v10840_v12  ;;  %v1140_v10 = vpop.f32.mrb[11].mxu0 }
 0x247   : > { %v1141_v52 = vadd.f32 %v1140_v10, %v10846_v61 }
 0x248   : > { %v10905_v11 = vpack.c.bf16 %v1139_v63, %v1135_v62 }
 0x249   : > { %v10907_v4 = vpack.c.bf16 %v1141_v52, %v1137_v57 }
 0x24b   : > { %1598 = vrot.lane.b32.xlu1 %v10907_v4, %s10444_s25  ;;  %v1144_v32 = vpop.f32.mrb[12].mxu0  ;;  %9887 = vmatprep.subr.msk.bf16.mxu1 %vm1302_vm0, %v10907_v4  ;;  %v1322_v55 = vsel %vm1302_vm0, %v10907_v4, 0 }
 0x24c   : > { %1937 = vrot.lane.b32.xlu0 %v10907_v4, %s10445_s19  ;;  %v1146_v3 = vpop.f32.mrb[13].mxu0  ;;  %9602 = vmatpush3.bf16.xpose.msra.mxu1 %v1322_v55  ;;  %v1145_v13 = vadd.f32 %v1144_v32, %v10840_v12 }
 0x24d   : > { %v1148_v60 = vpop.f32.mrb[14].mxu0  ;;  %v1147_v40 = vadd.f32 %v1146_v3, %v10846_v61 }
 0x24e   : > { %v1149_v14 = vadd.f32 %v1148_v60, %v10840_v12  ;;  %v1150_v16 = vpop.f32.mrb[15].mxu0 }
 0x24f   : > { %v1151_v19 = vadd.f32 %v1150_v16, %v10846_v61 }
 0x250   : > { %v10921_v20 = vpack.c.bf16 %v1149_v14, %v1145_v13 }
 0x251   : > { %v10923_v22 = vpack.c.bf16 %v1151_v19, %v1147_v40 }
 0x252   : > { %1588 = vrot.lane.b32.xlu0 %v10921_v20, %s10444_s25 }
 0x253   : > { %1600 = vrot.lane.b32.xlu1 %v10923_v22, %s10444_s25  ;;  %9888 = vmatprep.subr.msk.bf16.mxu1 %vm1302_vm0, %v10923_v22  ;;  %v1325_v24 = vsel %vm1302_vm0, %v10923_v22, 0 }
 0x254   : > { %9604 = vmatpush3.bf16.xpose.msra.mxu1 %v1325_v24 }
 0x255   : > { %9613 = vmatprep.subr.bf16.mxu1 %v10873_v37 }
 0x256   : > { %1925 = vrot.lane.b32.xlu0 %v10855_v26, %s10445_s19 }
 0x257   : > { %1933 = vrot.lane.b32.xlu1 %v10857_v0, %s10445_s19 }
 0x25a   : > { %1929 = vrot.lane.b32.xlu0 %v10905_v11, %s10445_s19 }
 0x25b   : > { %1935 = vrot.lane.b32.xlu1 %v10883_v49, %s10445_s19  ;;  %9606 = vmatmul.mubr.msk.bf16.vlgmr.msra.gmra.mrb[16].mxu1 %vm1302_vm0, %v10881_v46 }
 0x25c   : > { %9609 = vmatprep.mubr.msk.bf16.mxu1 %vm1302_vm0, %v10905_v11  ;;  %9614 = vmatpush3.bf16.msra.mxu1 %v10873_v37 }
 0x25d   : > { %9615 = vmatprep.subr.bf16.mxu1 %v10871_v36 }
 0x25e   : > { %1795 = vrot.lane.b32.xlu0 %v10873_v37, %s10444_s25 }
 0x25f   : > { %1586 = vrot.lane.b32.xlu1 %v10905_v11, %s10444_s25 }
 0x260   : > { %9616 = vmatpush3.bf16.msra.mxu1 %v10871_v36 }
 0x261   : > { %9617 = vmatprep.subr.bf16.mxu1 %v10899_v58 }
 0x262   : > { %1799 = vrot.lane.b32.xlu0 %v10899_v58, %s10444_s25 }
 0x263   : > { %1939 = vrot.lane.b32.xlu1 %v10923_v22, %s10445_s19  ;;  %9610 = vmatmul.mubr.msk.bf16.gmra.mrb[20].mxu1 %vm1302_vm0, %v10921_v20 }
 0x264   : > { %9618 = vmatpush3.bf16.msra.mxu1 %v10899_v58 }
 0x265   : > { %9619 = vmatprep.subr.bf16.mxu1 %v10895_v35 }
 0x267   : > { %1927 = vrot.lane.b32.xlu1 %v10881_v46, %s10445_s19 }
 0x268   : > { %9620 = vmatpush3.bf16.msra.mxu1 %v10895_v35 }
 0x26b   : > { %1931 = vrot.lane.b32.xlu1 %v10921_v20, %s10445_s19 }
 0x26f   : > { %1797 = vrot.lane.b32.xlu1 %v10871_v36, %s10444_s25 }
 0x273   : > { %1801 = vrot.lane.b32.xlu1 %v10895_v35, %s10444_s25 }
 0x2ad   : > { %v1595_v25 = vpop.permute.xlu0 %1594 }
 0x2ae   : > { %9889 = vmatprep.subr.msk.bf16.mxu0 %vm1302_vm0, %v1595_v25  ;;  %v1615_v33 = vsel %vm1302_vm0, %v1595_v25, 0 }
 0x2af   : > { %9630 = vmatpush3.bf16.xpose.msra.mxu0 %v1615_v33 }
 0x2b1   : > { %v1583_v27 = vpop.permute.xlu0 %1582 }
 0x2b2   : > { %9637 = vmatprep.mubr.msk.bf16.mxu0 %vm1302_vm0, %v1583_v27 }
 0x2b5   : > { %v1597_v1 = vpop.permute.xlu1 %1596 }
 0x2b6   : > { %9890 = vmatprep.subr.msk.bf16.mxu0 %vm1302_vm0, %v1597_v1  ;;  %v1618_v28 = vsel %vm1302_vm0, %v1597_v1, 0  ;;  %v1585_v29 = vpop.permute.xlu0 %1584 }
 0x2b7   : > { %9632 = vmatpush3.bf16.xpose.msra.mxu0 %v1618_v28 }
 0x2bd   : > { %v1599_v30 = vpop.permute.xlu1 %1598 }
 0x2be   : > { %9891 = vmatprep.subr.msk.bf16.mxu0 %vm1302_vm0, %v1599_v30  ;;  %v1621_v31 = vsel %vm1302_vm0, %v1599_v30, 0  ;;  %v1938_v41 = vpop.permute.xlu0 %1937 }
 0x2bf   : > { %9634 = vmatpush3.bf16.xpose.msra.mxu0 %v1621_v31  ;;  %v1960_v55 = vsel %vm1302_vm0, %v1938_v41, 0 }
 0x2c4   : > { %v1589_v34 = vpop.permute.xlu0 %1588 }
 0x2c5   : > { %v1601_v48 = vpop.permute.xlu1 %1600 }
 0x2c6   : > { %9892 = vmatprep.subr.msk.bf16.mxu0 %vm1302_vm0, %v1601_v48  ;;  %v1624_v38 = vsel %vm1302_vm0, %v1601_v48, 0 }
 0x2c7   : > { %9636 = vmatpush3.bf16.xpose.msra.mxu0 %v1624_v38 }
 0x2c8   : > { %v1926_v42 = vpop.permute.xlu0 %1925 }
 0x2c9   : > { %v1934_v43 = vpop.permute.xlu1 %1933 }
 0x2ca   : > { %9893 = vmatprep.subr.msk.bf16.mxu0 %vm1302_vm0, %v1934_v43  ;;  %v1954_v2 = vsel %vm1302_vm0, %v1934_v43, 0 }
 0x2cc   : > { %v10981_v5 = vpop.permute.xlu0 %1929 }
 0x2cd   : > { %v1936_v44 = vpop.permute.xlu1 %1935 }
 0x2ce   : > { %9638 = vmatmul.mubr.msk.bf16.vlgmr.msra.gmra.mrb[32].mxu0 %vm1302_vm0, %v1585_v29  ;;  %v1957_v50 = vsel %vm1302_vm0, %v1936_v44, 0 }
 0x2cf   : > { %9662 = vmatpush3.bf16.xpose.msra.mxu0 %v1954_v2 }
 0x2d0   : > { %9894 = vmatprep.subr.msk.bf16.mxu0 %vm1302_vm0, %v1936_v44  ;;  %v10986_v45 = vpop.permute.xlu0 %1795 }
 0x2d1   : > { %v1587_v47 = vpop.permute.xlu1 %1586  ;;  %9645 = vmatprep.subr.bf16.mxu1 %v10986_v45 }
 0x2d2   : > { %9641 = vmatprep.mubr.msk.bf16.mxu0 %vm1302_vm0, %v1587_v47 }
 0x2d5   : > { %v1940_v13 = vpop.permute.xlu1 %1939 }
 0x2d6   : > { %9642 = vmatmul.mubr.msk.bf16.gmra.mrb[36].mxu0 %vm1302_vm0, %v1589_v34  ;;  %v1963_v43 = vsel %vm1302_vm0, %v1940_v13, 0 }
 0x2d7   : > { %9664 = vmatpush3.bf16.xpose.msra.mxu0 %v1957_v50  ;;  %9669 = vmatprep.mubr.msk.bf16.mxu0 %vm1302_vm0, %v1926_v42  ;;  %v1154_v17 = vpop.f32.mrb[16].mxu0 }
 0x2d8   : > { %9895 = vmatprep.subr.msk.bf16.mxu0 %vm1302_vm0, %v1938_v41  ;;  %v1155_v6 = vadd.f32 %v1154_v17, %v10840_v12  ;;  %v1156_v18 = vpop.f32.mrb[17].mxu0 }
 0x2d9   : > { %v1157_v51 = vadd.f32 %v1156_v18, %v10846_v61  ;;  %v1158_v53 = vpop.f32.mrb[18].mxu0 }
 0x2da   : > { %v1159_v56 = vadd.f32 %v1158_v53, %v10840_v12  ;;  %v1160_v54 = vpop.f32.mrb[19].mxu0 }
 0x2db   : > { %v1161_v39 = vadd.f32 %v1160_v54, %v10846_v61  ;;  %v9591_v59 = vpop.f32.mrb[8].mxu1 }
 0x2dc   : > { %v10998_v62 = vpack.c.bf16 %v1159_v56, %v1155_v6  ;;  %v1268_v63 = vadd.f32 %v9591_v59, %v10851_v21  ;;  %v1259_v10 = vpop.f32.mrb[9].mxu1 }
 0x2dd   : > { %v11001_v57 = vpack.c.bf16 %v1161_v39, %v1157_v51  ;;  %v1260_v52 = vadd.f32 %v1259_v10, %v10851_v21  ;;  %v9592_v32 = vpop.f32.mrb[10].mxu1 }
 0x2de   : > { %13813 = vst [vmem:[#allocation9_spill] sm:$0xff] %v10998_v62  ;;  %v1271_v3 = vadd.f32 %v9592_v32, %v10851_v21  ;;  %v1262_v60 = vpop.f32.mrb[11].mxu1 }
 0x2df   : > { %13814 = vst [vmem:[#allocation10_spill] sm:$0xff] %v11001_v57  ;;  %9666 = vmatpush3.bf16.xpose.msra.mxu0 %v1960_v55  ;;  %v1164_v14 = vpop.f32.mrb[20].mxu0  ;;  %v1263_v16 = vadd.f32 %v1262_v60, %v10851_v21 }
 0x2e0   : > { %9896 = vmatprep.subr.msk.bf16.mxu0 %vm1302_vm0, %v1940_v13  ;;  %v1165_v40 = vadd.f32 %v1164_v14, %v10840_v12  ;;  %v1166_v19 = vpop.f32.mrb[21].mxu0  ;;  %v11009_v24 = vpack.c.bf16 %v1271_v3, %v1268_v63 }
 0x2e1   : > { %v1167_v25 = vadd.f32 %v1166_v19, %v10846_v61  ;;  %v1168_v33 = vpop.f32.mrb[22].mxu0  ;;  %v11012_v27 = vpack.c.bf16 %v1263_v16, %v1260_v52  ;;  %v2620_v52 = vsel %vm1302_vm0, %v11001_v57, 0 }
 0x2e2   : > { %13815 = vst [vmem:[#allocation11_spill] sm:$0xff] %v11009_v24  ;;  %v1169_v1 = vadd.f32 %v1168_v33, %v10840_v12  ;;  %v1170_v28 = vpop.f32.mrb[23].mxu0 }
 0x2e3   : > { %13816 = vst [vmem:[#allocation12_spill] sm:$0xff] %v11012_v27  ;;  %v1171_v29 = vadd.f32 %v1170_v28, %v10846_v61  ;;  %v9595_v30 = vpop.f32.mrb[12].mxu1 }
 0x2e4   : > { %v11016_v31 = vpack.c.bf16 %v1169_v1, %v1165_v40  ;;  %v1284_v41 = vadd.f32 %v9595_v30, %v10851_v21  ;;  %v1275_v34 = vpop.f32.mrb[13].mxu1 }
 0x2e5   : > { %v11019_v48 = vpack.c.bf16 %v1171_v29, %v1167_v25  ;;  %v1276_v38 = vadd.f32 %v1275_v34, %v10851_v21  ;;  %v9596_v42 = vpop.f32.mrb[14].mxu1 }
 0x2e6   : > { %13817 = vst [vmem:[#allocation13_spill] sm:$0xff] %v11016_v31  ;;  %v1287_v44 = vadd.f32 %v9596_v42, %v10851_v21  ;;  %v1278_v2 = vpop.f32.mrb[15].mxu1 }
 0x2e7   : > { %13818 = vst [vmem:[#allocation14_spill] sm:$0xff] %v11019_v48  ;;  %9668 = vmatpush3.bf16.xpose.msra.mxu0 %v1963_v43  ;;  %v1174_v47 = vpop.f32.mrb[24].mxu0  ;;  %v1279_v50 = vadd.f32 %v1278_v2, %v10851_v21  ;;  %v1928_v21 = vpop.permute.xlu1 %1927  ;;  %v2623_v33 = vsel %vm1302_vm0, %v11019_v48, 0 }
 0x2e8   : > { %v1175_v17 = vadd.f32 %v1174_v47, %v10840_v12  ;;  %9901 = vmatprep.subr.msk.bf16.mxu0 %vm1302_vm0, %v11001_v57  ;;  %v1176_v6 = vpop.f32.mrb[25].mxu0  ;;  %v11028_v18 = vpack.c.bf16 %v1287_v44, %v1284_v41 }
 0x2e9   : > { %v1177_v51 = vadd.f32 %v1176_v6, %v10846_v61  ;;  %v1178_v53 = vpop.f32.mrb[26].mxu0  ;;  %v11031_v56 = vpack.c.bf16 %v1279_v50, %v1276_v38 }
 0x2ea   : > { %13819 = vst [vmem:[#allocation15_spill] sm:$0xff] %v11028_v18  ;;  %v1179_v54 = vadd.f32 %v1178_v53, %v10840_v12  ;;  %v1180_v39 = vpop.f32.mrb[27].mxu0 }
 0x2eb   : > { %13820 = vst [vmem:[#allocation16_spill] sm:$0xff] %v11031_v56  ;;  %v1181_v59 = vadd.f32 %v1180_v39, %v10846_v61  ;;  %v1932_v25 = vpop.permute.xlu1 %1931 }
 0x2ec   : > { %v11035_v63 = vpack.c.bf16 %v1179_v54, %v1175_v17 }
 0x2ed   : > { %v11037_v10 = vpack.c.bf16 %v1181_v59, %v1177_v51 }
 0x2ee   : > { %13821 = vst [vmem:[#allocation17_spill] sm:$0xff] %v11035_v63  ;;  %9670 = vmatmul.mubr.msk.bf16.vlgmr.msra.gmra.mrb[40].mxu0 %vm1302_vm0, %v1928_v21 }
 0x2ef   : > { %13822 = vst [vmem:[#allocation18_spill] sm:$0xff] %v11037_v10  ;;  %9673 = vmatprep.mubr.msk.bf16.mxu0 %vm1302_vm0, %v10981_v5  ;;  %9726 = vmatpush3.bf16.xpose.msra.mxu0 %v2620_v52  ;;  %v1184_v32 = vpop.f32.mrb[28].mxu0  ;;  %v11187_v9 = vpop.permute.xlu1 %1797 }
 0x2f0   : > { %v1185_v55 = vadd.f32 %v1184_v32, %v10840_v12  ;;  %9902 = vmatprep.subr.msk.bf16.mxu0 %vm1302_vm0, %v11019_v48  ;;  %v1186_v3 = vpop.f32.mrb[29].mxu0 }
 0x2f1   : > { %v1187_v60 = vadd.f32 %v1186_v3, %v10846_v61  ;;  %v1188_v13 = vpop.f32.mrb[30].mxu0 }
 0x2f2   : > { %v1189_v14 = vadd.f32 %v1188_v13, %v10840_v12  ;;  %v1190_v16 = vpop.f32.mrb[31].mxu0  ;;  %v2626_v12 = vsel %vm1302_vm0, %v11037_v10, 0 }
 0x2f3   : > { %v1191_v40 = vadd.f32 %v1190_v16, %v10846_v61  ;;  %v11191_v24 = vpop.permute.xlu1 %1801 }
 0x2f4   : > { %v11050_v19 = vpack.c.bf16 %v1189_v14, %v1185_v55 }
 0x2f5   : > { %v11052_v5 = vpack.c.bf16 %v1191_v40, %v1187_v60 }
 0x2f6   : > { %13823 = vst [vmem:[#allocation19_spill] sm:$0xff] %v11050_v19  ;;  %9674 = vmatmul.mubr.msk.bf16.gmra.mrb[44].mxu0 %vm1302_vm0, %v1932_v25 }
 0x2f7   : > { %13824 = vst [vmem:[#allocation20_spill] sm:$0xff] %v11052_v5  ;;  %9728 = vmatpush3.bf16.xpose.msra.mxu0 %v2623_v33  ;;  %9733 = vmatprep.mubr.msk.bf16.mxu0 %vm1302_vm0, %v10998_v62  ;;  %v2629_v61 = vsel %vm1302_vm0, %v11052_v5, 0 }
 0x2f8   : > { %9903 = vmatprep.subr.msk.bf16.mxu0 %vm1302_vm0, %v11037_v10 }
 0x2ff   : > { %9730 = vmatpush3.bf16.xpose.msra.mxu0 %v2626_v12 }
 0x300   : > { %9904 = vmatprep.subr.msk.bf16.mxu0 %vm1302_vm0, %v11052_v5 }
 0x307   : > { %9732 = vmatpush3.bf16.xpose.msra.mxu0 %v2629_v61 }
 0x30e   : > { %9734 = vmatmul.mubr.msk.bf16.vlgmr.msra.gmra.mrb[48].mxu0 %vm1302_vm0, %v11016_v31 }
 0x30f   : > { %9737 = vmatprep.mubr.msk.bf16.mxu0 %vm1302_vm0, %v11035_v63 }
 0x316   : > { %9738 = vmatmul.mubr.msk.bf16.gmra.mrb[52].mxu0 %vm1302_vm0, %v11050_v19 }
 0x32e   : > { %v9607_v1 = vpop.f32.mrb[16].mxu1 }
 0x32f   : > { %v1361_v28 = vpop.f32.mrb[17].mxu1  ;;  %v11073_v29 = vmul.f32 0.17677669, %v9607_v1 }
 0x330   : > { %v9608_v30 = vpop.f32.mrb[18].mxu1  ;;  %v11077_v38 = vmul.f32 0.17677669, %v1361_v28 }
 0x331   : > { %v1364_v41 = vpop.f32.mrb[19].mxu1  ;;  %v1407_v34 = vsel %vm1400_vm1, %v11073_v29, -inf  ;;  %v11085_v2 = vmul.f32 0.17677669, %v9608_v30 }
 0x332   : > { %1408 = vmax.xlane.f32.xlu0 %v1407_v34  ;;  %v11079_v42 = vmul.f32 0.17677669, %v1364_v41  ;;  %v1401_v44 = vsel %vm1400_vm1, %v11077_v38, -inf }
 0x333   : > { %v1410_v51 = vsel %vm1400_vm1, %v11085_v2, -inf }
 0x334   : > { %v1404_v43 = vsel %vm1400_vm1, %v11079_v42, -inf }
 0x335   : > { %1405 = vmax.xlane.f32.xlu1 %v1404_v43 }
 0x336   : > { %1402 = vmax.xlane.f32.xlu0 %v1401_v44  ;;  %v9611_v47 = vpop.f32.mrb[20].mxu1 }
 0x337   : > { %v1377_v50 = vpop.f32.mrb[21].mxu1  ;;  %v11091_v54 = vmul.f32 0.17677669, %v9611_v47 }
 0x338   : > { %v9612_v17 = vpop.f32.mrb[22].mxu1  ;;  %v11099_v52 = vmul.f32 0.17677669, %v1377_v50 }
 0x339   : > { %v1380_v6 = vpop.f32.mrb[23].mxu1  ;;  %v11089_v53 = vmul.f32 0.17677669, %v9612_v17  ;;  %v1419_v21 = vsel %vm1400_vm1, %v11091_v54, -inf }
 0x33a   : > { %1411 = vmax.xlane.f32.xlu0 %v1410_v51  ;;  %v11095_v59 = vmul.f32 0.17677669, %v1380_v6  ;;  %v1413_v55 = vsel %vm1400_vm1, %v11099_v52, -inf }
 0x33b   : > { %v1422_v39 = vsel %vm1400_vm1, %v11089_v53, -inf }
 0x33c   : > { %1423 = vmax.xlane.f32.xlu1 %v1422_v39  ;;  %v1416_v32 = vsel %vm1400_vm1, %v11095_v59, -inf }
 0x33e   : > { %1420 = vmax.xlane.f32.xlu0 %v1419_v21 }
 0x340   : > { %1417 = vmax.xlane.f32.xlu1 %v1416_v32 }
 0x342   : > { %1414 = vmax.xlane.f32.xlu0 %v1413_v55 }
 0x3a1   : > { %v9639_v3 = vpop.f32.mrb[32].mxu0 }
 0x3a2   : > { %v1660_v60 = vpop.f32.mrb[33].mxu0  ;;  %v11105_v13 = vmul.f32 0.17677669, %v9639_v3 }
 0x3a3   : > { %v9640_v14 = vpop.f32.mrb[34].mxu0  ;;  %v11111_v33 = vmul.f32 0.17677669, %v1660_v60 }
 0x3a4   : > { %v1663_v16 = vpop.f32.mrb[35].mxu0  ;;  %v1705_v40 = vsel %vm1400_vm1, %v11105_v13, -inf  ;;  %v11109_v25 = vmul.f32 0.17677669, %v9640_v14 }
 0x3a5   : > { %1706 = vmax.xlane.f32.xlu0 %v1705_v40  ;;  %v11115_v61 = vmul.f32 0.17677669, %v1663_v16  ;;  %v1699_v1 = vsel %vm1400_vm1, %v11111_v33, -inf }
 0x3a6   : > { %v1708_v12 = vsel %vm1400_vm1, %v11109_v25, -inf }
 0x3a7   : > { %1709 = vmax.xlane.f32.xlu1 %v1708_v12  ;;  %v1702_v41 = vsel %vm1400_vm1, %v11115_v61, -inf }
 0x3a9   : > { %1700 = vmax.xlane.f32.xlu0 %v1699_v1  ;;  %v9643_v28 = vpop.f32.mrb[36].mxu0 }
 0x3aa   : > { %v1676_v30 = vpop.f32.mrb[37].mxu0  ;;  %v11121_v34 = vmul.f32 0.17677669, %v9643_v28 }
 0x3ab   : > { %1703 = vmax.xlane.f32.xlu1 %v1702_v41  ;;  %v9644_v43 = vpop.f32.mrb[38].mxu0  ;;  %v11127_v17 = vmul.f32 0.17677669, %v1676_v30 }
 0x3ac   : > { %v1679_v44 = vpop.f32.mrb[39].mxu0  ;;  %v1717_v47 = vsel %vm1400_vm1, %v11121_v34, -inf  ;;  %v11125_v50 = vmul.f32 0.17677669, %v9644_v43 }
 0x3ad   : > { %1718 = vmax.xlane.f32.xlu0 %v1717_v47  ;;  %v11131_v51 = vmul.f32 0.17677669, %v1679_v44  ;;  %v1711_v39 = vsel %vm1400_vm1, %v11127_v17, -inf }
 0x3ae   : > { %v1720_v6 = vsel %vm1400_vm1, %v11125_v50, -inf }
 0x3af   : > { %1721 = vmax.xlane.f32.xlu1 %v1720_v6  ;;  %v1714_v21 = vsel %vm1400_vm1, %v11131_v51, -inf }
 0x3b1   : > { %1712 = vmax.xlane.f32.xlu0 %v1711_v39 }
 0x3b3   : > { %1715 = vmax.xlane.f32.xlu1 %v1714_v21 }
 0x3c1   : > { %v9671_v32 = vpop.f32.mrb[40].mxu0 }
 0x3c2   : > { %v1999_v55 = vpop.f32.mrb[41].mxu0  ;;  %v11137_v3 = vmul.f32 0.17677669, %v9671_v32  ;;  %v1406_v63 = vpop.xlane.xlu1 %1405 }
 0x3c3   : > { %v9672_v60 = vpop.f32.mrb[42].mxu0  ;;  %v11143_v12 = vmul.f32 0.17677669, %v1999_v55 }
 0x3c4   : > { %v2002_v14 = vpop.f32.mrb[43].mxu0  ;;  %v2044_v16 = vsel %vm1400_vm1, %v11137_v3, -inf  ;;  %v11141_v40 = vmul.f32 0.17677669, %v9672_v60  ;;  %v11163_v60 = vpop.permute.xlu0 %1799 }
 0x3c5   : > { %2045 = vmax.xlane.f32.xlu0 %v2044_v16  ;;  %v11147_v28 = vmul.f32 0.17677669, %v2002_v14  ;;  %v2038_v30 = vsel %vm1400_vm1, %v11143_v12, -inf }
 0x3c6   : > { %v2047_v1 = vsel %vm1400_vm1, %v11141_v40, -inf }
 0x3c7   : > { %2048 = vmax.xlane.f32.xlu1 %v2047_v1  ;;  %v2041_v44 = vsel %vm1400_vm1, %v11147_v28, -inf }
 0x3c8   : > { %v1409_v14 = vpop.xlane.xlu0 %1408 }
 0x3c9   : > { %2039 = vmax.xlane.f32.xlu0 %v2038_v30  ;;  %v9675_v41 = vpop.f32.mrb[44].mxu0  ;;  %v1427_v7 = vsub.f32 %v11073_v29, %v1409_v14  ;;  %v1424_v10 = vpop.xlane.xlu1 %1423  ;;  %v1426_v29 = vsub.f32 %v11079_v42, %v1406_v63 }
 0x3ca   : > { %v2015_v43 = vpop.f32.mrb[45].mxu0  ;;  %v11153_v47 = vmul.f32 0.17677669, %v9675_v41 }
 0x3cb   : > { %2042 = vmax.xlane.f32.xlu1 %v2041_v44  ;;  %v9676_v6 = vpop.f32.mrb[46].mxu0  ;;  %v11157_v32 = vmul.f32 0.17677669, %v2015_v43  ;;  %v1437_v18 = vmul.f32 1.442695, %v1427_v7 }
 0x3cc   : > { %v2018_v39 = vpop.f32.mrb[47].mxu0  ;;  %v2056_v21 = vsel %vm1400_vm1, %v11153_v47, -inf  ;;  %v1403_v43 = vpop.xlane.xlu0 %1402 }
 0x3cd   : > { %2057 = vmax.xlane.f32.xlu0 %v2056_v21  ;;  %v2050_v55 = vsel %vm1400_vm1, %v11157_v32, -inf  ;;  %v1425_v56 = vsub.f32 %v11077_v38, %v1403_v43  ;;  %10131 = vpow2.f32 %v1437_v18  ;;  %v1435_v18 = vmul.f32 1.442695, %v1426_v29 }
 0x3ce   : > { %v11209_v63 = vmul.f32 0.17677669, %v2018_v39 }
 0x3cf   : > { %v1433_v27 = vmul.f32 1.442695, %v1425_v56  ;;  %v1418_v56 = vpop.xlane.xlu1 %1417 }
 0x3d0   : > { %v1412_v8 = vpop.xlane.xlu0 %1411  ;;  %v2053_v42 = vsel %vm1400_vm1, %v11209_v63, -inf }
 0x3d1   : > { %2051 = vmax.xlane.f32.xlu0 %v2050_v55  ;;  %v1428_v31 = vsub.f32 %v11085_v2, %v1412_v8  ;;  %10133 = vpow2.f32 %v1433_v27 }
 0x3d3   : > { %v1439_v7 = vmul.f32 1.442695, %v1428_v31 }
 0x3d4   : > { %v1421_v15 = vpop.xlane.xlu0 %1420 }
 0x3d5   : > { %v1431_v19 = vsub.f32 %v11091_v54, %v1421_v15  ;;  %v1432_v15 = vsub.f32 %v11089_v53, %v1424_v10  ;;  %v11200_v54 = vmul.f32 0.17677669, %v9676_v6 }
 0x3d7   : > { %v1445_v62 = vmul.f32 1.442695, %v1431_v19  ;;  %v11197_v14 = vpop.eup %10131  ;;  %v2059_v31 = vsel %vm1400_vm1, %v11200_v54, -inf }
 0x3d8   : > { %v1415_v48 = vpop.xlane.xlu0 %1414  ;;  %v1455_v8 = vsel %vm1400_vm1, %v11197_v14, 0.0 }
 0x3d9   : > { %v1429_v5 = vsub.f32 %v11099_v52, %v1415_v48  ;;  %10135 = vpow2.f32 %v1445_v62  ;;  %v1447_v48 = vmul.f32 1.442695, %v1432_v15  ;;  %v1430_v62 = vsub.f32 %v11095_v59, %v1418_v56 }
 0x3da   : > { %10137 = vpow2.f32 %v1439_v7 }
 0x3db   : > { %v1441_v38 = vmul.f32 1.442695, %v1429_v5  ;;  %v11204_v27 = vpop.eup %10133  ;;  %v1443_v5 = vmul.f32 1.442695, %v1430_v62 }
 0x3dc   : > { %2132 = vrot.lane.b32.xlu1 %v10871_v36, %s10445_s19  ;;  %v1449_v10 = vsel %vm1400_vm1, %v11204_v27, 0.0 }
 0x3dd   : > { %10139 = vpow2.f32 %v1441_v38 }
 0x3de   : > { %10141 = vpow2.f32 %v1435_v18 }
 0x3df   : > { %10143 = vpow2.f32 %v1447_v48 }
 0x3e0   : > { %2134 = vrot.lane.b32.xlu1 %v10899_v58, %s10445_s19  ;;  %10145 = vpow2.f32 %v1443_v5 }
 0x3e1   : > { %v11167_v16 = vpop.f32.mrb[48].mxu0 }
 0x3e2   : > { %v11169_v1 = vpop.f32.mrb[49].mxu0 }
 0x3e3   : > { %v11171_v30 = vpop.f32.mrb[50].mxu0  ;;  %v11213_v19 = vpop.eup %10135 }
 0x3e4   : > { %2136 = vrot.lane.b32.xlu1 %v10895_v35, %s10445_s19  ;;  %v11175_v41 = vpop.f32.mrb[51].mxu0  ;;  %v11217_v2 = vpop.eup %10137  ;;  %v1467_v53 = vsel %vm1400_vm1, %v11213_v19, 0.0 }
 0x3e5   : > { %v1458_v52 = vsel %vm1400_vm1, %v11217_v2, 0.0 }
 0x3e7   : > { %2130 = vrot.lane.b32.xlu0 %v10873_v37, %s10445_s19  ;;  %v11221_v59 = vpop.eup %10139 }
 0x3e8   : > { %v11225_v6 = vpop.eup %10141  ;;  %v1461_v39 = vsel %vm1400_vm1, %v11221_v59, 0.0 }
 0x3e9   : > { %v11179_v44 = vpop.f32.mrb[52].mxu0  ;;  %v1452_v43 = vsel %vm1400_vm1, %v11225_v6, 0.0  ;;  %v11231_v29 = vpop.eup %10143 }
 0x3ea   : > { %v11181_v21 = vpop.f32.mrb[53].mxu0  ;;  %v1470_v7 = vsel %vm1400_vm1, %v11231_v29, 0.0  ;;  %v11235_v38 = vpop.eup %10145 }
 0x3eb   : > { %v11183_v55 = vpop.f32.mrb[54].mxu0  ;;  %v1464_v18 = vsel %vm1400_vm1, %v11235_v38, 0.0 }
 0x3ec   : > { %v11185_v23 = vpop.f32.mrb[55].mxu0 }
 0x406   : > { %1456 = vadd.xlane.f32.xlu0 %v1455_v8 }
 0x408   : > { %2060 = vmax.xlane.f32.xlu1 %v2059_v31 }
 0x40a   : > { %1450 = vadd.xlane.f32.xlu0 %v1449_v10 }
 0x40c   : > { %2054 = vmax.xlane.f32.xlu1 %v2053_v42 }
 0x40e   : > { %1468 = vadd.xlane.f32.xlu0 %v1467_v53 }
 0x410   : > { %1459 = vadd.xlane.f32.xlu1 %v1458_v52 }
 0x412   : > { %1462 = vadd.xlane.f32.xlu0 %v1461_v39 }
 0x414   : > { %1453 = vadd.xlane.f32.xlu1 %v1452_v43 }
 0x418   : > { %1471 = vadd.xlane.f32.xlu1 %v1470_v7 }
 0x41c   : > { %1465 = vadd.xlane.f32.xlu1 %v1464_v18 }
 0x432   : > { %v1707_v15 = vpop.xlane.xlu0 %1706 }
 0x433   : > { %v1725_v56 = vsub.f32 %v11105_v13, %v1707_v15 }
 0x434   : > { %v1710_v8 = vpop.xlane.xlu1 %1709 }
 0x435   : > { %v1735_v48 = vmul.f32 1.442695, %v1725_v56  ;;  %v1726_v62 = vsub.f32 %v11109_v25, %v1710_v8 }
 0x436   : > { %v1701_v31 = vpop.xlane.xlu0 %1700 }
 0x437   : > { %10147 = vpow2.f32 %v1735_v48  ;;  %v1737_v10 = vmul.f32 1.442695, %v1726_v62  ;;  %v1723_v5 = vsub.f32 %v11111_v33, %v1701_v31 }
 0x438   : > { %v1704_v42 = vpop.xlane.xlu1 %1703 }
 0x439   : > { %10149 = vpow2.f32 %v1737_v10  ;;  %v1731_v53 = vmul.f32 1.442695, %v1723_v5  ;;  %v1724_v52 = vsub.f32 %v11115_v61, %v1704_v42 }
 0x43a   : > { %v1719_v39 = vpop.xlane.xlu0 %1718 }
 0x43b   : > { %10151 = vpow2.f32 %v1731_v53  ;;  %v1733_v43 = vmul.f32 1.442695, %v1724_v52  ;;  %v1729_v7 = vsub.f32 %v11121_v34, %v1719_v39 }
 0x43c   : > { %v1722_v13 = vpop.xlane.xlu1 %1721 }
 0x43d   : > { %10153 = vpow2.f32 %v1733_v43  ;;  %v1743_v18 = vmul.f32 1.442695, %v1729_v7  ;;  %v1730_v25 = vsub.f32 %v11125_v50, %v1722_v13 }
 0x43e   : > { %v1713_v15 = vpop.xlane.xlu0 %1712 }
 0x43f   : > { %10155 = vpow2.f32 %v1743_v18  ;;  %v1745_v56 = vmul.f32 1.442695, %v1730_v25  ;;  %v1727_v33 = vsub.f32 %v11127_v17, %v1713_v15 }
 0x440   : > { %v1716_v8 = vpop.xlane.xlu1 %1715 }
 0x441   : > { %v11246_v48 = vpop.eup %10147  ;;  %v1739_v62 = vmul.f32 1.442695, %v1727_v33  ;;  %v1728_v61 = vsub.f32 %v11131_v51, %v1716_v8  ;;  %10157 = vpow2.f32 %v1745_v56 }
 0x442   : > { %v1753_v34 = vsel %vm1400_vm1, %v11246_v48, 0.0 }
 0x443   : > { %v11251_v31 = vpop.eup %10149  ;;  %10159 = vpow2.f32 %v1739_v62  ;;  %v1741_v10 = vmul.f32 1.442695, %v1728_v61  ;;  %1754 = vadd.xlane.f32.xlu0 %v1753_v34 }
 0x444   : > { %v1756_v50 = vsel %vm1400_vm1, %v11251_v31, 0.0 }
 0x445   : > { %v11255_v5 = vpop.eup %10151  ;;  %1757 = vadd.xlane.f32.xlu1 %v1756_v50  ;;  %10161 = vpow2.f32 %v1741_v10 }
 0x446   : > { %v1747_v17 = vsel %vm1400_vm1, %v11255_v5, 0.0 }
 0x447   : > { %v11259_v42 = vpop.eup %10153  ;;  %1748 = vadd.xlane.f32.xlu0 %v1747_v17 }
 0x448   : > { %v1750_v51 = vsel %vm1400_vm1, %v11259_v42, 0.0 }
 0x449   : > { %v11263_v53 = vpop.eup %10155  ;;  %1751 = vadd.xlane.f32.xlu1 %v1750_v51 }
 0x44a   : > { %v1765_v39 = vsel %vm1400_vm1, %v11263_v53, 0.0 }
 0x44b   : > { %v11265_v52 = vpop.eup %10157 }
 0x44c   : > { %v1768_v13 = vsel %vm1400_vm1, %v11265_v52, 0.0 }
 0x44d   : > { %v11269_v43 = vpop.eup %10159  ;;  %1766 = vadd.xlane.f32.xlu1 %v1765_v39 }
 0x44e   : > { %v1759_v7 = vsel %vm1400_vm1, %v11269_v43, 0.0 }
 0x44f   : > { %1760 = vadd.xlane.f32.xlu0 %v1759_v7  ;;  %v11275_v18 = vpop.eup %10161 }
 0x450   : > { %v1762_v33 = vsel %vm1400_vm1, %v11275_v18, 0.0 }
 0x451   : > { %1769 = vadd.xlane.f32.xlu1 %v1768_v13 }
 0x452   : > { %v2046_v25 = vpop.xlane.xlu0 %2045 }
 0x453   : > { %v2064_v15 = vsub.f32 %v11137_v3, %v2046_v25 }
 0x454   : > { %v2049_v56 = vpop.xlane.xlu1 %2048 }
 0x455   : > { %v2074_v8 = vmul.f32 1.442695, %v2064_v15  ;;  %v2065_v62 = vsub.f32 %v11141_v40, %v2049_v56  ;;  %1763 = vadd.xlane.f32.xlu1 %v1762_v33 }
 0x456   : > { %v2040_v61 = vpop.xlane.xlu0 %2039 }
 0x457   : > { %10163 = vpow2.f32 %v2074_v8  ;;  %v2076_v34 = vmul.f32 1.442695, %v2065_v62  ;;  %v2062_v10 = vsub.f32 %v11143_v12, %v2040_v61 }
 0x458   : > { %v2043_v50 = vpop.xlane.xlu1 %2042 }
 0x459   : > { %10165 = vpow2.f32 %v2076_v34  ;;  %v2070_v17 = vmul.f32 1.442695, %v2062_v10  ;;  %v2063_v51 = vsub.f32 %v11147_v28, %v2043_v50 }
 0x45a   : > { %v2058_v39 = vpop.xlane.xlu0 %2057 }
 0x45b   : > { %10167 = vpow2.f32 %v2070_v17  ;;  %v2072_v3 = vmul.f32 1.442695, %v2063_v51  ;;  %v2068_v7 = vsub.f32 %v11153_v47, %v2058_v39 }
 0x45c   : > { %v11313_v17 = vpop.permute.xlu1 %2132 }
 0x45d   : > { %10169 = vpow2.f32 %v2072_v3  ;;  %v2082_v13 = vmul.f32 1.442695, %v2068_v7 }
 0x45e   : > { %v2052_v25 = vpop.xlane.xlu0 %2051 }
 0x45f   : > { %v2066_v40 = vsub.f32 %v11157_v32, %v2052_v25  ;;  %10171 = vpow2.f32 %v2082_v13 }
 0x460   : > { %v11315_v51 = vpop.permute.xlu1 %2134 }
 0x461   : > { %v11285_v15 = vpop.eup %10163  ;;  %v2078_v56 = vmul.f32 1.442695, %v2066_v40 }
 0x462   : > { %v2092_v12 = vsel %vm1400_vm1, %v11285_v15, 0.0  ;;  %v11317_v39 = vpop.permute.xlu0 %2130 }
 0x463   : > { %v11289_v33 = vpop.eup %10165  ;;  %2093 = vadd.xlane.f32.xlu0 %v2092_v12  ;;  %10173 = vpow2.f32 %v2078_v56 }
 0x464   : > { %v2095_v47 = vsel %vm1400_vm1, %v11289_v33, 0.0  ;;  %v11319_v3 = vpop.permute.xlu1 %2136 }
 0x465   : > { %v11291_v28 = vpop.eup %10167 }
 0x466   : > { %v2086_v8 = vsel %vm1400_vm1, %v11291_v28, 0.0 }
 0x467   : > { %v11297_v32 = vpop.eup %10169  ;;  %2096 = vadd.xlane.f32.xlu0 %v2095_v47  ;;  %2087 = vadd.xlane.f32.xlu1 %v2086_v8 }
 0x468   : > { %v2089_v62 = vsel %vm1400_vm1, %v11297_v32, 0.0 }
 0x469   : > { %v11301_v61 = vpop.eup %10171 }
 0x46a   : > { %v2104_v34 = vsel %vm1400_vm1, %v11301_v61, 0.0 }
 0x46b   : > { %2090 = vadd.xlane.f32.xlu0 %v2089_v62 }
 0x46d   : > { %v11305_v10 = vpop.eup %10173 }
 0x46e   : > { %v2098_v50 = vsel %vm1400_vm1, %v11305_v10, 0.0 }
 0x46f   : > { %2105 = vadd.xlane.f32.xlu0 %v2104_v34 }
 0x473   : > { %2099 = vadd.xlane.f32.xlu0 %v2098_v50 }
 0x478   : > { %2270 = vrot.lane.b32.xlu1 %v10883_v49, %s10446_s23 }
 0x47c   : > { %2272 = vrot.lane.b32.xlu1 %v10907_v4, %s10446_s23 }
 0x493   : > { %v1457_v7 = vpop.xlane.xlu0 %1456 }
 0x495   : > { %v2061_v13 = vpop.xlane.xlu1 %2060 }
 0x496   : > { %v2069_v25 = vsub.f32 %v11200_v54, %v2061_v13 }
 0x497   : > { %v1451_v56 = vpop.xlane.xlu0 %1450 }
 0x498   : > { %v2084_v40 = vmul.f32 1.442695, %v2069_v25 }
 0x499   : > { %v2055_v12 = vpop.xlane.xlu1 %2054 }
 0x49a   : > { %10175 = vpow2.f32 %v2084_v40  ;;  %v2067_v49 = vsub.f32 %v11209_v63, %v2055_v12 }
 0x49b   : > { %v1469_v8 = vpop.xlane.xlu0 %1468 }
 0x49c   : > { %v2080_v47 = vmul.f32 1.442695, %v2067_v49 }
 0x49d   : > { %v1460_v4 = vpop.xlane.xlu1 %1459 }
 0x49e   : > { %10177 = vpow2.f32 %v2080_v47 }
 0x49f   : > { %10179 = vrcp.f32 %v1460_v4  ;;  %v1463_v50 = vpop.xlane.xlu0 %1462 }
 0x4a0   : > { %10181 = vrcp.f32 %v1451_v56 }
 0x4a1   : > { %10183 = vrcp.f32 %v1457_v7  ;;  %v1454_v62 = vpop.xlane.xlu1 %1453 }
 0x4a2   : > { %10185 = vrcp.f32 %v1454_v62 }
 0x4a4   : > { %v11323_v34 = vpop.eup %10175 }
 0x4a5   : > { %v1472_v57 = vpop.xlane.xlu1 %1471  ;;  %v2107_v54 = vsel %vm1400_vm1, %v11323_v34, 0.0 }
 0x4a6   : > { %2108 = vadd.xlane.f32.xlu0 %v2107_v54  ;;  %10187 = vrcp.f32 %v1472_v57 }
 0x4a7   : > { %10189 = vrcp.f32 %v1463_v50 }
 0x4a8   : > { %v11327_v13 = vpop.eup %10177  ;;  %10191 = vrcp.f32 %v1469_v8 }
 0x4a9   : > { %v10180_v63 = vpop.eup %10179  ;;  %v1466_v25 = vpop.xlane.xlu1 %1465  ;;  %v2101_v7 = vsel %vm1400_vm1, %v11327_v13, 0.0 }
 0x4aa   : > { %v10182_v40 = vpop.eup %10181  ;;  %10193 = vrcp.f32 %v1466_v25  ;;  %2102 = vadd.xlane.f32.xlu1 %v2101_v7  ;;  %v1484_v49 = vmul.f32 %v10180_v63, %v11217_v2 }
 0x4ab   : > { %v10184_v56 = vpop.eup %10183  ;;  %v1481_v47 = vmul.f32 %v10182_v40, %v11204_v27 }
 0x4ac   : > { %v10186_v12 = vpop.eup %10185  ;;  %v1483_v4 = vmul.f32 %v10184_v56, %v11197_v14 }
 0x4ad   : > { %v1482_v57 = vmul.f32 %v10186_v12, %v11225_v6 }
 0x4ae   : > { %v1490_v50 = vpack.c.bf16 %v1484_v49, %v1483_v4 }
 0x4af   : > { %v1489_v62 = vpack.c.bf16 %v1482_v57, %v1481_v47 }
 0x4b0   : > { %v10188_v8 = vpop.eup %10187 }
 0x4b1   : > { %9621 = vmatprep.mubr.msk.bf16.mxu1 %vm1400_vm1, %v1489_v62  ;;  %v10190_v54 = vpop.eup %10189  ;;  %v1488_v27 = vmul.f32 %v10188_v8, %v11231_v29 }
 0x4b2   : > { %9622 = vmatmul.mubr.msk.bf16.vlgmr.msra.gmra.mrb[24].mxu1 %vm1400_vm1, %v1490_v50  ;;  %v10192_v25 = vpop.eup %10191  ;;  %v1485_v2 = vmul.f32 %v10190_v54, %v11221_v59 }
 0x4b3   : > { %9646 = vmatpush3.bf16.msra.mxu1 %v10986_v45  ;;  %v1487_v6 = vmul.f32 %v10192_v25, %v11213_v19 }
 0x4b4   : > { %v10194_v7 = vpop.eup %10193  ;;  %9647 = vmatprep.subr.bf16.mxu1 %v11187_v9 }
 0x4b5   : > { %v1486_v14 = vmul.f32 %v10194_v7, %v11235_v38  ;;  %v1492_v40 = vpack.c.bf16 %v1488_v27, %v1487_v6 }
 0x4b7   : > { %9648 = vmatpush3.bf16.msra.mxu1 %v11187_v9  ;;  %v1491_v63 = vpack.c.bf16 %v1486_v14, %v1485_v2 }
 0x4b8   : > { %9649 = vmatprep.subr.bf16.mxu1 %v11163_v60 }
 0x4b9   : > { %9625 = vmatprep.mubr.msk.bf16.mxu1 %vm1400_vm1, %v1491_v63 }
 0x4ba   : > { %9626 = vmatmul.mubr.msk.bf16.gmra.mrb[28].mxu1 %vm1400_vm1, %v1492_v40 }
 0x4bb   : > { %9650 = vmatpush3.bf16.msra.mxu1 %v11163_v60  ;;  %2274 = vrot.lane.b32.xlu1 %v10923_v22, %s10446_s23 }
 0x4bc   : > { %9651 = vmatprep.subr.bf16.mxu1 %v11191_v24  ;;  %2268 = vrot.lane.b32.xlu0 %v10857_v0, %s10446_s23 }
 0x4bf   : > { %9652 = vmatpush3.bf16.msra.mxu1 %v11191_v24  ;;  %2262 = vrot.lane.b32.xlu1 %v10881_v46, %s10446_s23 }
 0x4c0   : > { %9677 = vmatprep.subr.bf16.mxu1 %v11317_v39  ;;  %2260 = vrot.lane.b32.xlu0 %v10855_v26, %s10446_s23 }
 0x4c3   : > { %2266 = vrot.lane.b32.xlu1 %v10921_v20, %s10446_s23 }
 0x4c4   : > { %2264 = vrot.lane.b32.xlu0 %v10905_v11, %s10446_s23  ;;  %v11365_v11 = vmul.f32 0.17677669, %v11175_v41 }
 0x4d0   : > { %v1755_v9 = vpop.xlane.xlu0 %1754 }
 0x4d2   : > { %v1758_v22 = vpop.xlane.xlu1 %1757 }
 0x4d3   : > { %10195 = vrcp.f32 %v1758_v22 }
 0x4d4   : > { %v1749_v0 = vpop.xlane.xlu0 %1748 }
 0x4d5   : > { %10197 = vrcp.f32 %v1749_v0 }
 0x4d6   : > { %10199 = vrcp.f32 %v1755_v9  ;;  %v1752_v45 = vpop.xlane.xlu1 %1751 }
 0x4d7   : > { %10201 = vrcp.f32 %v1752_v45 }
 0x4da   : > { %v1767_v46 = vpop.xlane.xlu1 %1766 }
 0x4dc   : > { %v1761_v60 = vpop.xlane.xlu0 %1760 }
 0x4dd   : > { %v10196_v24 = vpop.eup %10195 }
 0x4de   : > { %v1770_v19 = vpop.xlane.xlu1 %1769  ;;  %v1782_v20 = vmul.f32 %v10196_v24, %v11251_v31  ;;  %v2707_v31 = vsel %vm1400_vm1, %v11365_v11, -inf }
 0x4df   : > { %v10198_v59 = vpop.eup %10197  ;;  %10203 = vrcp.f32 %v1770_v19 }
 0x4e0   : > { %v10200_v26 = vpop.eup %10199  ;;  %10205 = vrcp.f32 %v1761_v60  ;;  %v1779_v56 = vmul.f32 %v10198_v59, %v11255_v5 }
 0x4e1   : > { %v10202_v29 = vpop.eup %10201  ;;  %10207 = vrcp.f32 %v1767_v46  ;;  %v1781_v49 = vmul.f32 %v10200_v26, %v11246_v48 }
 0x4e2   : > { %v1764_v38 = vpop.xlane.xlu1 %1763  ;;  %v1780_v12 = vmul.f32 %v10202_v29, %v11259_v42 }
 0x4e3   : > { %10209 = vrcp.f32 %v1764_v38  ;;  %v1788_v57 = vpack.c.bf16 %v1782_v20, %v1781_v49 }
 0x4e4   : > { %v1787_v47 = vpack.c.bf16 %v1780_v12, %v1779_v56 }
 0x4e6   : > { %9653 = vmatprep.mubr.msk.bf16.mxu1 %vm1400_vm1, %v1787_v47 }
 0x4e7   : > { %2708 = vmax.xlane.f32.xlu1 %v2707_v31  ;;  %9654 = vmatmul.mubr.msk.bf16.vlgmr.msra.gmra.mrb[32].mxu1 %vm1400_vm1, %v1788_v57 }
 0x4e8   : > { %9678 = vmatpush3.bf16.msra.mxu1 %v11317_v39 }
 0x4e9   : > { %9679 = vmatprep.subr.bf16.mxu1 %v11313_v17  ;;  %v10204_v41 = vpop.eup %10203 }
 0x4ea   : > { %v10206_v5 = vpop.eup %10205  ;;  %v1786_v4 = vmul.f32 %v10204_v41, %v11265_v52 }
 0x4eb   : > { %v10208_v42 = vpop.eup %10207  ;;  %v1783_v62 = vmul.f32 %v10206_v5, %v11269_v43 }
 0x4ec   : > { %9680 = vmatpush3.bf16.msra.mxu1 %v11313_v17  ;;  %v1785_v8 = vmul.f32 %v10208_v42, %v11263_v53 }
 0x4ed   : > { %v10210_v48 = vpop.eup %10209  ;;  %9681 = vmatprep.subr.bf16.mxu1 %v11315_v51 }
 0x4ee   : > { %v1784_v50 = vmul.f32 %v10210_v48, %v11275_v18  ;;  %v1790_v25 = vpack.c.bf16 %v1786_v4, %v1785_v8 }
 0x4f0   : > { %9682 = vmatpush3.bf16.msra.mxu1 %v11315_v51  ;;  %v2094_v39 = vpop.xlane.xlu0 %2093  ;;  %v1789_v54 = vpack.c.bf16 %v1784_v50, %v1783_v62 }
 0x4f1   : > { %9683 = vmatprep.subr.bf16.mxu1 %v11319_v3 }
 0x4f2   : > { %9657 = vmatprep.mubr.msk.bf16.mxu1 %vm1400_vm1, %v1789_v54 }
 0x4f3   : > { %9658 = vmatmul.mubr.msk.bf16.gmra.mrb[36].mxu1 %vm1400_vm1, %v1790_v25 }
 0x4f4   : > { %9684 = vmatpush3.bf16.msra.mxu1 %v11319_v3  ;;  %v2088_v52 = vpop.xlane.xlu1 %2087  ;;  %v2097_v17 = vpop.xlane.xlu0 %2096 }
 0x4f5   : > { %10211 = vrcp.f32 %v2097_v17 }
 0x4f6   : > { %10213 = vrcp.f32 %v2088_v52 }
 0x4f7   : > { %10215 = vrcp.f32 %v2094_v39 }
 0x4f8   : > { %v2091_v43 = vpop.xlane.xlu0 %2090  ;;  %v2271_v9 = vpop.permute.xlu1 %2270 }
 0x4f9   : > { %10217 = vrcp.f32 %v2091_v43  ;;  %v2292_v24 = vsel %vm1302_vm0, %v2271_v9, 0 }
 0x4fc   : > { %v2106_v40 = vpop.xlane.xlu0 %2105  ;;  %v2273_v0 = vpop.permute.xlu1 %2272 }
 0x4fd   : > { %v2295_v49 = vsel %vm1302_vm0, %v2273_v0, 0 }
 0x4ff   : > { %v10212_v53 = vpop.eup %10211 }
 0x500   : > { %v10214_v18 = vpop.eup %10213  ;;  %v2121_v27 = vmul.f32 %v10212_v53, %v11289_v33  ;;  %v2100_v22 = vpop.xlane.xlu0 %2099 }
 0x501   : > { %v10216_v51 = vpop.eup %10215  ;;  %v2118_v2 = vmul.f32 %v10214_v18, %v11291_v28 }
 0x502   : > { %v2120_v6 = vmul.f32 %v10216_v51, %v11285_v15 }
 0x503   : > { %v10218_v7 = vpop.eup %10217 }
 0x504   : > { %v2119_v14 = vmul.f32 %v10218_v7, %v11297_v32  ;;  %v2127_v63 = vpack.c.bf16 %v2121_v27, %v2120_v6 }
 0x506   : > { %v2126_v3 = vpack.c.bf16 %v2119_v14, %v2118_v2 }
 0x508   : > { %9685 = vmatprep.mubr.msk.bf16.mxu1 %vm1400_vm1, %v2126_v3 }
 0x509   : > { %9686 = vmatmul.mubr.msk.bf16.vlgmr.msra.gmra.mrb[40].mxu1 %vm1400_vm1, %v2127_v63 }
 0x533   : > { %v2109_v45 = vpop.xlane.xlu0 %2108 }
 0x534   : > { %10219 = vrcp.f32 %v2109_v45 }
 0x535   : > { %10221 = vrcp.f32 %v2100_v22 }
 0x536   : > { %10223 = vrcp.f32 %v2106_v40 }
 0x537   : > { %v2103_v33 = vpop.xlane.xlu1 %2102  ;;  %v2269_v28 = vpop.permute.xlu0 %2268 }
 0x538   : > { %10225 = vrcp.f32 %v2103_v33  ;;  %9897 = vmatprep.subr.msk.bf16.mxu1 %vm1302_vm0, %v2269_v28  ;;  %v2289_v15 = vsel %vm1302_vm0, %v2269_v28, 0  ;;  %v11460_v28 = vmul.f32 0.17677669, %v11171_v30 }
 0x539   : > { %9694 = vmatpush3.bf16.xpose.msra.mxu1 %v2289_v15 }
 0x53a   : > { %9898 = vmatprep.subr.msk.bf16.mxu1 %vm1302_vm0, %v2271_v9  ;;  %v2713_v30 = vsel %vm1400_vm1, %v11460_v28, -inf }
 0x53b   : > { %v2261_v12 = vpop.permute.xlu0 %2260  ;;  %v2275_v47 = vpop.permute.xlu1 %2274 }
 0x53e   : > { %v10220_v32 = vpop.eup %10219 }
 0x53f   : > { %v10222_v46 = vpop.eup %10221  ;;  %v2125_v59 = vmul.f32 %v10220_v32, %v11323_v34  ;;  %v2263_v34 = vpop.permute.xlu1 %2262 }
 0x540   : > { %v10224_v60 = vpop.eup %10223  ;;  %v2122_v26 = vmul.f32 %v10222_v46, %v11305_v10  ;;  %v2298_v10 = vsel %vm1302_vm0, %v2275_v47, 0 }
 0x541   : > { %9696 = vmatpush3.bf16.xpose.msra.mxu1 %v2292_v24  ;;  %v2124_v20 = vmul.f32 %v10224_v60, %v11301_v61  ;;  %v2265_v61 = vpop.permute.xlu0 %2264 }
 0x542   : > { %v10226_v19 = vpop.eup %10225  ;;  %9899 = vmatprep.subr.msk.bf16.mxu1 %vm1302_vm0, %v2273_v0 }
 0x543   : > { %v2123_v29 = vmul.f32 %v10226_v19, %v11327_v13  ;;  %v2129_v56 = vpack.c.bf16 %v2125_v59, %v2124_v20  ;;  %v2267_v13 = vpop.permute.xlu1 %2266  ;;  %v11469_v19 = vmul.f32 0.17677669, %v11185_v23 }
 0x545   : > { %v2128_v38 = vpack.c.bf16 %v2123_v29, %v2122_v26  ;;  %v2696_v26 = vmul.f32 0.17677669, %v11169_v1 }
 0x547   : > { %9689 = vmatprep.mubr.msk.bf16.mxu1 %vm1400_vm1, %v2128_v38  ;;  %v11477_v38 = vmul.f32 0.17677669, %v11183_v55 }
 0x548   : > { %9690 = vmatmul.mubr.msk.bf16.gmra.mrb[44].mxu1 %vm1400_vm1, %v2129_v56  ;;  %v2719_v56 = vsel %vm1400_vm1, %v11469_v19, -inf }
 0x549   : > { %9698 = vmatpush3.bf16.xpose.msra.mxu1 %v2295_v49  ;;  %9701 = vmatprep.mubr.msk.bf16.mxu1 %vm1302_vm0, %v2261_v12  ;;  %v2704_v12 = vsel %vm1400_vm1, %v2696_v26, -inf  ;;  %v2725_v1 = vsel %vm1400_vm1, %v11477_v38, -inf }
 0x54a   : > { %9900 = vmatprep.subr.msk.bf16.mxu1 %vm1302_vm0, %v2275_v47 }
 0x551   : > { %9700 = vmatpush3.bf16.xpose.msra.mxu1 %v2298_v10 }
 0x558   : > { %9702 = vmatmul.mubr.msk.bf16.vlgmr.msra.gmra.mrb[48].mxu1 %vm1302_vm0, %v2263_v34 }
 0x559   : > { %9705 = vmatprep.mubr.msk.bf16.mxu1 %vm1302_vm0, %v2265_v61  ;;  %v11497_v61 = vmul.f32 0.17677669, %v11167_v16 }
 0x560   : > { %9706 = vmatmul.mubr.msk.bf16.gmra.mrb[52].mxu1 %vm1302_vm0, %v2267_v13 }
 0x585   : > { %v9623_v57 = vpop.f32.mrb[24].mxu1 }
 0x586   : > { %1572 = vst.msk [vmem:[#allocation3 + $0x10] sm:$0xff] %vm1302_vm0, %v9623_v57  ;;  %v1539_v31 = vpop.f32.mrb[25].mxu1 }
 0x587   : > { %1570 = vst.msk [vmem:[#allocation3] sm:$0xff] %vm1302_vm0, %v1539_v31  ;;  %v9624_v41 = vpop.f32.mrb[26].mxu1  ;;  %v11504_v31 = vmul.f32 0.17677669, %v11181_v21  ;;  %v2709_v21 = vpop.xlane.xlu1 %2708 }
 0x588   : > { %1573 = vst.msk [vmem:[#allocation3 + $0x18] sm:$0xff] %vm1302_vm0, %v9624_v41  ;;  %v1542_v5 = vpop.f32.mrb[27].mxu1  ;;  %v2710_v41 = vsel %vm1400_vm1, %v11497_v61, -inf }
 0x589   : > { %1571 = vst.msk [vmem:[#allocation3 + $0x8] sm:$0xff] %vm1302_vm0, %v1542_v5  ;;  %v11509_v5 = vmul.f32 0.17677669, %v11179_v44  ;;  %v2716_v16 = vsel %vm1400_vm1, %v11504_v31, -inf  ;;  %v2729_v44 = vsub.f32 %v11365_v11, %v2709_v21 }
 0x58d   : > { %v9627_v42 = vpop.f32.mrb[28].mxu1 }
 0x58e   : > { %1576 = vst.msk [vmem:[#allocation3 + $0x30] sm:$0xff] %vm1302_vm0, %v9627_v42  ;;  %v1555_v48 = vpop.f32.mrb[29].mxu1  ;;  %v2722_v42 = vsel %vm1400_vm1, %v11509_v5, -inf }
 0x58f   : > { %1574 = vst.msk [vmem:[#allocation3 + $0x20] sm:$0xff] %vm1302_vm0, %v1555_v48  ;;  %v9628_v4 = vpop.f32.mrb[30].mxu1  ;;  %v2738_v48 = vmul.f32 1.442695, %v2729_v44 }
 0x590   : > { %1577 = vst.msk [vmem:[#allocation3 + $0x38] sm:$0xff] %vm1302_vm0, %v9628_v4  ;;  %v1558_v62 = vpop.f32.mrb[31].mxu1 }
 0x591   : > { %1575 = vst.msk [vmem:[#allocation3 + $0x28] sm:$0xff] %vm1302_vm0, %v1558_v62  ;;  %10227 = vpow2.f32 %v2738_v48 }
 0x59b   : > { %v11522_v4 = vpop.eup %10227 }
 0x59c   : > { %v2755_v62 = vsel %vm1400_vm1, %v11522_v4, 0.0 }
 0x5ba   : > { %v11419_v50 = vpop.f32.mrb[32].mxu1 }
 0x5bb   : > { %v11421_v8 = vpop.f32.mrb[33].mxu1 }
 0x5bc   : > { %v11423_v39 = vpop.f32.mrb[34].mxu1 }
 0x5bd   : > { %v11425_v54 = vpop.f32.mrb[35].mxu1 }
 0x5c6   : > { %v11427_v25 = vpop.f32.mrb[36].mxu1 }
 0x5c7   : > { %v11429_v52 = vpop.f32.mrb[37].mxu1 }
 0x5c8   : > { %v11431_v17 = vpop.f32.mrb[38].mxu1 }
 0x5c9   : > { %v11433_v43 = vpop.f32.mrb[39].mxu1 }
 0x5dc   : > { %v11435_v53 = vpop.f32.mrb[40].mxu1 }
 0x5dd   : > { %v11437_v18 = vpop.f32.mrb[41].mxu1 }
 0x5de   : > { %v11439_v51 = vpop.f32.mrb[42].mxu1 }
 0x5df   : > { %v11441_v7 = vpop.f32.mrb[43].mxu1 }
 0x61b   : > { %v11443_v27 = vpop.f32.mrb[44].mxu1 }
 0x61c   : > { %v11445_v2 = vpop.f32.mrb[45].mxu1 }
 0x61d   : > { %v11447_v14 = vpop.f32.mrb[46].mxu1 }
 0x61e   : > { %v11449_v6 = vpop.f32.mrb[47].mxu1 }
 0x62b   : > { %v9703_v3 = vpop.f32.mrb[48].mxu1 }
 0x62c   : > { %v11451_v63 = vmul.f32 0.17677669, %v9703_v3  ;;  %v2334_v40 = vpop.f32.mrb[49].mxu1 }
 0x62d   : > { %v9704_v9 = vpop.f32.mrb[50].mxu1  ;;  %v11453_v22 = vmul.f32 0.17677669, %v2334_v40 }
 0x62e   : > { %v2337_v0 = vpop.f32.mrb[51].mxu1  ;;  %v2379_v45 = vsel %vm1400_vm1, %v11451_v63, -inf  ;;  %v11464_v32 = vmul.f32 0.17677669, %v9704_v9 }
 0x62f   : > { %v11457_v33 = vmul.f32 0.17677669, %v2337_v0  ;;  %2380 = vmax.xlane.f32.xlu0 %v2379_v45  ;;  %v2373_v46 = vsel %vm1400_vm1, %v11453_v22, -inf }
 0x630   : > { %v2382_v20 = vsel %vm1400_vm1, %v11464_v32, -inf }
 0x631   : > { %v2376_v15 = vsel %vm1400_vm1, %v11457_v33, -inf }
 0x632   : > { %2377 = vmax.xlane.f32.xlu1 %v2376_v15 }
 0x633   : > { %2374 = vmax.xlane.f32.xlu0 %v2373_v46  ;;  %v9707_v24 = vpop.f32.mrb[52].mxu1 }
 0x634   : > { %v2350_v60 = vpop.f32.mrb[53].mxu1  ;;  %v11481_v23 = vmul.f32 0.17677669, %v9707_v24 }
 0x635   : > { %v9708_v59 = vpop.f32.mrb[54].mxu1  ;;  %v11488_v47 = vmul.f32 0.17677669, %v2350_v60 }
 0x636   : > { %2714 = vmax.xlane.f32.xlu1 %v2713_v30  ;;  %v2353_v29 = vpop.f32.mrb[55].mxu1  ;;  %v11484_v49 = vmul.f32 0.17677669, %v9708_v59  ;;  %v2391_v55 = vsel %vm1400_vm1, %v11481_v23, -inf }
 0x637   : > { %2383 = vmax.xlane.f32.xlu0 %v2382_v20  ;;  %v11492_v10 = vmul.f32 0.17677669, %v2353_v29  ;;  %v2385_v13 = vsel %vm1400_vm1, %v11488_v47, -inf }
 0x638   : > { %v2394_v34 = vsel %vm1400_vm1, %v11484_v49, -inf }
 0x639   : > { %v2388_v57 = vsel %vm1400_vm1, %v11492_v10, -inf }
 0x63a   : > { %2720 = vmax.xlane.f32.xlu1 %v2719_v56 }
 0x63b   : > { %2705 = vmax.xlane.f32.xlu0 %v2704_v12 }
 0x63e   : > { %2726 = vmax.xlane.f32.xlu1 %v2725_v1 }
 0x63f   : > { %2392 = vmax.xlane.f32.xlu0 %v2391_v55 }
 0x642   : > { %2395 = vmax.xlane.f32.xlu1 %v2394_v34 }
 0x643   : > { %2386 = vmax.xlane.f32.xlu0 %v2385_v13 }
 0x646   : > { %2389 = vmax.xlane.f32.xlu1 %v2388_v57 }
 0x647   : > { %2711 = vmax.xlane.f32.xlu0 %v2710_v41 }
 0x64b   : > { %2717 = vmax.xlane.f32.xlu0 %v2716_v16 }
 0x64f   : > { %2723 = vmax.xlane.f32.xlu0 %v2722_v42 }
 0x657   : > { %2467 = vrot.lane.b32.xlu1 %v10871_v36, %s10446_s23 }
 0x665   : > { %2465 = vrot.lane.b32.xlu0 %v10873_v37, %s10446_s23 }
 0x669   : > { %2469 = vrot.lane.b32.xlu0 %v10899_v58, %s10446_s23 }
 0x688   : > { %2756 = vadd.xlane.f32.xlu0 %v2755_v62 }
 0x6bc   : > { %v2381_v3 = vpop.xlane.xlu0 %2380 }
 0x6bd   : > { %v2399_v36 = vsub.f32 %v11451_v63, %v2381_v3 }
 0x6bf   : > { %v2409_v40 = vmul.f32 1.442695, %v2399_v36  ;;  %v2378_v9 = vpop.xlane.xlu1 %2377 }
 0x6c0   : > { %v2375_v37 = vpop.xlane.xlu0 %2374  ;;  %v2398_v30 = vsub.f32 %v11457_v33, %v2378_v9 }
 0x6c1   : > { %10229 = vpow2.f32 %v2409_v40  ;;  %v2397_v58 = vsub.f32 %v11453_v22, %v2375_v37 }
 0x6c3   : > { %v2405_v0 = vmul.f32 1.442695, %v2397_v58  ;;  %v2715_v45 = vpop.xlane.xlu1 %2714 }
 0x6c4   : > { %v2384_v11 = vpop.xlane.xlu0 %2383  ;;  %v2731_v34 = vsub.f32 %v11460_v28, %v2715_v45 }
 0x6c5   : > { %10231 = vpow2.f32 %v2405_v0  ;;  %v2400_v15 = vsub.f32 %v11464_v32, %v2384_v11  ;;  %v2407_v32 = vmul.f32 1.442695, %v2398_v30 }
 0x6c6   : > { %v2742_v21 = vmul.f32 1.442695, %v2731_v34 }
 0x6c7   : > { %v2721_v46 = vpop.xlane.xlu1 %2720  ;;  %v2411_v63 = vmul.f32 1.442695, %v2400_v15 }
 0x6c8   : > { %v2706_v24 = vpop.xlane.xlu0 %2705  ;;  %v2733_v58 = vsub.f32 %v11469_v19, %v2721_v46 }
 0x6c9   : > { %v2728_v60 = vsub.f32 %v2696_v26, %v2706_v24 }
 0x6cb   : > { %v11529_v59 = vpop.eup %10229  ;;  %v2736_v29 = vmul.f32 1.442695, %v2728_v60  ;;  %v11532_v20 = vpop.xlane.xlu1 %2726  ;;  %v2746_v60 = vmul.f32 1.442695, %v2733_v58 }
 0x6cc   : > { %v2393_v56 = vpop.xlane.xlu0 %2392  ;;  %v2427_v22 = vsel %vm1400_vm1, %v11529_v59, 0.0 }
 0x6cd   : > { %10233 = vpow2.f32 %v2736_v29  ;;  %2428 = vadd.xlane.f32.xlu0 %v2427_v22  ;;  %v2403_v26 = vsub.f32 %v11481_v23, %v2393_v56  ;;  %v2735_v22 = vsub.f32 %v11477_v38, %v11532_v20 }
 0x6ce   : > { %10235 = vpow2.f32 %v2411_v63 }
 0x6cf   : > { %v11536_v12 = vpop.eup %10231  ;;  %v2396_v1 = vpop.xlane.xlu1 %2395  ;;  %10237 = vpow2.f32 %v2407_v32  ;;  %v2417_v13 = vmul.f32 1.442695, %v2403_v26 }
 0x6d0   : > { %v2387_v55 = vpop.xlane.xlu0 %2386  ;;  %v2421_v33 = vsel %vm1400_vm1, %v11536_v12, 0.0  ;;  %v2404_v57 = vsub.f32 %v11484_v49, %v2396_v1 }
 0x6d1   : > { %2422 = vadd.xlane.f32.xlu0 %v2421_v33  ;;  %v2401_v44 = vsub.f32 %v11488_v47, %v2387_v55  ;;  %10239 = vpow2.f32 %v2417_v13  ;;  %v2750_v33 = vmul.f32 1.442695, %v2735_v22 }
 0x6d2   : > { %v2419_v48 = vmul.f32 1.442695, %v2404_v57 }
 0x6d3   : > { %v2390_v41 = vpop.xlane.xlu1 %2389  ;;  %v2413_v49 = vmul.f32 1.442695, %v2401_v44 }
 0x6d4   : > { %v2712_v16 = vpop.xlane.xlu0 %2711  ;;  %v2402_v62 = vsub.f32 %v11492_v10, %v2390_v41 }
 0x6d5   : > { %v2730_v42 = vsub.f32 %v11497_v61, %v2712_v16 }
 0x6d6   : > { %v2415_v61 = vmul.f32 1.442695, %v2402_v62  ;;  %v13826_v62 = vld [vmem:[#allocation18_spill] sm:$0xff] }
 0x6d7   : > { %v11545_v23 = vpop.eup %10233  ;;  %v2740_v3 = vmul.f32 1.442695, %v2730_v42 }
 0x6d8   : > { %v2718_v36 = vpop.xlane.xlu0 %2717  ;;  %v2752_v28 = vsel %vm1400_vm1, %v11545_v23, 0.0  ;;  %v11550_v40 = vpop.eup %10235 }
 0x6d9   : > { %10241 = vpow2.f32 %v2740_v3  ;;  %2753 = vadd.xlane.f32.xlu1 %v2752_v28  ;;  %v2732_v47 = vsub.f32 %v11504_v31, %v2718_v36  ;;  %v2430_v37 = vsel %vm1400_vm1, %v11550_v40, 0.0  ;;  %v11555_v10 = vpop.eup %10237  ;;  %v2468_v31 = vpop.permute.xlu1 %2467  ;;  %v13827_v3 = vld [vmem:[#allocation20_spill] sm:$0xff]  ;;  %v13828_v36 = vld [vmem:[#allocation9_spill] sm:$0xff] }
 0x6da   : > { %10243 = vpow2.f32 %v2742_v21  ;;  %v2424_v11 = vsel %vm1400_vm1, %v11555_v10, 0.0  ;;  %v13829_v28 = vld [vmem:[#allocation13_spill] sm:$0xff] }
 0x6db   : > { %10245 = vpow2.f32 %v2419_v48  ;;  %v2744_v0 = vmul.f32 1.442695, %v2732_v47  ;;  %v11560_v15 = vpop.eup %10239  ;;  %v13825_v48 = vld [vmem:[#allocation10_spill] sm:$0xff] }
 0x6dc   : > { %v2724_v9 = vpop.xlane.xlu0 %2723  ;;  %10247 = vpow2.f32 %v2413_v49  ;;  %v2439_v46 = vsel %vm1400_vm1, %v11560_v15, 0.0  ;;  %v13830_v49 = vld [vmem:[#allocation14_spill] sm:$0xff] }
 0x6dd   : > { %2431 = vadd.xlane.f32.xlu1 %v2430_v37  ;;  %10249 = vpow2.f32 %v2415_v61  ;;  %v2734_v30 = vsub.f32 %v11509_v5, %v2724_v9  ;;  %v13832_v61 = vld [vmem:[#allocation19_spill] sm:$0xff] }
 0x6de   : > { %10251 = vpow2.f32 %v2744_v0 }
 0x6df   : > { %10253 = vpow2.f32 %v2746_v60  ;;  %v2748_v5 = vmul.f32 1.442695, %v2734_v30 }
 0x6e0   : > { %v2466_v45 = vpop.permute.xlu0 %2465 }
 0x6e1   : > { %2425 = vadd.xlane.f32.xlu1 %v2424_v11  ;;  %9709 = vmatprep.subr.bf16.mxu1 %v2466_v45  ;;  %10255 = vpow2.f32 %v2748_v5 }
 0x6e2   : > { %9710 = vmatpush3.bf16.msra.mxu1 %v2466_v45  ;;  %10257 = vpow2.f32 %v2750_v33 }
 0x6e3   : > { %v11562_v24 = vpop.eup %10241  ;;  %9711 = vmatprep.subr.bf16.mxu1 %v2468_v31 }
 0x6e4   : > { %v11565_v19 = vpop.eup %10243  ;;  %v2758_v63 = vsel %vm1400_vm1, %v11562_v24, 0.0  ;;  %v2470_v56 = vpop.permute.xlu0 %2469 }
 0x6e5   : > { %v11571_v29 = vpop.eup %10245  ;;  %2440 = vadd.xlane.f32.xlu1 %v2439_v46  ;;  %2759 = vadd.xlane.f32.xlu0 %v2758_v63  ;;  %v2761_v1 = vsel %vm1400_vm1, %v11565_v19, 0.0 }
 0x6e6   : > { %9712 = vmatpush3.bf16.msra.mxu1 %v2468_v31  ;;  %v11575_v32 = vpop.eup %10247  ;;  %v2442_v26 = vsel %vm1400_vm1, %v11571_v29, 0.0 }
 0x6e7   : > { %9713 = vmatprep.subr.bf16.mxu1 %v2470_v56  ;;  %v11581_v55 = vpop.eup %10249  ;;  %v2433_v20 = vsel %vm1400_vm1, %v11575_v32, 0.0 }
 0x6e8   : > { %v2436_v38 = vsel %vm1400_vm1, %v11581_v55, 0.0  ;;  %v11587_v34 = vpop.eup %10251 }
 0x6e9   : > { %2443 = vadd.xlane.f32.xlu1 %v2442_v26  ;;  %2762 = vadd.xlane.f32.xlu0 %v2761_v1  ;;  %v2764_v13 = vsel %vm1400_vm1, %v11587_v34, 0.0  ;;  %v11591_v57 = vpop.eup %10253 }
 0x6ea   : > { %9714 = vmatpush3.bf16.msra.mxu1 %v2470_v56  ;;  %v2767_v41 = vsel %vm1400_vm1, %v11591_v57, 0.0 }
 0x6eb   : > { %v11595_v16 = vpop.eup %10255 }
 0x6ec   : > { %v2770_v42 = vsel %vm1400_vm1, %v11595_v16, 0.0  ;;  %v11599_v21 = vpop.eup %10257 }
 0x6ed   : > { %2437 = vadd.xlane.f32.xlu1 %v2436_v38  ;;  %2434 = vadd.xlane.f32.xlu0 %v2433_v20  ;;  %v2773_v44 = vsel %vm1400_vm1, %v11599_v21, 0.0 }
 0x6f1   : > { %2765 = vadd.xlane.f32.xlu0 %v2764_v13 }
 0x6f5   : > { %2768 = vadd.xlane.f32.xlu0 %v2767_v41 }
 0x6f9   : > { %2771 = vadd.xlane.f32.xlu0 %v2770_v42 }
 0x6fd   : > { %2774 = vadd.xlane.f32.xlu0 %v2773_v44 }
 0x6fe   : > { %2471 = vrot.lane.b32.xlu1 %v10895_v35, %s10446_s23  ;;  %v13831_v35 = vld [vmem:[#allocation17_spill] sm:$0xff] }
 0x702   : > { %2897 = vrot.lane.b32.xlu1 %v13825_v48, %s10444_s25 }
 0x706   : > { %2901 = vrot.lane.b32.xlu1 %v13826_v62, %s10444_s25 }
 0x70a   : > { %2903 = vrot.lane.b32.xlu1 %v13827_v3, %s10444_s25 }
 0x70e   : > { %2885 = vrot.lane.b32.xlu1 %v13828_v36, %s10444_s25 }
 0x712   : > { %2887 = vrot.lane.b32.xlu1 %v13829_v28, %s10444_s25 }
 0x713   : > { %2899 = vrot.lane.b32.xlu0 %v13830_v49, %s10444_s25 }
 0x715   : > { %v2757_v47 = vpop.xlane.xlu0 %2756 }
 0x716   : > { %2889 = vrot.lane.b32.xlu1 %v13831_v35, %s10444_s25 }
 0x71a   : > { %2891 = vrot.lane.b32.xlu1 %v13832_v61, %s10444_s25 }
 0x75a   : > { %v2429_v9 = vpop.xlane.xlu0 %2428 }
 0x75e   : > { %v2423_v58 = vpop.xlane.xlu0 %2422 }
 0x75f   : > { %10259 = vrcp.f32 %v2423_v58 }
 0x766   : > { %v2754_v37 = vpop.xlane.xlu1 %2753 }
 0x769   : > { %v10260_v46 = vpop.eup %10259 }
 0x76a   : > { %v2432_v0 = vpop.xlane.xlu1 %2431  ;;  %v2453_v26 = vmul.f32 %v10260_v46, %v11536_v12  ;;  %v13833_v12 = vld [vmem:[#allocation12_spill] sm:$0xff] }
 0x76e   : > { %v2426_v45 = vpop.xlane.xlu1 %2425 }
 0x76f   : > { %10261 = vrcp.f32 %v2426_v45 }
 0x770   : > { %10263 = vrcp.f32 %v2432_v0 }
 0x771   : > { %10265 = vrcp.f32 %v2429_v9 }
 0x772   : > { %v2441_v11 = vpop.xlane.xlu1 %2440  ;;  %v2760_v31 = vpop.xlane.xlu0 %2759  ;;  %10267 = vrcp.f32 %v2757_v47 }
 0x773   : > { %10269 = vrcp.f32 %v2754_v37 }
 0x776   : > { %v2444_v60 = vpop.xlane.xlu1 %2443  ;;  %v2763_v30 = vpop.xlane.xlu0 %2762 }
 0x777   : > { %10271 = vrcp.f32 %v2444_v60 }
 0x778   : > { %10273 = vrcp.f32 %v2441_v11 }
 0x779   : > { %v10262_v63 = vpop.eup %10261 }
 0x77a   : > { %v10264_v56 = vpop.eup %10263  ;;  %v2438_v22 = vpop.xlane.xlu1 %2437  ;;  %v2454_v1 = vmul.f32 %v10262_v63, %v11555_v10  ;;  %v13835_v63 = vld [vmem:[#allocation16_spill] sm:$0xff] }
 0x77b   : > { %v2435_v5 = vpop.xlane.xlu0 %2434  ;;  %10275 = vrcp.f32 %v2438_v22  ;;  %v10266_v33 = vpop.eup %10265  ;;  %v2456_v20 = vmul.f32 %v10264_v56, %v11550_v40 }
 0x77c   : > { %10277 = vrcp.f32 %v2435_v5  ;;  %v2461_v38 = vpack.c.bf16 %v2454_v1, %v2453_v26  ;;  %v2455_v42 = vmul.f32 %v10266_v33, %v11529_v59  ;;  %v10268_v44 = vpop.eup %10267  ;;  %v13834_v59 = vld [vmem:[#allocation11_spill] sm:$0xff] }
 0x77d   : > { %10279 = vrcp.f32 %v2763_v30  ;;  %v10270_v10 = vpop.eup %10269  ;;  %v2785_v22 = vmul.f32 %v10268_v44, %v11522_v4  ;;  %v13836_v4 = vld [vmem:[#allocation15_spill] sm:$0xff] }
 0x77e   : > { %v2472_v13 = vpop.permute.xlu1 %2471  ;;  %9717 = vmatprep.mubr.msk.bf16.mxu1 %vm1400_vm1, %v2461_v38  ;;  %v2462_v47 = vpack.c.bf16 %v2456_v20, %v2455_v42  ;;  %10281 = vrcp.f32 %v2760_v31  ;;  %v2784_v30 = vmul.f32 %v10270_v10, %v11545_v23 }
 0x77f   : > { %v2766_v41 = vpop.xlane.xlu0 %2765  ;;  %9715 = vmatprep.subr.bf16.mxu1 %v2472_v13 }
 0x780   : > { %9716 = vmatpush3.bf16.msra.mxu1 %v2472_v13 }
 0x781   : > { %9741 = vmatprep.subr.bf16.mxu1 %v13833_v12  ;;  %v10272_v37 = vpop.eup %10271 }
 0x782   : > { %v10274_v40 = vpop.eup %10273  ;;  %v2460_v60 = vmul.f32 %v10272_v37, %v11571_v29  ;;  %v2898_v5 = vpop.permute.xlu1 %2897  ;;  %v2792_v29 = vpack.c.bf16 %v2785_v22, %v2784_v30 }
 0x783   : > { %v2769_v9 = vpop.xlane.xlu0 %2768  ;;  %9718 = vmatmul.mubr.msk.bf16.vlgmr.msra.gmra.mrb[56].mxu1 %vm1400_vm1, %v2462_v47  ;;  %v2459_v46 = vmul.f32 %v10274_v40, %v11560_v15  ;;  %v2918_v37 = vsel %vm1302_vm0, %v2898_v5, 0 }
 0x784   : > { %10283 = vrcp.f32 %v2769_v9  ;;  %9742 = vmatpush3.bf16.msra.mxu1 %v13833_v12 }
 0x785   : > { %10285 = vrcp.f32 %v2766_v41  ;;  %v10276_v58 = vpop.eup %10275  ;;  %9743 = vmatprep.subr.bf16.mxu1 %v13834_v59  ;;  %v2464_v1 = vpack.c.bf16 %v2460_v60, %v2459_v46 }
 0x786   : > { %v10278_v0 = vpop.eup %10277  ;;  %v2458_v11 = vmul.f32 %v10276_v58, %v11581_v55  ;;  %v2902_v13 = vpop.permute.xlu1 %2901 }
 0x787   : > { %v2772_v45 = vpop.xlane.xlu0 %2771  ;;  %v2457_v31 = vmul.f32 %v10278_v0, %v11575_v32  ;;  %v10280_v55 = vpop.eup %10279 }
 0x788   : > { %9744 = vmatpush3.bf16.msra.mxu1 %v13834_v59  ;;  %10287 = vrcp.f32 %v2772_v45  ;;  %v10282_v32 = vpop.eup %10281  ;;  %v2787_v33 = vmul.f32 %v10280_v55, %v11565_v19 }
 0x789   : > { %9745 = vmatprep.subr.bf16.mxu1 %v13835_v63  ;;  %v2463_v56 = vpack.c.bf16 %v2458_v11, %v2457_v31  ;;  %v2786_v20 = vmul.f32 %v10282_v32, %v11562_v24 }
 0x78a   : > { %v2904_v19 = vpop.permute.xlu1 %2903 }
 0x78b   : > { %v2775_v26 = vpop.xlane.xlu0 %2774  ;;  %9721 = vmatprep.mubr.msk.bf16.mxu1 %vm1400_vm1, %v2463_v56  ;;  %v2793_v42 = vpack.c.bf16 %v2787_v33, %v2786_v20 }
 0x78c   : > { %10289 = vrcp.f32 %v2775_v26  ;;  %9722 = vmatmul.mubr.msk.bf16.gmra.mrb[60].mxu1 %vm1400_vm1, %v2464_v1 }
 0x78d   : > { %9746 = vmatpush3.bf16.msra.mxu1 %v13835_v63  ;;  %9749 = vmatprep.mubr.msk.bf16.mxu1 %vm1400_vm1, %v2792_v29 }
 0x78e   : > { %v10284_v23 = vpop.eup %10283  ;;  %9747 = vmatprep.subr.bf16.mxu1 %v13836_v4 }
 0x78f   : > { %v10286_v15 = vpop.eup %10285  ;;  %v2789_v38 = vmul.f32 %v10284_v23, %v11591_v57  ;;  %v2900_v40 = vpop.permute.xlu0 %2899 }
 0x790   : > { %v2788_v41 = vmul.f32 %v10286_v15, %v11587_v34  ;;  %v2886_v34 = vpop.permute.xlu1 %2885  ;;  %v2921_v58 = vsel %vm1302_vm0, %v2900_v40, 0 }
 0x791   : > { %9748 = vmatpush3.bf16.msra.mxu1 %v13836_v4 }
 0x792   : > { %9905 = vmatprep.subr.msk.bf16.mxu1 %vm1302_vm0, %v2898_v5  ;;  %v10288_v44 = vpop.eup %10287  ;;  %v2794_v47 = vpack.c.bf16 %v2789_v38, %v2788_v41 }
 0x793   : > { %v2790_v57 = vmul.f32 %v10288_v44, %v11595_v16  ;;  %v2924_v16 = vsel %vm1302_vm0, %v2902_v13, 0 }
 0x794   : > { %9750 = vmatmul.mubr.msk.bf16.vlgmr.msra.gmra.mrb[64].mxu1 %vm1400_vm1, %v2793_v42  ;;  %v2888_v0 = vpop.permute.xlu1 %2887 }
 0x795   : > { %9753 = vmatprep.mubr.msk.bf16.mxu1 %vm1400_vm1, %v2794_v47 }
 0x796   : > { %v10290_v10 = vpop.eup %10289 }
 0x797   : > { %v2791_v24 = vmul.f32 %v10290_v10, %v11599_v21  ;;  %v2927_v21 = vsel %vm1302_vm0, %v2904_v19, 0 }
 0x798   : > { %v2890_v45 = vpop.permute.xlu1 %2889 }
 0x799   : > { %v2795_v9 = vpack.c.bf16 %v2791_v24, %v2790_v57 }
 0x79a   : > { %9758 = vmatpush3.bf16.xpose.msra.mxu1 %v2918_v37 }
 0x79b   : > { %9906 = vmatprep.subr.msk.bf16.mxu1 %vm1302_vm0, %v2900_v40 }
 0x79c   : > { %9754 = vmatmul.mubr.msk.bf16.gmra.mrb[68].mxu1 %vm1400_vm1, %v2795_v9  ;;  %v2892_v11 = vpop.permute.xlu1 %2891 }
 0x79d   : > { %9765 = vmatprep.mubr.msk.bf16.mxu1 %vm1302_vm0, %v2886_v34 }
 0x7a2   : > { %9760 = vmatpush3.bf16.xpose.msra.mxu1 %v2921_v58 }
 0x7a3   : > { %9907 = vmatprep.subr.msk.bf16.mxu1 %vm1302_vm0, %v2902_v13 }
 0x7aa   : > { %9762 = vmatpush3.bf16.xpose.msra.mxu1 %v2924_v16 }
 0x7ab   : > { %9908 = vmatprep.subr.msk.bf16.mxu1 %vm1302_vm0, %v2904_v19 }
 0x7b2   : > { %9764 = vmatpush3.bf16.xpose.msra.mxu1 %v2927_v21 }
 0x7b9   : > { %9766 = vmatmul.mubr.msk.bf16.vlgmr.msra.gmra.mrb[72].mxu1 %vm1302_vm0, %v2888_v0 }
 0x7ba   : > { %9769 = vmatprep.mubr.msk.bf16.mxu1 %vm1302_vm0, %v2890_v45 }
 0x7c1   : > { %9770 = vmatmul.mubr.msk.bf16.gmra.mrb[76].mxu1 %vm1302_vm0, %v2892_v11 }
 0x856   : > { %v11665_v60 = vpop.f32.mrb[56].mxu1 }
 0x857   : > { %v11667_v31 = vpop.f32.mrb[57].mxu1 }
 0x858   : > { %v11669_v30 = vpop.f32.mrb[58].mxu1 }
 0x859   : > { %v11671_v46 = vpop.f32.mrb[59].mxu1 }
 0x85f   : > { %v11673_v56 = vpop.f32.mrb[60].mxu1 }
 0x860   : > { %v11675_v22 = vpop.f32.mrb[61].mxu1 }
 0x861   : > { %v11677_v5 = vpop.f32.mrb[62].mxu1 }
 0x862   : > { %v11679_v26 = vpop.f32.mrb[63].mxu1 }
 0x867   : > { %v9751_v1 = vpop.f32.mrb[64].mxu1 }
 0x868   : > { %2875 = vst.msk [vmem:[#allocation3 + $0x50] sm:$0xff] %vm1302_vm0, %v9751_v1  ;;  %v2842_v55 = vpop.f32.mrb[65].mxu1 }
 0x869   : > { %2873 = vst.msk [vmem:[#allocation3 + $0x40] sm:$0xff] %vm1302_vm0, %v2842_v55  ;;  %v9752_v29 = vpop.f32.mrb[66].mxu1 }
 0x86a   : > { %2876 = vst.msk [vmem:[#allocation3 + $0x58] sm:$0xff] %vm1302_vm0, %v9752_v29  ;;  %v2845_v32 = vpop.f32.mrb[67].mxu1 }
 0x86b   : > { %2874 = vst.msk [vmem:[#allocation3 + $0x48] sm:$0xff] %vm1302_vm0, %v2845_v32 }
 0x86f   : > { %v9755_v23 = vpop.f32.mrb[68].mxu1 }
 0x870   : > { %2879 = vst.msk [vmem:[#allocation3 + $0x70] sm:$0xff] %vm1302_vm0, %v9755_v23  ;;  %v2858_v15 = vpop.f32.mrb[69].mxu1 }
 0x871   : > { %2877 = vst.msk [vmem:[#allocation3 + $0x60] sm:$0xff] %vm1302_vm0, %v2858_v15  ;;  %v9756_v33 = vpop.f32.mrb[70].mxu1 }
 0x872   : > { %2880 = vst.msk [vmem:[#allocation3 + $0x78] sm:$0xff] %vm1302_vm0, %v9756_v33  ;;  %v2861_v38 = vpop.f32.mrb[71].mxu1 }
 0x873   : > { %2878 = vst.msk [vmem:[#allocation3 + $0x68] sm:$0xff] %vm1302_vm0, %v2861_v38 }
 0x88c   : > { %v9767_v20 = vpop.f32.mrb[72].mxu1 }
 0x88d   : > { %v2996_v13 = vmul.f32 0.17677669, %v9767_v20  ;;  %v2963_v41 = vpop.f32.mrb[73].mxu1 }
 0x88e   : > { %v9768_v42 = vpop.f32.mrb[74].mxu1  ;;  %v2994_v44 = vmul.f32 0.17677669, %v2963_v41 }
 0x88f   : > { %v2966_v47 = vpop.f32.mrb[75].mxu1  ;;  %v3008_v10 = vsel %vm1400_vm1, %v2996_v13, -inf  ;;  %v2997_v24 = vmul.f32 0.17677669, %v9768_v42 }
 0x890   : > { %v2995_v19 = vmul.f32 0.17677669, %v2966_v47  ;;  %3009 = vmax.xlane.f32.xlu0 %v3008_v10  ;;  %v3002_v9 = vsel %vm1400_vm1, %v2994_v44, -inf }
 0x891   : > { %v3011_v21 = vsel %vm1400_vm1, %v2997_v24, -inf }
 0x892   : > { %v3005_v57 = vsel %vm1400_vm1, %v2995_v19, -inf }
 0x893   : > { %3006 = vmax.xlane.f32.xlu1 %v3005_v57 }
 0x894   : > { %3003 = vmax.xlane.f32.xlu0 %v3002_v9  ;;  %v9771_v37 = vpop.f32.mrb[76].mxu1 }
 0x895   : > { %v2979_v40 = vpop.f32.mrb[77].mxu1  ;;  %v3000_v58 = vmul.f32 0.17677669, %v9771_v37 }
 0x896   : > { %v9772_v34 = vpop.f32.mrb[78].mxu1  ;;  %v2998_v0 = vmul.f32 0.17677669, %v2979_v40 }
 0x897   : > { %v2982_v16 = vpop.f32.mrb[79].mxu1  ;;  %v3020_v45 = vsel %vm1400_vm1, %v3000_v58, -inf  ;;  %v3001_v1 = vmul.f32 0.17677669, %v9772_v34 }
 0x898   : > { %3012 = vmax.xlane.f32.xlu0 %v3011_v21  ;;  %v3014_v11 = vsel %vm1400_vm1, %v2998_v0, -inf  ;;  %v11701_v55 = vmul.f32 0.17677669, %v2982_v16 }
 0x899   : > { %v3023_v29 = vsel %vm1400_vm1, %v3001_v1, -inf }
 0x89a   : > { %v3017_v32 = vsel %vm1400_vm1, %v11701_v55, -inf }
 0x89c   : > { %3021 = vmax.xlane.f32.xlu0 %v3020_v45 }
 0x8a0   : > { %3015 = vmax.xlane.f32.xlu0 %v3014_v11 }
 0x8a4   : > { %3100 = vrot.lane.b32.xlu1 %v13834_v59, %s10444_s25 }
 0x8a8   : > { %3102 = vrot.lane.b32.xlu1 %v13835_v63, %s10444_s25 }
 0x8b6   : > { %3098 = vrot.lane.b32.xlu0 %v13833_v12, %s10444_s25 }
 0x8cc   : > { %3024 = vmax.xlane.f32.xlu1 %v3023_v29 }
 0x8d0   : > { %3018 = vmax.xlane.f32.xlu1 %v3017_v32 }
 0x8e1   : > { %3104 = vrot.lane.b32.xlu1 %v13836_v4, %s10444_s25 }
 0x91d   : > { %v3010_v23 = vpop.xlane.xlu0 %3009 }
 0x91e   : > { %v3028_v15 = vsub.f32 %v2996_v13, %v3010_v23 }
 0x920   : > { %v3038_v33 = vmul.f32 1.442695, %v3028_v15  ;;  %v3007_v38 = vpop.xlane.xlu1 %3006 }
 0x921   : > { %v3004_v20 = vpop.xlane.xlu0 %3003  ;;  %v3027_v42 = vsub.f32 %v2995_v19, %v3007_v38 }
 0x922   : > { %10291 = vpow2.f32 %v3038_v33  ;;  %v3026_v41 = vsub.f32 %v2994_v44, %v3004_v20 }
 0x923   : > { %v3036_v9 = vmul.f32 1.442695, %v3027_v42 }
 0x924   : > { %v3034_v47 = vmul.f32 1.442695, %v3026_v41 }
 0x925   : > { %v3013_v10 = vpop.xlane.xlu0 %3012 }
 0x926   : > { %10293 = vpow2.f32 %v3034_v47  ;;  %v3029_v57 = vsub.f32 %v2997_v24, %v3013_v10  ;;  %v3101_v24 = vpop.permute.xlu1 %3100 }
 0x928   : > { %v3040_v37 = vmul.f32 1.442695, %v3029_v57 }
 0x929   : > { %v3022_v40 = vpop.xlane.xlu0 %3021 }
 0x92a   : > { %10295 = vpow2.f32 %v3040_v37  ;;  %v3032_v34 = vsub.f32 %v3000_v58, %v3022_v40 }
 0x92b   : > { %10297 = vpow2.f32 %v3036_v9 }
 0x92c   : > { %v11708_v16 = vpop.eup %10291  ;;  %v3046_v21 = vmul.f32 1.442695, %v3032_v34 }
 0x92d   : > { %v3016_v13 = vpop.xlane.xlu0 %3015  ;;  %v3056_v45 = vsel %vm1400_vm1, %v11708_v16, 0.0 }
 0x92e   : > { %10299 = vpow2.f32 %v3046_v21  ;;  %v3030_v44 = vsub.f32 %v2998_v0, %v3016_v13  ;;  %3057 = vadd.xlane.f32.xlu0 %v3056_v45  ;;  %v3103_v0 = vpop.permute.xlu1 %3102 }
 0x930   : > { %v11712_v19 = vpop.eup %10293  ;;  %v3042_v11 = vmul.f32 1.442695, %v3030_v44 }
 0x931   : > { %v3099_v29 = vpop.permute.xlu0 %3098  ;;  %v3050_v32 = vsel %vm1400_vm1, %v11712_v19, 0.0 }
 0x932   : > { %10301 = vpow2.f32 %v3042_v11  ;;  %3051 = vadd.xlane.f32.xlu0 %v3050_v32  ;;  %9773 = vmatprep.subr.bf16.mxu0 %v3099_v29 }
 0x933   : > { %9774 = vmatpush3.bf16.msra.mxu0 %v3099_v29 }
 0x934   : > { %v10296_v58 = vpop.eup %10295  ;;  %9775 = vmatprep.subr.bf16.mxu0 %v3101_v24 }
 0x935   : > { %v3059_v23 = vsel %vm1400_vm1, %v10296_v58, 0.0  ;;  %v10298_v15 = vpop.eup %10297 }
 0x936   : > { %3060 = vadd.xlane.f32.xlu1 %v3059_v23  ;;  %v3053_v20 = vsel %vm1400_vm1, %v10298_v15, 0.0 }
 0x937   : > { %9776 = vmatpush3.bf16.msra.mxu0 %v3101_v24 }
 0x938   : > { %v11717_v33 = vpop.eup %10299  ;;  %9777 = vmatprep.subr.bf16.mxu0 %v3103_v0 }
 0x939   : > { %v3068_v38 = vsel %vm1400_vm1, %v11717_v33, 0.0 }
 0x93a   : > { %3069 = vadd.xlane.f32.xlu0 %v3068_v38  ;;  %3054 = vadd.xlane.f32.xlu1 %v3053_v20 }
 0x93b   : > { %9778 = vmatpush3.bf16.msra.mxu0 %v3103_v0 }
 0x93c   : > { %v11722_v41 = vpop.eup %10301 }
 0x93d   : > { %v3062_v42 = vsel %vm1400_vm1, %v11722_v41, 0.0 }
 0x93e   : > { %3063 = vadd.xlane.f32.xlu0 %v3062_v42 }
 0x94b   : > { %3237 = vrot.lane.b32.xlu1 %v13830_v49, %s10445_s19 }
 0x94f   : > { %3239 = vrot.lane.b32.xlu1 %v13826_v62, %s10445_s19 }
 0x959   : > { %v3025_v47 = vpop.xlane.xlu1 %3024 }
 0x95a   : > { %v3033_v10 = vsub.f32 %v3001_v1, %v3025_v47 }
 0x95c   : > { %v3048_v57 = vmul.f32 1.442695, %v3033_v10 }
 0x95d   : > { %v3019_v9 = vpop.xlane.xlu1 %3018 }
 0x95e   : > { %10303 = vpow2.f32 %v3048_v57  ;;  %v3031_v37 = vsub.f32 %v11701_v55, %v3019_v9 }
 0x960   : > { %v3044_v40 = vmul.f32 1.442695, %v3031_v37 }
 0x961   : > { %v3105_v34 = vpop.permute.xlu1 %3104 }
 0x962   : > { %9779 = vmatprep.subr.bf16.mxu0 %v3105_v34  ;;  %10305 = vpow2.f32 %v3044_v40 }
 0x963   : > { %9780 = vmatpush3.bf16.msra.mxu0 %v3105_v34 }
 0x968   : > { %v10304_v21 = vpop.eup %10303 }
 0x969   : > { %v3071_v13 = vsel %vm1400_vm1, %v10304_v21, 0.0 }
 0x96a   : > { %3072 = vadd.xlane.f32.xlu0 %v3071_v13 }
 0x96c   : > { %v10306_v45 = vpop.eup %10305 }
 0x96d   : > { %v3065_v44 = vsel %vm1400_vm1, %v10306_v45, 0.0 }
 0x973   : > { %3066 = vadd.xlane.f32.xlu1 %v3065_v44 }
 0x980   : > { %3235 = vrot.lane.b32.xlu0 %v13825_v48, %s10445_s19 }
 0x984   : > { %3227 = vrot.lane.b32.xlu0 %v13828_v36, %s10445_s19  ;;  %3241 = vrot.lane.b32.xlu1 %v13827_v3, %s10445_s19 }
 0x988   : > { %3231 = vrot.lane.b32.xlu0 %v13831_v35, %s10445_s19  ;;  %3229 = vrot.lane.b32.xlu1 %v13829_v28, %s10445_s19 }
 0x98c   : > { %3233 = vrot.lane.b32.xlu1 %v13832_v61, %s10445_s19 }
 0x9bb   : > { %v3058_v1 = vpop.xlane.xlu0 %3057 }
 0x9bf   : > { %v3052_v11 = vpop.xlane.xlu0 %3051 }
 0x9c3   : > { %v3061_v55 = vpop.xlane.xlu1 %3060 }
 0x9c4   : > { %10307 = vrcp.f32 %v3061_v55 }
 0x9c5   : > { %10309 = vrcp.f32 %v3052_v11 }
 0x9c6   : > { %10311 = vrcp.f32 %v3058_v1 }
 0x9c7   : > { %v3055_v24 = vpop.xlane.xlu1 %3054  ;;  %v3070_v9 = vpop.xlane.xlu0 %3069 }
 0x9c8   : > { %10313 = vrcp.f32 %v3055_v24 }
 0x9cb   : > { %v3064_v37 = vpop.xlane.xlu0 %3063  ;;  %v3238_v40 = vpop.permute.xlu1 %3237 }
 0x9ce   : > { %v10308_v29 = vpop.eup %10307 }
 0x9cf   : > { %v10310_v32 = vpop.eup %10309  ;;  %v3085_v38 = vmul.f32 %v10308_v29, %v10296_v58  ;;  %v3240_v44 = vpop.permute.xlu1 %3239 }
 0x9d0   : > { %v10312_v23 = vpop.eup %10311  ;;  %v3082_v20 = vmul.f32 %v10310_v32, %v11712_v19  ;;  %v3259_v19 = vsel %vm1302_vm0, %v3238_v40, 0  ;;  %v3262_v29 = vsel %vm1302_vm0, %v3240_v44, 0 }
 0x9d1   : > { %v3084_v47 = vmul.f32 %v10312_v23, %v11708_v16 }
 0x9d2   : > { %v10314_v0 = vpop.eup %10313 }
 0x9d3   : > { %v3083_v42 = vmul.f32 %v10314_v0, %v10298_v15  ;;  %v3091_v57 = vpack.c.bf16 %v3085_v38, %v3084_v47 }
 0x9d5   : > { %v3090_v10 = vpack.c.bf16 %v3083_v42, %v3082_v20 }
 0x9d7   : > { %9781 = vmatprep.mubr.msk.bf16.mxu0 %vm1400_vm1, %v3090_v10 }
 0x9d8   : > { %9782 = vmatmul.mubr.msk.bf16.vlgmr.msra.gmra.mrb[56].mxu0 %vm1400_vm1, %v3091_v57 }
 0x9f7   : > { %v3073_v34 = vpop.xlane.xlu0 %3072 }
 0x9f8   : > { %10315 = vrcp.f32 %v3073_v34 }
 0x9f9   : > { %10317 = vrcp.f32 %v3064_v37 }
 0x9fa   : > { %10319 = vrcp.f32 %v3070_v9 }
 0x9fb   : > { %v3236_v13 = vpop.permute.xlu0 %3235 }
 0x9fc   : > { %9909 = vmatprep.subr.msk.bf16.mxu0 %vm1302_vm0, %v3236_v13  ;;  %v3256_v58 = vsel %vm1302_vm0, %v3236_v13, 0 }
 0x9fd   : > { %9790 = vmatpush3.bf16.xpose.msra.mxu0 %v3256_v58 }
 0x9fe   : > { %9910 = vmatprep.subr.msk.bf16.mxu0 %vm1302_vm0, %v3238_v40 }
 0x9ff   : > { %v3228_v47 = vpop.permute.xlu0 %3227 }
 0xa00   : > { %v3067_v16 = vpop.xlane.xlu1 %3066 }
 0xa01   : > { %10321 = vrcp.f32 %v3067_v16 }
 0xa02   : > { %v10316_v15 = vpop.eup %10315 }
 0xa03   : > { %v10318_v1 = vpop.eup %10317  ;;  %v3089_v24 = vmul.f32 %v10316_v15, %v10304_v21 }
 0xa04   : > { %v10320_v55 = vpop.eup %10319  ;;  %v3086_v32 = vmul.f32 %v10318_v1, %v11722_v41  ;;  %v3242_v0 = vpop.permute.xlu1 %3241 }
 0xa05   : > { %9792 = vmatpush3.bf16.xpose.msra.mxu0 %v3259_v19  ;;  %v3088_v38 = vmul.f32 %v10320_v55, %v11717_v33  ;;  %v3265_v21 = vsel %vm1302_vm0, %v3242_v0, 0 }
 0xa06   : > { %9911 = vmatprep.subr.msk.bf16.mxu0 %vm1302_vm0, %v3240_v44 }
 0xa07   : > { %v3093_v42 = vpack.c.bf16 %v3089_v24, %v3088_v38 }
 0xa08   : > { %v3230_v41 = vpop.permute.xlu1 %3229 }
 0xa0b   : > { %v10322_v11 = vpop.eup %10321 }
 0xa0c   : > { %v3087_v23 = vmul.f32 %v10322_v11, %v10306_v45  ;;  %v3232_v45 = vpop.permute.xlu0 %3231  ;;  %v3234_v33 = vpop.permute.xlu1 %3233 }
 0xa0d   : > { %9794 = vmatpush3.bf16.xpose.msra.mxu0 %v3262_v29 }
 0xa0e   : > { %9912 = vmatprep.subr.msk.bf16.mxu0 %vm1302_vm0, %v3242_v0  ;;  %v3092_v20 = vpack.c.bf16 %v3087_v23, %v3086_v32 }
 0xa10   : > { %9785 = vmatprep.mubr.msk.bf16.mxu0 %vm1400_vm1, %v3092_v20 }
 0xa11   : > { %9786 = vmatmul.mubr.msk.bf16.gmra.mrb[60].mxu0 %vm1400_vm1, %v3093_v42 }
 0xa12   : > { %9797 = vmatprep.mubr.msk.bf16.mxu0 %vm1302_vm0, %v3228_v47 }
 0xa15   : > { %9796 = vmatpush3.bf16.xpose.msra.mxu0 %v3265_v21 }
 0xa1c   : > { %9798 = vmatmul.mubr.msk.bf16.vlgmr.msra.gmra.mrb[64].mxu0 %vm1302_vm0, %v3230_v41 }
 0xa1d   : > { %9801 = vmatprep.mubr.msk.bf16.mxu0 %vm1302_vm0, %v3232_v45 }
 0xa24   : > { %9802 = vmatmul.mubr.msk.bf16.gmra.mrb[68].mxu0 %vm1302_vm0, %v3234_v33 }
 0xaab   : > { %v11765_v10 = vpop.f32.mrb[56].mxu0 }
 0xaac   : > { %v11767_v57 = vpop.f32.mrb[57].mxu0 }
 0xaad   : > { %v11769_v9 = vpop.f32.mrb[58].mxu0 }
 0xaae   : > { %v11771_v37 = vpop.f32.mrb[59].mxu0 }
 0xae4   : > { %v11773_v40 = vpop.f32.mrb[60].mxu0 }
 0xae5   : > { %13837 = vst [vmem:[#allocation10_spill] sm:$0xff] %v11773_v40  ;;  %v11775_v34 = vpop.f32.mrb[61].mxu0 }
 0xae6   : > { %13838 = vst [vmem:[#allocation18_spill] sm:$0xff] %v11775_v34  ;;  %v11777_v13 = vpop.f32.mrb[62].mxu0 }
 0xae7   : > { %13839 = vst [vmem:[#allocation20_spill] sm:$0xff] %v11777_v13  ;;  %v11779_v44 = vpop.f32.mrb[63].mxu0 }
 0xae8   : > { %13840 = vst [vmem:[#allocation9_spill] sm:$0xff] %v11779_v44 }
 0xaef   : > { %v9799_v58 = vpop.f32.mrb[64].mxu0 }
 0xaf0   : > { %v3334_v16 = vmul.f32 0.17677669, %v9799_v58  ;;  %v3301_v19 = vpop.f32.mrb[65].mxu0 }
 0xaf1   : > { %v9800_v15 = vpop.f32.mrb[66].mxu0  ;;  %v3332_v1 = vmul.f32 0.17677669, %v3301_v19 }
 0xaf2   : > { %v3304_v55 = vpop.f32.mrb[67].mxu0  ;;  %v3346_v11 = vsel %vm1400_vm1, %v3334_v16, -inf  ;;  %v3335_v32 = vmul.f32 0.17677669, %v9800_v15 }
 0xaf3   : > { %v3333_v24 = vmul.f32 0.17677669, %v3304_v55  ;;  %3347 = vmax.xlane.f32.xlu0 %v3346_v11  ;;  %v3340_v23 = vsel %vm1400_vm1, %v3332_v1, -inf }
 0xaf4   : > { %v3349_v21 = vsel %vm1400_vm1, %v3335_v32, -inf }
 0xaf5   : > { %v3343_v29 = vsel %vm1400_vm1, %v3333_v24, -inf }
 0xaf6   : > { %3344 = vmax.xlane.f32.xlu1 %v3343_v29 }
 0xaf7   : > { %3341 = vmax.xlane.f32.xlu0 %v3340_v23  ;;  %v9803_v0 = vpop.f32.mrb[68].mxu0 }
 0xaf8   : > { %v3317_v38 = vpop.f32.mrb[69].mxu0  ;;  %v3338_v42 = vmul.f32 0.17677669, %v9803_v0 }
 0xaf9   : > { %v9804_v20 = vpop.f32.mrb[70].mxu0  ;;  %v3336_v41 = vmul.f32 0.17677669, %v3317_v38 }
 0xafa   : > { %v3320_v47 = vpop.f32.mrb[71].mxu0  ;;  %v3358_v45 = vsel %vm1400_vm1, %v3338_v42, -inf  ;;  %v3339_v58 = vmul.f32 0.17677669, %v9804_v20 }
 0xafb   : > { %3350 = vmax.xlane.f32.xlu0 %v3349_v21  ;;  %v3352_v33 = vsel %vm1400_vm1, %v3336_v41, -inf  ;;  %v11793_v19 = vmul.f32 0.17677669, %v3320_v47 }
 0xafc   : > { %v3361_v15 = vsel %vm1400_vm1, %v3339_v58, -inf }
 0xafd   : > { %v3355_v55 = vsel %vm1400_vm1, %v11793_v19, -inf }
 0xaff   : > { %3359 = vmax.xlane.f32.xlu0 %v3358_v45 }
 0xb03   : > { %3353 = vmax.xlane.f32.xlu0 %v3352_v33 }
 0xb07   : > { %3434 = vrot.lane.b32.xlu1 %v13834_v59, %s10445_s19 }
 0xb0b   : > { %3436 = vrot.lane.b32.xlu1 %v13835_v63, %s10445_s19 }
 0xb19   : > { %3432 = vrot.lane.b32.xlu0 %v13833_v12, %s10445_s19 }
 0xb2f   : > { %3362 = vmax.xlane.f32.xlu1 %v3361_v15 }
 0xb33   : > { %3356 = vmax.xlane.f32.xlu1 %v3355_v55 }
 0xb44   : > { %3438 = vrot.lane.b32.xlu1 %v13836_v4, %s10445_s19 }
 0xb80   : > { %v3348_v11 = vpop.xlane.xlu0 %3347 }
 0xb81   : > { %v3366_v29 = vsub.f32 %v3334_v16, %v3348_v11 }
 0xb83   : > { %v3376_v23 = vmul.f32 1.442695, %v3366_v29  ;;  %v3345_v0 = vpop.xlane.xlu1 %3344 }
 0xb84   : > { %v3342_v38 = vpop.xlane.xlu0 %3341  ;;  %v3365_v20 = vsub.f32 %v3333_v24, %v3345_v0 }
 0xb85   : > { %10323 = vpow2.f32 %v3376_v23  ;;  %v3364_v21 = vsub.f32 %v3332_v1, %v3342_v38 }
 0xb86   : > { %v3374_v15 = vmul.f32 1.442695, %v3365_v20 }
 0xb87   : > { %v3372_v47 = vmul.f32 1.442695, %v3364_v21 }
 0xb88   : > { %v3351_v45 = vpop.xlane.xlu0 %3350 }
 0xb89   : > { %10325 = vpow2.f32 %v3372_v47  ;;  %v3367_v33 = vsub.f32 %v3335_v32, %v3351_v45  ;;  %v3435_v32 = vpop.permute.xlu1 %3434 }
 0xb8b   : > { %v3378_v13 = vmul.f32 1.442695, %v3367_v33 }
 0xb8c   : > { %v3360_v40 = vpop.xlane.xlu0 %3359 }
 0xb8d   : > { %10327 = vpow2.f32 %v3378_v13  ;;  %v3370_v55 = vsub.f32 %v3338_v42, %v3360_v40 }
 0xb8e   : > { %10329 = vpow2.f32 %v3374_v15 }
 0xb8f   : > { %v11800_v44 = vpop.eup %10323  ;;  %v3384_v34 = vmul.f32 1.442695, %v3370_v55 }
 0xb90   : > { %v3354_v16 = vpop.xlane.xlu0 %3353  ;;  %v3394_v11 = vsel %vm1400_vm1, %v11800_v44, 0.0 }
 0xb91   : > { %10331 = vpow2.f32 %v3384_v34  ;;  %v3368_v1 = vsub.f32 %v3336_v41, %v3354_v16  ;;  %3395 = vadd.xlane.f32.xlu0 %v3394_v11  ;;  %v3437_v34 = vpop.permute.xlu1 %3436 }
 0xb93   : > { %v11804_v24 = vpop.eup %10325  ;;  %v3380_v29 = vmul.f32 1.442695, %v3368_v1 }
 0xb94   : > { %v3433_v23 = vpop.permute.xlu0 %3432  ;;  %v3388_v13 = vsel %vm1400_vm1, %v11804_v24, 0.0 }
 0xb95   : > { %10333 = vpow2.f32 %v3380_v29  ;;  %3389 = vadd.xlane.f32.xlu0 %v3388_v13  ;;  %9805 = vmatprep.subr.bf16.mxu1 %v3433_v23 }
 0xb96   : > { %9806 = vmatpush3.bf16.msra.mxu1 %v3433_v23 }
 0xb97   : > { %v10328_v40 = vpop.eup %10327  ;;  %9807 = vmatprep.subr.bf16.mxu1 %v3435_v32 }
 0xb98   : > { %v3397_v42 = vsel %vm1400_vm1, %v10328_v40, 0.0  ;;  %v10330_v0 = vpop.eup %10329 }
 0xb99   : > { %3398 = vadd.xlane.f32.xlu1 %v3397_v42  ;;  %v3391_v21 = vsel %vm1400_vm1, %v10330_v0, 0.0 }
 0xb9a   : > { %9808 = vmatpush3.bf16.msra.mxu1 %v3435_v32 }
 0xb9b   : > { %v11809_v41 = vpop.eup %10331  ;;  %9809 = vmatprep.subr.bf16.mxu1 %v3437_v34 }
 0xb9c   : > { %v3406_v38 = vsel %vm1400_vm1, %v11809_v41, 0.0 }
 0xb9d   : > { %3407 = vadd.xlane.f32.xlu0 %v3406_v38  ;;  %3392 = vadd.xlane.f32.xlu1 %v3391_v21 }
 0xb9e   : > { %9810 = vmatpush3.bf16.msra.mxu1 %v3437_v34 }
 0xb9f   : > { %v11814_v20 = vpop.eup %10333 }
 0xba0   : > { %v3400_v47 = vsel %vm1400_vm1, %v11814_v20, 0.0 }
 0xba1   : > { %3401 = vadd.xlane.f32.xlu0 %v3400_v47 }
 0xbae   : > { %3571 = vrot.lane.b32.xlu1 %v13830_v49, %s10446_s23 }
 0xbb2   : > { %3573 = vrot.lane.b32.xlu1 %v13826_v62, %s10446_s23 }
 0xbbc   : > { %v3363_v45 = vpop.xlane.xlu1 %3362 }
 0xbbd   : > { %v3371_v33 = vsub.f32 %v3339_v58, %v3363_v45 }
 0xbbf   : > { %v3386_v15 = vmul.f32 1.442695, %v3371_v33 }
 0xbc0   : > { %v3357_v55 = vpop.xlane.xlu1 %3356 }
 0xbc1   : > { %10335 = vpow2.f32 %v3386_v15  ;;  %v3369_v16 = vsub.f32 %v11793_v19, %v3357_v55 }
 0xbc3   : > { %v3382_v11 = vmul.f32 1.442695, %v3369_v16 }
 0xbc4   : > { %v3439_v1 = vpop.permute.xlu1 %3438 }
 0xbc5   : > { %9811 = vmatprep.subr.bf16.mxu1 %v3439_v1  ;;  %10337 = vpow2.f32 %v3382_v11 }
 0xbc6   : > { %9812 = vmatpush3.bf16.msra.mxu1 %v3439_v1 }
 0xbcb   : > { %v10336_v29 = vpop.eup %10335 }
 0xbcc   : > { %v3409_v32 = vsel %vm1400_vm1, %v10336_v29, 0.0 }
 0xbcd   : > { %3410 = vadd.xlane.f32.xlu0 %v3409_v32 }
 0xbcf   : > { %v10338_v49 = vpop.eup %10337 }
 0xbd0   : > { %v3403_v23 = vsel %vm1400_vm1, %v10338_v49, 0.0 }
 0xbd6   : > { %3404 = vadd.xlane.f32.xlu1 %v3403_v23 }
 0xbe3   : > { %3569 = vrot.lane.b32.xlu0 %v13825_v48, %s10446_s23 }
 0xbe7   : > { %3561 = vrot.lane.b32.xlu0 %v13828_v36, %s10446_s23  ;;  %3575 = vrot.lane.b32.xlu1 %v13827_v3, %s10446_s23 }
 0xbeb   : > { %3565 = vrot.lane.b32.xlu0 %v13831_v35, %s10446_s23  ;;  %3563 = vrot.lane.b32.xlu1 %v13829_v28, %s10446_s23 }
 0xbef   : > { %3567 = vrot.lane.b32.xlu1 %v13832_v61, %s10446_s23 }
 0xc1e   : > { %v3396_v62 = vpop.xlane.xlu0 %3395 }
 0xc22   : > { %v3390_v19 = vpop.xlane.xlu0 %3389 }
 0xc26   : > { %v3399_v58 = vpop.xlane.xlu1 %3398 }
 0xc27   : > { %10339 = vrcp.f32 %v3399_v58 }
 0xc28   : > { %10341 = vrcp.f32 %v3390_v19 }
 0xc29   : > { %10343 = vrcp.f32 %v3396_v62 }
 0xc2a   : > { %v3393_v48 = vpop.xlane.xlu1 %3392  ;;  %v3408_v47 = vpop.xlane.xlu0 %3407 }
 0xc2b   : > { %10345 = vrcp.f32 %v3393_v48 }
 0xc2e   : > { %v3402_v45 = vpop.xlane.xlu0 %3401  ;;  %v3572_v33 = vpop.permute.xlu1 %3571 }
 0xc31   : > { %v10340_v36 = vpop.eup %10339 }
 0xc32   : > { %v10342_v13 = vpop.eup %10341  ;;  %v3423_v34 = vmul.f32 %v10340_v36, %v10328_v40  ;;  %v3574_v16 = vpop.permute.xlu1 %3573 }
 0xc33   : > { %v10344_v3 = vpop.eup %10343  ;;  %v3420_v35 = vmul.f32 %v10342_v13, %v11804_v24  ;;  %v3593_v24 = vsel %vm1302_vm0, %v3572_v33, 0  ;;  %v3596_v62 = vsel %vm1302_vm0, %v3574_v16, 0 }
 0xc34   : > { %v3422_v28 = vmul.f32 %v10344_v3, %v11800_v44 }
 0xc35   : > { %v10346_v42 = vpop.eup %10345 }
 0xc36   : > { %v3421_v38 = vmul.f32 %v10346_v42, %v10330_v0  ;;  %v3429_v61 = vpack.c.bf16 %v3423_v34, %v3422_v28  ;;  %v13841_v34 = vmov 0  }
 0xc38   : > { %v3428_v21 = vpack.c.bf16 %v3421_v38, %v3420_v35 }
 0xc3a   : > { %9813 = vmatprep.mubr.msk.bf16.mxu1 %vm1400_vm1, %v3428_v21 }
 0xc3b   : > { %9814 = vmatmul.mubr.msk.bf16.vlgmr.msra.gmra.mrb[80].mxu1 %vm1400_vm1, %v3429_v61 }
 0xc5a   : > { %v3411_v15 = vpop.xlane.xlu0 %3410 }
 0xc5b   : > { %10347 = vrcp.f32 %v3411_v15 }
 0xc5c   : > { %10349 = vrcp.f32 %v3402_v45 }
 0xc5d   : > { %10351 = vrcp.f32 %v3408_v47 }
 0xc5e   : > { %v3570_v55 = vpop.permute.xlu0 %3569 }
 0xc5f   : > { %9913 = vmatprep.subr.msk.bf16.mxu1 %vm1302_vm0, %v3570_v55  ;;  %v3590_v40 = vsel %vm1302_vm0, %v3570_v55, 0 }
 0xc60   : > { %9822 = vmatpush3.bf16.xpose.msra.mxu1 %v3590_v40 }
 0xc61   : > { %9914 = vmatprep.subr.msk.bf16.mxu1 %vm1302_vm0, %v3572_v33 }
 0xc62   : > { %v3562_v42 = vpop.permute.xlu0 %3561 }
 0xc63   : > { %v3405_v44 = vpop.xlane.xlu1 %3404 }
 0xc64   : > { %10353 = vrcp.f32 %v3405_v44 }
 0xc65   : > { %v10348_v0 = vpop.eup %10347 }
 0xc66   : > { %v10350_v11 = vpop.eup %10349  ;;  %v3427_v23 = vmul.f32 %v10348_v0, %v10336_v29 }
 0xc67   : > { %v10352_v1 = vpop.eup %10351  ;;  %v3424_v58 = vmul.f32 %v10350_v11, %v11814_v20  ;;  %v3576_v48 = vpop.permute.xlu1 %3575 }
 0xc68   : > { %9824 = vmatpush3.bf16.xpose.msra.mxu1 %v3593_v24  ;;  %v3426_v36 = vmul.f32 %v10352_v1, %v11809_v41  ;;  %v3599_v29 = vsel %vm1302_vm0, %v3576_v48, 0 }
 0xc69   : > { %9915 = vmatprep.subr.msk.bf16.mxu1 %vm1302_vm0, %v3574_v16 }
 0xc6a   : > { %v3431_v3 = vpack.c.bf16 %v3427_v23, %v3426_v36 }
 0xc6b   : > { %v3564_v20 = vpop.permute.xlu1 %3563 }
 0xc6e   : > { %v10354_v32 = vpop.eup %10353 }
 0xc6f   : > { %v3425_v19 = vmul.f32 %v10354_v32, %v10338_v49  ;;  %v3566_v49 = vpop.permute.xlu0 %3565  ;;  %v3568_v41 = vpop.permute.xlu1 %3567 }
 0xc70   : > { %9826 = vmatpush3.bf16.xpose.msra.mxu1 %v3596_v62 }
 0xc71   : > { %9916 = vmatprep.subr.msk.bf16.mxu1 %vm1302_vm0, %v3576_v48  ;;  %v3430_v13 = vpack.c.bf16 %v3425_v19, %v3424_v58 }
 0xc73   : > { %9817 = vmatprep.mubr.msk.bf16.mxu1 %vm1400_vm1, %v3430_v13 }
 0xc74   : > { %9818 = vmatmul.mubr.msk.bf16.gmra.mrb[84].mxu1 %vm1400_vm1, %v3431_v3 }
 0xc75   : > { %9829 = vmatprep.mubr.msk.bf16.mxu1 %vm1302_vm0, %v3562_v42 }
 0xc78   : > { %9828 = vmatpush3.bf16.xpose.msra.mxu1 %v3599_v29 }
 0xc7f   : > { %9830 = vmatmul.mubr.msk.bf16.vlgmr.msra.gmra.mrb[88].mxu1 %vm1302_vm0, %v3564_v20 }
 0xc80   : > { %9833 = vmatprep.mubr.msk.bf16.mxu1 %vm1302_vm0, %v3566_v49 }
 0xc87   : > { %9834 = vmatmul.mubr.msk.bf16.gmra.mrb[92].mxu1 %vm1302_vm0, %v3568_v41 }
 0xc88   : > { %5217 = vmatprep.mubr.bf16.mxu1 %v13841_v34 }
 0xd0e   : > { %v11858_v35 = vpop.f32.mrb[80].mxu1 }
 0xd0f   : > { %v11860_v38 = vpop.f32.mrb[81].mxu1 }
 0xd10   : > { %v11862_v28 = vpop.f32.mrb[82].mxu1 }
 0xd11   : > { %v11864_v21 = vpop.f32.mrb[83].mxu1 }
 0xd47   : > { %v11866_v61 = vpop.f32.mrb[84].mxu1 }
 0xd48   : > { %v11868_v47 = vpop.f32.mrb[85].mxu1 }
 0xd49   : > { %v11870_v45 = vpop.f32.mrb[86].mxu1 }
 0xd4a   : > { %v11872_v33 = vpop.f32.mrb[87].mxu1 }
 0xd52   : > { %v9831_v15 = vpop.f32.mrb[88].mxu1 }
 0xd53   : > { %v3635_v55 = vpop.f32.mrb[89].mxu1  ;;  %v3668_v24 = vmul.f32 0.17677669, %v9831_v15 }
 0xd54   : > { %v3666_v16 = vmul.f32 0.17677669, %v3635_v55  ;;  %v9832_v40 = vpop.f32.mrb[90].mxu1 }
 0xd55   : > { %v3638_v44 = vpop.f32.mrb[91].mxu1  ;;  %v3669_v32 = vmul.f32 0.17677669, %v9832_v40  ;;  %v3680_v62 = vsel %vm1400_vm1, %v3668_v24, -inf }
 0xd56   : > { %v3667_v0 = vmul.f32 0.17677669, %v3638_v44  ;;  %v3674_v11 = vsel %vm1400_vm1, %v3666_v16, -inf }
 0xd57   : > { %3675 = vmax.xlane.f32.xlu0 %v3674_v11  ;;  %v3683_v3 = vsel %vm1400_vm1, %v3669_v32, -inf }
 0xd58   : > { %v3677_v1 = vsel %vm1400_vm1, %v3667_v0, -inf }
 0xd59   : > { %3678 = vmax.xlane.f32.xlu1 %v3677_v1 }
 0xd5a   : > { %v9835_v23 = vpop.f32.mrb[92].mxu1 }
 0xd5b   : > { %3681 = vmax.xlane.f32.xlu0 %v3680_v62  ;;  %v3651_v58 = vpop.f32.mrb[93].mxu1  ;;  %v3672_v20 = vmul.f32 0.17677669, %v9835_v23 }
 0xd5c   : > { %v9836_v19 = vpop.f32.mrb[94].mxu1  ;;  %v3670_v36 = vmul.f32 0.17677669, %v3651_v58 }
 0xd5d   : > { %v3654_v48 = vpop.f32.mrb[95].mxu1  ;;  %v3673_v42 = vmul.f32 0.17677669, %v9836_v19  ;;  %v3692_v15 = vsel %vm1400_vm1, %v3672_v20, -inf }
 0xd5e   : > { %v3671_v13 = vmul.f32 0.17677669, %v3654_v48  ;;  %v3686_v49 = vsel %vm1400_vm1, %v3670_v36, -inf }
 0xd5f   : > { %3684 = vmax.xlane.f32.xlu0 %v3683_v3  ;;  %v3695_v41 = vsel %vm1400_vm1, %v3673_v42, -inf }
 0xd60   : > { %v3689_v29 = vsel %vm1400_vm1, %v3671_v13, -inf }
 0xd61   : > { %3690 = vmax.xlane.f32.xlu1 %v3689_v29 }
 0xd63   : > { %3687 = vmax.xlane.f32.xlu0 %v3686_v49 }
 0xd65   : > { %3696 = vmax.xlane.f32.xlu1 %v3695_v41 }
 0xd67   : > { %3693 = vmax.xlane.f32.xlu0 %v3692_v15 }
 0xd7d   : > { %3766 = vrot.lane.b32.xlu0 %v13833_v12, %s10446_s23 }
 0xde4   : > { %v3676_v55 = vpop.xlane.xlu0 %3675 }
 0xde5   : > { %v3698_v40 = vsub.f32 %v3666_v16, %v3676_v55 }
 0xde6   : > { %v3679_v44 = vpop.xlane.xlu1 %3678 }
 0xde7   : > { %v3706_v62 = vmul.f32 1.442695, %v3698_v40  ;;  %v3699_v58 = vsub.f32 %v3667_v0, %v3679_v44 }
 0xde8   : > { %v3682_v11 = vpop.xlane.xlu0 %3681 }
 0xde9   : > { %v3700_v1 = vsub.f32 %v3668_v24, %v3682_v11  ;;  %v3708_v29 = vmul.f32 1.442695, %v3699_v58 }
 0xdeb   : > { %v3710_v23 = vmul.f32 1.442695, %v3700_v1 }
 0xdec   : > { %v3685_v19 = vpop.xlane.xlu0 %3684 }
 0xded   : > { %10355 = vpow2.f32 %v3710_v23  ;;  %v3701_v48 = vsub.f32 %v3669_v32, %v3685_v19 }
 0xdee   : > { %v3691_v3 = vpop.xlane.xlu1 %3690  ;;  %10357 = vpow2.f32 %v3706_v62 }
 0xdef   : > { %v3712_v49 = vmul.f32 1.442695, %v3701_v48 }
 0xdf0   : > { %v3688_v41 = vpop.xlane.xlu0 %3687 }
 0xdf1   : > { %10359 = vpow2.f32 %v3712_v49  ;;  %v3702_v15 = vsub.f32 %v3670_v36, %v3688_v41  ;;  %v3703_v36 = vsub.f32 %v3671_v13, %v3691_v3 }
 0xdf2   : > { %10361 = vpow2.f32 %v3708_v29  ;;  %v3697_v12 = vpop.xlane.xlu1 %3696 }
 0xdf3   : > { %v3714_v24 = vmul.f32 1.442695, %v3702_v15  ;;  %v3705_v40 = vsub.f32 %v3673_v42, %v3697_v12  ;;  %v3716_v58 = vmul.f32 1.442695, %v3703_v36 }
 0xdf4   : > { %v3694_v34 = vpop.xlane.xlu0 %3693 }
 0xdf5   : > { %v3704_v16 = vsub.f32 %v3672_v20, %v3694_v34  ;;  %v3720_v34 = vmul.f32 1.442695, %v3705_v40 }
 0xdf7   : > { %v11884_v55 = vpop.eup %10355  ;;  %v3718_v0 = vmul.f32 1.442695, %v3704_v16  ;;  %v9964_v16 = vld [vmem:[%s10541_s22 + $0x8] sm:$0xff]  }
 0xdf8   : > { %v3767_v44 = vpop.permute.xlu0 %3766  ;;  %v3728_v32 = vsel %vm1400_vm1, %v11884_v55, 0.0  ;;  %v11888_v11 = vpop.eup %10357 }
 0xdf9   : > { %10363 = vpow2.f32 %v3718_v0  ;;  %3729 = vadd.xlane.f32.xlu0 %v3728_v32  ;;  %9837 = vmatprep.subr.bf16.mxu0 %v3767_v44  ;;  %v3722_v20 = vsel %vm1400_vm1, %v11888_v11, 0.0 }
 0xdfa   : > { %9838 = vmatpush3.bf16.msra.mxu0 %v3767_v44  ;;  %10365 = vpow2.f32 %v3714_v24 }
 0xdfb   : > { %v11890_v1 = vpop.eup %10359  ;;  %10367 = vpow2.f32 %v3720_v34 }
 0xdfc   : > { %v3731_v42 = vsel %vm1400_vm1, %v11890_v1, 0.0  ;;  %v11896_v62 = vpop.eup %10361  ;;  %10369 = vpow2.f32 %v3716_v58 }
 0xdfd   : > { %3723 = vadd.xlane.f32.xlu0 %v3722_v20  ;;  %3732 = vadd.xlane.f32.xlu1 %v3731_v42  ;;  %v3725_v23 = vsel %vm1400_vm1, %v11896_v62, 0.0  ;;  %v9966_v42 = vld [vmem:[%s10541_s22 + $0x18] sm:$0xff]  }
 0xe01   : > { %3726 = vadd.xlane.f32.xlu1 %v3725_v23  ;;  %v9967_v23 = vld [vmem:[%s10541_s22 + $0x20] sm:$0xff]  }
 0xe03   : > { %v11900_v19 = vpop.eup %10363 }
 0xe04   : > { %v3740_v13 = vsel %vm1400_vm1, %v11900_v19, 0.0  ;;  %v11904_v48 = vpop.eup %10365 }
 0xe05   : > { %3741 = vadd.xlane.f32.xlu1 %v3740_v13  ;;  %v3734_v3 = vsel %vm1400_vm1, %v11904_v48, 0.0  ;;  %v11908_v29 = vpop.eup %10367 }
 0xe06   : > { %v3743_v49 = vsel %vm1400_vm1, %v11908_v29, 0.0  ;;  %v11912_v41 = vpop.eup %10369 }
 0xe07   : > { %v3737_v15 = vsel %vm1400_vm1, %v11912_v41, 0.0 }
 0xe09   : > { %3735 = vadd.xlane.f32.xlu1 %v3734_v3 }
 0xe0d   : > { %3744 = vadd.xlane.f32.xlu1 %v3743_v49 }
 0xe11   : > { %3738 = vadd.xlane.f32.xlu1 %v3737_v15 }
 0xe13   : > { %3770 = vrot.lane.b32.xlu0 %v13835_v63, %s10446_s23 }
 0xe17   : > { %3772 = vrot.lane.b32.xlu0 %v13836_v4, %s10446_s23 }
 0xe1b   : > { %1892 = vrot.lane.b32.xlu0 %v11421_v8, %s10446_s23  ;;  %v13843_v8 = vld [vmem:[#allocation9_spill] sm:$0xff] }
 0xe1f   : > { %1896 = vrot.lane.b32.xlu0 %v11419_v50, %s10446_s23  ;;  %v13842_v50 = vld [vmem:[#allocation18_spill] sm:$0xff] }
 0xe22   : > { %3768 = vrot.lane.b32.xlu1 %v13834_v59, %s10446_s23 }
 0xe23   : > { %2227 = vrot.lane.b32.xlu0 %v11437_v18, %s10445_s19 }
 0xe26   : > { %1894 = vrot.lane.b32.xlu1 %v11425_v54, %s10446_s23 }
 0xe27   : > { %2231 = vrot.lane.b32.xlu0 %v11435_v53, %s10445_s19 }
 0xe2a   : > { %1898 = vrot.lane.b32.xlu1 %v11423_v39, %s10446_s23 }
 0xe2b   : > { %2562 = vrot.lane.b32.xlu0 %v11667_v31, %s10444_s25 }
 0xe2e   : > { %2229 = vrot.lane.b32.xlu1 %v11441_v7, %s10445_s19 }
 0xe2f   : > { %2566 = vrot.lane.b32.xlu0 %v11665_v60, %s10444_s25 }
 0xe32   : > { %2233 = vrot.lane.b32.xlu1 %v11439_v51, %s10445_s19 }
 0xe33   : > { %1900 = vrot.lane.b32.xlu0 %v11429_v52, %s10446_s23 }
 0xe36   : > { %2564 = vrot.lane.b32.xlu1 %v11671_v46, %s10444_s25 }
 0xe37   : > { %1904 = vrot.lane.b32.xlu0 %v11427_v25, %s10446_s23 }
 0xe3a   : > { %2568 = vrot.lane.b32.xlu1 %v11669_v30, %s10444_s25 }
 0xe3b   : > { %2235 = vrot.lane.b32.xlu0 %v11445_v2, %s10445_s19 }
 0xe3e   : > { %1902 = vrot.lane.b32.xlu1 %v11433_v43, %s10446_s23 }
 0xe3f   : > { %2239 = vrot.lane.b32.xlu0 %v11443_v27, %s10445_s19 }
 0xe42   : > { %1906 = vrot.lane.b32.xlu1 %v11431_v17, %s10446_s23 }
 0xe43   : > { %2570 = vrot.lane.b32.xlu0 %v11675_v22, %s10444_s25 }
 0xe46   : > { %2237 = vrot.lane.b32.xlu1 %v11449_v6, %s10445_s19 }
 0xe47   : > { %2574 = vrot.lane.b32.xlu0 %v11673_v56, %s10444_s25 }
 0xe4a   : > { %2241 = vrot.lane.b32.xlu1 %v11447_v14, %s10445_s19 }
 0xe4b   : > { %3195 = vrot.lane.b32.xlu0 %v11767_v57, %s10446_s23 }
 0xe4e   : > { %2572 = vrot.lane.b32.xlu1 %v11679_v26, %s10444_s25 }
 0xe4f   : > { %3199 = vrot.lane.b32.xlu0 %v11765_v10, %s10446_s23 }
 0xe52   : > { %2576 = vrot.lane.b32.xlu1 %v11677_v5, %s10444_s25 }
 0xe53   : > { %3529 = vrot.lane.b32.xlu0 %v11860_v38, %s10445_s19 }
 0xe56   : > { %3197 = vrot.lane.b32.xlu1 %v11771_v37, %s10446_s23 }
 0xe57   : > { %3533 = vrot.lane.b32.xlu0 %v11858_v35, %s10445_s19 }
 0xe5a   : > { %3201 = vrot.lane.b32.xlu1 %v11769_v9, %s10446_s23  ;;  %v9963_v9 = vld [vmem:[%s10541_s22] sm:$0xff]  }
 0xe5b   : > { %3203 = vrot.lane.b32.xlu0 %v13842_v50, %s10446_s23  ;;  %v9969_v50 = vld [vmem:[%s10541_s22 + $0x30] sm:$0xff]  }
 0xe5e   : > { %3531 = vrot.lane.b32.xlu1 %v11864_v21, %s10445_s19 }
 0xe62   : > { %3535 = vrot.lane.b32.xlu1 %v11862_v28, %s10445_s19 }
 0xe66   : > { %3205 = vrot.lane.b32.xlu1 %v13843_v8, %s10446_s23 }
 0xe86   : > { %v3730_v39 = vpop.xlane.xlu0 %3729 }
 0xe8a   : > { %v3724_v54 = vpop.xlane.xlu0 %3723  ;;  %v3733_v25 = vpop.xlane.xlu1 %3732 }
 0xe8b   : > { %10371 = vrcp.f32 %v3724_v54  ;;  %v9970_v54 = vld [vmem:[%s10541_s22 + $0x38] sm:$0xff]  }
 0xe8e   : > { %v3771_v52 = vpop.permute.xlu0 %3770  ;;  %v3727_v17 = vpop.xlane.xlu1 %3726 }
 0xe8f   : > { %10373 = vrcp.f32 %v3727_v17 }
 0xe90   : > { %10375 = vrcp.f32 %v3733_v25 }
 0xe91   : > { %10377 = vrcp.f32 %v3730_v39 }
 0xe92   : > { %v3773_v43 = vpop.permute.xlu0 %3772  ;;  %v3742_v53 = vpop.xlane.xlu1 %3741 }
 0xe95   : > { %v10372_v7 = vpop.eup %10371 }
 0xe96   : > { %v1893_v18 = vpop.permute.xlu0 %1892  ;;  %v3736_v51 = vpop.xlane.xlu1 %3735  ;;  %v3754_v6 = vmul.f32 %v10372_v7, %v11888_v11  ;;  %v9965_v11 = vld [vmem:[%s10541_s22 + $0x10] sm:$0xff]  }
 0xe97   : > { %1917 = vst.msk [vmem:[#allocation3] sm:$0xff] %vm1916_vm2, %v1893_v18  ;;  %10379 = vrcp.f32 %v3736_v51 }
 0xe99   : > { %v10374_v27 = vpop.eup %10373 }
 0xe9a   : > { %v1897_v2 = vpop.permute.xlu0 %1896  ;;  %v3745_v14 = vpop.xlane.xlu1 %3744  ;;  %v3755_v59 = vmul.f32 %v10374_v27, %v11896_v62 }
 0xe9b   : > { %1919 = vst.msk [vmem:[#allocation3 + $0x10] sm:$0xff] %vm1916_vm2, %v1897_v2  ;;  %v10376_v46 = vpop.eup %10375 }
 0xe9c   : > { %v3762_v63 = vpack.c.bf16 %v3755_v59, %v3754_v6  ;;  %v10378_v5 = vpop.eup %10377  ;;  %v3757_v57 = vmul.f32 %v10376_v46, %v11890_v1 }
 0xe9d   : > { %v3756_v28 = vmul.f32 %v10378_v5, %v11884_v55 }
 0xe9e   : > { %v2228_v4 = vpop.permute.xlu0 %2227  ;;  %9845 = vmatprep.mubr.msk.bf16.mxu0 %vm1400_vm1, %v3762_v63  ;;  %v3739_v60 = vpop.xlane.xlu1 %3738 }
 0xe9f   : > { %2252 = vst.msk [vmem:[#allocation3] sm:$0xff] %vm2251_vm3, %v2228_v4  ;;  %10381 = vrcp.f32 %v3739_v60  ;;  %v3763_v12 = vpack.c.bf16 %v3757_v57, %v3756_v28 }
 0xea0   : > { %10383 = vrcp.f32 %v3745_v14 }
 0xea1   : > { %10385 = vrcp.f32 %v3742_v53  ;;  %v10380_v26 = vpop.eup %10379 }
 0xea2   : > { %v2232_v31 = vpop.permute.xlu0 %2231  ;;  %v3769_v30 = vpop.permute.xlu1 %3768  ;;  %v3758_v21 = vmul.f32 %v10380_v26, %v11904_v48 }
 0xea3   : > { %2254 = vst.msk [vmem:[#allocation3 + $0x10] sm:$0xff] %vm2251_vm3, %v2232_v31  ;;  %9839 = vmatprep.subr.bf16.mxu0 %v3769_v30 }
 0xea4   : > { %9840 = vmatpush3.bf16.msra.mxu0 %v3769_v30 }
 0xea5   : > { %9841 = vmatprep.subr.bf16.mxu0 %v3771_v52 }
 0xea6   : > { %v2563_v56 = vpop.permute.xlu0 %2562  ;;  %v1895_v22 = vpop.permute.xlu1 %1894 }
 0xea7   : > { %2587 = vst.msk [vmem:[#allocation3] sm:$0xff] %vm2586_vm4, %v2563_v56 }
 0xea8   : > { %1918 = vst.msk [vmem:[#allocation3 + $0x8] sm:$0xff] %vm1916_vm2, %v1895_v22  ;;  %9842 = vmatpush3.bf16.msra.mxu0 %v3771_v52 }
 0xea9   : > { %v10382_v10 = vpop.eup %10381  ;;  %9843 = vmatprep.subr.bf16.mxu0 %v3773_v43 }
 0xeaa   : > { %v2567_v37 = vpop.permute.xlu0 %2566  ;;  %v1899_v35 = vpop.permute.xlu1 %1898  ;;  %v3759_v38 = vmul.f32 %v10382_v10, %v11912_v41 }
 0xeab   : > { %2589 = vst.msk [vmem:[#allocation3 + $0x10] sm:$0xff] %vm2586_vm4, %v2567_v37  ;;  %v10384_v24 = vpop.eup %10383 }
 0xeac   : > { %1920 = vst.msk [vmem:[#allocation3 + $0x18] sm:$0xff] %vm1916_vm2, %v1899_v35  ;;  %9844 = vmatpush3.bf16.msra.mxu0 %v3773_v43  ;;  %v3764_v44 = vpack.c.bf16 %v3759_v38, %v3758_v21  ;;  %v10386_v55 = vpop.eup %10385  ;;  %v3761_v32 = vmul.f32 %v10384_v24, %v11908_v29  ;;  %v13844_v38 = vld [vmem:[#allocation10_spill] sm:$0xff] }
 0xead   : > { %9853 = vmatprep.subr.bf16.mxu0 %v9963_v9  ;;  %v3760_v34 = vmul.f32 %v10386_v55, %v11900_v19  ;;  %v9968_v19 = vld [vmem:[%s10541_s22 + $0x28] sm:$0xff]  }
 0xeae   : > { %v1901_v40 = vpop.permute.xlu0 %1900  ;;  %v2230_v0 = vpop.permute.xlu1 %2229  ;;  %v3895_v49 = vld [vmem:[#allocation3] sm:$0xff] }
 0xeaf   : > { %1921 = vst.msk [vmem:[#allocation3 + $0x20] sm:$0xff] %vm1916_vm2, %v1901_v40  ;;  %9846 = vmatmul.mubr.msk.bf16.vlgmr.msra.gmra.mrb[72].mxu0 %vm1400_vm1, %v3763_v12  ;;  %v3765_v20 = vpack.c.bf16 %v3761_v32, %v3760_v34  ;;  %v13845_v12 = vld [vmem:[#allocation20_spill] sm:$0xff] }
 0xeb0   : > { %2253 = vst.msk [vmem:[#allocation3 + $0x8] sm:$0xff] %vm2251_vm3, %v2230_v0  ;;  %9849 = vmatprep.mubr.msk.bf16.mxu0 %vm1400_vm1, %v3764_v44  ;;  %9854 = vmatpush3.bf16.msra.mxu0 %v9963_v9 }
 0xeb1   : > { %9855 = vmatprep.subr.bf16.mxu0 %v9964_v16 }
 0xeb2   : > { %v1905_v1 = vpop.permute.xlu0 %1904  ;;  %v2234_v36 = vpop.permute.xlu1 %2233  ;;  %v3897_v18 = vld [vmem:[#allocation3 + $0x10] sm:$0xff] }
 0xeb3   : > { %1923 = vst.msk [vmem:[#allocation3 + $0x30] sm:$0xff] %vm1916_vm2, %v1905_v1  ;;  %v10419_v1 = vld [vmem:[#allocation2] sm:$0xff] }
 0xeb4   : > { %2255 = vst.msk [vmem:[#allocation3 + $0x18] sm:$0xff] %vm2251_vm3, %v2234_v36  ;;  %9856 = vmatpush3.bf16.msra.mxu0 %v9964_v16 }
 0xeb5   : > { %9857 = vmatprep.subr.bf16.mxu0 %v9965_v11 }
 0xeb6   : > { %v2236_v62 = vpop.permute.xlu0 %2235  ;;  %v2565_v58 = vpop.permute.xlu1 %2564 }
 0xeb7   : > { %2256 = vst.msk [vmem:[#allocation3 + $0x20] sm:$0xff] %vm2251_vm3, %v2236_v62  ;;  %9850 = vmatmul.mubr.msk.bf16.gmra.mrb[76].mxu0 %vm1400_vm1, %v3765_v20 }
 0xeb8   : > { %2588 = vst.msk [vmem:[#allocation3 + $0x8] sm:$0xff] %vm2586_vm4, %v2565_v58  ;;  %9858 = vmatpush3.bf16.msra.mxu0 %v9965_v11 }
 0xeb9   : > { %9859 = vmatprep.subr.bf16.mxu0 %v9966_v42 }
 0xeba   : > { %v2240_v13 = vpop.permute.xlu0 %2239  ;;  %v2569_v48 = vpop.permute.xlu1 %2568 }
 0xebb   : > { %2258 = vst.msk [vmem:[#allocation3 + $0x30] sm:$0xff] %vm2251_vm3, %v2240_v13 }
 0xebc   : > { %2590 = vst.msk [vmem:[#allocation3 + $0x18] sm:$0xff] %vm2586_vm4, %v2569_v48  ;;  %9860 = vmatpush3.bf16.msra.mxu0 %v9966_v42  ;;  %v10420_v42 = vld [vmem:[#allocation2 + $0x10] sm:$0xff] }
 0xebd   : > { %9861 = vmatprep.subr.bf16.mxu0 %v9967_v23 }
 0xebe   : > { %v2571_v3 = vpop.permute.xlu0 %2570  ;;  %v1903_v29 = vpop.permute.xlu1 %1902 }
 0xebf   : > { %v3896_v41 = vld [vmem:[#allocation3 + $0x8] sm:$0xff]  ;;  %2591 = vst.msk [vmem:[#allocation3 + $0x20] sm:$0xff] %vm2586_vm4, %v2571_v3 }
 0xec0   : > { %1922 = vst.msk [vmem:[#allocation3 + $0x28] sm:$0xff] %vm1916_vm2, %v1903_v29  ;;  %v3911_v15 = vpack.c.bf16 %v3896_v41, %v3895_v49  ;;  %9862 = vmatpush3.bf16.msra.mxu0 %v9967_v23  ;;  %v10421_v23 = vld [vmem:[#allocation2 + $0x8] sm:$0xff] }
 0xec1   : > { %9863 = vmatprep.subr.bf16.mxu0 %v9968_v19  ;;  %v10423_v49 = vld [vmem:[#allocation2 + $0x28] sm:$0xff] }
 0xec2   : > { %9869 = vmatprep.mubr.bf16.mxu0 %v3911_v15  ;;  %v2575_v8 = vpop.permute.xlu0 %2574  ;;  %v1907_v39 = vpop.permute.xlu1 %1906 }
 0xec3   : > { %2593 = vst.msk [vmem:[#allocation3 + $0x30] sm:$0xff] %vm2586_vm4, %v2575_v8  ;;  %v3898_v53 = vld [vmem:[#allocation3 + $0x18] sm:$0xff] }
 0xec4   : > { %1924 = vst.msk [vmem:[#allocation3 + $0x38] sm:$0xff] %vm1916_vm2, %v1907_v39  ;;  %9864 = vmatpush3.bf16.msra.mxu0 %v9968_v19  ;;  %v3912_v51 = vpack.c.bf16 %v3898_v53, %v3897_v18  ;;  %v10422_v19 = vld [vmem:[#allocation2 + $0x18] sm:$0xff] }
 0xec5   : > { %9865 = vmatprep.subr.bf16.mxu0 %v9969_v50  ;;  %v10425_v39 = vld [vmem:[#allocation2 + $0x38] sm:$0xff] }
 0xec6   : > { %v3196_v25 = vpop.permute.xlu0 %3195  ;;  %v2238_v52 = vpop.permute.xlu1 %2237  ;;  %v3899_v63 = vld [vmem:[#allocation3 + $0x20] sm:$0xff] }
 0xec7   : > { %3219 = vst.msk [vmem:[#allocation3 + $0x40] sm:$0xff] %vm1916_vm2, %v3196_v25  ;;  %v10426_v25 = vld [vmem:[#allocation2 + $0x30] sm:$0xff] }
 0xec8   : > { %2257 = vst.msk [vmem:[#allocation3 + $0x28] sm:$0xff] %vm2251_vm3, %v2238_v52  ;;  %9866 = vmatpush3.bf16.msra.mxu0 %v9969_v50  ;;  %v10424_v50 = vld [vmem:[#allocation2 + $0x20] sm:$0xff] }
 0xec9   : > { %9867 = vmatprep.subr.bf16.mxu0 %v9970_v54 }
 0xeca   : > { %v3200_v17 = vpop.permute.xlu0 %3199  ;;  %v2242_v43 = vpop.permute.xlu1 %2241  ;;  %v3901_v30 = vld [vmem:[#allocation3 + $0x30] sm:$0xff] }
 0xecb   : > { %3221 = vst.msk [vmem:[#allocation3 + $0x50] sm:$0xff] %vm1916_vm2, %v3200_v17 }
 0xecc   : > { %2259 = vst.msk [vmem:[#allocation3 + $0x38] sm:$0xff] %vm2251_vm3, %v2242_v43  ;;  %9868 = vmatpush3.bf16.msra.mxu0 %v9970_v54 }
 0xece   : > { %v3530_v7 = vpop.permute.xlu0 %3529  ;;  %v2573_v27 = vpop.permute.xlu1 %2572 }
 0xecf   : > { %3553 = vst.msk [vmem:[#allocation3 + $0x40] sm:$0xff] %vm2251_vm3, %v3530_v7  ;;  %9870 = vmatmul.mubr.bf16.vlgmr.msra.gmra.mrb[80].mxu0 %v3912_v51 }
 0xed0   : > { %2592 = vst.msk [vmem:[#allocation3 + $0x28] sm:$0xff] %vm2586_vm4, %v2573_v27 }
 0xed2   : > { %v3534_v2 = vpop.permute.xlu0 %3533  ;;  %v2577_v14 = vpop.permute.xlu1 %2576 }
 0xed3   : > { %3555 = vst.msk [vmem:[#allocation3 + $0x50] sm:$0xff] %vm2251_vm3, %v3534_v2 }
 0xed4   : > { %2594 = vst.msk [vmem:[#allocation3 + $0x38] sm:$0xff] %vm2586_vm4, %v2577_v14 }
 0xed6   : > { %v3204_v6 = vpop.permute.xlu0 %3203  ;;  %v3198_v59 = vpop.permute.xlu1 %3197 }
 0xed7   : > { %v3900_v4 = vld [vmem:[#allocation3 + $0x28] sm:$0xff]  ;;  %3223 = vst.msk [vmem:[#allocation3 + $0x60] sm:$0xff] %vm1916_vm2, %v3204_v6  ;;  %3220 = vst.msk [vmem:[#allocation3 + $0x48] sm:$0xff] %vm1916_vm2, %v3198_v59 }
 0xed8   : > { %v3913_v60 = vpack.c.bf16 %v3900_v4, %v3899_v63 }
 0xeda   : > { %9873 = vmatprep.mubr.bf16.mxu0 %v3913_v60  ;;  %v3202_v31 = vpop.permute.xlu1 %3201 }
 0xedb   : > { %v3902_v46 = vld [vmem:[#allocation3 + $0x38] sm:$0xff]  ;;  %3222 = vst.msk [vmem:[#allocation3 + $0x58] sm:$0xff] %vm1916_vm2, %v3202_v31 }
 0xedc   : > { %v3914_v56 = vpack.c.bf16 %v3902_v46, %v3901_v30 }
 0xede   : > { %9874 = vmatmul.mubr.bf16.gmra.mrb[84].mxu0 %v3914_v56  ;;  %v3532_v22 = vpop.permute.xlu1 %3531 }
 0xedf   : > { %3554 = vst.msk [vmem:[#allocation3 + $0x48] sm:$0xff] %vm2251_vm3, %v3532_v22 }
 0xee2   : > { %v3536_v5 = vpop.permute.xlu1 %3535 }
 0xee3   : > { %3556 = vst.msk [vmem:[#allocation3 + $0x58] sm:$0xff] %vm2251_vm3, %v3536_v5 }
 0xee6   : > { %v3206_v26 = vpop.permute.xlu1 %3205 }
 0xee7   : > { %3224 = vst.msk [vmem:[#allocation3 + $0x68] sm:$0xff] %vm1916_vm2, %v3206_v26 }
 0xf82   : > { %v9847_v10 = vpop.f32.mrb[72].mxu0 }
 0xf83   : > { %3867 = vrot.lane.b32.xlu0 %v9847_v10, %s10444_s25  ;;  %v3824_v57 = vpop.f32.mrb[73].mxu0 }
 0xf84   : > { %v9848_v9 = vpop.f32.mrb[74].mxu0 }
 0xf85   : > { %3869 = vrot.lane.b32.xlu1 %v9848_v9, %s10444_s25  ;;  %v3827_v37 = vpop.f32.mrb[75].mxu0 }
 0xf87   : > { %3863 = vrot.lane.b32.xlu0 %v3824_v57, %s10444_s25 }
 0xf89   : > { %3865 = vrot.lane.b32.xlu1 %v3827_v37, %s10444_s25 }
 0xf8a   : > { %v9851_v35 = vpop.f32.mrb[76].mxu0 }
 0xf8b   : > { %3207 = vrot.lane.b32.xlu0 %v13844_v38, %s10446_s23  ;;  %v3840_v28 = vpop.f32.mrb[77].mxu0  ;;  %v13855_v38 = vmov 0  }
 0xf8c   : > { %v9852_v21 = vpop.f32.mrb[78].mxu0 }
 0xf8d   : > { %3209 = vrot.lane.b32.xlu1 %v13845_v12, %s10446_s23  ;;  %v3843_v16 = vpop.f32.mrb[79].mxu0 }
 0xf8f   : > { %3537 = vrot.lane.b32.xlu0 %v11868_v47, %s10445_s19 }
 0xf91   : > { %3539 = vrot.lane.b32.xlu1 %v11872_v33, %s10445_s19 }
 0xf93   : > { %3541 = vrot.lane.b32.xlu0 %v11866_v61, %s10445_s19  ;;  %v12069_v61 = vld [vmem:[%s13846_s20] ss:$0 sm:$0xff] }
 0xf95   : > { %3543 = vrot.lane.b32.xlu1 %v11870_v45, %s10445_s19 }
 0xf97   : > { %3871 = vrot.lane.b32.xlu0 %v3840_v28, %s10444_s25 }
 0xf99   : > { %3873 = vrot.lane.b32.xlu1 %v3843_v16, %s10444_s25 }
 0xf9b   : > { %3875 = vrot.lane.b32.xlu0 %v9851_v35, %s10444_s25 }
 0xf9d   : > { %3877 = vrot.lane.b32.xlu1 %v9852_v21, %s10444_s25 }
 0xfa2   : > { %v9871_v24 = vpop.f32.mrb[80].mxu0 }
 0xfa3   : > { %v4024_v40 = vpop.f32.mrb[81].mxu0  ;;  %v4033_v11 = vadd.f32 %v9871_v24, %v12069_v61 }
 0xfa4   : > { %v9872_v47 = vpop.f32.mrb[82].mxu0  ;;  %v4025_v32 = vadd.f32 %v12069_v61, %v4024_v40 }
 0xfa5   : > { %v4027_v0 = vpop.f32.mrb[83].mxu0  ;;  %v4036_v20 = vadd.f32 %v9872_v47, %v12069_v61  ;;  %v12078_v62 = vadd.f32 %v10420_v42, %v4033_v11  ;;  %v10429_v11 = vld [vmem:[#allocation2 + $0x50] sm:$0xff] }
 0xfa6   : > { %v12073_v36 = vadd.f32 %v10419_v1, %v4025_v32  ;;  %v4028_v34 = vadd.f32 %v12069_v61, %v4027_v0  ;;  %v10427_v0 = vld [vmem:[#allocation2 + $0x40] sm:$0xff] }
 0xfa7   : > { %13848 = vst [vmem:[#allocation14_spill] sm:$0xff] %v12078_v62  ;;  %v12085_v3 = vadd.f32 %v10422_v19, %v4036_v20 }
 0xfa8   : > { %13847 = vst [vmem:[#allocation13_spill] sm:$0xff] %v12073_v36  ;;  %v12082_v13 = vadd.f32 %v10421_v23, %v4028_v34  ;;  %v10430_v34 = vld [vmem:[#allocation2 + $0x58] sm:$0xff] }
 0xfa9   : > { %13850 = vst [vmem:[#allocation19_spill] sm:$0xff] %v12085_v3 }
 0xfaa   : > { %13849 = vst [vmem:[#allocation17_spill] sm:$0xff] %v12082_v13 }
 0xfb1   : > { %v9875_v44 = vpop.f32.mrb[84].mxu0 }
 0xfb2   : > { %v4040_v45 = vpop.f32.mrb[85].mxu0  ;;  %v4049_v15 = vadd.f32 %v9875_v44, %v12069_v61 }
 0xfb3   : > { %v9876_v33 = vpop.f32.mrb[86].mxu0  ;;  %v4041_v48 = vadd.f32 %v12069_v61, %v4040_v45 }
 0xfb4   : > { %v4043_v55 = vpop.f32.mrb[87].mxu0  ;;  %v4052_v29 = vadd.f32 %v9876_v33, %v12069_v61  ;;  %v12099_v52 = vadd.f32 %v10426_v25, %v4049_v15  ;;  %v10428_v33 = vld [vmem:[#allocation2 + $0x48] sm:$0xff] }
 0xfb5   : > { %v4044_v58 = vadd.f32 %v12069_v61, %v4043_v55  ;;  %v12093_v8 = vadd.f32 %v10424_v50, %v4041_v48 }
 0xfb6   : > { %v12097_v54 = vadd.f32 %v10425_v39, %v4052_v29  ;;  %13854 = vst [vmem:[#allocation15_spill] sm:$0xff] %v12099_v52 }
 0xfb7   : > { %v12090_v41 = vadd.f32 %v10423_v49, %v4044_v58  ;;  %13852 = vst [vmem:[#allocation11_spill] sm:$0xff] %v12093_v8 }
 0xfb8   : > { %13853 = vst [vmem:[#allocation16_spill] sm:$0xff] %v12097_v54 }
 0xfb9   : > { %13851 = vst [vmem:[#allocation12_spill] sm:$0xff] %v12090_v41 }
 0xfba   : > { %4105 = vadd.xlane.f32.xlu0 %v12073_v36 }
 0xfbe   : > { %4109 = vadd.xlane.f32.xlu0 %v12078_v62 }
 0xfc1   : > { %4107 = vadd.xlane.f32.xlu1 %v12082_v13 }
 0xfc2   : > { %4111 = vadd.xlane.f32.xlu0 %v12085_v3 }
 0xfc5   : > { %4115 = vadd.xlane.f32.xlu1 %v12090_v41 }
 0xfc6   : > { %4113 = vadd.xlane.f32.xlu0 %v12093_v8 }
 0xfc9   : > { %4119 = vadd.xlane.f32.xlu1 %v12097_v54 }
 0xfca   : > { %4117 = vadd.xlane.f32.xlu0 %v12099_v52 }
 0xff5   : > { %v3868_v17 = vpop.permute.xlu0 %3867 }
 0xff6   : > { %3889 = vst.msk [vmem:[#allocation3 + $0x50] sm:$0xff] %vm2586_vm4, %v3868_v17  ;;  %v10431_v17 = vld [vmem:[#allocation2 + $0x60] sm:$0xff] }
 0xff7   : > { %v3870_v43 = vpop.permute.xlu1 %3869 }
 0xff8   : > { %3890 = vst.msk [vmem:[#allocation3 + $0x58] sm:$0xff] %vm2586_vm4, %v3870_v43 }
 0xff9   : > { %v3864_v53 = vpop.permute.xlu0 %3863 }
 0xffa   : > { %3887 = vst.msk [vmem:[#allocation3 + $0x40] sm:$0xff] %vm2586_vm4, %v3864_v53 }
 0xffb   : > { %v3866_v18 = vpop.permute.xlu1 %3865 }
 0xffc   : > { %3888 = vst.msk [vmem:[#allocation3 + $0x48] sm:$0xff] %vm2586_vm4, %v3866_v18 }
 0xffd   : > { %v3208_v51 = vpop.permute.xlu0 %3207  ;;  %v3905_v4 = vld [vmem:[#allocation3 + $0x50] sm:$0xff] }
 0xffe   : > { %3225 = vst.msk [vmem:[#allocation3 + $0x70] sm:$0xff] %vm1916_vm2, %v3208_v51  ;;  %v10432_v51 = vld [vmem:[#allocation2 + $0x68] sm:$0xff] }
 0xfff   : > { %v3210_v7 = vpop.permute.xlu1 %3209  ;;  %v3906_v2 = vld [vmem:[#allocation3 + $0x58] sm:$0xff] }
0x1000   : > { %3226 = vst.msk [vmem:[#allocation3 + $0x78] sm:$0xff] %vm1916_vm2, %v3210_v7  ;;  %v3916_v31 = vpack.c.bf16 %v3906_v2, %v3905_v4 }
0x1001   : > { %v3538_v27 = vpop.permute.xlu0 %3537  ;;  %v3903_v6 = vld [vmem:[#allocation3 + $0x40] sm:$0xff] }
0x1002   : > { %3557 = vst.msk [vmem:[#allocation3 + $0x60] sm:$0xff] %vm2251_vm3, %v3538_v27 }
0x1003   : > { %v3540_v14 = vpop.permute.xlu1 %3539  ;;  %v3904_v59 = vld [vmem:[#allocation3 + $0x48] sm:$0xff] }
0x1004   : > { %3558 = vst.msk [vmem:[#allocation3 + $0x68] sm:$0xff] %vm2251_vm3, %v3540_v14  ;;  %v3915_v63 = vpack.c.bf16 %v3904_v59, %v3903_v6  ;;  %v10433_v6 = vld [vmem:[#allocation2 + $0x70] sm:$0xff] }
0x1005   : > { %v3542_v60 = vpop.permute.xlu0 %3541 }
0x1006   : > { %3559 = vst.msk [vmem:[#allocation3 + $0x70] sm:$0xff] %vm2251_vm3, %v3542_v60  ;;  %9877 = vmatprep.mubr.bf16.mxu0 %v3915_v63  ;;  %v10434_v60 = vld [vmem:[#allocation2 + $0x78] sm:$0xff] }
0x1007   : > { %9878 = vmatmul.mubr.bf16.gmra.mrb[88].mxu0 %v3916_v31  ;;  %v3544_v30 = vpop.permute.xlu1 %3543 }
0x1008   : > { %3560 = vst.msk [vmem:[#allocation3 + $0x78] sm:$0xff] %vm2251_vm3, %v3544_v30 }
0x1009   : > { %v3872_v46 = vpop.permute.xlu0 %3871 }
0x100a   : > { %3891 = vst.msk [vmem:[#allocation3 + $0x60] sm:$0xff] %vm2586_vm4, %v3872_v46 }
0x100b   : > { %v3874_v56 = vpop.permute.xlu1 %3873 }
0x100c   : > { %3892 = vst.msk [vmem:[#allocation3 + $0x68] sm:$0xff] %vm2586_vm4, %v3874_v56 }
0x100d   : > { %v3876_v22 = vpop.permute.xlu0 %3875 }
0x100e   : > { %3893 = vst.msk [vmem:[#allocation3 + $0x70] sm:$0xff] %vm2586_vm4, %v3876_v22 }
0x100f   : > { %v3878_v5 = vpop.permute.xlu1 %3877 }
0x1010   : > { %3894 = vst.msk [vmem:[#allocation3 + $0x78] sm:$0xff] %vm2586_vm4, %v3878_v5 }
0x1011   : > { %v3907_v26 = vld [vmem:[#allocation3 + $0x60] sm:$0xff] }
0x1013   : > { %v3908_v10 = vld [vmem:[#allocation3 + $0x68] sm:$0xff] }
0x1014   : > { %v3917_v57 = vpack.c.bf16 %v3908_v10, %v3907_v26 }
0x1015   : > { %v3909_v9 = vld [vmem:[#allocation3 + $0x70] sm:$0xff] }
0x1016   : > { %9881 = vmatprep.mubr.bf16.mxu0 %v3917_v57 }
0x1017   : > { %v3910_v37 = vld [vmem:[#allocation3 + $0x78] sm:$0xff] }
0x1018   : > { %v3918_v35 = vpack.c.bf16 %v3910_v37, %v3909_v9 }
0x101a   : > { %9882 = vmatmul.mubr.bf16.gmra.mrb[92].mxu0 %v3918_v35 }
0x101b   : > { %5330 = vmatprep.mubr.bf16.mxu0 %v13855_v38 }
0x1047   : > { %v4106_v32 = vpop.xlane.xlu0 %4105 }
0x1048   : > { %v4137_v50 = vmul.f32 0.0078125, %v4106_v32 }
0x104a   : > { %v12144_v2 = vsub.f32 %v12073_v36, %v4137_v50 }
0x104b   : > { %v4110_v42 = vpop.xlane.xlu0 %4109 }
0x104c   : > { %v4139_v14 = vmul.f32 0.0078125, %v4110_v42  ;;  %v4169_v56 = vmul.f32 %v12144_v2, %v12144_v2 }
0x104e   : > { %v4108_v49 = vpop.xlane.xlu1 %4107  ;;  %v12156_v30 = vsub.f32 %v12078_v62, %v4139_v14  ;;  %v4374_v14 = vld [vmem:[%s10569_s3 + $0x148] sm:$0xff] }
0x104f   : > { %v4112_v23 = vpop.xlane.xlu0 %4111  ;;  %v4138_v53 = vmul.f32 0.0078125, %v4108_v49 }
0x1050   : > { %v4171_v35 = vmul.f32 %v12156_v30, %v12156_v30 }
0x1051   : > { %v12150_v4 = vsub.f32 %v12082_v13, %v4138_v53  ;;  %v4365_v53 = vld [vmem:[%s10569_s3 + $0x100] sm:$0xff]  ;;  %v4460_v13 = vld [vmem:[%s10569_s3 + $0x3f8] sm:$0xff] }
0x1052   : > { %v4116_v63 = vpop.xlane.xlu1 %4115 }
0x1053   : > { %v4114_v27 = vpop.xlane.xlu0 %4113  ;;  %v4142_v26 = vmul.f32 0.0078125, %v4116_v63  ;;  %v4170_v10 = vmul.f32 %v12150_v4, %v12150_v4 }
0x1054   : > { %v4141_v46 = vmul.f32 0.0078125, %v4114_v27 }
0x1056   : > { %v4120_v57 = vpop.xlane.xlu1 %4119  ;;  %v12167_v9 = vsub.f32 %v12093_v8, %v4141_v46  ;;  %v4389_v46 = vld [vmem:[%s10569_s3 + $0x1c0] sm:$0xff] }
0x1057   : > { %v4118_v22 = vpop.xlane.xlu0 %4117 }
0x1058   : > { %v4143_v37 = vmul.f32 0.0078125, %v4118_v22 }
0x10da   : > { %v9879_v28 = vpop.f32.mrb[88].mxu0 }
0x10db   : > { %v4056_v21 = vpop.f32.mrb[89].mxu0  ;;  %v4065_v40 = vadd.f32 %v9879_v28, %v12069_v61  ;;  %v12172_v28 = vsub.f32 %v12090_v41, %v4142_v26  ;;  %v4390_v26 = vld [vmem:[%s10569_s3 + $0x1c8] sm:$0xff] }
0x10dc   : > { %v4057_v12 = vadd.f32 %v12069_v61, %v4056_v21  ;;  %v9880_v16 = vpop.f32.mrb[90].mxu0  ;;  %v4144_v21 = vmul.f32 0.0078125, %v4120_v57 }
0x10dd   : > { %v4059_v24 = vpop.f32.mrb[91].mxu0  ;;  %v4068_v45 = vadd.f32 %v9880_v16, %v12069_v61  ;;  %v12128_v1 = vadd.f32 %v10429_v11, %v4065_v40  ;;  %v4333_v16 = vld [vmem:[%s10569_s3] sm:$0xff]  ;;  %v4334_v40 = vld [vmem:[%s10569_s3 + $0x8] sm:$0xff] }
0x10de   : > { %v4060_v47 = vadd.f32 %v12069_v61, %v4059_v24  ;;  %v12121_v44 = vadd.f32 %v10427_v0, %v4057_v12  ;;  %v4341_v24 = vld [vmem:[%s10569_s3 + $0x40] sm:$0xff]  ;;  %v4173_v0 = vmul.f32 %v12167_v9, %v12167_v9  ;;  %v12186_v42 = vsub.f32 %v12097_v54, %v4144_v21 }
0x10df   : > { %13858 = vst [vmem:[#allocation10_spill] sm:$0xff] %v12128_v1  ;;  %v12131_v20 = vadd.f32 %v10430_v34, %v4068_v45  ;;  %v8631_v45 = vcombine.high %v4333_v16, %v4341_v24  ;;  %v8630_v32 = vcombine.low %v4333_v16, %v4341_v24  ;;  %v4405_v21 = vld [vmem:[%s10569_s3 + $0x240] sm:$0xff]  ;;  %v4406_v24 = vld [vmem:[%s10569_s3 + $0x248] sm:$0xff] }
0x10e0   : > { %13856 = vst [vmem:[#allocation18_spill] sm:$0xff] %v12121_v44  ;;  %4121 = vadd.xlane.f32.xlu0 %v12121_v44  ;;  %v12125_v55 = vadd.f32 %v10428_v33, %v4060_v47  ;;  %v12180_v47 = vsub.f32 %v12099_v52, %v4143_v37  ;;  %v4342_v33 = vld [vmem:[%s10569_s3 + $0x48] sm:$0xff]  ;;  %v4459_v52 = vld [vmem:[%s10569_s3 + $0x3f0] sm:$0xff] }
0x10e1   : > { %13859 = vst [vmem:[#allocation20_spill] sm:$0xff] %v12131_v20  ;;  %v8632_v11 = vcombine.low %v4334_v40, %v4342_v33  ;;  %v8633_v34 = vcombine.high %v4334_v40, %v4342_v33  ;;  %5185 = vmatprep.subr.bf16.mxu1 %v8631_v45  ;;  %v4413_v33 = vld [vmem:[%s10569_s3 + $0x280] sm:$0xff] }
0x10e2   : > { %13857 = vst [vmem:[#allocation9_spill] sm:$0xff] %v12125_v55  ;;  %4123 = vadd.xlane.f32.xlu1 %v12125_v55  ;;  %5186 = vmatpush1.bf16.msra.mxu1 %v8630_v32  ;;  %v4421_v32 = vld [vmem:[%s10569_s3 + $0x2c0] sm:$0xff] }
0x10e3   : > { %5298 = vmatprep.subr.bf16.mxu0 %v8633_v34  ;;  %v8711_v34 = vcombine.high %v4413_v33, %v4421_v32 }
0x10e4   : > { %4125 = vadd.xlane.f32.xlu0 %v12128_v1  ;;  %5299 = vmatpush1.bf16.msra.mxu0 %v8632_v11  ;;  %v4414_v11 = vld [vmem:[%s10569_s3 + $0x288] sm:$0xff] }
0x10e6   : > { %4127 = vadd.xlane.f32.xlu1 %v12131_v20 }
0x10ed   : > { %v9883_v58 = vpop.f32.mrb[92].mxu0 }
0x10ee   : > { %v4072_v48 = vpop.f32.mrb[93].mxu0  ;;  %v4081_v39 = vadd.f32 %v9883_v58, %v12069_v61  ;;  %v4174_v58 = vmul.f32 %v12172_v28, %v12172_v28 }
0x10ef   : > { %v4073_v19 = vadd.f32 %v12069_v61, %v4072_v48  ;;  %v9884_v29 = vpop.f32.mrb[94].mxu0  ;;  %v4357_v48 = vld [vmem:[%s10569_s3 + $0xc0] sm:$0xff] }
0x10f0   : > { %v4075_v15 = vpop.f32.mrb[95].mxu0  ;;  %v4084_v18 = vadd.f32 %v9884_v29, %v12069_v61  ;;  %v12147_v59 = vadd.f32 %v10433_v6, %v4081_v39  ;;  %v4175_v29 = vmul.f32 %v12180_v47, %v12180_v47 }
0x10f1   : > { %v4076_v25 = vadd.f32 %v12069_v61, %v4075_v15  ;;  %v12137_v43 = vadd.f32 %v10431_v17, %v4073_v19  ;;  %v4140_v61 = vmul.f32 0.0078125, %v4112_v23  ;;  %v4349_v23 = vld [vmem:[%s10569_s3 + $0x80] sm:$0xff]  ;;  %v4350_v19 = vld [vmem:[%s10569_s3 + $0x88] sm:$0xff]  ;;  %v4176_v17 = vmul.f32 %v12186_v42, %v12186_v42 }
0x10f2   : > { %13862 = vst [vmem:[#allocation23_spill] sm:$0xff] %v12147_v59  ;;  %v12153_v31 = vadd.f32 %v10434_v60, %v4084_v18  ;;  %v8647_v49 = vcombine.high %v4349_v23, %v4357_v48  ;;  %v4358_v15 = vld [vmem:[%s10569_s3 + $0xc8] sm:$0xff]  ;;  %v8646_v50 = vcombine.low %v4349_v23, %v4357_v48  ;;  %v4373_v18 = vld [vmem:[%s10569_s3 + $0x140] sm:$0xff]  ;;  %v8710_v23 = vcombine.low %v4413_v33, %v4421_v32 }
0x10f3   : > { %13860 = vst [vmem:[#allocation21_spill] sm:$0xff] %v12137_v43  ;;  %4129 = vadd.xlane.f32.xlu0 %v12137_v43  ;;  %v12141_v7 = vadd.f32 %v10432_v51, %v4076_v25  ;;  %v12162_v5 = vsub.f32 %v12085_v3, %v4140_v61  ;;  %v8648_v39 = vcombine.low %v4350_v19, %v4358_v15  ;;  %v4366_v51 = vld [vmem:[%s10569_s3 + $0x108] sm:$0xff]  ;;  %v4381_v60 = vld [vmem:[%s10569_s3 + $0x180] sm:$0xff] }
0x10f4   : > { %13863 = vst [vmem:[#allocation24_spill] sm:$0xff] %v12153_v31  ;;  %v8649_v25 = vcombine.high %v4350_v19, %v4358_v15  ;;  %5187 = vmatprep.subr.bf16.mxu1 %v8647_v49  ;;  %v8663_v27 = vcombine.high %v4365_v53, %v4373_v18  ;;  %v8662_v6 = vcombine.low %v4365_v53, %v4373_v18  ;;  %v4437_v49 = vld [vmem:[%s10569_s3 + $0x340] sm:$0xff]  ;;  %v4430_v15 = vld [vmem:[%s10569_s3 + $0x308] sm:$0xff] }
0x10f5   : > { %13861 = vst [vmem:[#allocation22_spill] sm:$0xff] %v12141_v7  ;;  %4131 = vadd.xlane.f32.xlu1 %v12141_v7  ;;  %v4172_v12 = vmul.f32 %v12162_v5, %v12162_v5  ;;  %5188 = vmatpush1.bf16.msra.mxu1 %v8646_v50  ;;  %v8664_v63 = vcombine.low %v4366_v51, %v4374_v14  ;;  %v4445_v18 = vld [vmem:[%s10569_s3 + $0x380] sm:$0xff] }
0x10f6   : > { %5300 = vmatprep.subr.bf16.mxu0 %v8649_v25  ;;  %v8665_v61 = vcombine.high %v4366_v51, %v4374_v14  ;;  %5189 = vmatprep.subr.bf16.mxu1 %v8663_v27  ;;  %v8679_v22 = vcombine.high %v4381_v60, %v4389_v46  ;;  %v4453_v51 = vld [vmem:[%s10569_s3 + $0x3c0] sm:$0xff]  ;;  %v4446_v27 = vld [vmem:[%s10569_s3 + $0x388] sm:$0xff] }
0x10f7   : > { %4133 = vadd.xlane.f32.xlu0 %v12147_v59  ;;  %5301 = vmatpush1.bf16.msra.mxu0 %v8648_v39  ;;  %v4438_v39 = vld [vmem:[%s10569_s3 + $0x348] sm:$0xff]  ;;  %v8743_v14 = vcombine.high %v4445_v18, %v4453_v51 }
0x10f8   : > { %5302 = vmatprep.subr.bf16.mxu0 %v8665_v61  ;;  %v8729_v53 = vcombine.high %v4430_v15, %v4438_v39 }
0x10f9   : > { %4135 = vadd.xlane.f32.xlu1 %v12153_v31  ;;  %5190 = vmatpush1.bf16.msra.mxu1 %v8662_v6  ;;  %v4454_v6 = vld [vmem:[%s10569_s3 + $0x3c8] sm:$0xff] }
0x10fa   : > { %5191 = vmatprep.subr.bf16.mxu1 %v8679_v22  ;;  %v8744_v61 = vcombine.low %v4446_v27, %v4454_v6 }
0x10fb   : > { %4185 = vadd.xlane.f32.xlu0 %v4169_v56  ;;  %v4382_v56 = vld [vmem:[%s10569_s3 + $0x188] sm:$0xff]  ;;  %5303 = vmatpush1.bf16.msra.mxu0 %v8664_v63  ;;  %v8742_v63 = vcombine.low %v4445_v18, %v4453_v51 }
0x10fc   : > { %v8680_v57 = vcombine.low %v4382_v56, %v4390_v26  ;;  %v8681_v37 = vcombine.high %v4382_v56, %v4390_v26 }
0x10fd   : > { %4187 = vadd.xlane.f32.xlu1 %v4170_v10  ;;  %v8678_v10 = vcombine.low %v4381_v60, %v4389_v46  ;;  %v8745_v60 = vcombine.high %v4446_v27, %v4454_v6 }
0x10fe   : > { %5304 = vmatprep.subr.bf16.mxu0 %v8681_v37 }
0x10ff   : > { %4189 = vadd.xlane.f32.xlu0 %v4171_v35  ;;  %5192 = vmatpush1.bf16.msra.mxu1 %v8678_v10  ;;  %v4397_v35 = vld [vmem:[%s10569_s3 + $0x200] sm:$0xff] }
0x1100   : > { %5305 = vmatpush1.bf16.msra.mxu0 %v8680_v57  ;;  %v8695_v16 = vcombine.high %v4397_v35, %v4405_v21  ;;  %v8694_v40 = vcombine.low %v4397_v35, %v4405_v21 }
0x1101   : > { %4191 = vadd.xlane.f32.xlu1 %v4172_v12  ;;  %v4398_v12 = vld [vmem:[%s10569_s3 + $0x208] sm:$0xff] }
0x1102   : > { %v8697_v45 = vcombine.high %v4398_v12, %v4406_v24  ;;  %5193 = vmatprep.subr.bf16.mxu1 %v8695_v16 }
0x1103   : > { %4193 = vadd.xlane.f32.xlu0 %v4173_v0  ;;  %v8696_v0 = vcombine.low %v4398_v12, %v4406_v24  ;;  %5194 = vmatpush1.bf16.msra.mxu1 %v8694_v40 }
0x1104   : > { %5306 = vmatprep.subr.bf16.mxu0 %v8697_v45  ;;  %5195 = vmatprep.subr.bf16.mxu1 %v8711_v34 }
0x1105   : > { %4195 = vadd.xlane.f32.xlu1 %v4174_v58  ;;  %5307 = vmatpush1.bf16.msra.mxu0 %v8696_v0  ;;  %v4422_v58 = vld [vmem:[%s10569_s3 + $0x2c8] sm:$0xff] }
0x1106   : > { %v8712_v48 = vcombine.low %v4414_v11, %v4422_v58  ;;  %v8713_v19 = vcombine.high %v4414_v11, %v4422_v58 }
0x1107   : > { %4197 = vadd.xlane.f32.xlu0 %v4175_v29  ;;  %5196 = vmatpush1.bf16.msra.mxu1 %v8710_v23  ;;  %v4429_v29 = vld [vmem:[%s10569_s3 + $0x300] sm:$0xff] }
0x1108   : > { %5308 = vmatprep.subr.bf16.mxu0 %v8713_v19  ;;  %v8727_v50 = vcombine.high %v4429_v29, %v4437_v49  ;;  %v8726_v25 = vcombine.low %v4429_v29, %v4437_v49 }
0x1109   : > { %4199 = vadd.xlane.f32.xlu1 %v4176_v17  ;;  %5309 = vmatpush1.bf16.msra.mxu0 %v8712_v48  ;;  %v8728_v17 = vcombine.low %v4430_v15, %v4438_v39 }
0x110a   : > { %5197 = vmatprep.subr.bf16.mxu1 %v8727_v50  ;;  %5310 = vmatprep.subr.bf16.mxu0 %v8729_v53 }
0x110b   : > { %5198 = vmatpush1.bf16.msra.mxu1 %v8726_v25 }
0x110c   : > { %5199 = vmatprep.subr.bf16.mxu1 %v8743_v14 }
0x110d   : > { %5311 = vmatpush1.bf16.msra.mxu0 %v8728_v17 }
0x110e   : > { %5312 = vmatprep.subr.bf16.mxu0 %v8745_v60 }
0x110f   : > { %5200 = vmatpush1.bf16.msra.mxu1 %v8742_v63 }
0x1111   : > { %5313 = vmatpush1.bf16.msra.mxu0 %v8744_v61 }
0x116d   : > { %v4122_v46 = vpop.xlane.xlu0 %4121 }
0x116e   : > { %v4145_v56 = vmul.f32 0.0078125, %v4122_v46 }
0x116f   : > { %v4124_v22 = vpop.xlane.xlu1 %4123 }
0x1170   : > { %v12223_v26 = vsub.f32 %v12121_v44, %v4145_v56  ;;  %v4146_v10 = vmul.f32 0.0078125, %v4124_v22 }
0x1171   : > { %v4126_v57 = vpop.xlane.xlu0 %4125 }
0x1172   : > { %v12226_v37 = vsub.f32 %v12125_v55, %v4146_v10  ;;  %v4147_v35 = vmul.f32 0.0078125, %v4126_v57  ;;  %v4177_v21 = vmul.f32 %v12223_v26, %v12223_v26 }
0x1173   : > { %v4128_v12 = vpop.xlane.xlu1 %4127 }
0x1174   : > { %v12231_v16 = vsub.f32 %v12128_v1, %v4147_v35  ;;  %v4148_v24 = vmul.f32 0.0078125, %v4128_v12  ;;  %4201 = vadd.xlane.f32.xlu0 %v4177_v21  ;;  %v4178_v40 = vmul.f32 %v12226_v37, %v12226_v37 }
0x1176   : > { %v12236_v0 = vsub.f32 %v12131_v20, %v4148_v24  ;;  %4203 = vadd.xlane.f32.xlu1 %v4178_v40  ;;  %v4179_v45 = vmul.f32 %v12231_v16, %v12231_v16 }
0x1178   : > { %4205 = vadd.xlane.f32.xlu0 %v4179_v45  ;;  %v4180_v33 = vmul.f32 %v12236_v0, %v12236_v0 }
0x117a   : > { %4207 = vadd.xlane.f32.xlu1 %v4180_v33 }
0x1180   : > { %v4130_v32 = vpop.xlane.xlu0 %4129 }
0x1181   : > { %v4149_v11 = vmul.f32 0.0078125, %v4130_v32 }
0x1182   : > { %v4132_v34 = vpop.xlane.xlu1 %4131 }
0x1183   : > { %v12243_v58 = vsub.f32 %v12137_v43, %v4149_v11  ;;  %v4150_v23 = vmul.f32 0.0078125, %v4132_v34  ;;  %v12267_v34 = vld [vmem:[%s13864_s26] ss:$0 sm:$0xff] }
0x1184   : > { %v4134_v48 = vpop.xlane.xlu0 %4133 }
0x1185   : > { %v12246_v19 = vsub.f32 %v12141_v7, %v4150_v23  ;;  %v4151_v29 = vmul.f32 0.0078125, %v4134_v48  ;;  %v4181_v49 = vmul.f32 %v12243_v58, %v12243_v58 }
0x1186   : > { %v4136_v15 = vpop.xlane.xlu1 %4135 }
0x1187   : > { %v12251_v50 = vsub.f32 %v12147_v59, %v4151_v29  ;;  %v4152_v39 = vmul.f32 0.0078125, %v4136_v15  ;;  %4209 = vadd.xlane.f32.xlu0 %v4181_v49  ;;  %v4182_v25 = vmul.f32 %v12246_v19, %v12246_v19 }
0x1188   : > { %v4186_v17 = vpop.xlane.xlu0 %4185 }
0x1189   : > { %v12256_v53 = vsub.f32 %v12153_v31, %v4152_v39  ;;  %v4217_v18 = vmul.f32 0.0078125, %v4186_v17  ;;  %4211 = vadd.xlane.f32.xlu1 %v4182_v25  ;;  %v4183_v51 = vmul.f32 %v12251_v50, %v12251_v50  ;;  %v12277_v17 = vld [vmem:[%s13865_s17] ss:$0 sm:$0xff] }
0x118a   : > { %v4188_v27 = vpop.xlane.xlu1 %4187 }
0x118b   : > { %v4233_v14 = vadd.f32 1e-06, %v4217_v18  ;;  %v4218_v6 = vmul.f32 0.0078125, %v4188_v27  ;;  %4213 = vadd.xlane.f32.xlu0 %v4183_v51  ;;  %v4184_v63 = vmul.f32 %v12256_v53, %v12256_v53  ;;  %v4335_v27 = vld [vmem:[%s10569_s3 + $0x10] sm:$0xff] }
0x118c   : > { %v4190_v61 = vpop.xlane.xlu0 %4189 }
0x118d   : > { %10387 = vrsqrt.f32 %v4233_v14  ;;  %v4234_v60 = vadd.f32 1e-06, %v4218_v6  ;;  %v4219_v46 = vmul.f32 0.0078125, %v4190_v61  ;;  %4215 = vadd.xlane.f32.xlu1 %v4184_v63  ;;  %v4336_v14 = vld [vmem:[%s10569_s3 + $0x18] sm:$0xff] }
0x118e   : > { %v4192_v56 = vpop.xlane.xlu1 %4191 }
0x118f   : > { %10389 = vrsqrt.f32 %v4234_v60  ;;  %v4235_v22 = vadd.f32 1e-06, %v4219_v46  ;;  %v4220_v10 = vmul.f32 0.0078125, %v4192_v56 }
0x1190   : > { %v4194_v57 = vpop.xlane.xlu0 %4193 }
0x1191   : > { %10391 = vrsqrt.f32 %v4235_v22  ;;  %v4236_v35 = vadd.f32 1e-06, %v4220_v10  ;;  %v4221_v21 = vmul.f32 0.0078125, %v4194_v57 }
0x1192   : > { %v4196_v12 = vpop.xlane.xlu1 %4195 }
0x1193   : > { %10393 = vrsqrt.f32 %v4236_v35  ;;  %v4222_v24 = vmul.f32 0.0078125, %v4196_v12  ;;  %v4237_v40 = vadd.f32 1e-06, %v4221_v21  ;;  %v4351_v12 = vld [vmem:[%s10569_s3 + $0x90] sm:$0xff] }
0x1194   : > { %v4198_v33 = vpop.xlane.xlu0 %4197 }
0x1195   : > { %v4238_v45 = vadd.f32 1e-06, %v4222_v24  ;;  %v4223_v49 = vmul.f32 0.0078125, %v4198_v33  ;;  %v4359_v24 = vld [vmem:[%s10569_s3 + $0xd0] sm:$0xff] }
0x1196   : > { %v4200_v32 = vpop.xlane.xlu1 %4199 }
0x1197   : > { %v10388_v11 = vpop.eup %10387  ;;  %10395 = vrsqrt.f32 %v4238_v45  ;;  %v4224_v23 = vmul.f32 0.0078125, %v4200_v32  ;;  %v4239_v63 = vadd.f32 1e-06, %v4223_v49  ;;  %v4360_v32 = vld [vmem:[%s10569_s3 + $0xd8] sm:$0xff]  ;;  %v8650_v49 = vcombine.low %v4351_v12, %v4359_v24 }
0x1198   : > { %v4265_v48 = vmul.f32 %v10388_v11, %v12144_v2  ;;  %10397 = vrsqrt.f32 %v4237_v40  ;;  %v4343_v2 = vld [vmem:[%s10569_s3 + $0x50] sm:$0xff]  ;;  %v4352_v40 = vld [vmem:[%s10569_s3 + $0x98] sm:$0xff] }
0x1199   : > { %v10390_v29 = vpop.eup %10389  ;;  %v4240_v18 = vadd.f32 1e-06, %v4224_v23  ;;  %v8635_v61 = vcombine.high %v4335_v27, %v4343_v2  ;;  %v8634_v21 = vcombine.low %v4335_v27, %v4343_v2  ;;  %v8653_v23 = vcombine.high %v4352_v40, %v4360_v32  ;;  %v4376_v27 = vld [vmem:[%s10569_s3 + $0x158] sm:$0xff] }
0x119a   : > { %v4287_v15 = vmul.f32 %v12267_v34, %v4265_v48  ;;  %v4266_v39 = vmul.f32 %v10390_v29, %v12150_v4  ;;  %v4344_v4 = vld [vmem:[%s10569_s3 + $0x58] sm:$0xff] }
0x119b   : > { %v10392_v25 = vpop.eup %10391  ;;  %10399 = vrsqrt.f32 %v4240_v18  ;;  %5411 = vmatprep.subr.bf16.mxu1 %v8635_v61  ;;  %v8637_v10 = vcombine.high %v4336_v14, %v4344_v4  ;;  %v8636_v33 = vcombine.low %v4336_v14, %v4344_v4  ;;  %v4383_v4 = vld [vmem:[%s10569_s3 + $0x190] sm:$0xff] }
0x119c   : > { %v4288_v51 = vmul.f32 %v12267_v34, %v4266_v39  ;;  %v4309_v60 = vadd.f32 %v12277_v17, %v4287_v15  ;;  %v4267_v56 = vmul.f32 %v10392_v25, %v12156_v30  ;;  %10401 = vrsqrt.f32 %v4239_v63  ;;  %v4367_v15 = vld [vmem:[%s10569_s3 + $0x110] sm:$0xff] }
0x119d   : > { %v10394_v6 = vpop.eup %10393  ;;  %5524 = vmatprep.subr.bf16.mxu0 %v8637_v10  ;;  %v8651_v30 = vcombine.high %v4351_v12, %v4359_v24  ;;  %v4375_v39 = vld [vmem:[%s10569_s3 + $0x150] sm:$0xff]  ;;  %v8652_v25 = vcombine.low %v4352_v40, %v4360_v32 }
0x119e   : > { %v4310_v46 = vadd.f32 %v12277_v17, %v4288_v51  ;;  %v4268_v22 = vmul.f32 %v10394_v6, %v12162_v5  ;;  %v4289_v5 = vmul.f32 %v12267_v34, %v4267_v56  ;;  %v8667_v18 = vcombine.high %v4367_v15, %v4375_v39  ;;  %v4368_v51 = vld [vmem:[%s10569_s3 + $0x118] sm:$0xff] }
0x119f   : > { %v8666_v63 = vcombine.low %v4367_v15, %v4375_v39  ;;  %v8669_v61 = vcombine.high %v4368_v51, %v4376_v27 }
0x11a0   : > { %v12288_v57 = vpack.c.bf16 %v4310_v46, %v4309_v60  ;;  %v4290_v35 = vmul.f32 %v12267_v34, %v4268_v22  ;;  %v4311_v2 = vadd.f32 %v12277_v17, %v4289_v5  ;;  %v4391_v60 = vld [vmem:[%s10569_s3 + $0x1d0] sm:$0xff]  ;;  %v4384_v46 = vld [vmem:[%s10569_s3 + $0x198] sm:$0xff]  ;;  %v8668_v22 = vcombine.low %v4368_v51, %v4376_v27 }
0x11a1   : > { %v10396_v45 = vpop.eup %10395  ;;  %v8683_v10 = vcombine.high %v4383_v4, %v4391_v60  ;;  %v4416_v51 = vld [vmem:[%s10569_s3 + $0x298] sm:$0xff] }
0x11a2   : > { %5218 = vmatmul.mubr.bf16.vlgmr.msra.gmra.mrb[96].mxu1 %v12288_v57  ;;  %5331 = vmatmul.mubr.bf16.vlgmr.msra.gmra.mrb[96].mxu0 %v12288_v57  ;;  %v10398_v11 = vpop.eup %10397  ;;  %v4312_v48 = vadd.f32 %v12277_v17, %v4290_v35  ;;  %v4270_v29 = vmul.f32 %v10396_v45, %v12172_v28  ;;  %v4392_v35 = vld [vmem:[%s10569_s3 + $0x1d8] sm:$0xff]  ;;  %v8682_v45 = vcombine.low %v4383_v4, %v4391_v60  ;;  %v4431_v4 = vld [vmem:[%s10569_s3 + $0x310] sm:$0xff] }
0x11a3   : > { %5227 = vmatprep.mubr.bf16.mxu1 %v13855_v38  ;;  %5340 = vmatprep.mubr.bf16.mxu0 %v13855_v38  ;;  %v4269_v14 = vmul.f32 %v10398_v11, %v12167_v9  ;;  %v8685_v12 = vcombine.high %v4384_v46, %v4392_v35  ;;  %v8684_v32 = vcombine.low %v4384_v46, %v4392_v35  ;;  %v4400_v11 = vld [vmem:[%s10569_s3 + $0x218] sm:$0xff]  ;;  %v4439_v60 = vld [vmem:[%s10569_s3 + $0x350] sm:$0xff] }
0x11a4   : > { %5412 = vmatpush1.bf16.msra.mxu1 %v8634_v21  ;;  %5525 = vmatpush1.bf16.msra.mxu0 %v8636_v33  ;;  %v12308_v28 = vpack.c.bf16 %v4312_v48, %v4311_v2  ;;  %v4292_v6 = vmul.f32 %v12267_v34, %v4270_v29  ;;  %v4399_v33 = vld [vmem:[%s10569_s3 + $0x210] sm:$0xff] }
0x11a5   : > { %5413 = vmatprep.subr.bf16.mxu1 %v8651_v30  ;;  %5526 = vmatprep.subr.bf16.mxu0 %v8653_v23  ;;  %v10400_v56 = vpop.eup %10399  ;;  %v4291_v9 = vmul.f32 %v12267_v34, %v4269_v14  ;;  %v4407_v30 = vld [vmem:[%s10569_s3 + $0x250] sm:$0xff]  ;;  %v4408_v23 = vld [vmem:[%s10569_s3 + $0x258] sm:$0xff] }
0x11a6   : > { %v10402_v21 = vpop.eup %10401  ;;  %v4314_v24 = vadd.f32 %v12277_v17, %v4292_v6  ;;  %v4272_v40 = vmul.f32 %v10400_v56, %v12186_v42  ;;  %v8699_v5 = vcombine.high %v4399_v33, %v4407_v30  ;;  %v8698_v15 = vcombine.low %v4399_v33, %v4407_v30  ;;  %v4424_v14 = vld [vmem:[%s10569_s3 + $0x2d8] sm:$0xff] }
0x11a7   : > { %v4313_v48 = vadd.f32 %v12277_v17, %v4291_v9  ;;  %v4271_v29 = vmul.f32 %v10402_v21, %v12180_v47  ;;  %v8701_v39 = vcombine.high %v4400_v11, %v4408_v23  ;;  %v8700_v27 = vcombine.low %v4400_v11, %v4408_v23  ;;  %v4447_v9 = vld [vmem:[%s10569_s3 + $0x390] sm:$0xff]  ;;  %v4456_v33 = vld [vmem:[%s10569_s3 + $0x3d8] sm:$0xff] }
0x11a8   : > { %5414 = vmatpush1.bf16.msra.mxu1 %v8650_v49  ;;  %5527 = vmatpush1.bf16.msra.mxu0 %v8652_v25  ;;  %v4294_v49 = vmul.f32 %v12267_v34, %v4272_v40  ;;  %v4415_v25 = vld [vmem:[%s10569_s3 + $0x290] sm:$0xff]  ;;  %v8717_v6 = vcombine.high %v4416_v51, %v4424_v14  ;;  %v8716_v46 = vcombine.low %v4416_v51, %v4424_v14 }
0x11a9   : > { %5415 = vmatprep.subr.bf16.mxu1 %v8667_v18  ;;  %5528 = vmatprep.subr.bf16.mxu0 %v8669_v61  ;;  %v12328_v42 = vpack.c.bf16 %v4314_v24, %v4313_v48  ;;  %v4423_v18 = vld [vmem:[%s10569_s3 + $0x2d0] sm:$0xff]  ;;  %v4293_v47 = vmul.f32 %v12267_v34, %v4271_v29  ;;  %v8731_v56 = vcombine.high %v4431_v4, %v4439_v60  ;;  %v12357_v48 = vld [vmem:[%s10569_s3 + $0x20] sm:$0xff] }
0x11aa   : > { %5228 = vmatmul.mubr.bf16.gmra.mrb[100].mxu1 %v12308_v28  ;;  %5341 = vmatmul.mubr.bf16.gmra.mrb[100].mxu0 %v12308_v28  ;;  %v8715_v2 = vcombine.high %v4415_v25, %v4423_v18  ;;  %v8714_v61 = vcombine.low %v4415_v25, %v4423_v18  ;;  %v4455_v21 = vld [vmem:[%s10569_s3 + $0x3d0] sm:$0xff]  ;;  %v8730_v40 = vcombine.low %v4431_v4, %v4439_v60  ;;  %v12360_v29 = vld [vmem:[%s10569_s3 + $0x60] sm:$0xff]  ;;  %v12370_v25 = vld [vmem:[%s10569_s3 + $0x68] sm:$0xff] }
0x11ab   : > { %5237 = vmatprep.mubr.bf16.mxu1 %v13855_v38  ;;  %5350 = vmatprep.mubr.bf16.mxu0 %v13855_v38  ;;  %v4315_v35 = vadd.f32 %v12277_v17, %v4293_v47  ;;  %v8746_v11 = vcombine.low %v4447_v9, %v4455_v21 }
0x11ac   : > { %5416 = vmatpush1.bf16.msra.mxu1 %v8666_v63  ;;  %5529 = vmatpush1.bf16.msra.mxu0 %v8668_v22  ;;  %v4316_v63 = vadd.f32 %v12277_v17, %v4294_v49  ;;  %v4432_v22 = vld [vmem:[%s10569_s3 + $0x318] sm:$0xff]  ;;  %v8638_v49 = vcombine.low %v12357_v48, %v12360_v29 }
0x11ad   : > { %5417 = vmatprep.subr.bf16.mxu1 %v8683_v10  ;;  %5530 = vmatprep.subr.bf16.mxu0 %v8685_v12  ;;  %v4440_v10 = vld [vmem:[%s10569_s3 + $0x358] sm:$0xff] }
0x11ae   : > { %v4448_v12 = vld [vmem:[%s10569_s3 + $0x398] sm:$0xff]  ;;  %v12349_v24 = vpack.c.bf16 %v4316_v63, %v4315_v35  ;;  %v8732_v30 = vcombine.low %v4432_v22, %v4440_v10 }
0x11af   : > { %v8748_v23 = vcombine.low %v4448_v12, %v4456_v33 }
0x11b0   : > { %5418 = vmatpush1.bf16.msra.mxu1 %v8682_v45  ;;  %5531 = vmatpush1.bf16.msra.mxu0 %v8684_v32  ;;  %v8733_v45 = vcombine.high %v4432_v22, %v4440_v10  ;;  %v8747_v32 = vcombine.high %v4447_v9, %v4455_v21 }
0x11b1   : > { %5419 = vmatprep.subr.bf16.mxu1 %v8699_v5  ;;  %5532 = vmatprep.subr.bf16.mxu0 %v8701_v39  ;;  %v8749_v5 = vcombine.high %v4448_v12, %v4456_v33  ;;  %v12367_v39 = vld [vmem:[%s10569_s3 + $0x28] sm:$0xff] }
0x11b2   : > { %5238 = vmatmul.mubr.bf16.gmra.mrb[104].mxu1 %v12328_v42  ;;  %5351 = vmatmul.mubr.bf16.gmra.mrb[104].mxu0 %v12328_v42  ;;  %v8641_v18 = vcombine.high %v12367_v39, %v12370_v25  ;;  %v8640_v51 = vcombine.low %v12367_v39, %v12370_v25  ;;  %v4401_v25 = vld [vmem:[%s10569_s3 + $0x220] sm:$0xff] }
0x11b3   : > { %5247 = vmatprep.mubr.bf16.mxu1 %v13855_v38  ;;  %5360 = vmatprep.mubr.bf16.mxu0 %v13855_v38 }
0x11b4   : > { %5420 = vmatpush1.bf16.msra.mxu1 %v8698_v15  ;;  %5533 = vmatpush1.bf16.msra.mxu0 %v8700_v27  ;;  %v8639_v15 = vcombine.high %v12357_v48, %v12360_v29 }
0x11b5   : > { %5421 = vmatprep.subr.bf16.mxu1 %v8715_v2  ;;  %5534 = vmatprep.subr.bf16.mxu0 %v8717_v6 }
0x11b8   : > { %5422 = vmatpush1.bf16.msra.mxu1 %v8714_v61  ;;  %5535 = vmatpush1.bf16.msra.mxu0 %v8716_v46 }
0x11b9   : > { %5423 = vmatprep.subr.bf16.mxu1 %v8731_v56  ;;  %5536 = vmatprep.subr.bf16.mxu0 %v8733_v45 }
0x11ba   : > { %5248 = vmatmul.mubr.bf16.gmra.mrb[108].mxu1 %v12349_v24  ;;  %5361 = vmatmul.mubr.bf16.gmra.mrb[108].mxu0 %v12349_v24 }
0x11bb   : > { %5257 = vmatprep.mubr.bf16.mxu1 %v13855_v38  ;;  %5370 = vmatprep.mubr.bf16.mxu0 %v13855_v38 }
0x11bc   : > { %5424 = vmatpush1.bf16.msra.mxu1 %v8730_v40  ;;  %5537 = vmatpush1.bf16.msra.mxu0 %v8732_v30 }
0x11bd   : > { %5425 = vmatprep.subr.bf16.mxu1 %v8747_v32  ;;  %5538 = vmatprep.subr.bf16.mxu0 %v8749_v5 }
0x11c0   : > { %5426 = vmatpush1.bf16.msra.mxu1 %v8746_v11  ;;  %5539 = vmatpush1.bf16.msra.mxu0 %v8748_v23 }
0x11c1   : > { %5637 = vmatprep.subr.bf16.mxu1 %v8639_v15  ;;  %5750 = vmatprep.subr.bf16.mxu0 %v8641_v18 }
0x1201   : > { %v4202_v27 = vpop.xlane.xlu0 %4201 }
0x1202   : > { %v4225_v2 = vmul.f32 0.0078125, %v4202_v27 }
0x1203   : > { %v4204_v14 = vpop.xlane.xlu1 %4203 }
0x1204   : > { %v4241_v47 = vadd.f32 1e-06, %v4225_v2  ;;  %v4226_v6 = vmul.f32 0.0078125, %v4204_v14 }
0x1205   : > { %v4206_v63 = vpop.xlane.xlu0 %4205 }
0x1206   : > { %10403 = vrsqrt.f32 %v4241_v47  ;;  %v4242_v61 = vadd.f32 1e-06, %v4226_v6  ;;  %v4227_v4 = vmul.f32 0.0078125, %v4206_v63 }
0x1207   : > { %v4208_v60 = vpop.xlane.xlu1 %4207 }
0x1208   : > { %10405 = vrsqrt.f32 %v4242_v61  ;;  %v4243_v46 = vadd.f32 1e-06, %v4227_v4  ;;  %v4228_v56 = vmul.f32 0.0078125, %v4208_v60 }
0x120a   : > { %10407 = vrsqrt.f32 %v4243_v46  ;;  %v4244_v22 = vadd.f32 1e-06, %v4228_v56 }
0x120c   : > { %10409 = vrsqrt.f32 %v4244_v22 }
0x1210   : > { %v10404_v10 = vpop.eup %10403 }
0x1211   : > { %v4273_v35 = vmul.f32 %v10404_v10, %v12223_v26 }
0x1212   : > { %v10406_v9 = vpop.eup %10405 }
0x1213   : > { %v4295_v21 = vmul.f32 %v12267_v34, %v4273_v35  ;;  %v4274_v12 = vmul.f32 %v10406_v9, %v12226_v37 }
0x1214   : > { %v10408_v40 = vpop.eup %10407  ;;  %v4210_v45 = vpop.xlane.xlu0 %4209 }
0x1215   : > { %v4296_v33 = vmul.f32 %v12267_v34, %v4274_v12  ;;  %v4229_v30 = vmul.f32 0.0078125, %v4210_v45  ;;  %v4317_v5 = vadd.f32 %v12277_v17, %v4295_v21  ;;  %v4275_v15 = vmul.f32 %v10408_v40, %v12231_v16 }
0x1216   : > { %v10410_v32 = vpop.eup %10409  ;;  %v4212_v11 = vpop.xlane.xlu1 %4211 }
0x1217   : > { %v4318_v23 = vadd.f32 %v12277_v17, %v4296_v33  ;;  %v4276_v26 = vmul.f32 %v10410_v32, %v12236_v0  ;;  %v4245_v18 = vadd.f32 1e-06, %v4229_v30  ;;  %v4230_v27 = vmul.f32 0.0078125, %v4212_v11 }
0x1218   : > { %v4214_v2 = vpop.xlane.xlu0 %4213  ;;  %v4297_v61 = vmul.f32 %v12267_v34, %v4275_v15  ;;  %v4361_v15 = vld [vmem:[%s10569_s3 + $0xe0] sm:$0xff] }
0x1219   : > { %v12384_v14 = vpack.c.bf16 %v4318_v23, %v4317_v5  ;;  %v4298_v37 = vmul.f32 %v12267_v34, %v4276_v26  ;;  %10411 = vrsqrt.f32 %v4245_v18  ;;  %v4246_v47 = vadd.f32 1e-06, %v4230_v27  ;;  %v4354_v26 = vld [vmem:[%s10569_s3 + $0xa8] sm:$0xff] }
0x121a   : > { %v4231_v6 = vmul.f32 0.0078125, %v4214_v2  ;;  %v4216_v63 = vpop.xlane.xlu1 %4215  ;;  %v4319_v46 = vadd.f32 %v12277_v17, %v4297_v61  ;;  %v4362_v18 = vld [vmem:[%s10569_s3 + $0xe8] sm:$0xff] }
0x121b   : > { %v4232_v4 = vmul.f32 0.0078125, %v4216_v63  ;;  %5258 = vmatmul.mubr.bf16.gmra.mrb[112].mxu1 %v12384_v14  ;;  %5371 = vmatmul.mubr.bf16.gmra.mrb[112].mxu0 %v12384_v14  ;;  %10413 = vrsqrt.f32 %v4246_v47  ;;  %v4320_v0 = vadd.f32 %v12277_v17, %v4298_v37  ;;  %v8657_v2 = vcombine.high %v4354_v26, %v4362_v18  ;;  %v4369_v37 = vld [vmem:[%s10569_s3 + $0x120] sm:$0xff]  ;;  %v4370_v47 = vld [vmem:[%s10569_s3 + $0x128] sm:$0xff] }
0x121c   : > { %v4247_v16 = vadd.f32 1e-06, %v4231_v6  ;;  %5267 = vmatprep.mubr.bf16.mxu1 %v13855_v38  ;;  %5380 = vmatprep.mubr.bf16.mxu0 %v13855_v38  ;;  %v4378_v6 = vld [vmem:[%s10569_s3 + $0x168] sm:$0xff]  ;;  %v8656_v61 = vcombine.low %v4354_v26, %v4362_v18 }
0x121d   : > { %v4248_v60 = vadd.f32 1e-06, %v4232_v4  ;;  %v12394_v56 = vpack.c.bf16 %v4320_v0, %v4319_v46  ;;  %v4385_v0 = vld [vmem:[%s10569_s3 + $0x1a0] sm:$0xff]  ;;  %v4386_v46 = vld [vmem:[%s10569_s3 + $0x1a8] sm:$0xff]  ;;  %v8672_v29 = vcombine.low %v4370_v47, %v4378_v6 }
0x121e   : > { %10415 = vrsqrt.f32 %v4247_v16  ;;  %v8673_v16 = vcombine.high %v4370_v47, %v4378_v6  ;;  %v4442_v26 = vld [vmem:[%s10569_s3 + $0x368] sm:$0xff]  ;;  %v4457_v47 = vld [vmem:[%s10569_s3 + $0x3e0] sm:$0xff] }
0x121f   : > { %10417 = vrsqrt.f32 %v4248_v60  ;;  %v4393_v60 = vld [vmem:[%s10569_s3 + $0x1e0] sm:$0xff]  ;;  %v4450_v6 = vld [vmem:[%s10569_s3 + $0x3a8] sm:$0xff] }
0x1223   : > { %v10412_v22 = vpop.eup %10411  ;;  %5268 = vmatmul.mubr.bf16.gmra.mrb[116].mxu1 %v12394_v56  ;;  %5381 = vmatmul.mubr.bf16.gmra.mrb[116].mxu0 %v12394_v56 }
0x1224   : > { %v4277_v10 = vmul.f32 %v10412_v22, %v12243_v58  ;;  %5277 = vmatprep.mubr.bf16.mxu1 %v13855_v38  ;;  %5390 = vmatprep.mubr.bf16.mxu0 %v13855_v38  ;;  %v4394_v22 = vld [vmem:[%s10569_s3 + $0x1e8] sm:$0xff] }
0x1225   : > { %v10414_v35 = vpop.eup %10413  ;;  %v8689_v39 = vcombine.high %v4386_v46, %v4394_v22 }
0x1226   : > { %v4299_v9 = vmul.f32 %v12267_v34, %v4277_v10  ;;  %v4278_v21 = vmul.f32 %v10414_v35, %v12246_v19  ;;  %v4402_v10 = vld [vmem:[%s10569_s3 + $0x228] sm:$0xff] }
0x1227   : > { %v4410_v35 = vld [vmem:[%s10569_s3 + $0x268] sm:$0xff] }
0x1228   : > { %v10416_v12 = vpop.eup %10415  ;;  %v4300_v45 = vmul.f32 %v12267_v34, %v4278_v21  ;;  %v4321_v30 = vadd.f32 %v12277_v17, %v4299_v9  ;;  %v8686_v9 = vcombine.low %v4385_v0, %v4393_v60  ;;  %v8688_v21 = vcombine.low %v4386_v46, %v4394_v22  ;;  %v12476_v46 = vld [vmem:[%s10569_s3 + $0x70] sm:$0xff]  ;;  %v12479_v22 = vld [vmem:[%s10569_s3 + $0x38] sm:$0xff] }
0x1229   : > { %v10418_v40 = vpop.eup %10417  ;;  %v4279_v58 = vmul.f32 %v10416_v12, %v12251_v50 }
0x122a   : > { %v4280_v33 = vmul.f32 %v10418_v40, %v12256_v53  ;;  %v4322_v32 = vadd.f32 %v12277_v17, %v4300_v45  ;;  %v8705_v40 = vcombine.high %v4402_v10, %v4410_v35  ;;  %v4417_v45 = vld [vmem:[%s10569_s3 + $0x2a0] sm:$0xff] }
0x122b   : > { %v4301_v19 = vmul.f32 %v12267_v34, %v4279_v58 }
0x122c   : > { %v12408_v5 = vpack.c.bf16 %v4322_v32, %v4321_v30  ;;  %v4302_v11 = vmul.f32 %v12267_v34, %v4280_v33  ;;  %v4353_v34 = vld [vmem:[%s10569_s3 + $0xa0] sm:$0xff]  ;;  %v4418_v30 = vld [vmem:[%s10569_s3 + $0x2a8] sm:$0xff] }
0x122d   : > { %v4323_v53 = vadd.f32 %v12277_v17, %v4301_v19  ;;  %v8655_v27 = vcombine.high %v4353_v34, %v4361_v15  ;;  %v8654_v63 = vcombine.low %v4353_v34, %v4361_v15  ;;  %v4425_v33 = vld [vmem:[%s10569_s3 + $0x2e0] sm:$0xff]  ;;  %v4426_v32 = vld [vmem:[%s10569_s3 + $0x2e8] sm:$0xff] }
0x122e   : > { %5278 = vmatmul.mubr.bf16.gmra.mrb[120].mxu1 %v12408_v5  ;;  %5391 = vmatmul.mubr.bf16.gmra.mrb[120].mxu0 %v12408_v5  ;;  %v4324_v50 = vadd.f32 %v12277_v17, %v4302_v11  ;;  %v4377_v17 = vld [vmem:[%s10569_s3 + $0x160] sm:$0xff]  ;;  %v8704_v11 = vcombine.low %v4402_v10, %v4410_v35  ;;  %v8719_v19 = vcombine.high %v4417_v45, %v4425_v33  ;;  %v4434_v15 = vld [vmem:[%s10569_s3 + $0x328] sm:$0xff] }
0x122f   : > { %5287 = vmatprep.mubr.bf16.mxu1 %v13855_v38  ;;  %5400 = vmatprep.mubr.bf16.mxu0 %v13855_v38  ;;  %v8671_v4 = vcombine.high %v4369_v37, %v4377_v17  ;;  %v8670_v48 = vcombine.low %v4369_v37, %v4377_v17  ;;  %v4441_v34 = vld [vmem:[%s10569_s3 + $0x360] sm:$0xff]  ;;  %v8718_v18 = vcombine.low %v4417_v45, %v4425_v33  ;;  %v13869_v45 = vld [vmem:[#allocation7_spill] sm:$0xff] }
0x1230   : > { %v12418_v23 = vpack.c.bf16 %v4324_v50, %v4323_v53  ;;  %v8721_v50 = vcombine.high %v4418_v30, %v4426_v32  ;;  %v4433_v53 = vld [vmem:[%s10569_s3 + $0x320] sm:$0xff]  ;;  %v8737_v37 = vcombine.high %v4434_v15, %v4442_v26 }
0x1231   : > { %v4449_v17 = vld [vmem:[%s10569_s3 + $0x3a0] sm:$0xff] }
0x1232   : > { %v13866_v10 = vld [vmem:[#allocation5_spill] sm:$0xff] }
0x1233   : > { %v13779_v35 = vsub.s32 3, %v13866_v10 }
0x1236   : > { %5288 = vmatmul.mubr.bf16.gmra.mrb[124].mxu1 %v12418_v23  ;;  %5401 = vmatmul.mubr.bf16.gmra.mrb[124].mxu0 %v12418_v23 }
0x1237   : > { %5443 = vmatprep.mubr.bf16.mxu1 %v13855_v38  ;;  %5556 = vmatprep.mubr.bf16.mxu0 %v13855_v38 }
0x123e   : > { %5444 = vmatmul.mubr.bf16.vlgmr.msra.gmra.mrb[128].mxu1 %v12288_v57  ;;  %5557 = vmatmul.mubr.bf16.vlgmr.msra.gmra.mrb[128].mxu0 %v12288_v57 }
0x123f   : > { %5453 = vmatprep.mubr.bf16.mxu1 %v13855_v38  ;;  %5566 = vmatprep.mubr.bf16.mxu0 %v13855_v38 }
0x1240   : > { %5638 = vmatpush1.bf16.msra.mxu1 %v8638_v49  ;;  %5751 = vmatpush1.bf16.msra.mxu0 %v8640_v51  ;;  %v8687_v49 = vcombine.high %v4385_v0, %v4393_v60  ;;  %v4409_v51 = vld [vmem:[%s10569_s3 + $0x260] sm:$0xff]  ;;  %v12471_v60 = vld [vmem:[%s10569_s3 + $0x30] sm:$0xff] }
0x1241   : > { %5639 = vmatprep.subr.bf16.mxu1 %v8655_v27  ;;  %5752 = vmatprep.subr.bf16.mxu0 %v8657_v2  ;;  %v8703_v12 = vcombine.high %v4401_v25, %v4409_v51  ;;  %v8702_v58 = vcombine.low %v4401_v25, %v4409_v51  ;;  %v8720_v27 = vcombine.low %v4418_v30, %v4426_v32  ;;  %v12501_v51 = vld [vmem:[%s10575_s16] sm:$0xff] }
0x1242   : > { %v8735_v2 = vcombine.high %v4433_v53, %v4441_v34  ;;  %v12516_v33 = vrot.slane %v12501_v51, %v13869_v45  ;;  %v12521_v30 = vrot.slane %v12501_v51, %v13779_v35  ;;  %v12603_v35 = vld [vmem:[%s10569_s3 + $0x1f0] sm:$0xff] }
0x1244   : > { %5640 = vmatpush1.bf16.msra.mxu1 %v8654_v63  ;;  %5753 = vmatpush1.bf16.msra.mxu0 %v8656_v61  ;;  %v4458_v63 = vld [vmem:[%s10569_s3 + $0x3e8] sm:$0xff]  ;;  %v8734_v61 = vcombine.low %v4433_v53, %v4441_v34 }
0x1245   : > { %5641 = vmatprep.subr.bf16.mxu1 %v8671_v4  ;;  %5754 = vmatprep.subr.bf16.mxu0 %v8673_v16  ;;  %v8736_v4 = vcombine.low %v4434_v15, %v4442_v26  ;;  %v8751_v16 = vcombine.high %v4449_v17, %v4457_v47  ;;  %v8753_v0 = vcombine.high %v4450_v6, %v4458_v63 }
0x1246   : > { %5454 = vmatmul.mubr.bf16.gmra.mrb[132].mxu1 %v12308_v28  ;;  %5567 = vmatmul.mubr.bf16.gmra.mrb[132].mxu0 %v12308_v28 }
0x1247   : > { %5463 = vmatprep.mubr.bf16.mxu1 %v13855_v38  ;;  %5576 = vmatprep.mubr.bf16.mxu0 %v13855_v38 }
0x1248   : > { %5642 = vmatpush1.bf16.msra.mxu1 %v8670_v48  ;;  %5755 = vmatpush1.bf16.msra.mxu0 %v8672_v29  ;;  %v12482_v48 = vld [vmem:[%s10569_s3 + $0x78] sm:$0xff]  ;;  %v8750_v29 = vcombine.low %v4449_v17, %v4457_v47 }
0x1249   : > { %5643 = vmatprep.subr.bf16.mxu1 %v8687_v49  ;;  %5756 = vmatprep.subr.bf16.mxu0 %v8689_v39  ;;  %v8752_v49 = vcombine.low %v4450_v6, %v4458_v63  ;;  %v8643_v39 = vcombine.high %v12471_v60, %v12476_v46  ;;  %v8645_v25 = vcombine.high %v12479_v22, %v12482_v48 }
0x124a   : > { %v8642_v63 = vcombine.low %v12471_v60, %v12476_v46  ;;  %v12553_v60 = vld [vmem:[%s10569_s3 + $0x170] sm:$0xff] }
0x124c   : > { %5644 = vmatpush1.bf16.msra.mxu1 %v8686_v9  ;;  %5757 = vmatpush1.bf16.msra.mxu0 %v8688_v21  ;;  %v13867_v9 = vld [vmem:[#allocation6_spill] sm:$0xff] }
0x124d   : > { %5645 = vmatprep.subr.bf16.mxu1 %v8703_v12  ;;  %5758 = vmatprep.subr.bf16.mxu0 %v8705_v40  ;;  %v12508_v21 = vrot.slane %v12501_v51, %v13867_v9  ;;  %v13868_v12 = vld [vmem:[#allocation8_spill] sm:$0xff] }
0x124e   : > { %5464 = vmatmul.mubr.bf16.gmra.mrb[136].mxu1 %v12328_v42  ;;  %5577 = vmatmul.mubr.bf16.gmra.mrb[136].mxu0 %v12328_v42  ;;  %v12512_v40 = vrot.slane %v12501_v51, %v13868_v12 }
0x124f   : > { %5473 = vmatprep.mubr.bf16.mxu1 %v13855_v38  ;;  %5586 = vmatprep.mubr.bf16.mxu0 %v13855_v38 }
0x1250   : > { %5646 = vmatpush1.bf16.msra.mxu1 %v8702_v58  ;;  %5759 = vmatpush1.bf16.msra.mxu0 %v8704_v11 }
0x1251   : > { %5647 = vmatprep.subr.bf16.mxu1 %v8719_v19  ;;  %5760 = vmatprep.subr.bf16.mxu0 %v8721_v50 }
0x1254   : > { %5648 = vmatpush1.bf16.msra.mxu1 %v8718_v18  ;;  %5761 = vmatpush1.bf16.msra.mxu0 %v8720_v27 }
0x1255   : > { %5649 = vmatprep.subr.bf16.mxu1 %v8735_v2  ;;  %5762 = vmatprep.subr.bf16.mxu0 %v8737_v37 }
0x1256   : > { %5474 = vmatmul.mubr.bf16.gmra.mrb[140].mxu1 %v12349_v24  ;;  %5587 = vmatmul.mubr.bf16.gmra.mrb[140].mxu0 %v12349_v24 }
0x1257   : > { %5483 = vmatprep.mubr.bf16.mxu1 %v13855_v38  ;;  %5596 = vmatprep.mubr.bf16.mxu0 %v13855_v38 }
0x1258   : > { %5650 = vmatpush1.bf16.msra.mxu1 %v8734_v61  ;;  %5763 = vmatpush1.bf16.msra.mxu0 %v8736_v4  ;;  %v12538_v61 = vld [vmem:[%s10569_s3 + $0xb0] sm:$0xff] }
0x1259   : > { %5651 = vmatprep.subr.bf16.mxu1 %v8751_v16  ;;  %5764 = vmatprep.subr.bf16.mxu0 %v8753_v0  ;;  %v12541_v4 = vld [vmem:[%s10569_s3 + $0xf0] sm:$0xff] }
0x125c   : > { %5652 = vmatpush1.bf16.msra.mxu1 %v8750_v29  ;;  %5765 = vmatpush1.bf16.msra.mxu0 %v8752_v49 }
0x125d   : > { %5863 = vmatprep.subr.bf16.mxu1 %v8643_v39  ;;  %5976 = vmatprep.subr.bf16.mxu0 %v8645_v25  ;;  %v12544_v39 = vld [vmem:[%s10569_s3 + $0xb8] sm:$0xff] }
0x125e   : > { %5484 = vmatmul.mubr.bf16.gmra.mrb[144].mxu1 %v12384_v14  ;;  %5597 = vmatmul.mubr.bf16.gmra.mrb[144].mxu0 %v12384_v14  ;;  %v12547_v25 = vld [vmem:[%s10569_s3 + $0xf8] sm:$0xff] }
0x125f   : > { %5493 = vmatprep.mubr.bf16.mxu1 %v13855_v38  ;;  %5606 = vmatprep.mubr.bf16.mxu0 %v13855_v38 }
0x1266   : > { %5494 = vmatmul.mubr.bf16.gmra.mrb[148].mxu1 %v12394_v56  ;;  %5607 = vmatmul.mubr.bf16.gmra.mrb[148].mxu0 %v12394_v56 }
0x1267   : > { %5503 = vmatprep.mubr.bf16.mxu1 %v13855_v38  ;;  %5616 = vmatprep.mubr.bf16.mxu0 %v13855_v38 }
0x126e   : > { %5504 = vmatmul.mubr.bf16.gmra.mrb[152].mxu1 %v12408_v5  ;;  %5617 = vmatmul.mubr.bf16.gmra.mrb[152].mxu0 %v12408_v5 }
0x126f   : > { %5513 = vmatprep.mubr.bf16.mxu1 %v13855_v38  ;;  %5626 = vmatprep.mubr.bf16.mxu0 %v13855_v38 }
0x1275   : > { %v5219_v32 = vpop.f32.mrb[96].mxu1  ;;  %v5332_v58 = vpop.f32.mrb[96].mxu0 }
0x1276   : > { %v5220_v11 = vadd.f32 %v5219_v32, %v12508_v21  ;;  %v5333_v19 = vadd.f32 %v5332_v58, %v12512_v40  ;;  %v5221_v50 = vpop.f32.mrb[97].mxu1  ;;  %v5334_v53 = vpop.f32.mrb[97].mxu0  ;;  %5514 = vmatmul.mubr.bf16.gmra.mrb[156].mxu1 %v12418_v23  ;;  %5627 = vmatmul.mubr.bf16.gmra.mrb[156].mxu0 %v12418_v23 }
0x1277   : > { %v5222_v34 = vadd.f32 %v5221_v50, %v12516_v33  ;;  %v5335_v15 = vadd.f32 %v5334_v53, %v12521_v30  ;;  %v5223_v26 = vpop.f32.mrb[98].mxu1  ;;  %v5336_v18 = vpop.f32.mrb[98].mxu0  ;;  %5669 = vmatprep.mubr.bf16.mxu1 %v13855_v38  ;;  %5782 = vmatprep.mubr.bf16.mxu0 %v13855_v38 }
0x1278   : > { %v5224_v27 = vadd.f32 %v5223_v26, %v12508_v21  ;;  %v5337_v2 = vadd.f32 %v5336_v18, %v12512_v40  ;;  %v5225_v37 = vpop.f32.mrb[99].mxu1  ;;  %v5338_v17 = vpop.f32.mrb[99].mxu0  ;;  %v6089_v16 = vmax.f32 %v5220_v11, 0.0  ;;  %v6091_v0 = vmax.f32 %v5333_v19, 0.0  ;;  %v12550_v26 = vld [vmem:[%s10569_s3 + $0x130] sm:$0xff] }
0x1279   : > { %v5226_v47 = vadd.f32 %v5225_v37, %v12516_v33  ;;  %v5339_v6 = vadd.f32 %v5338_v17, %v12521_v30  ;;  %v6090_v32 = vmax.f32 %v5222_v34, 0.0  ;;  %v6092_v58 = vmax.f32 %v5335_v15, 0.0 }
0x127a   : > { %v6105_v29 = vmax.f32 %v5224_v27, 0.0  ;;  %v6107_v49 = vmax.f32 %v5337_v2, 0.0  ;;  %v8644_v19 = vcombine.low %v12479_v22, %v12482_v48  ;;  %v8658_v18 = vcombine.low %v12538_v61, %v12541_v4 }
0x127b   : > { %v6106_v50 = vmax.f32 %v5226_v47, 0.0  ;;  %v6108_v53 = vmax.f32 %v5339_v6, 0.0  ;;  %v8659_v37 = vcombine.high %v12538_v61, %v12541_v4  ;;  %v8660_v17 = vcombine.low %v12544_v39, %v12547_v25  ;;  %v12572_v47 = vld [vmem:[%s10569_s3 + $0x138] sm:$0xff] }
0x127c   : > { %v12555_v46 = vpack.c.bf16 %v6105_v29, %v6089_v16  ;;  %v12557_v11 = vpack.c.bf16 %v6107_v49, %v6091_v0  ;;  %v12575_v6 = vld [vmem:[%s10569_s3 + $0x178] sm:$0xff]  ;;  %v8661_v29 = vcombine.high %v12544_v39, %v12547_v25  ;;  %v8675_v49 = vcombine.high %v12550_v26, %v12553_v60 }
0x127d   : > { %v12563_v34 = vpack.c.bf16 %v6106_v50, %v6090_v32  ;;  %v12565_v15 = vpack.c.bf16 %v6108_v53, %v6092_v58  ;;  %v5229_v27 = vpop.f32.mrb[100].mxu1  ;;  %v5342_v2 = vpop.f32.mrb[100].mxu0 }
0x127e   : > { %v5230_v22 = vadd.f32 %v5229_v27, %v12508_v21  ;;  %v5343_v48 = vadd.f32 %v5342_v2, %v12512_v40  ;;  %v5231_v16 = vpop.f32.mrb[101].mxu1  ;;  %v5344_v0 = vpop.f32.mrb[101].mxu0  ;;  %5670 = vmatmul.mubr.bf16.vlgmr.msra.gmra.mrb[160].mxu1 %v12288_v57  ;;  %5783 = vmatmul.mubr.bf16.vlgmr.msra.gmra.mrb[160].mxu0 %v12288_v57  ;;  %v8676_v2 = vcombine.low %v12572_v47, %v12575_v6 }
0x127f   : > { %v5232_v61 = vadd.f32 %v5231_v16, %v12516_v33  ;;  %v5345_v4 = vadd.f32 %v5344_v0, %v12521_v30  ;;  %v5233_v32 = vpop.f32.mrb[102].mxu1  ;;  %v5346_v58 = vpop.f32.mrb[102].mxu0  ;;  %5679 = vmatprep.mubr.bf16.mxu1 %v13855_v38  ;;  %5792 = vmatprep.mubr.bf16.mxu0 %v13855_v38 }
0x1280   : > { %v5234_v39 = vadd.f32 %v5233_v32, %v12508_v21  ;;  %v5347_v25 = vadd.f32 %v5346_v58, %v12512_v40  ;;  %v5235_v53 = vpop.f32.mrb[103].mxu1  ;;  %v5348_v27 = vpop.f32.mrb[103].mxu0  ;;  %5864 = vmatpush1.bf16.msra.mxu1 %v8642_v63  ;;  %5977 = vmatpush1.bf16.msra.mxu0 %v8644_v19  ;;  %v8677_v32 = vcombine.high %v12572_v47, %v12575_v6  ;;  %v12600_v58 = vld [vmem:[%s10569_s3 + $0x1b0] sm:$0xff]  ;;  %v6121_v50 = vmax.f32 %v5230_v22, 0.0 }
0x1281   : > { %v5236_v16 = vadd.f32 %v5235_v53, %v12516_v33  ;;  %v5349_v0 = vadd.f32 %v5348_v27, %v12521_v30  ;;  %v6123_v31 = vmax.f32 %v5343_v48, 0.0  ;;  %5865 = vmatprep.subr.bf16.mxu1 %v8659_v37  ;;  %5978 = vmatprep.subr.bf16.mxu0 %v8661_v29  ;;  %v12606_v53 = vld [vmem:[%s10569_s3 + $0x1b8] sm:$0xff]  ;;  %v6122_v63 = vmax.f32 %v5232_v61, 0.0  ;;  %v12620_v37 = vld [vmem:[%s10569_s3 + $0x230] sm:$0xff] }
0x1282   : > { %v6137_v59 = vmax.f32 %v5234_v39, 0.0  ;;  %v6139_v7 = vmax.f32 %v5347_v25, 0.0  ;;  %v12609_v27 = vld [vmem:[%s10569_s3 + $0x1f8] sm:$0xff]  ;;  %v6124_v19 = vmax.f32 %v5345_v4, 0.0  ;;  %v8690_v22 = vcombine.low %v12600_v58, %v12603_v35  ;;  %v12623_v29 = vld [vmem:[%s10569_s3 + $0x270] sm:$0xff] }
0x1283   : > { %v6138_v43 = vmax.f32 %v5236_v16, 0.0  ;;  %v6140_v47 = vmax.f32 %v5349_v0, 0.0  ;;  %v8691_v48 = vcombine.high %v12600_v58, %v12603_v35  ;;  %v12636_v16 = vld [vmem:[%s10569_s3 + $0x238] sm:$0xff] }
0x1284   : > { %v12611_v6 = vpack.c.bf16 %v6137_v59, %v6121_v50  ;;  %v12613_v20 = vpack.c.bf16 %v6139_v7, %v6123_v31  ;;  %5866 = vmatpush1.bf16.msra.mxu1 %v8658_v18  ;;  %5979 = vmatpush1.bf16.msra.mxu0 %v8660_v17  ;;  %v8692_v7 = vcombine.low %v12606_v53, %v12609_v27  ;;  %v12639_v0 = vld [vmem:[%s10569_s3 + $0x278] sm:$0xff] }
0x1285   : > { %v12625_v61 = vpack.c.bf16 %v6138_v43, %v6122_v63  ;;  %v12627_v4 = vpack.c.bf16 %v6140_v47, %v6124_v19  ;;  %v5239_v59 = vpop.f32.mrb[104].mxu1  ;;  %v5352_v50 = vpop.f32.mrb[104].mxu0  ;;  %5867 = vmatprep.subr.bf16.mxu1 %v8675_v49  ;;  %5980 = vmatprep.subr.bf16.mxu0 %v8677_v32  ;;  %v8693_v43 = vcombine.high %v12606_v53, %v12609_v27 }
0x1286   : > { %v5240_v31 = vadd.f32 %v5239_v59, %v12508_v21  ;;  %v5353_v35 = vadd.f32 %v5352_v50, %v12512_v40  ;;  %v5241_v39 = vpop.f32.mrb[105].mxu1  ;;  %v5354_v25 = vpop.f32.mrb[105].mxu0  ;;  %5680 = vmatmul.mubr.bf16.gmra.mrb[164].mxu1 %v12308_v28  ;;  %5793 = vmatmul.mubr.bf16.gmra.mrb[164].mxu0 %v12308_v28  ;;  %v8707_v32 = vcombine.high %v12620_v37, %v12623_v29 }
0x1287   : > { %v5242_v18 = vadd.f32 %v5241_v39, %v12516_v33  ;;  %v5355_v17 = vadd.f32 %v5354_v25, %v12521_v30  ;;  %v5243_v58 = vpop.f32.mrb[106].mxu1  ;;  %v5356_v49 = vpop.f32.mrb[106].mxu0  ;;  %5689 = vmatprep.mubr.bf16.mxu1 %v13855_v38  ;;  %5802 = vmatprep.mubr.bf16.mxu0 %v13855_v38  ;;  %v8706_v47 = vcombine.low %v12620_v37, %v12623_v29 }
0x1288   : > { %v5244_v53 = vadd.f32 %v5243_v58, %v12508_v21  ;;  %v5357_v27 = vadd.f32 %v5356_v49, %v12512_v40  ;;  %v5245_v63 = vpop.f32.mrb[107].mxu1  ;;  %v5358_v19 = vpop.f32.mrb[107].mxu0  ;;  %v13870_v39 = vcombine.low %v12550_v26, %v12553_v60  ;;  %5981 = vmatpush1.bf16.msra.mxu0 %v8676_v2  ;;  %v8709_v25 = vcombine.high %v12636_v16, %v12639_v0  ;;  %v12661_v58 = vld [vmem:[%s10569_s3 + $0x2b0] sm:$0xff]  ;;  %v12667_v2 = vld [vmem:[%s10569_s3 + $0x2b8] sm:$0xff] }
0x1289   : > { %v5246_v59 = vadd.f32 %v5245_v63, %v12516_v33  ;;  %v5359_v50 = vadd.f32 %v5358_v19, %v12521_v30  ;;  %v12664_v49 = vld [vmem:[%s10569_s3 + $0x2f0] sm:$0xff]  ;;  %v6153_v1 = vmax.f32 %v5240_v31, 0.0  ;;  %v6155_v37 = vmax.f32 %v5353_v35, 0.0  ;;  %5982 = vmatprep.subr.bf16.mxu0 %v8693_v43 }
0x128a   : > { %5868 = vmatpush1.bf16.msra.mxu1 %v13870_v39  ;;  %v6169_v29 = vmax.f32 %v5244_v53, 0.0  ;;  %v6171_v63 = vmax.f32 %v5357_v27, 0.0  ;;  %v6154_v19 = vmax.f32 %v5242_v18, 0.0  ;;  %v6156_v55 = vmax.f32 %v5355_v17, 0.0  ;;  %v4428_v39 = vld [vmem:[%s10569_s3 + $0x2f8] sm:$0xff]  ;;  %v4435_v53 = vld [vmem:[%s10569_s3 + $0x330] sm:$0xff] }
0x128b   : > { %5869 = vmatprep.subr.bf16.mxu1 %v8691_v48  ;;  %v6170_v26 = vmax.f32 %v5246_v59, 0.0  ;;  %v6172_v60 = vmax.f32 %v5359_v50, 0.0  ;;  %v8708_v31 = vcombine.low %v12636_v16, %v12639_v0  ;;  %v8722_v48 = vcombine.low %v12661_v58, %v12664_v49  ;;  %v4443_v27 = vld [vmem:[%s10569_s3 + $0x370] sm:$0xff] }
0x128c   : > { %v12670_v44 = vpack.c.bf16 %v6169_v29, %v6153_v1  ;;  %v12672_v54 = vpack.c.bf16 %v6171_v63, %v6155_v37  ;;  %5983 = vmatpush1.bf16.msra.mxu0 %v8692_v7  ;;  %v8723_v1 = vcombine.high %v12661_v58, %v12664_v49  ;;  %v4436_v37 = vld [vmem:[%s10569_s3 + $0x338] sm:$0xff]  ;;  %v8724_v63 = vcombine.low %v12667_v2, %v4428_v39 }
0x128d   : > { %v12678_v35 = vpack.c.bf16 %v6170_v26, %v6154_v19  ;;  %v12680_v43 = vpack.c.bf16 %v6172_v60, %v6156_v55  ;;  %v5249_v18 = vpop.f32.mrb[108].mxu1  ;;  %v5362_v17 = vpop.f32.mrb[108].mxu0  ;;  %5984 = vmatprep.subr.bf16.mxu0 %v8709_v25  ;;  %v8725_v55 = vcombine.high %v12667_v2, %v4428_v39  ;;  %v4444_v29 = vld [vmem:[%s10569_s3 + $0x378] sm:$0xff]  ;;  %v8739_v60 = vcombine.high %v4435_v53, %v4443_v27 }
0x128e   : > { %5870 = vmatpush1.bf16.msra.mxu1 %v8690_v22  ;;  %v5250_v16 = vadd.f32 %v5249_v18, %v12508_v21  ;;  %v5363_v0 = vadd.f32 %v5362_v17, %v12512_v40  ;;  %v5251_v59 = vpop.f32.mrb[109].mxu1  ;;  %v5364_v50 = vpop.f32.mrb[109].mxu0  ;;  %5803 = vmatmul.mubr.bf16.gmra.mrb[168].mxu0 %v12328_v42  ;;  %v8741_v2 = vcombine.high %v4436_v37, %v4444_v29 }
0x128f   : > { %5871 = vmatprep.subr.bf16.mxu1 %v8707_v32  ;;  %v5252_v22 = vadd.f32 %v5251_v59, %v12516_v33  ;;  %v5365_v7 = vadd.f32 %v5364_v50, %v12521_v30  ;;  %5690 = vmatmul.mubr.bf16.gmra.mrb[168].mxu1 %v12328_v42  ;;  %v5253_v58 = vpop.f32.mrb[110].mxu1  ;;  %v5366_v49 = vpop.f32.mrb[110].mxu0 }
0x1290   : > { %v5254_v19 = vadd.f32 %v5253_v58, %v12508_v21  ;;  %v5367_v32 = vadd.f32 %v5366_v49, %v12512_v40  ;;  %v5255_v25 = vpop.f32.mrb[111].mxu1  ;;  %v5368_v26 = vpop.f32.mrb[111].mxu0  ;;  %5699 = vmatprep.mubr.bf16.mxu1 %v13855_v38  ;;  %5812 = vmatprep.mubr.bf16.mxu0 %v13855_v38  ;;  %v6185_v39 = vmax.f32 %v5250_v16, 0.0  ;;  %v6187_v59 = vmax.f32 %v5363_v0, 0.0  ;;  %v4451_v49 = vld [vmem:[%s10569_s3 + $0x3b0] sm:$0xff] }
0x1291   : > { %v5256_v18 = vadd.f32 %v5255_v25, %v12516_v33  ;;  %v5369_v17 = vadd.f32 %v5368_v26, %v12521_v30  ;;  %5985 = vmatpush1.bf16.msra.mxu0 %v8708_v31  ;;  %v6186_v41 = vmax.f32 %v5252_v22, 0.0  ;;  %v6188_v8 = vmax.f32 %v5365_v7, 0.0  ;;  %v4452_v25 = vld [vmem:[%s10569_s3 + $0x3b8] sm:$0xff]  ;;  %v9980_v22 = vld [vmem:[%s10580_s1 + $0xd0] sm:$0xff]  }
0x1292   : > { %5872 = vmatpush1.bf16.msra.mxu1 %v8706_v47  ;;  %v6201_v50 = vmax.f32 %v5254_v19, 0.0  ;;  %v6203_v58 = vmax.f32 %v5367_v32, 0.0  ;;  %5986 = vmatprep.subr.bf16.mxu0 %v8725_v55  ;;  %v8738_v31 = vcombine.low %v4435_v53, %v4443_v27  ;;  %v8755_v0 = vcombine.high %v4451_v49, %v4459_v52  ;;  %v9976_v53 = vld [vmem:[%s10580_s1 + $0xc8] sm:$0xff]   ;;  %v9981_v7 = vld [vmem:[%s10580_s1 + $0x10] sm:$0xff]   ;;  %v9984_v19 = vld [vmem:[%s10580_s1 + $0xd8] sm:$0xff]  }
0x1293   : > { %5873 = vmatprep.subr.bf16.mxu1 %v8723_v1  ;;  %v6202_v3 = vmax.f32 %v5256_v18, 0.0  ;;  %v6204_v62 = vmax.f32 %v5369_v17, 0.0  ;;  %v8740_v1 = vcombine.low %v4436_v37, %v4444_v29  ;;  %v8757_v55 = vcombine.high %v4452_v25, %v4460_v13  ;;  %v9977_v27 = vld [vmem:[%s10580_s1 + $0x8] sm:$0xff]   ;;  %v9979_v29 = vld [vmem:[%s10580_s1 + $0x50] sm:$0xff]   ;;  %v9985_v32 = vld [vmem:[%s10580_s1 + $0x18] sm:$0xff]  }
0x1294   : > { %v12706_v26 = vpack.c.bf16 %v6201_v50, %v6185_v39  ;;  %v12708_v47 = vpack.c.bf16 %v6203_v58, %v6187_v59  ;;  %v9978_v37 = vld [vmem:[%s10580_s1 + $0x88] sm:$0xff]   ;;  %v9987_v18 = vld [vmem:[%s10580_s1 + $0x60] sm:$0xff]  }
0x1295   : > { %v12710_v36 = vpack.c.bf16 %v6202_v3, %v6186_v41  ;;  %v12712_v16 = vpack.c.bf16 %v6204_v62, %v6188_v8  ;;  %5987 = vmatpush1.bf16.msra.mxu0 %v8724_v63  ;;  %v8754_v62 = vcombine.low %v4451_v49, %v4459_v52  ;;  %v8756_v3 = vcombine.low %v4452_v25, %v4460_v13  ;;  %v9971_v41 = vld [vmem:[%s10580_s1 + $0x40] sm:$0xff]   ;;  %v9983_v63 = vld [vmem:[%s10580_s1 + $0x58] sm:$0xff]   ;;  %v9991_v39 = vld [vmem:[%s10580_s1 + $0x68] sm:$0xff]  }
0x1296   : > { %5874 = vmatpush1.bf16.msra.mxu1 %v8722_v48  ;;  %5988 = vmatprep.subr.bf16.mxu0 %v8741_v2  ;;  %v9973_v8 = vld [vmem:[%s10580_s1 + $0xc0] sm:$0xff]   ;;  %v9975_v48 = vld [vmem:[%s10580_s1 + $0x48] sm:$0xff]   ;;  %v9995_v49 = vld [vmem:[%s10580_s1 + $0x70] sm:$0xff]  }
0x1297   : > { %5875 = vmatprep.subr.bf16.mxu1 %v8739_v60  ;;  %5700 = vmatmul.mubr.bf16.gmra.mrb[172].mxu1 %v12349_v24  ;;  %v9972_v13 = vld [vmem:[%s10580_s1] sm:$0xff]   ;;  %v9986_v60 = vld [vmem:[%s10580_s1 + $0x98] sm:$0xff]   ;;  %v9992_v59 = vld [vmem:[%s10580_s1 + $0xe8] sm:$0xff]  }
0x1298   : > { %5813 = vmatmul.mubr.bf16.gmra.mrb[172].mxu0 %v12349_v24  ;;  %5709 = vmatprep.mubr.bf16.mxu1 %v13855_v38  ;;  %v9974_v52 = vld [vmem:[%s10580_s1 + $0x80] sm:$0xff]   ;;  %v9993_v50 = vld [vmem:[%s10580_s1 + $0x28] sm:$0xff]   ;;  %v9996_v25 = vld [vmem:[%s10580_s1 + $0xf0] sm:$0xff]  }
0x1299   : > { %5822 = vmatprep.mubr.bf16.mxu0 %v13855_v38  ;;  %5989 = vmatpush1.bf16.msra.mxu0 %v8740_v1  ;;  %v9988_v17 = vld [vmem:[%s10580_s1 + $0xe0] sm:$0xff]   ;;  %v9994_v58 = vld [vmem:[%s10580_s1 + $0xa8] sm:$0xff]   ;;  %v9999_v1 = vld [vmem:[%s10580_s1 + $0x78] sm:$0xff]  }
0x129a   : > { %5876 = vmatpush1.bf16.msra.mxu1 %v8738_v31  ;;  %5990 = vmatprep.subr.bf16.mxu0 %v8757_v55  ;;  %v9989_v2 = vld [vmem:[%s10580_s1 + $0x20] sm:$0xff]   ;;  %v9997_v31 = vld [vmem:[%s10580_s1 + $0x30] sm:$0xff]   ;;  %v10001_v55 = vld [vmem:[%s10580_s1 + $0x38] sm:$0xff]  }
0x129b   : > { %5877 = vmatprep.subr.bf16.mxu1 %v8755_v0  ;;  %v10000_v0 = vld [vmem:[%s10580_s1 + $0xf8] sm:$0xff]  }
0x129d   : > { %5991 = vmatpush1.bf16.msra.mxu0 %v8756_v3  ;;  %v10003_v3 = vld [vmem:[%s10580_s1 + $0x140] sm:$0xff]  }
0x129e   : > { %5878 = vmatpush1.bf16.msra.mxu1 %v8754_v62  ;;  %9117 = vmatprep.subr.bf16.mxu0 %v9973_v8  ;;  %v10002_v62 = vld [vmem:[%s10580_s1 + $0xb8] sm:$0xff]  }
0x129f   : > { %9053 = vmatprep.subr.bf16.mxu1 %v9971_v41  ;;  %5710 = vmatmul.mubr.bf16.gmra.mrb[176].mxu1 %v12384_v14  ;;  %v10005_v41 = vld [vmem:[%s10580_s1 + $0x1c0] sm:$0xff]  }
0x12a0   : > { %5823 = vmatmul.mubr.bf16.gmra.mrb[176].mxu0 %v12384_v14  ;;  %5719 = vmatprep.mubr.bf16.mxu1 %v13855_v38 }
0x12a1   : > { %5832 = vmatprep.mubr.bf16.mxu0 %v13855_v38 }
0x12a7   : > { %5720 = vmatmul.mubr.bf16.gmra.mrb[180].mxu1 %v12394_v56 }
0x12a8   : > { %5833 = vmatmul.mubr.bf16.gmra.mrb[180].mxu0 %v12394_v56  ;;  %5729 = vmatprep.mubr.bf16.mxu1 %v13855_v38 }
0x12a9   : > { %5842 = vmatprep.mubr.bf16.mxu0 %v13855_v38 }
0x12af   : > { %5730 = vmatmul.mubr.bf16.gmra.mrb[184].mxu1 %v12408_v5 }
0x12b0   : > { %5843 = vmatmul.mubr.bf16.gmra.mrb[184].mxu0 %v12408_v5  ;;  %5739 = vmatprep.mubr.bf16.mxu1 %v13855_v38 }
0x12b1   : > { %5852 = vmatprep.mubr.bf16.mxu0 %v13855_v38 }
0x12b7   : > { %5740 = vmatmul.mubr.bf16.gmra.mrb[188].mxu1 %v12418_v23 }
0x12b8   : > { %5853 = vmatmul.mubr.bf16.gmra.mrb[188].mxu0 %v12418_v23  ;;  %5895 = vmatprep.mubr.bf16.mxu1 %v13855_v38 }
0x12b9   : > { %6008 = vmatprep.mubr.bf16.mxu0 %v13855_v38 }
0x12bf   : > { %5896 = vmatmul.mubr.bf16.vlgmr.msra.gmra.mrb[192].mxu1 %v12288_v57 }
0x12c0   : > { %6009 = vmatmul.mubr.bf16.vlgmr.msra.gmra.mrb[192].mxu0 %v12288_v57  ;;  %5905 = vmatprep.mubr.bf16.mxu1 %v13855_v38  ;;  %v9982_v57 = vld [vmem:[%s10580_s1 + $0x90] sm:$0xff]  }
0x12c1   : > { %6018 = vmatprep.mubr.bf16.mxu0 %v13855_v38  ;;  %9054 = vmatpush3.bf16.msra.mxu1 %v9972_v13 }
0x12c2   : > { %9118 = vmatpush3.bf16.msra.mxu0 %v9974_v52  ;;  %9055 = vmatprep.subr.bf16.mxu1 %v9975_v48 }
0x12c3   : > { %9119 = vmatprep.subr.bf16.mxu0 %v9976_v53 }
0x12c5   : > { %9056 = vmatpush3.bf16.msra.mxu1 %v9977_v27 }
0x12c6   : > { %9120 = vmatpush3.bf16.msra.mxu0 %v9978_v37  ;;  %9057 = vmatprep.subr.bf16.mxu1 %v9979_v29 }
0x12c7   : > { %9121 = vmatprep.subr.bf16.mxu0 %v9980_v22  ;;  %5906 = vmatmul.mubr.bf16.gmra.mrb[196].mxu1 %v12308_v28 }
0x12c8   : > { %6019 = vmatmul.mubr.bf16.gmra.mrb[196].mxu0 %v12308_v28  ;;  %5915 = vmatprep.mubr.bf16.mxu1 %v13855_v38  ;;  %v9990_v28 = vld [vmem:[%s10580_s1 + $0xa0] sm:$0xff]  }
0x12c9   : > { %6028 = vmatprep.mubr.bf16.mxu0 %v13855_v38  ;;  %9058 = vmatpush3.bf16.msra.mxu1 %v9981_v7 }
0x12ca   : > { %9122 = vmatpush3.bf16.msra.mxu0 %v9982_v57  ;;  %9059 = vmatprep.subr.bf16.mxu1 %v9983_v63 }
0x12cb   : > { %9123 = vmatprep.subr.bf16.mxu0 %v9984_v19 }
0x12cd   : > { %9060 = vmatpush3.bf16.msra.mxu1 %v9985_v32 }
0x12ce   : > { %9124 = vmatpush3.bf16.msra.mxu0 %v9986_v60  ;;  %9061 = vmatprep.subr.bf16.mxu1 %v9987_v18 }
0x12cf   : > { %9125 = vmatprep.subr.bf16.mxu0 %v9988_v17  ;;  %5916 = vmatmul.mubr.bf16.gmra.mrb[200].mxu1 %v12328_v42 }
0x12d0   : > { %6029 = vmatmul.mubr.bf16.gmra.mrb[200].mxu0 %v12328_v42  ;;  %5925 = vmatprep.mubr.bf16.mxu1 %v13855_v38  ;;  %v9998_v42 = vld [vmem:[%s10580_s1 + $0xb0] sm:$0xff]  }
0x12d1   : > { %6038 = vmatprep.mubr.bf16.mxu0 %v13855_v38  ;;  %9062 = vmatpush3.bf16.msra.mxu1 %v9989_v2 }
0x12d2   : > { %9126 = vmatpush3.bf16.msra.mxu0 %v9990_v28  ;;  %9063 = vmatprep.subr.bf16.mxu1 %v9991_v39 }
0x12d3   : > { %9127 = vmatprep.subr.bf16.mxu0 %v9992_v59 }
0x12d5   : > { %9064 = vmatpush3.bf16.msra.mxu1 %v9993_v50 }
0x12d6   : > { %9128 = vmatpush3.bf16.msra.mxu0 %v9994_v58  ;;  %9065 = vmatprep.subr.bf16.mxu1 %v9995_v49 }
0x12d7   : > { %9129 = vmatprep.subr.bf16.mxu0 %v9996_v25  ;;  %5926 = vmatmul.mubr.bf16.gmra.mrb[204].mxu1 %v12349_v24 }
0x12d8   : > { %6039 = vmatmul.mubr.bf16.gmra.mrb[204].mxu0 %v12349_v24  ;;  %5935 = vmatprep.mubr.bf16.mxu1 %v13855_v38 }
0x12d9   : > { %6048 = vmatprep.mubr.bf16.mxu0 %v13855_v38  ;;  %9066 = vmatpush3.bf16.msra.mxu1 %v9997_v31 }
0x12da   : > { %9130 = vmatpush3.bf16.msra.mxu0 %v9998_v42  ;;  %9067 = vmatprep.subr.bf16.mxu1 %v9999_v1 }
0x12db   : > { %9131 = vmatprep.subr.bf16.mxu0 %v10000_v0 }
0x12dd   : > { %9068 = vmatpush3.bf16.msra.mxu1 %v10001_v55 }
0x12de   : > { %9132 = vmatpush3.bf16.msra.mxu0 %v10002_v62  ;;  %9181 = vmatprep.subr.bf16.mxu1 %v10003_v3 }
0x12df   : > { %9245 = vmatprep.subr.bf16.mxu0 %v10005_v41  ;;  %5936 = vmatmul.mubr.bf16.gmra.mrb[208].mxu1 %v12384_v14 }
0x12e0   : > { %6049 = vmatmul.mubr.bf16.gmra.mrb[208].mxu0 %v12384_v14  ;;  %5945 = vmatprep.mubr.bf16.mxu1 %v13855_v38 }
0x12e1   : > { %6058 = vmatprep.mubr.bf16.mxu0 %v13855_v38 }
0x12e7   : > { %5946 = vmatmul.mubr.bf16.gmra.mrb[212].mxu1 %v12394_v56 }
0x12e8   : > { %6059 = vmatmul.mubr.bf16.gmra.mrb[212].mxu0 %v12394_v56  ;;  %5955 = vmatprep.mubr.bf16.mxu1 %v13855_v38 }
0x12e9   : > { %6068 = vmatprep.mubr.bf16.mxu0 %v13855_v38 }
0x12ee   : > { %v5259_v24 = vpop.f32.mrb[112].mxu1  ;;  %v5372_v8 = vpop.f32.mrb[112].mxu0 }
0x12ef   : > { %v5260_v13 = vadd.f32 %v5259_v24, %v12508_v21  ;;  %v5373_v52 = vadd.f32 %v5372_v8, %v12512_v40  ;;  %5956 = vmatmul.mubr.bf16.gmra.mrb[216].mxu1 %v12408_v5  ;;  %v5261_v14 = vpop.f32.mrb[113].mxu1  ;;  %v5374_v48 = vpop.f32.mrb[113].mxu0 }
0x12f0   : > { %6069 = vmatmul.mubr.bf16.gmra.mrb[216].mxu0 %v12408_v5  ;;  %v5262_v53 = vadd.f32 %v5261_v14, %v12516_v33  ;;  %v5375_v56 = vadd.f32 %v5374_v48, %v12521_v30  ;;  %v5263_v27 = vpop.f32.mrb[114].mxu1  ;;  %v5376_v37 = vpop.f32.mrb[114].mxu0  ;;  %5965 = vmatprep.mubr.bf16.mxu1 %v13855_v38 }
0x12f1   : > { %6078 = vmatprep.mubr.bf16.mxu0 %v13855_v38  ;;  %v5264_v29 = vadd.f32 %v5263_v27, %v12508_v21  ;;  %v5377_v22 = vadd.f32 %v5376_v37, %v12512_v40  ;;  %v5265_v7 = vpop.f32.mrb[115].mxu1  ;;  %v5378_v57 = vpop.f32.mrb[115].mxu0  ;;  %v6217_v19 = vmax.f32 %v5260_v13, 0.0  ;;  %v6219_v32 = vmax.f32 %v5373_v52, 0.0 }
0x12f2   : > { %v5266_v5 = vadd.f32 %v5265_v7, %v12516_v33  ;;  %v5379_v63 = vadd.f32 %v5378_v57, %v12521_v30  ;;  %v6218_v17 = vmax.f32 %v5262_v53, 0.0  ;;  %v6220_v2 = vmax.f32 %v5375_v56, 0.0  ;;  %v10004_v57 = vld [vmem:[%s10580_s1 + $0x100] sm:$0xff]  }
0x12f3   : > { %v6233_v60 = vmax.f32 %v5264_v29, 0.0  ;;  %v6235_v18 = vmax.f32 %v5377_v22, 0.0 }
0x12f4   : > { %v6234_v28 = vmax.f32 %v5266_v5, 0.0  ;;  %v6236_v39 = vmax.f32 %v5379_v63, 0.0  ;;  %v10006_v5 = vld [vmem:[%s10580_s1 + $0x180] sm:$0xff]  }
0x12f5   : > { %v12804_v59 = vpack.c.bf16 %v6233_v60, %v6217_v19  ;;  %v12806_v38 = vpack.c.bf16 %v6235_v18, %v6219_v32  ;;  %v10007_v32 = vld [vmem:[%s10580_s1 + $0x148] sm:$0xff]  }
0x12f6   : > { %v12808_v50 = vpack.c.bf16 %v6234_v28, %v6218_v17  ;;  %v12810_v58 = vpack.c.bf16 %v6236_v39, %v6220_v2  ;;  %v5269_v49 = vpop.f32.mrb[116].mxu1  ;;  %v5382_v25 = vpop.f32.mrb[116].mxu0  ;;  %v10008_v60 = vld [vmem:[%s10580_s1 + $0x1c8] sm:$0xff]   ;;  %v10011_v39 = vld [vmem:[%s10580_s1 + $0x150] sm:$0xff]  }
0x12f7   : > { %v5270_v31 = vadd.f32 %v5269_v49, %v12508_v21  ;;  %v5383_v42 = vadd.f32 %v5382_v25, %v12512_v40  ;;  %5966 = vmatmul.mubr.bf16.gmra.mrb[220].mxu1 %v12418_v23  ;;  %v5271_v1 = vpop.f32.mrb[117].mxu1  ;;  %v5384_v0 = vpop.f32.mrb[117].mxu0  ;;  %v10009_v18 = vld [vmem:[%s10580_s1 + $0x108] sm:$0xff]   ;;  %v10012_v49 = vld [vmem:[%s10580_s1 + $0x1d0] sm:$0xff]  }
0x12f8   : > { %6079 = vmatmul.mubr.bf16.gmra.mrb[220].mxu0 %v12418_v23  ;;  %v5272_v55 = vadd.f32 %v5271_v1, %v12516_v33  ;;  %v5385_v62 = vadd.f32 %v5384_v0, %v12521_v30  ;;  %7529 = vmatprep.mubr.bf16.mxu1 %v12563_v34  ;;  %v5273_v3 = vpop.f32.mrb[118].mxu1  ;;  %v5386_v41 = vpop.f32.mrb[118].mxu0  ;;  %v10010_v17 = vld [vmem:[%s10580_s1 + $0x188] sm:$0xff]  }
0x12f9   : > { %7626 = vmatprep.mubr.bf16.mxu0 %v12565_v15  ;;  %v5274_v24 = vadd.f32 %v5273_v3, %v12508_v21  ;;  %v5387_v8 = vadd.f32 %v5386_v41, %v12512_v40  ;;  %v5275_v13 = vpop.f32.mrb[119].mxu1  ;;  %v5388_v23 = vpop.f32.mrb[119].mxu0  ;;  %v6249_v48 = vmax.f32 %v5270_v31, 0.0  ;;  %v6251_v34 = vmax.f32 %v5383_v42, 0.0  ;;  %v10013_v41 = vld [vmem:[%s10580_s1 + $0x110] sm:$0xff]  }
0x12fa   : > { %v5276_v52 = vadd.f32 %v5275_v13, %v12516_v33  ;;  %v5389_v14 = vadd.f32 %v5388_v23, %v12521_v30  ;;  %v6250_v56 = vmax.f32 %v5272_v55, 0.0  ;;  %v6252_v27 = vmax.f32 %v5385_v62, 0.0 }
0x12fb   : > { %v6265_v53 = vmax.f32 %v5274_v24, 0.0  ;;  %v6267_v15 = vmax.f32 %v5387_v8, 0.0  ;;  %v10014_v24 = vld [vmem:[%s10580_s1 + $0x190] sm:$0xff]   ;;  %v4483_v23 = vsub.s32 4, %v13866_v10 }
0x12fc   : > { %v6266_v37 = vmax.f32 %v5276_v52, 0.0  ;;  %v6268_v29 = vmax.f32 %v5389_v14, 0.0  ;;  %v4491_v52 = vsub.s32 6, %v13866_v10  ;;  %v10015_v14 = vld [vmem:[%s10580_s1 + $0x158] sm:$0xff]  }
0x12fd   : > { %v12824_v22 = vpack.c.bf16 %v6265_v53, %v6249_v48  ;;  %v12826_v7 = vpack.c.bf16 %v6267_v15, %v6251_v34  ;;  %v10016_v48 = vld [vmem:[%s10580_s1 + $0x1d8] sm:$0xff]  }
0x12fe   : > { %v12830_v63 = vpack.c.bf16 %v6266_v37, %v6250_v56  ;;  %v12832_v19 = vpack.c.bf16 %v6268_v29, %v6252_v27 }
0x12ff   : > { %7530 = vmatmul.mubr.bf16.vlgmr.msra.gmra.mrb[224].mxu1 %v12555_v46 }
0x1300   : > { %7627 = vmatmul.mubr.bf16.vlgmr.msra.gmra.mrb[224].mxu0 %v12557_v11  ;;  %7537 = vmatprep.mubr.bf16.mxu1 %v12625_v61 }
0x1301   : > { %7634 = vmatprep.mubr.bf16.mxu0 %v12627_v4  ;;  %9182 = vmatpush3.bf16.msra.mxu1 %v10004_v57  ;;  %v5279_v2 = vpop.f32.mrb[120].mxu1  ;;  %v5392_v28 = vpop.f32.mrb[120].mxu0 }
0x1302   : > { %9246 = vmatpush3.bf16.msra.mxu0 %v10006_v5  ;;  %9183 = vmatprep.subr.bf16.mxu1 %v10007_v32  ;;  %v5280_v46 = vadd.f32 %v5279_v2, %v12508_v21  ;;  %v5393_v11 = vadd.f32 %v5392_v28, %v12512_v40  ;;  %v5281_v25 = vpop.f32.mrb[121].mxu1  ;;  %v5394_v61 = vpop.f32.mrb[121].mxu0  ;;  %v4495_v28 = vsub.s32 7, %v13866_v10 }
0x1303   : > { %9247 = vmatprep.subr.bf16.mxu0 %v10008_v60  ;;  %v5282_v4 = vadd.f32 %v5281_v25, %v12516_v33  ;;  %v5395_v31 = vadd.f32 %v5394_v61, %v12521_v30  ;;  %v5283_v42 = vpop.f32.mrb[122].mxu1  ;;  %v5396_v1 = vpop.f32.mrb[122].mxu0  ;;  %v4487_v60 = vsub.s32 5, %v13866_v10 }
0x1304   : > { %v5284_v0 = vadd.f32 %v5283_v42, %v12508_v21  ;;  %v5397_v55 = vadd.f32 %v5396_v1, %v12512_v40  ;;  %v5285_v62 = vpop.f32.mrb[123].mxu1  ;;  %v5398_v3 = vpop.f32.mrb[123].mxu0  ;;  %v6281_v34 = vmax.f32 %v5280_v46, 0.0  ;;  %v6283_v53 = vmax.f32 %v5393_v11, 0.0 }
0x1305   : > { %9184 = vmatpush3.bf16.msra.mxu1 %v10009_v18  ;;  %v5286_v8 = vadd.f32 %v5285_v62, %v12516_v33  ;;  %v5399_v13 = vadd.f32 %v5398_v3, %v12521_v30  ;;  %v6282_v27 = vmax.f32 %v5282_v4, 0.0  ;;  %v6284_v37 = vmax.f32 %v5395_v31, 0.0 }
0x1306   : > { %9248 = vmatpush3.bf16.msra.mxu0 %v10010_v17  ;;  %9185 = vmatprep.subr.bf16.mxu1 %v10011_v39  ;;  %v6297_v15 = vmax.f32 %v5284_v0, 0.0  ;;  %v6299_v56 = vmax.f32 %v5397_v55, 0.0  ;;  %v10020_v39 = vld [vmem:[%s10580_s1 + $0x1e0] sm:$0xff]   ;;  %v12883_v1 = vrot.slane %v12501_v51, %v4483_v23  ;;  %v12888_v0 = vrot.slane %v12501_v51, %v4491_v52 }
0x1307   : > { %9249 = vmatprep.subr.bf16.mxu0 %v10012_v49  ;;  %7538 = vmatmul.mubr.bf16.gmra.mrb[228].mxu1 %v12611_v6  ;;  %v6298_v29 = vmax.f32 %v5286_v8, 0.0  ;;  %v6300_v57 = vmax.f32 %v5399_v13, 0.0  ;;  %v10017_v6 = vld [vmem:[%s10580_s1 + $0x118] sm:$0xff]   ;;  %v10021_v8 = vld [vmem:[%s10580_s1 + $0x120] sm:$0xff]  }
0x1308   : > { %7635 = vmatmul.mubr.bf16.gmra.mrb[228].mxu0 %v12613_v20  ;;  %7545 = vmatprep.mubr.bf16.mxu1 %v12678_v35  ;;  %v12862_v5 = vpack.c.bf16 %v6297_v15, %v6281_v34  ;;  %v12864_v32 = vpack.c.bf16 %v6299_v56, %v6283_v53  ;;  %v10018_v20 = vld [vmem:[%s10580_s1 + $0x198] sm:$0xff]   ;;  %v10022_v13 = vld [vmem:[%s10580_s1 + $0x1a0] sm:$0xff]   ;;  %v10024_v34 = vld [vmem:[%s10580_s1 + $0x1e8] sm:$0xff]  }
0x1309   : > { %7642 = vmatprep.mubr.bf16.mxu0 %v12680_v43  ;;  %9186 = vmatpush3.bf16.msra.mxu1 %v10013_v41  ;;  %v12869_v18 = vpack.c.bf16 %v6298_v29, %v6282_v27  ;;  %v12871_v17 = vpack.c.bf16 %v6300_v57, %v6284_v37  ;;  %v5289_v2 = vpop.f32.mrb[124].mxu1  ;;  %v5402_v35 = vpop.f32.mrb[124].mxu0  ;;  %v10019_v43 = vld [vmem:[%s10580_s1 + $0x160] sm:$0xff]  }
0x130a   : > { %9250 = vmatpush3.bf16.msra.mxu0 %v10014_v24  ;;  %9187 = vmatprep.subr.bf16.mxu1 %v10015_v14  ;;  %v5290_v49 = vadd.f32 %v5289_v2, %v12508_v21  ;;  %v5403_v46 = vadd.f32 %v5402_v35, %v12512_v40  ;;  %v5291_v11 = vpop.f32.mrb[125].mxu1  ;;  %v5404_v25 = vpop.f32.mrb[125].mxu0  ;;  %v12895_v24 = vrot.slane %v12501_v51, %v4487_v60 }
0x130b   : > { %9251 = vmatprep.subr.bf16.mxu0 %v10016_v48  ;;  %v5292_v61 = vadd.f32 %v5291_v11, %v12516_v33  ;;  %v5405_v4 = vadd.f32 %v5404_v25, %v12521_v30  ;;  %v5293_v31 = vpop.f32.mrb[126].mxu1  ;;  %v5406_v42 = vpop.f32.mrb[126].mxu0 }
0x130c   : > { %v5294_v55 = vadd.f32 %v5293_v31, %v12508_v21  ;;  %v5407_v62 = vadd.f32 %v5406_v42, %v12512_v40  ;;  %v5295_v3 = vpop.f32.mrb[127].mxu1  ;;  %v5408_v41 = vpop.f32.mrb[127].mxu0  ;;  %v12904_v21 = vrot.slane %v12501_v51, %v4495_v28  ;;  %v10023_v40 = vld [vmem:[%s10580_s1 + $0x168] sm:$0xff]   ;;  %v6313_v53 = vmax.f32 %v5290_v49, 0.0 }
0x130d   : > { %9188 = vmatpush3.bf16.msra.mxu1 %v10017_v6  ;;  %v5296_v14 = vadd.f32 %v5295_v3, %v12516_v33  ;;  %v5409_v48 = vadd.f32 %v5408_v41, %v12521_v30  ;;  %v6315_v15 = vmax.f32 %v5403_v46, 0.0  ;;  %v6314_v33 = vmax.f32 %v5292_v61, 0.0  ;;  %v10025_v6 = vld [vmem:[%s10580_s1 + $0x128] sm:$0xff]   ;;  %v10029_v3 = vld [vmem:[%s10580_s1 + $0x130] sm:$0xff]  }
0x130e   : > { %9252 = vmatpush3.bf16.msra.mxu0 %v10018_v20  ;;  %9189 = vmatprep.subr.bf16.mxu1 %v10019_v43  ;;  %v6329_v56 = vmax.f32 %v5294_v55, 0.0  ;;  %v6331_v27 = vmax.f32 %v5407_v62, 0.0  ;;  %v6316_v30 = vmax.f32 %v5405_v4, 0.0  ;;  %v10027_v43 = vld [vmem:[%s10580_s1 + $0x170] sm:$0xff]  }
0x130f   : > { %9253 = vmatprep.subr.bf16.mxu0 %v10020_v39  ;;  %7546 = vmatmul.mubr.bf16.gmra.mrb[232].mxu1 %v12670_v44  ;;  %v6330_v37 = vmax.f32 %v5296_v14, 0.0  ;;  %v6332_v51 = vmax.f32 %v5409_v48, 0.0  ;;  %v10026_v44 = vld [vmem:[%s10580_s1 + $0x1a8] sm:$0xff]   ;;  %v10030_v41 = vld [vmem:[%s10580_s1 + $0x1b0] sm:$0xff]   ;;  %v10031_v14 = vld [vmem:[%s10580_s1 + $0x178] sm:$0xff]  }
0x1310   : > { %7643 = vmatmul.mubr.bf16.gmra.mrb[232].mxu0 %v12672_v54  ;;  %7553 = vmatprep.mubr.bf16.mxu1 %v12710_v36  ;;  %v12912_v29 = vpack.c.bf16 %v6329_v56, %v6313_v53  ;;  %v12914_v57 = vpack.c.bf16 %v6331_v27, %v6315_v15  ;;  %v10028_v36 = vld [vmem:[%s10580_s1 + $0x1f0] sm:$0xff]   ;;  %v10032_v48 = vld [vmem:[%s10580_s1 + $0x1f8] sm:$0xff]  }
0x1311   : > { %7650 = vmatprep.mubr.bf16.mxu0 %v12712_v16  ;;  %9190 = vmatpush3.bf16.msra.mxu1 %v10021_v8  ;;  %v12918_v20 = vpack.c.bf16 %v6330_v37, %v6314_v33  ;;  %v12920_v54 = vpack.c.bf16 %v6332_v51, %v6316_v30  ;;  %v5445_v2 = vpop.f32.mrb[128].mxu1  ;;  %v5558_v35 = vpop.f32.mrb[128].mxu0 }
0x1312   : > { %9254 = vmatpush3.bf16.msra.mxu0 %v10022_v13  ;;  %9191 = vmatprep.subr.bf16.mxu1 %v10023_v40  ;;  %v5446_v16 = vadd.f32 %v5445_v2, %v12883_v1  ;;  %v5559_v39 = vadd.f32 %v5558_v35, %v12888_v0  ;;  %v5447_v49 = vpop.f32.mrb[129].mxu1  ;;  %v5560_v46 = vpop.f32.mrb[129].mxu0 }
0x1313   : > { %9255 = vmatprep.subr.bf16.mxu0 %v10024_v34  ;;  %v5448_v11 = vadd.f32 %v5447_v49, %v12895_v24  ;;  %v5561_v25 = vadd.f32 %v5560_v46, %v12904_v21  ;;  %v5449_v61 = vpop.f32.mrb[130].mxu1  ;;  %v5562_v4 = vpop.f32.mrb[130].mxu0 }
0x1314   : > { %v5450_v31 = vadd.f32 %v5449_v61, %v12883_v1  ;;  %v5563_v42 = vadd.f32 %v5562_v4, %v12888_v0  ;;  %v5451_v55 = vpop.f32.mrb[131].mxu1  ;;  %v5564_v62 = vpop.f32.mrb[131].mxu0  ;;  %v6093_v40 = vmax.f32 %v5446_v16, 0.0  ;;  %v6095_v34 = vmax.f32 %v5559_v39, 0.0 }
0x1315   : > { %9192 = vmatpush3.bf16.msra.mxu1 %v10025_v6  ;;  %v5452_v8 = vadd.f32 %v5451_v55, %v12895_v24  ;;  %v5565_v13 = vadd.f32 %v5564_v62, %v12904_v21  ;;  %v6094_v56 = vmax.f32 %v5448_v11, 0.0  ;;  %v6096_v27 = vmax.f32 %v5561_v25, 0.0  ;;  %v10033_v6 = vld [vmem:[%s10580_s1 + $0x138] sm:$0xff]  }
0x1316   : > { %9256 = vmatpush3.bf16.msra.mxu0 %v10026_v44  ;;  %9193 = vmatprep.subr.bf16.mxu1 %v10027_v43  ;;  %v6109_v53 = vmax.f32 %v5450_v31, 0.0  ;;  %v6111_v15 = vmax.f32 %v5563_v42, 0.0  ;;  %v10035_v43 = vld [vmem:[%s10580_s1 + $0x240] sm:$0xff]  }
0x1317   : > { %9257 = vmatprep.subr.bf16.mxu0 %v10028_v36  ;;  %7554 = vmatmul.mubr.bf16.gmra.mrb[236].mxu1 %v12706_v26  ;;  %v6110_v33 = vmax.f32 %v5452_v8, 0.0  ;;  %v6112_v30 = vmax.f32 %v5565_v13, 0.0  ;;  %v10034_v26 = vld [vmem:[%s10580_s1 + $0x1b8] sm:$0xff]  }
0x1318   : > { %7651 = vmatmul.mubr.bf16.gmra.mrb[236].mxu0 %v12708_v47  ;;  %7561 = vmatprep.mubr.bf16.mxu1 %v12808_v50  ;;  %v12940_v37 = vpack.c.bf16 %v6109_v53, %v6093_v40  ;;  %v12942_v51 = vpack.c.bf16 %v6111_v15, %v6095_v34  ;;  %v10037_v50 = vld [vmem:[%s10580_s1 + $0x2c0] sm:$0xff]  }
0x1319   : > { %7658 = vmatprep.mubr.bf16.mxu0 %v12810_v58  ;;  %9194 = vmatpush3.bf16.msra.mxu1 %v10029_v3  ;;  %v12946_v44 = vpack.c.bf16 %v6110_v33, %v6094_v56  ;;  %v12948_v47 = vpack.c.bf16 %v6112_v30, %v6096_v27  ;;  %v5455_v2 = vpop.f32.mrb[132].mxu1  ;;  %v5568_v35 = vpop.f32.mrb[132].mxu0 }
0x131a   : > { %9258 = vmatpush3.bf16.msra.mxu0 %v10030_v41  ;;  %9195 = vmatprep.subr.bf16.mxu1 %v10031_v14  ;;  %v5456_v58 = vadd.f32 %v5455_v2, %v12883_v1  ;;  %v5569_v36 = vadd.f32 %v5568_v35, %v12888_v0  ;;  %v5457_v16 = vpop.f32.mrb[133].mxu1  ;;  %v5570_v39 = vpop.f32.mrb[133].mxu0 }
0x131b   : > { %9259 = vmatprep.subr.bf16.mxu0 %v10032_v48  ;;  %v5458_v49 = vadd.f32 %v5457_v16, %v12895_v24  ;;  %v5571_v46 = vadd.f32 %v5570_v39, %v12904_v21  ;;  %v5459_v11 = vpop.f32.mrb[134].mxu1  ;;  %v5572_v25 = vpop.f32.mrb[134].mxu0 }
0x131c   : > { %v5460_v61 = vadd.f32 %v5459_v11, %v12883_v1  ;;  %v5573_v4 = vadd.f32 %v5572_v25, %v12888_v0  ;;  %v5461_v31 = vpop.f32.mrb[135].mxu1  ;;  %v5574_v42 = vpop.f32.mrb[135].mxu0  ;;  %v6125_v3 = vmax.f32 %v5456_v58, 0.0  ;;  %v6127_v41 = vmax.f32 %v5569_v36, 0.0 }
0x131d   : > { %9196 = vmatpush3.bf16.msra.mxu1 %v10033_v6  ;;  %v5462_v55 = vadd.f32 %v5461_v31, %v12895_v24  ;;  %v5575_v62 = vadd.f32 %v5574_v42, %v12904_v21  ;;  %v6126_v14 = vmax.f32 %v5458_v49, 0.0  ;;  %v6128_v48 = vmax.f32 %v5571_v46, 0.0 }
0x131e   : > { %9260 = vmatpush3.bf16.msra.mxu0 %v10034_v26  ;;  %9309 = vmatprep.subr.bf16.mxu1 %v10035_v43  ;;  %v6141_v8 = vmax.f32 %v5460_v61, 0.0  ;;  %v6143_v13 = vmax.f32 %v5573_v4, 0.0 }
0x131f   : > { %9373 = vmatprep.subr.bf16.mxu0 %v10037_v50  ;;  %7562 = vmatmul.mubr.bf16.gmra.mrb[240].mxu1 %v12804_v59  ;;  %v6142_v40 = vmax.f32 %v5462_v55, 0.0  ;;  %v6144_v34 = vmax.f32 %v5575_v62, 0.0 }
0x1320   : > { %7659 = vmatmul.mubr.bf16.gmra.mrb[240].mxu0 %v12806_v38  ;;  %7569 = vmatprep.mubr.bf16.mxu1 %v12830_v63  ;;  %v12964_v53 = vpack.c.bf16 %v6141_v8, %v6125_v3  ;;  %v12966_v15 = vpack.c.bf16 %v6143_v13, %v6127_v41 }
0x1321   : > { %7666 = vmatprep.mubr.bf16.mxu0 %v12832_v19  ;;  %v12968_v56 = vpack.c.bf16 %v6142_v40, %v6126_v14  ;;  %v12970_v27 = vpack.c.bf16 %v6144_v34, %v6128_v48  ;;  %v5465_v33 = vpop.f32.mrb[136].mxu1  ;;  %v5578_v59 = vpop.f32.mrb[136].mxu0 }
0x1322   : > { %v5466_v38 = vadd.f32 %v5465_v33, %v12883_v1  ;;  %v5579_v30 = vadd.f32 %v5578_v59, %v12888_v0  ;;  %v5467_v6 = vpop.f32.mrb[137].mxu1  ;;  %v5580_v26 = vpop.f32.mrb[137].mxu0 }
0x1323   : > { %v5468_v63 = vadd.f32 %v5467_v6, %v12895_v24  ;;  %v5581_v19 = vadd.f32 %v5580_v26, %v12904_v21  ;;  %v5469_v2 = vpop.f32.mrb[138].mxu1  ;;  %v5582_v35 = vpop.f32.mrb[138].mxu0 }
0x1324   : > { %v5470_v43 = vadd.f32 %v5469_v2, %v12883_v1  ;;  %v5583_v50 = vadd.f32 %v5582_v35, %v12888_v0  ;;  %v5471_v58 = vpop.f32.mrb[139].mxu1  ;;  %v5584_v36 = vpop.f32.mrb[139].mxu0  ;;  %v6157_v49 = vmax.f32 %v5466_v38, 0.0  ;;  %v6159_v46 = vmax.f32 %v5579_v30, 0.0 }
0x1325   : > { %v5472_v16 = vadd.f32 %v5471_v58, %v12895_v24  ;;  %v5585_v39 = vadd.f32 %v5584_v36, %v12904_v21  ;;  %v6158_v61 = vmax.f32 %v5468_v63, 0.0  ;;  %v6160_v4 = vmax.f32 %v5581_v19, 0.0 }
0x1326   : > { %v6173_v11 = vmax.f32 %v5470_v43, 0.0  ;;  %v6175_v25 = vmax.f32 %v5583_v50, 0.0 }
0x1327   : > { %7570 = vmatmul.mubr.bf16.gmra.mrb[244].mxu1 %v12824_v22  ;;  %v6174_v31 = vmax.f32 %v5472_v16, 0.0  ;;  %v6176_v42 = vmax.f32 %v5585_v39, 0.0 }
0x1328   : > { %7667 = vmatmul.mubr.bf16.gmra.mrb[244].mxu0 %v12826_v7  ;;  %7577 = vmatprep.mubr.bf16.mxu1 %v12869_v18  ;;  %v12984_v55 = vpack.c.bf16 %v6173_v11, %v6157_v49  ;;  %v12986_v62 = vpack.c.bf16 %v6175_v25, %v6159_v46 }
0x1329   : > { %7674 = vmatprep.mubr.bf16.mxu0 %v12871_v17  ;;  %v12988_v3 = vpack.c.bf16 %v6174_v31, %v6158_v61  ;;  %v12990_v41 = vpack.c.bf16 %v6176_v42, %v6160_v4  ;;  %v5475_v8 = vpop.f32.mrb[140].mxu1  ;;  %v5588_v22 = vpop.f32.mrb[140].mxu0 }
0x132a   : > { %v5476_v7 = vadd.f32 %v5475_v8, %v12883_v1  ;;  %v5589_v13 = vadd.f32 %v5588_v22, %v12888_v0  ;;  %v5477_v14 = vpop.f32.mrb[141].mxu1  ;;  %v5590_v48 = vpop.f32.mrb[141].mxu0 }
0x132b   : > { %v5478_v18 = vadd.f32 %v5477_v14, %v12895_v24  ;;  %v5591_v17 = vadd.f32 %v5590_v48, %v12904_v21  ;;  %v5479_v40 = vpop.f32.mrb[142].mxu1  ;;  %v5592_v34 = vpop.f32.mrb[142].mxu0 }
0x132c   : > { %v5480_v33 = vadd.f32 %v5479_v40, %v12883_v1  ;;  %v5593_v59 = vadd.f32 %v5592_v34, %v12888_v0  ;;  %v5481_v38 = vpop.f32.mrb[143].mxu1  ;;  %v5594_v30 = vpop.f32.mrb[143].mxu0  ;;  %v6189_v63 = vmax.f32 %v5476_v7, 0.0  ;;  %v6191_v19 = vmax.f32 %v5589_v13, 0.0 }
0x132d   : > { %v5482_v6 = vadd.f32 %v5481_v38, %v12895_v24  ;;  %v5595_v26 = vadd.f32 %v5594_v30, %v12904_v21  ;;  %v6190_v43 = vmax.f32 %v5478_v18, 0.0  ;;  %v6192_v50 = vmax.f32 %v5591_v17, 0.0 }
0x132e   : > { %v6205_v2 = vmax.f32 %v5480_v33, 0.0  ;;  %v6207_v35 = vmax.f32 %v5593_v59, 0.0 }
0x132f   : > { %7578 = vmatmul.mubr.bf16.gmra.mrb[248].mxu1 %v12862_v5  ;;  %v6206_v58 = vmax.f32 %v5482_v6, 0.0  ;;  %v6208_v36 = vmax.f32 %v5595_v26, 0.0 }
0x1330   : > { %7675 = vmatmul.mubr.bf16.gmra.mrb[248].mxu0 %v12864_v32  ;;  %7585 = vmatprep.mubr.bf16.mxu1 %v12918_v20  ;;  %v13004_v16 = vpack.c.bf16 %v6205_v2, %v6189_v63  ;;  %v13006_v39 = vpack.c.bf16 %v6207_v35, %v6191_v19 }
0x1331   : > { %7682 = vmatprep.mubr.bf16.mxu0 %v12920_v54  ;;  %v13008_v49 = vpack.c.bf16 %v6206_v58, %v6190_v43  ;;  %v13010_v46 = vpack.c.bf16 %v6208_v36, %v6192_v50  ;;  %v5485_v11 = vpop.f32.mrb[144].mxu1  ;;  %v5598_v5 = vpop.f32.mrb[144].mxu0 }
0x1332   : > { %v5486_v32 = vadd.f32 %v5485_v11, %v12883_v1  ;;  %v5599_v25 = vadd.f32 %v5598_v5, %v12888_v0  ;;  %v5487_v61 = vpop.f32.mrb[145].mxu1  ;;  %v5600_v4 = vpop.f32.mrb[145].mxu0 }
0x1333   : > { %v5488_v20 = vadd.f32 %v5487_v61, %v12895_v24  ;;  %v5601_v54 = vadd.f32 %v5600_v4, %v12904_v21  ;;  %v5489_v31 = vpop.f32.mrb[146].mxu1  ;;  %v5602_v42 = vpop.f32.mrb[146].mxu0  ;;  %v10036_v61 = vld [vmem:[%s10580_s1 + $0x200] sm:$0xff]  }
0x1334   : > { %v5490_v8 = vadd.f32 %v5489_v31, %v12883_v1  ;;  %v5603_v22 = vadd.f32 %v5602_v42, %v12888_v0  ;;  %v5491_v7 = vpop.f32.mrb[147].mxu1  ;;  %v5604_v13 = vpop.f32.mrb[147].mxu0  ;;  %v6221_v18 = vmax.f32 %v5486_v32, 0.0  ;;  %v6223_v17 = vmax.f32 %v5599_v25, 0.0  ;;  %v10038_v4 = vld [vmem:[%s10580_s1 + $0x280] sm:$0xff]   ;;  %v10039_v31 = vld [vmem:[%s10580_s1 + $0x248] sm:$0xff]  }
0x1335   : > { %v5492_v14 = vadd.f32 %v5491_v7, %v12895_v24  ;;  %v5605_v48 = vadd.f32 %v5604_v13, %v12904_v21  ;;  %v6222_v33 = vmax.f32 %v5488_v20, 0.0  ;;  %v6224_v59 = vmax.f32 %v5601_v54, 0.0  ;;  %v10040_v42 = vld [vmem:[%s10580_s1 + $0x2c8] sm:$0xff]  }
0x1336   : > { %v6237_v40 = vmax.f32 %v5490_v8, 0.0  ;;  %v6239_v34 = vmax.f32 %v5603_v22, 0.0 }
0x1337   : > { %7586 = vmatmul.mubr.bf16.gmra.mrb[252].mxu1 %v12912_v29  ;;  %v6238_v38 = vmax.f32 %v5492_v14, 0.0  ;;  %v6240_v30 = vmax.f32 %v5605_v48, 0.0 }
0x1338   : > { %7683 = vmatmul.mubr.bf16.gmra.mrb[252].mxu0 %v12914_v57  ;;  %7723 = vmatprep.mubr.bf16.mxu1 %v12946_v44  ;;  %v13024_v6 = vpack.c.bf16 %v6237_v40, %v6221_v18  ;;  %v13026_v26 = vpack.c.bf16 %v6239_v34, %v6223_v17 }
0x1339   : > { %7820 = vmatprep.mubr.bf16.mxu0 %v12948_v47  ;;  %v13028_v63 = vpack.c.bf16 %v6238_v38, %v6222_v33  ;;  %v13030_v19 = vpack.c.bf16 %v6240_v30, %v6224_v59  ;;  %v5495_v29 = vpop.f32.mrb[148].mxu1  ;;  %v5608_v57 = vpop.f32.mrb[148].mxu0  ;;  %v10041_v33 = vld [vmem:[%s10580_s1 + $0x208] sm:$0xff]  }
0x133a   : > { %v5496_v2 = vadd.f32 %v5495_v29, %v12883_v1  ;;  %v5609_v35 = vadd.f32 %v5608_v57, %v12888_v0  ;;  %v5497_v44 = vpop.f32.mrb[149].mxu1  ;;  %v5610_v47 = vpop.f32.mrb[149].mxu0  ;;  %v10043_v29 = vld [vmem:[%s10580_s1 + $0x250] sm:$0xff]  }
0x133b   : > { %v5498_v43 = vadd.f32 %v5497_v44, %v12895_v24  ;;  %v5611_v50 = vadd.f32 %v5610_v47, %v12904_v21  ;;  %v5499_v58 = vpop.f32.mrb[150].mxu1  ;;  %v5612_v36 = vpop.f32.mrb[150].mxu0 }
0x133c   : > { %v5500_v11 = vadd.f32 %v5499_v58, %v12883_v1  ;;  %v5613_v5 = vadd.f32 %v5612_v36, %v12888_v0  ;;  %v5501_v32 = vpop.f32.mrb[151].mxu1  ;;  %v5614_v25 = vpop.f32.mrb[151].mxu0  ;;  %v6253_v8 = vmax.f32 %v5496_v2, 0.0  ;;  %v6255_v22 = vmax.f32 %v5609_v35, 0.0 }
0x133d   : > { %v5502_v20 = vadd.f32 %v5501_v32, %v12895_v24  ;;  %v5615_v54 = vadd.f32 %v5614_v25, %v12904_v21  ;;  %v6254_v14 = vmax.f32 %v5498_v43, 0.0  ;;  %v6256_v48 = vmax.f32 %v5611_v50, 0.0  ;;  %v10045_v32 = vld [vmem:[%s10580_s1 + $0x210] sm:$0xff]  }
0x133e   : > { %v6269_v7 = vmax.f32 %v5500_v11, 0.0  ;;  %v6271_v13 = vmax.f32 %v5613_v5, 0.0  ;;  %v10046_v25 = vld [vmem:[%s10580_s1 + $0x290] sm:$0xff]  }
0x133f   : > { %7724 = vmatmul.mubr.bf16.vlgmr.msra.gmra.mrb[0].mxu1 %v12940_v37  ;;  %v6270_v18 = vmax.f32 %v5502_v20, 0.0  ;;  %v6272_v17 = vmax.f32 %v5615_v54, 0.0  ;;  %v10042_v37 = vld [vmem:[%s10580_s1 + $0x288] sm:$0xff]   ;;  %v10047_v20 = vld [vmem:[%s10580_s1 + $0x258] sm:$0xff]  }
0x1340   : > { %7821 = vmatmul.mubr.bf16.vlgmr.msra.gmra.mrb[0].mxu0 %v12942_v51  ;;  %7731 = vmatprep.mubr.bf16.mxu1 %v12968_v56  ;;  %v13048_v40 = vpack.c.bf16 %v6269_v7, %v6253_v8  ;;  %v13050_v34 = vpack.c.bf16 %v6271_v13, %v6255_v22  ;;  %v10044_v56 = vld [vmem:[%s10580_s1 + $0x2d0] sm:$0xff]   ;;  %v10048_v54 = vld [vmem:[%s10580_s1 + $0x2d8] sm:$0xff]  }
0x1341   : > { %7828 = vmatprep.mubr.bf16.mxu0 %v12970_v27  ;;  %9310 = vmatpush3.bf16.msra.mxu1 %v10036_v61  ;;  %v13054_v59 = vpack.c.bf16 %v6270_v18, %v6254_v14  ;;  %v13056_v51 = vpack.c.bf16 %v6272_v17, %v6256_v48  ;;  %v5505_v38 = vpop.f32.mrb[152].mxu1  ;;  %v5618_v30 = vpop.f32.mrb[152].mxu0 }
0x1342   : > { %9374 = vmatpush3.bf16.msra.mxu0 %v10038_v4  ;;  %9311 = vmatprep.subr.bf16.mxu1 %v10039_v31  ;;  %v5506_v27 = vadd.f32 %v5505_v38, %v12883_v1  ;;  %v5619_v57 = vadd.f32 %v5618_v30, %v12888_v0  ;;  %v5507_v2 = vpop.f32.mrb[153].mxu1  ;;  %v5620_v35 = vpop.f32.mrb[153].mxu0 }
0x1343   : > { %9375 = vmatprep.subr.bf16.mxu0 %v10040_v42  ;;  %v5508_v44 = vadd.f32 %v5507_v2, %v12895_v24  ;;  %v5621_v47 = vadd.f32 %v5620_v35, %v12904_v21  ;;  %v5509_v43 = vpop.f32.mrb[154].mxu1  ;;  %v5622_v50 = vpop.f32.mrb[154].mxu0 }
0x1344   : > { %v5510_v58 = vadd.f32 %v5509_v43, %v12883_v1  ;;  %v5623_v36 = vadd.f32 %v5622_v50, %v12888_v0  ;;  %v5511_v11 = vpop.f32.mrb[155].mxu1  ;;  %v5624_v5 = vpop.f32.mrb[155].mxu0  ;;  %v6285_v31 = vmax.f32 %v5506_v27, 0.0  ;;  %v6287_v42 = vmax.f32 %v5619_v57, 0.0 }
0x1345   : > { %9312 = vmatpush3.bf16.msra.mxu1 %v10041_v33  ;;  %v5512_v61 = vadd.f32 %v5511_v11, %v12895_v24  ;;  %v5625_v4 = vadd.f32 %v5624_v5, %v12904_v21  ;;  %v6286_v7 = vmax.f32 %v5508_v44, 0.0  ;;  %v6288_v13 = vmax.f32 %v5621_v47, 0.0  ;;  %v13081_v33 = vld [vmem:[%s10575_s16 + $0x8] sm:$0xff] }
0x1346   : > { %9376 = vmatpush3.bf16.msra.mxu0 %v10042_v37  ;;  %9313 = vmatprep.subr.bf16.mxu1 %v10043_v29  ;;  %v6301_v8 = vmax.f32 %v5510_v58, 0.0  ;;  %v6303_v22 = vmax.f32 %v5623_v36, 0.0  ;;  %v13097_v50 = vrot.slane %v13081_v33, %v13867_v9  ;;  %v13101_v58 = vrot.slane %v13081_v33, %v13868_v12  ;;  %v10053_v9 = vld [vmem:[%s10580_s1 + $0x220] sm:$0xff]  }
0x1347   : > { %9377 = vmatprep.subr.bf16.mxu0 %v10044_v56  ;;  %7732 = vmatmul.mubr.bf16.gmra.mrb[4].mxu1 %v12964_v53  ;;  %v6302_v14 = vmax.f32 %v5512_v61, 0.0  ;;  %v6304_v48 = vmax.f32 %v5625_v4, 0.0  ;;  %v10049_v53 = vld [vmem:[%s10580_s1 + $0x218] sm:$0xff]   ;;  %v10054_v61 = vld [vmem:[%s10580_s1 + $0x2a0] sm:$0xff]  }
0x1348   : > { %7829 = vmatmul.mubr.bf16.gmra.mrb[4].mxu0 %v12966_v15  ;;  %7739 = vmatprep.mubr.bf16.mxu1 %v12988_v3  ;;  %v13076_v18 = vpack.c.bf16 %v6301_v8, %v6285_v31  ;;  %v13078_v17 = vpack.c.bf16 %v6303_v22, %v6287_v42  ;;  %v10050_v15 = vld [vmem:[%s10580_s1 + $0x298] sm:$0xff]   ;;  %v10051_v3 = vld [vmem:[%s10580_s1 + $0x260] sm:$0xff]  }
0x1349   : > { %7836 = vmatprep.mubr.bf16.mxu0 %v12990_v41  ;;  %9314 = vmatpush3.bf16.msra.mxu1 %v10045_v32  ;;  %v13085_v37 = vpack.c.bf16 %v6302_v14, %v6286_v7  ;;  %v13087_v38 = vpack.c.bf16 %v6304_v48, %v6288_v13  ;;  %v5515_v30 = vpop.f32.mrb[156].mxu1  ;;  %v5628_v29 = vpop.f32.mrb[156].mxu0  ;;  %v10052_v41 = vld [vmem:[%s10580_s1 + $0x2e0] sm:$0xff]   ;;  %v10057_v48 = vld [vmem:[%s10580_s1 + $0x228] sm:$0xff]  }
0x134a   : > { %9378 = vmatpush3.bf16.msra.mxu0 %v10046_v25  ;;  %9315 = vmatprep.subr.bf16.mxu1 %v10047_v20  ;;  %v5516_v56 = vadd.f32 %v5515_v30, %v12883_v1  ;;  %v5629_v27 = vadd.f32 %v5628_v29, %v12888_v0  ;;  %v5517_v57 = vpop.f32.mrb[157].mxu1  ;;  %v5630_v2 = vpop.f32.mrb[157].mxu0  ;;  %v13107_v25 = vrot.slane %v13081_v33, %v13869_v45  ;;  %v13871_v20 = vsub.s32 3, %v13866_v10  ;;  %v10059_v29 = vld [vmem:[%s10580_s1 + $0x270] sm:$0xff]  }
0x134b   : > { %9379 = vmatprep.subr.bf16.mxu0 %v10048_v54  ;;  %v5518_v35 = vadd.f32 %v5517_v57, %v12895_v24  ;;  %v5631_v44 = vadd.f32 %v5630_v2, %v12904_v21  ;;  %v5519_v47 = vpop.f32.mrb[158].mxu1  ;;  %v5632_v43 = vpop.f32.mrb[158].mxu0  ;;  %v10056_v54 = vld [vmem:[%s10580_s1 + $0x2e8] sm:$0xff]  }
0x134c   : > { %v5520_v36 = vadd.f32 %v5519_v47, %v12883_v1  ;;  %v5633_v11 = vadd.f32 %v5632_v43, %v12888_v0  ;;  %v5521_v5 = vpop.f32.mrb[159].mxu1  ;;  %v5634_v32 = vpop.f32.mrb[159].mxu0  ;;  %v13116_v1 = vrot.slane %v13081_v33, %v13871_v20  ;;  %v10055_v0 = vld [vmem:[%s10580_s1 + $0x268] sm:$0xff]   ;;  %v6317_v31 = vmax.f32 %v5516_v56, 0.0 }
0x134d   : > { %9316 = vmatpush3.bf16.msra.mxu1 %v10049_v53  ;;  %v5522_v4 = vadd.f32 %v5521_v5, %v12895_v24  ;;  %v5635_v12 = vadd.f32 %v5634_v32, %v12904_v21  ;;  %v6319_v45 = vmax.f32 %v5629_v27, 0.0  ;;  %v6318_v24 = vmax.f32 %v5518_v35, 0.0  ;;  %v10062_v5 = vld [vmem:[%s10580_s1 + $0x2b0] sm:$0xff]  }
0x134e   : > { %9380 = vmatpush3.bf16.msra.mxu0 %v10050_v15  ;;  %9317 = vmatprep.subr.bf16.mxu1 %v10051_v3  ;;  %v6333_v42 = vmax.f32 %v5520_v36, 0.0  ;;  %v6335_v8 = vmax.f32 %v5633_v11, 0.0  ;;  %v6320_v21 = vmax.f32 %v5631_v44, 0.0  ;;  %v10061_v11 = vld [vmem:[%s10580_s1 + $0x230] sm:$0xff]  }
0x134f   : > { %9381 = vmatprep.subr.bf16.mxu0 %v10052_v41  ;;  %7740 = vmatmul.mubr.bf16.gmra.mrb[8].mxu1 %v12984_v55  ;;  %v6334_v22 = vmax.f32 %v5522_v4, 0.0  ;;  %v6336_v7 = vmax.f32 %v5635_v12, 0.0  ;;  %v10058_v55 = vld [vmem:[%s10580_s1 + $0x2a8] sm:$0xff]   ;;  %v10064_v4 = vld [vmem:[%s10580_s1 + $0x2f8] sm:$0xff]  }
0x1350   : > { %7837 = vmatmul.mubr.bf16.gmra.mrb[8].mxu0 %v12986_v62  ;;  %7747 = vmatprep.mubr.bf16.mxu1 %v13008_v49  ;;  %v13124_v13 = vpack.c.bf16 %v6333_v42, %v6317_v31  ;;  %v13126_v14 = vpack.c.bf16 %v6335_v8, %v6319_v45  ;;  %v10060_v49 = vld [vmem:[%s10580_s1 + $0x2f0] sm:$0xff]  }
0x1351   : > { %7844 = vmatprep.mubr.bf16.mxu0 %v13010_v46  ;;  %9318 = vmatpush3.bf16.msra.mxu1 %v10053_v9  ;;  %v13130_v53 = vpack.c.bf16 %v6334_v22, %v6318_v24  ;;  %v13132_v62 = vpack.c.bf16 %v6336_v7, %v6320_v21  ;;  %v5671_v15 = vpop.f32.mrb[160].mxu1  ;;  %v5784_v30 = vpop.f32.mrb[160].mxu0  ;;  %v10065_v22 = vld [vmem:[%s10580_s1 + $0x238] sm:$0xff]  }
0x1352   : > { %9382 = vmatpush3.bf16.msra.mxu0 %v10054_v61  ;;  %9319 = vmatprep.subr.bf16.mxu1 %v10055_v0  ;;  %v5672_v46 = vadd.f32 %v5671_v15, %v13097_v50  ;;  %v5785_v3 = vadd.f32 %v5784_v30, %v13101_v58  ;;  %v5673_v41 = vpop.f32.mrb[161].mxu1  ;;  %v5786_v56 = vpop.f32.mrb[161].mxu0  ;;  %v10063_v61 = vld [vmem:[%s10580_s1 + $0x278] sm:$0xff]   ;;  %v10067_v15 = vld [vmem:[%s10580_s1 + $0x340] sm:$0xff]  }
0x1353   : > { %9383 = vmatprep.subr.bf16.mxu0 %v10056_v54  ;;  %v5674_v27 = vadd.f32 %v5673_v41, %v13107_v25  ;;  %v5787_v57 = vadd.f32 %v5786_v56, %v13116_v1  ;;  %v5675_v2 = vpop.f32.mrb[162].mxu1  ;;  %v5788_v35 = vpop.f32.mrb[162].mxu0 }
0x1354   : > { %v5676_v44 = vadd.f32 %v5675_v2, %v13097_v50  ;;  %v5789_v47 = vadd.f32 %v5788_v35, %v13101_v58  ;;  %v5677_v43 = vpop.f32.mrb[163].mxu1  ;;  %v5790_v36 = vpop.f32.mrb[163].mxu0  ;;  %v6097_v12 = vmax.f32 %v5672_v46, 0.0  ;;  %v6099_v20 = vmax.f32 %v5785_v3, 0.0 }
0x1355   : > { %9320 = vmatpush3.bf16.msra.mxu1 %v10057_v48  ;;  %v5678_v32 = vadd.f32 %v5677_v43, %v13107_v25  ;;  %v5791_v9 = vadd.f32 %v5790_v36, %v13116_v1  ;;  %v6098_v31 = vmax.f32 %v5674_v27, 0.0  ;;  %v6100_v45 = vmax.f32 %v5787_v57, 0.0 }
0x1356   : > { %9384 = vmatpush3.bf16.msra.mxu0 %v10058_v55  ;;  %9321 = vmatprep.subr.bf16.mxu1 %v10059_v29  ;;  %v6113_v0 = vmax.f32 %v5676_v44, 0.0  ;;  %v6115_v54 = vmax.f32 %v5789_v47, 0.0 }
0x1357   : > { %9385 = vmatprep.subr.bf16.mxu0 %v10060_v49  ;;  %7748 = vmatmul.mubr.bf16.gmra.mrb[12].mxu1 %v13004_v16  ;;  %v6114_v42 = vmax.f32 %v5678_v32, 0.0  ;;  %v6116_v8 = vmax.f32 %v5791_v9, 0.0  ;;  %v10066_v16 = vld [vmem:[%s10580_s1 + $0x2b8] sm:$0xff]  }
0x1358   : > { %7845 = vmatmul.mubr.bf16.gmra.mrb[12].mxu0 %v13006_v39  ;;  %7755 = vmatprep.mubr.bf16.mxu1 %v13028_v63  ;;  %v13152_v24 = vpack.c.bf16 %v6113_v0, %v6097_v12  ;;  %v13154_v21 = vpack.c.bf16 %v6115_v54, %v6099_v20  ;;  %v10069_v63 = vld [vmem:[%s10580_s1 + $0x3c0] sm:$0xff]  }
0x1359   : > { %7852 = vmatprep.mubr.bf16.mxu0 %v13030_v19  ;;  %9322 = vmatpush3.bf16.msra.mxu1 %v10061_v11  ;;  %v13158_v7 = vpack.c.bf16 %v6114_v42, %v6098_v31  ;;  %v13160_v39 = vpack.c.bf16 %v6116_v8, %v6100_v45  ;;  %v5681_v48 = vpop.f32.mrb[164].mxu1  ;;  %v5794_v55 = vpop.f32.mrb[164].mxu0 }
0x135a   : > { %9386 = vmatpush3.bf16.msra.mxu0 %v10062_v5  ;;  %9323 = vmatprep.subr.bf16.mxu1 %v10063_v61  ;;  %v5682_v19 = vadd.f32 %v5681_v48, %v13097_v50  ;;  %v5795_v30 = vadd.f32 %v5794_v55, %v13101_v58  ;;  %v5683_v29 = vpop.f32.mrb[165].mxu1  ;;  %v5796_v49 = vpop.f32.mrb[165].mxu0 }
0x135b   : > { %9387 = vmatprep.subr.bf16.mxu0 %v10064_v4  ;;  %v5684_v46 = vadd.f32 %v5683_v29, %v13107_v25  ;;  %v5797_v3 = vadd.f32 %v5796_v49, %v13116_v1  ;;  %v5685_v41 = vpop.f32.mrb[166].mxu1  ;;  %v5798_v56 = vpop.f32.mrb[166].mxu0 }
0x135c   : > { %v5686_v27 = vadd.f32 %v5685_v41, %v13097_v50  ;;  %v5799_v57 = vadd.f32 %v5798_v56, %v13101_v58  ;;  %v5687_v2 = vpop.f32.mrb[167].mxu1  ;;  %v5800_v35 = vpop.f32.mrb[167].mxu0  ;;  %v6129_v43 = vmax.f32 %v5682_v19, 0.0  ;;  %v6131_v36 = vmax.f32 %v5795_v30, 0.0 }
0x135d   : > { %9324 = vmatpush3.bf16.msra.mxu1 %v10065_v22  ;;  %v5688_v44 = vadd.f32 %v5687_v2, %v13107_v25  ;;  %v5801_v47 = vadd.f32 %v5800_v35, %v13116_v1  ;;  %v6130_v32 = vmax.f32 %v5684_v46, 0.0  ;;  %v6132_v9 = vmax.f32 %v5797_v3, 0.0 }
0x135e   : > { %9388 = vmatpush3.bf16.msra.mxu0 %v10066_v16  ;;  %9437 = vmatprep.subr.bf16.mxu1 %v10067_v15  ;;  %v6145_v11 = vmax.f32 %v5686_v27, 0.0  ;;  %v6147_v5 = vmax.f32 %v5799_v57, 0.0 }
0x135f   : > { %9501 = vmatprep.subr.bf16.mxu0 %v10069_v63  ;;  %7756 = vmatmul.mubr.bf16.gmra.mrb[16].mxu1 %v13024_v6  ;;  %v6146_v61 = vmax.f32 %v5688_v44, 0.0  ;;  %v6148_v4 = vmax.f32 %v5801_v47, 0.0 }
0x1360   : > { %7853 = vmatmul.mubr.bf16.gmra.mrb[16].mxu0 %v13026_v26  ;;  %7763 = vmatprep.mubr.bf16.mxu1 %v13054_v59  ;;  %v13176_v12 = vpack.c.bf16 %v6145_v11, %v6129_v43  ;;  %v13178_v20 = vpack.c.bf16 %v6147_v5, %v6131_v36 }
0x1361   : > { %7860 = vmatprep.mubr.bf16.mxu0 %v13056_v51  ;;  %v13180_v0 = vpack.c.bf16 %v6146_v61, %v6130_v32  ;;  %v13182_v54 = vpack.c.bf16 %v6148_v4, %v6132_v9  ;;  %v5804_v6 = vpop.f32.mrb[168].mxu0 }
0x1362   : > { %v5691_v31 = vpop.f32.mrb[168].mxu1  ;;  %v5805_v45 = vadd.f32 %v5804_v6, %v13101_v58  ;;  %v5806_v8 = vpop.f32.mrb[169].mxu0 }
0x1363   : > { %v5692_v26 = vadd.f32 %v5691_v31, %v13097_v50  ;;  %v5693_v42 = vpop.f32.mrb[169].mxu1  ;;  %v5807_v51 = vadd.f32 %v5806_v8, %v13116_v1  ;;  %v5808_v16 = vpop.f32.mrb[170].mxu0 }
0x1364   : > { %v5694_v59 = vadd.f32 %v5693_v42, %v13107_v25  ;;  %v5695_v22 = vpop.f32.mrb[170].mxu1  ;;  %v5809_v55 = vadd.f32 %v5808_v16, %v13101_v58  ;;  %v5810_v63 = vpop.f32.mrb[171].mxu0  ;;  %v6163_v49 = vmax.f32 %v5805_v45, 0.0 }
0x1365   : > { %v5696_v48 = vadd.f32 %v5695_v22, %v13097_v50  ;;  %v5697_v15 = vpop.f32.mrb[171].mxu1  ;;  %v5811_v30 = vadd.f32 %v5810_v63, %v13116_v1  ;;  %v6161_v29 = vmax.f32 %v5692_v26, 0.0  ;;  %v6164_v56 = vmax.f32 %v5807_v51, 0.0 }
0x1366   : > { %v5698_v19 = vadd.f32 %v5697_v15, %v13107_v25  ;;  %v6179_v3 = vmax.f32 %v5809_v55, 0.0  ;;  %v6162_v41 = vmax.f32 %v5694_v59, 0.0 }
0x1367   : > { %v6177_v46 = vmax.f32 %v5696_v48, 0.0  ;;  %7764 = vmatmul.mubr.bf16.gmra.mrb[20].mxu1 %v13048_v40  ;;  %v6180_v57 = vmax.f32 %v5811_v30, 0.0 }
0x1368   : > { %7861 = vmatmul.mubr.bf16.gmra.mrb[20].mxu0 %v13050_v34  ;;  %v6178_v27 = vmax.f32 %v5698_v19, 0.0  ;;  %7771 = vmatprep.mubr.bf16.mxu1 %v13085_v37  ;;  %v13198_v35 = vpack.c.bf16 %v6179_v3, %v6163_v49 }
0x1369   : > { %7868 = vmatprep.mubr.bf16.mxu0 %v13087_v38  ;;  %v13196_v2 = vpack.c.bf16 %v6177_v46, %v6161_v29  ;;  %v13202_v47 = vpack.c.bf16 %v6180_v57, %v6164_v56 }
0x136a   : > { %v13200_v44 = vpack.c.bf16 %v6178_v27, %v6162_v41  ;;  %v5701_v43 = vpop.f32.mrb[172].mxu1 }
0x136b   : > { %v5814_v40 = vpop.f32.mrb[172].mxu0  ;;  %v5702_v34 = vadd.f32 %v5701_v43, %v13097_v50  ;;  %v5703_v11 = vpop.f32.mrb[173].mxu1 }
0x136c   : > { %v5815_v36 = vadd.f32 %v5814_v40, %v13101_v58  ;;  %v5816_v5 = vpop.f32.mrb[173].mxu0  ;;  %v5704_v37 = vadd.f32 %v5703_v11, %v13107_v25  ;;  %v5705_v32 = vpop.f32.mrb[174].mxu1 }
0x136d   : > { %v5817_v38 = vadd.f32 %v5816_v5, %v13116_v1  ;;  %v5818_v9 = vpop.f32.mrb[174].mxu0  ;;  %v5706_v61 = vadd.f32 %v5705_v32, %v13097_v50  ;;  %v5707_v31 = vpop.f32.mrb[175].mxu1  ;;  %v6193_v42 = vmax.f32 %v5702_v34, 0.0 }
0x136e   : > { %v5819_v4 = vadd.f32 %v5818_v9, %v13101_v58  ;;  %v5820_v6 = vpop.f32.mrb[175].mxu0  ;;  %v5708_v26 = vadd.f32 %v5707_v31, %v13107_v25  ;;  %v6195_v8 = vmax.f32 %v5815_v36, 0.0  ;;  %v6194_v22 = vmax.f32 %v5704_v37, 0.0 }
0x136f   : > { %v5821_v45 = vadd.f32 %v5820_v6, %v13116_v1  ;;  %v6209_v59 = vmax.f32 %v5706_v61, 0.0  ;;  %7772 = vmatmul.mubr.bf16.gmra.mrb[24].mxu1 %v13076_v18  ;;  %v6196_v16 = vmax.f32 %v5817_v38, 0.0 }
0x1370   : > { %v6211_v51 = vmax.f32 %v5819_v4, 0.0  ;;  %7869 = vmatmul.mubr.bf16.gmra.mrb[24].mxu0 %v13078_v17  ;;  %v6210_v48 = vmax.f32 %v5708_v26, 0.0  ;;  %7779 = vmatprep.mubr.bf16.mxu1 %v13130_v53 }
0x1371   : > { %v6212_v55 = vmax.f32 %v5821_v45, 0.0  ;;  %7876 = vmatprep.mubr.bf16.mxu0 %v13132_v62  ;;  %v13216_v15 = vpack.c.bf16 %v6209_v59, %v6193_v42 }
0x1372   : > { %v13218_v63 = vpack.c.bf16 %v6211_v51, %v6195_v8  ;;  %v13220_v19 = vpack.c.bf16 %v6210_v48, %v6194_v22  ;;  %v5711_v29 = vpop.f32.mrb[176].mxu1 }
0x1373   : > { %v13222_v30 = vpack.c.bf16 %v6212_v55, %v6196_v16  ;;  %v5824_v18 = vpop.f32.mrb[176].mxu0  ;;  %v5712_v17 = vadd.f32 %v5711_v29, %v13097_v50  ;;  %v5713_v46 = vpop.f32.mrb[177].mxu1 }
0x1374   : > { %v5825_v49 = vadd.f32 %v5824_v18, %v13101_v58  ;;  %v5826_v3 = vpop.f32.mrb[177].mxu0  ;;  %v5714_v53 = vadd.f32 %v5713_v46, %v13107_v25  ;;  %v5715_v41 = vpop.f32.mrb[178].mxu1 }
0x1375   : > { %v5827_v62 = vadd.f32 %v5826_v3, %v13116_v1  ;;  %v5828_v56 = vpop.f32.mrb[178].mxu0  ;;  %v5716_v27 = vadd.f32 %v5715_v41, %v13097_v50  ;;  %v5717_v43 = vpop.f32.mrb[179].mxu1  ;;  %v6225_v11 = vmax.f32 %v5712_v17, 0.0  ;;  %v10068_v17 = vld [vmem:[%s10580_s1 + $0x300] sm:$0xff]  }
0x1376   : > { %v5829_v57 = vadd.f32 %v5828_v56, %v13101_v58  ;;  %v5830_v40 = vpop.f32.mrb[179].mxu0  ;;  %v5718_v34 = vadd.f32 %v5717_v43, %v13107_v25  ;;  %v6227_v5 = vmax.f32 %v5825_v49, 0.0  ;;  %v6226_v32 = vmax.f32 %v5714_v53, 0.0  ;;  %v10070_v49 = vld [vmem:[%s10580_s1 + $0x380] sm:$0xff]   ;;  %v10071_v53 = vld [vmem:[%s10580_s1 + $0x348] sm:$0xff]  }
0x1377   : > { %v5831_v36 = vadd.f32 %v5830_v40, %v13116_v1  ;;  %v6241_v37 = vmax.f32 %v5716_v27, 0.0  ;;  %7780 = vmatmul.mubr.bf16.gmra.mrb[28].mxu1 %v13124_v13  ;;  %v6228_v9 = vmax.f32 %v5827_v62, 0.0  ;;  %v10072_v62 = vld [vmem:[%s10580_s1 + $0x3c8] sm:$0xff]  }
0x1378   : > { %v6243_v38 = vmax.f32 %v5829_v57, 0.0  ;;  %7877 = vmatmul.mubr.bf16.gmra.mrb[28].mxu0 %v13126_v14  ;;  %v6242_v61 = vmax.f32 %v5718_v34, 0.0  ;;  %7917 = vmatprep.mubr.bf16.mxu1 %v13158_v7 }
0x1379   : > { %v6244_v4 = vmax.f32 %v5831_v36, 0.0  ;;  %8014 = vmatprep.mubr.bf16.mxu0 %v13160_v39  ;;  %v13236_v31 = vpack.c.bf16 %v6241_v37, %v6225_v11  ;;  %v10073_v37 = vld [vmem:[%s10580_s1 + $0x308] sm:$0xff]  }
0x137a   : > { %v13238_v6 = vpack.c.bf16 %v6243_v38, %v6227_v5  ;;  %v13240_v26 = vpack.c.bf16 %v6242_v61, %v6226_v32  ;;  %v5721_v13 = vpop.f32.mrb[180].mxu1  ;;  %v10075_v61 = vld [vmem:[%s10580_s1 + $0x350] sm:$0xff]  }
0x137b   : > { %v13242_v45 = vpack.c.bf16 %v6244_v4, %v6228_v9  ;;  %v5834_v14 = vpop.f32.mrb[180].mxu0  ;;  %v5722_v42 = vadd.f32 %v5721_v13, %v13097_v50  ;;  %v5723_v7 = vpop.f32.mrb[181].mxu1 }
0x137c   : > { %v5835_v8 = vadd.f32 %v5834_v14, %v13101_v58  ;;  %v5836_v39 = vpop.f32.mrb[181].mxu0  ;;  %v5724_v59 = vadd.f32 %v5723_v7, %v13107_v25  ;;  %v5725_v22 = vpop.f32.mrb[182].mxu1 }
0x137d   : > { %v5837_v51 = vadd.f32 %v5836_v39, %v13116_v1  ;;  %v5838_v16 = vpop.f32.mrb[182].mxu0  ;;  %v5726_v48 = vadd.f32 %v5725_v22, %v13097_v50  ;;  %v5727_v29 = vpop.f32.mrb[183].mxu1  ;;  %v6257_v41 = vmax.f32 %v5722_v42, 0.0 }
0x137e   : > { %v5839_v55 = vadd.f32 %v5838_v16, %v13101_v58  ;;  %v5840_v18 = vpop.f32.mrb[183].mxu0  ;;  %v5728_v46 = vadd.f32 %v5727_v29, %v13107_v25  ;;  %v6259_v56 = vmax.f32 %v5835_v8, 0.0  ;;  %v6258_v43 = vmax.f32 %v5724_v59, 0.0 }
0x137f   : > { %v5841_v3 = vadd.f32 %v5840_v18, %v13116_v1  ;;  %v6273_v27 = vmax.f32 %v5726_v48, 0.0  ;;  %7918 = vmatmul.mubr.bf16.vlgmr.msra.gmra.mrb[32].mxu1 %v13152_v24  ;;  %v6260_v40 = vmax.f32 %v5837_v51, 0.0  ;;  %v10074_v24 = vld [vmem:[%s10580_s1 + $0x388] sm:$0xff]   ;;  %v10077_v48 = vld [vmem:[%s10580_s1 + $0x310] sm:$0xff]  }
0x1380   : > { %v6275_v57 = vmax.f32 %v5839_v55, 0.0  ;;  %8015 = vmatmul.mubr.bf16.vlgmr.msra.gmra.mrb[32].mxu0 %v13154_v21  ;;  %v6274_v34 = vmax.f32 %v5728_v46, 0.0  ;;  %7925 = vmatprep.mubr.bf16.mxu1 %v13180_v0  ;;  %v10076_v0 = vld [vmem:[%s10580_s1 + $0x3d0] sm:$0xff]  }
0x1381   : > { %v6276_v36 = vmax.f32 %v5841_v3, 0.0  ;;  %8022 = vmatprep.mubr.bf16.mxu0 %v13182_v54  ;;  %v13260_v11 = vpack.c.bf16 %v6273_v27, %v6257_v41  ;;  %9438 = vmatpush3.bf16.msra.mxu1 %v10068_v17  ;;  %v10078_v55 = vld [vmem:[%s10580_s1 + $0x390] sm:$0xff]   ;;  %v10079_v17 = vld [vmem:[%s10580_s1 + $0x358] sm:$0xff]  }
0x1382   : > { %v13262_v5 = vpack.c.bf16 %v6275_v57, %v6259_v56  ;;  %9502 = vmatpush3.bf16.msra.mxu0 %v10070_v49  ;;  %v13266_v38 = vpack.c.bf16 %v6274_v34, %v6258_v43  ;;  %v5731_v32 = vpop.f32.mrb[184].mxu1  ;;  %9439 = vmatprep.subr.bf16.mxu1 %v10071_v53  ;;  %v10080_v49 = vld [vmem:[%s10580_s1 + $0x3d8] sm:$0xff]  }
0x1383   : > { %v13268_v21 = vpack.c.bf16 %v6276_v36, %v6260_v40  ;;  %v5844_v9 = vpop.f32.mrb[184].mxu0  ;;  %9503 = vmatprep.subr.bf16.mxu0 %v10072_v62  ;;  %v5732_v54 = vadd.f32 %v5731_v32, %v13097_v50  ;;  %v5733_v13 = vpop.f32.mrb[185].mxu1  ;;  %v10081_v34 = vld [vmem:[%s10580_s1 + $0x318] sm:$0xff]   ;;  %v10083_v32 = vld [vmem:[%s10580_s1 + $0x360] sm:$0xff]  }
0x1384   : > { %v5845_v4 = vadd.f32 %v5844_v9, %v13101_v58  ;;  %v5846_v14 = vpop.f32.mrb[185].mxu0  ;;  %v5734_v42 = vadd.f32 %v5733_v13, %v13107_v25  ;;  %v5735_v7 = vpop.f32.mrb[186].mxu1 }
0x1385   : > { %v5847_v8 = vadd.f32 %v5846_v14, %v13116_v1  ;;  %v5848_v39 = vpop.f32.mrb[186].mxu0  ;;  %v5736_v59 = vadd.f32 %v5735_v7, %v13097_v50  ;;  %v5737_v22 = vpop.f32.mrb[187].mxu1  ;;  %9440 = vmatpush3.bf16.msra.mxu1 %v10073_v37  ;;  %v6289_v46 = vmax.f32 %v5732_v54, 0.0 }
0x1386   : > { %v5849_v51 = vadd.f32 %v5848_v39, %v13101_v58  ;;  %v5850_v16 = vpop.f32.mrb[187].mxu0  ;;  %9504 = vmatpush3.bf16.msra.mxu0 %v10074_v24  ;;  %v5738_v29 = vadd.f32 %v5737_v22, %v13107_v25  ;;  %9441 = vmatprep.subr.bf16.mxu1 %v10075_v61  ;;  %v6291_v3 = vmax.f32 %v5845_v4, 0.0  ;;  %v6290_v41 = vmax.f32 %v5734_v42, 0.0 }
0x1387   : > { %v5851_v18 = vadd.f32 %v5850_v16, %v13116_v1  ;;  %9505 = vmatprep.subr.bf16.mxu0 %v10076_v0  ;;  %v6305_v53 = vmax.f32 %v5736_v59, 0.0  ;;  %7926 = vmatmul.mubr.bf16.gmra.mrb[36].mxu1 %v13176_v12  ;;  %v6292_v56 = vmax.f32 %v5847_v8, 0.0  ;;  %v10082_v12 = vld [vmem:[%s10580_s1 + $0x398] sm:$0xff]   ;;  %v13307_v42 = vrot.slane %v13081_v33, %v4483_v23  ;;  %v10085_v23 = vld [vmem:[%s10580_s1 + $0x320] sm:$0xff]  }
0x1388   : > { %v6307_v62 = vmax.f32 %v5849_v51, 0.0  ;;  %8023 = vmatmul.mubr.bf16.gmra.mrb[36].mxu0 %v13178_v20  ;;  %v6306_v27 = vmax.f32 %v5738_v29, 0.0  ;;  %7933 = vmatprep.mubr.bf16.mxu1 %v13200_v44  ;;  %v10084_v44 = vld [vmem:[%s10580_s1 + $0x3e0] sm:$0xff]   ;;  %v13312_v8 = vrot.slane %v13081_v33, %v4491_v52  ;;  %v13319_v22 = vrot.slane %v13081_v33, %v4487_v60 }
0x1389   : > { %v6308_v57 = vmax.f32 %v5851_v18, 0.0  ;;  %8030 = vmatprep.mubr.bf16.mxu0 %v13202_v47  ;;  %v13288_v43 = vpack.c.bf16 %v6305_v53, %v6289_v46  ;;  %9442 = vmatpush3.bf16.msra.mxu1 %v10077_v48  ;;  %v10086_v16 = vld [vmem:[%s10580_s1 + $0x3a0] sm:$0xff]   ;;  %v10089_v46 = vld [vmem:[%s10580_s1 + $0x328] sm:$0xff]  }
0x138a   : > { %v13290_v40 = vpack.c.bf16 %v6307_v62, %v6291_v3  ;;  %9506 = vmatpush3.bf16.msra.mxu0 %v10078_v55  ;;  %v13294_v36 = vpack.c.bf16 %v6306_v27, %v6290_v41  ;;  %v5741_v37 = vpop.f32.mrb[188].mxu1  ;;  %9443 = vmatprep.subr.bf16.mxu1 %v10079_v17  ;;  %v10088_v55 = vld [vmem:[%s10580_s1 + $0x3e8] sm:$0xff]   ;;  %v10091_v41 = vld [vmem:[%s10580_s1 + $0x370] sm:$0xff]  }
0x138b   : > { %v13296_v20 = vpack.c.bf16 %v6308_v57, %v6292_v56  ;;  %v5854_v24 = vpop.f32.mrb[188].mxu0  ;;  %9507 = vmatprep.subr.bf16.mxu0 %v10080_v49  ;;  %v5742_v47 = vadd.f32 %v5741_v37, %v13097_v50  ;;  %v5743_v61 = vpop.f32.mrb[189].mxu1 }
0x138c   : > { %v5855_v9 = vadd.f32 %v5854_v24, %v13101_v58  ;;  %v5856_v0 = vpop.f32.mrb[189].mxu0  ;;  %v5744_v54 = vadd.f32 %v5743_v61, %v13107_v25  ;;  %v5745_v13 = vpop.f32.mrb[190].mxu1  ;;  %v10093_v61 = vld [vmem:[%s10580_s1 + $0x330] sm:$0xff]  }
0x138d   : > { %v5857_v4 = vadd.f32 %v5856_v0, %v13116_v1  ;;  %v5858_v14 = vpop.f32.mrb[190].mxu0  ;;  %v5746_v7 = vadd.f32 %v5745_v13, %v13097_v50  ;;  %v5747_v59 = vpop.f32.mrb[191].mxu1  ;;  %9444 = vmatpush3.bf16.msra.mxu1 %v10081_v34  ;;  %v13328_v50 = vrot.slane %v13081_v33, %v4495_v28  ;;  %v6321_v29 = vmax.f32 %v5742_v47, 0.0  ;;  %v10094_v0 = vld [vmem:[%s10580_s1 + $0x3b0] sm:$0xff]   ;;  %v10095_v13 = vld [vmem:[%s10580_s1 + $0x378] sm:$0xff]  }
0x138e   : > { %v5859_v39 = vadd.f32 %v5858_v14, %v13101_v58  ;;  %v5860_v51 = vpop.f32.mrb[191].mxu0  ;;  %9508 = vmatpush3.bf16.msra.mxu0 %v10082_v12  ;;  %v5748_v48 = vadd.f32 %v5747_v59, %v13107_v25  ;;  %9445 = vmatprep.subr.bf16.mxu1 %v10083_v32  ;;  %v10087_v58 = vld [vmem:[%s10580_s1 + $0x368] sm:$0xff]   ;;  %v6323_v60 = vmax.f32 %v5855_v9, 0.0  ;;  %v6322_v25 = vmax.f32 %v5744_v54, 0.0  ;;  %v10096_v14 = vld [vmem:[%s10580_s1 + $0x3f8] sm:$0xff]  }
0x138f   : > { %v5861_v52 = vadd.f32 %v5860_v51, %v13116_v1  ;;  %9509 = vmatprep.subr.bf16.mxu0 %v10084_v44  ;;  %v6337_v18 = vmax.f32 %v5746_v7, 0.0  ;;  %7934 = vmatmul.mubr.bf16.gmra.mrb[40].mxu1 %v13196_v2  ;;  %v6324_v1 = vmax.f32 %v5857_v4, 0.0  ;;  %v10090_v2 = vld [vmem:[%s10580_s1 + $0x3a8] sm:$0xff]  }
0x1390   : > { %v6339_v17 = vmax.f32 %v5859_v39, 0.0  ;;  %8031 = vmatmul.mubr.bf16.gmra.mrb[40].mxu0 %v13198_v35  ;;  %v6338_v10 = vmax.f32 %v5748_v48, 0.0  ;;  %7941 = vmatprep.mubr.bf16.mxu1 %v13220_v19  ;;  %v10092_v19 = vld [vmem:[%s10580_s1 + $0x3f0] sm:$0xff]  }
0x1391   : > { %v6340_v28 = vmax.f32 %v5861_v52, 0.0  ;;  %8038 = vmatprep.mubr.bf16.mxu0 %v13222_v30  ;;  %v13336_v33 = vpack.c.bf16 %v6337_v18, %v6321_v29  ;;  %9446 = vmatpush3.bf16.msra.mxu1 %v10085_v23  ;;  %v10097_v29 = vld [vmem:[%s10580_s1 + $0x338] sm:$0xff]  }
0x1392   : > { %v13338_v49 = vpack.c.bf16 %v6339_v17, %v6323_v60  ;;  %9510 = vmatpush3.bf16.msra.mxu0 %v10086_v16  ;;  %v13342_v3 = vpack.c.bf16 %v6338_v10, %v6322_v25  ;;  %v5897_v53 = vpop.f32.mrb[192].mxu1  ;;  %9447 = vmatprep.subr.bf16.mxu1 %v10087_v58  ;;  %v10098_v60 = vld [vmem:[%s10580_s1 + $0x3b8] sm:$0xff]  }
0x1393   : > { %v13344_v35 = vpack.c.bf16 %v6340_v28, %v6324_v1  ;;  %v6010_v62 = vpop.f32.mrb[192].mxu0  ;;  %9511 = vmatprep.subr.bf16.mxu0 %v10088_v55  ;;  %v5898_v30 = vadd.f32 %v5897_v53, %v13307_v42  ;;  %v5899_v27 = vpop.f32.mrb[193].mxu1 }
0x1394   : > { %v6011_v56 = vadd.f32 %v6010_v62, %v13312_v8  ;;  %v6012_v57 = vpop.f32.mrb[193].mxu0  ;;  %v5900_v34 = vadd.f32 %v5899_v27, %v13319_v22  ;;  %v5901_v37 = vpop.f32.mrb[194].mxu1 }
0x1395   : > { %v6013_v12 = vadd.f32 %v6012_v57, %v13328_v50  ;;  %v6014_v24 = vpop.f32.mrb[194].mxu0  ;;  %v5902_v32 = vadd.f32 %v5901_v37, %v13307_v42  ;;  %v5903_v47 = vpop.f32.mrb[195].mxu1  ;;  %9448 = vmatpush3.bf16.msra.mxu1 %v10089_v46  ;;  %v6101_v7 = vmax.f32 %v5898_v30, 0.0 }
0x1396   : > { %v6015_v44 = vadd.f32 %v6014_v24, %v13312_v8  ;;  %v6016_v9 = vpop.f32.mrb[195].mxu0  ;;  %9512 = vmatpush3.bf16.msra.mxu0 %v10090_v2  ;;  %v5904_v54 = vadd.f32 %v5903_v47, %v13319_v22  ;;  %9449 = vmatprep.subr.bf16.mxu1 %v10091_v41  ;;  %v6103_v39 = vmax.f32 %v6011_v56, 0.0  ;;  %v6102_v23 = vmax.f32 %v5900_v34, 0.0 }
0x1397   : > { %v6017_v4 = vadd.f32 %v6016_v9, %v13328_v50  ;;  %9513 = vmatprep.subr.bf16.mxu0 %v10092_v19  ;;  %v6117_v59 = vmax.f32 %v5902_v32, 0.0  ;;  %7942 = vmatmul.mubr.bf16.gmra.mrb[44].mxu1 %v13216_v15  ;;  %v6104_v16 = vmax.f32 %v6013_v12, 0.0 }
0x1398   : > { %v6119_v51 = vmax.f32 %v6015_v44, 0.0  ;;  %8039 = vmatmul.mubr.bf16.gmra.mrb[44].mxu0 %v13218_v63  ;;  %v6118_v48 = vmax.f32 %v5904_v54, 0.0  ;;  %7949 = vmatprep.mubr.bf16.mxu1 %v13240_v26 }
0x1399   : > { %v6120_v52 = vmax.f32 %v6017_v4, 0.0  ;;  %8046 = vmatprep.mubr.bf16.mxu0 %v13242_v45  ;;  %v13364_v58 = vpack.c.bf16 %v6117_v59, %v6101_v7  ;;  %9450 = vmatpush3.bf16.msra.mxu1 %v10093_v61 }
0x139a   : > { %v13366_v55 = vpack.c.bf16 %v6119_v51, %v6103_v39  ;;  %9514 = vmatpush3.bf16.msra.mxu0 %v10094_v0  ;;  %v13370_v18 = vpack.c.bf16 %v6118_v48, %v6102_v23  ;;  %v5907_v63 = vpop.f32.mrb[196].mxu1  ;;  %9451 = vmatprep.subr.bf16.mxu1 %v10095_v13 }
0x139b   : > { %v13372_v15 = vpack.c.bf16 %v6120_v52, %v6104_v16  ;;  %v6020_v17 = vpop.f32.mrb[196].mxu0  ;;  %9515 = vmatprep.subr.bf16.mxu0 %v10096_v14  ;;  %v5908_v26 = vadd.f32 %v5907_v63, %v13307_v42  ;;  %v5909_v25 = vpop.f32.mrb[197].mxu1 }
0x139c   : > { %v6021_v45 = vadd.f32 %v6020_v17, %v13312_v8  ;;  %v6022_v1 = vpop.f32.mrb[197].mxu0  ;;  %v5910_v10 = vadd.f32 %v5909_v25, %v13319_v22  ;;  %v5911_v46 = vpop.f32.mrb[198].mxu1 }
0x139d   : > { %v6023_v28 = vadd.f32 %v6022_v1, %v13328_v50  ;;  %v6024_v2 = vpop.f32.mrb[198].mxu0  ;;  %v5912_v53 = vadd.f32 %v5911_v46, %v13307_v42  ;;  %v5913_v41 = vpop.f32.mrb[199].mxu1  ;;  %9452 = vmatpush3.bf16.msra.mxu1 %v10097_v29  ;;  %v6133_v27 = vmax.f32 %v5908_v26, 0.0 }
0x139e   : > { %v6025_v62 = vadd.f32 %v6024_v2, %v13312_v8  ;;  %v6026_v19 = vpop.f32.mrb[199].mxu0  ;;  %9516 = vmatpush3.bf16.msra.mxu0 %v10098_v60  ;;  %v5914_v30 = vadd.f32 %v5913_v41, %v13319_v22  ;;  %v6135_v57 = vmax.f32 %v6021_v45, 0.0  ;;  %v6134_v37 = vmax.f32 %v5910_v10, 0.0 }
0x139f   : > { %v6027_v56 = vadd.f32 %v6026_v19, %v13328_v50  ;;  %v6149_v34 = vmax.f32 %v5912_v53, 0.0  ;;  %7950 = vmatmul.mubr.bf16.gmra.mrb[48].mxu1 %v13236_v31  ;;  %v6136_v24 = vmax.f32 %v6023_v28, 0.0 }
0x13a0   : > { %v6151_v12 = vmax.f32 %v6025_v62, 0.0  ;;  %8047 = vmatmul.mubr.bf16.gmra.mrb[48].mxu0 %v13238_v6  ;;  %v6150_v32 = vmax.f32 %v5914_v30, 0.0  ;;  %7957 = vmatprep.mubr.bf16.mxu1 %v13266_v38 }
0x13a1   : > { %v6152_v44 = vmax.f32 %v6027_v56, 0.0  ;;  %8054 = vmatprep.mubr.bf16.mxu0 %v13268_v21  ;;  %v13386_v47 = vpack.c.bf16 %v6149_v34, %v6133_v27 }
0x13a2   : > { %v13388_v9 = vpack.c.bf16 %v6151_v12, %v6135_v57  ;;  %v13390_v61 = vpack.c.bf16 %v6150_v32, %v6134_v37  ;;  %v5917_v54 = vpop.f32.mrb[200].mxu1 }
0x13a3   : > { %v13392_v0 = vpack.c.bf16 %v6152_v44, %v6136_v24  ;;  %v6030_v31 = vpop.f32.mrb[200].mxu0  ;;  %v5918_v6 = vadd.f32 %v5917_v54, %v13307_v42  ;;  %v5919_v13 = vpop.f32.mrb[201].mxu1 }
0x13a4   : > { %v6031_v4 = vadd.f32 %v6030_v31, %v13312_v8  ;;  %v6032_v14 = vpop.f32.mrb[201].mxu0  ;;  %v5920_v38 = vadd.f32 %v5919_v13, %v13319_v22  ;;  %v5921_v7 = vpop.f32.mrb[202].mxu1 }
0x13a5   : > { %v6033_v21 = vadd.f32 %v6032_v14, %v13328_v50  ;;  %v6034_v39 = vpop.f32.mrb[202].mxu0  ;;  %v5922_v59 = vadd.f32 %v5921_v7, %v13307_v42  ;;  %v5923_v23 = vpop.f32.mrb[203].mxu1  ;;  %v6165_v29 = vmax.f32 %v5918_v6, 0.0 }
0x13a6   : > { %v6035_v51 = vadd.f32 %v6034_v39, %v13312_v8  ;;  %v6036_v16 = vpop.f32.mrb[203].mxu0  ;;  %v5924_v48 = vadd.f32 %v5923_v23, %v13319_v22  ;;  %v6167_v60 = vmax.f32 %v6031_v4, 0.0  ;;  %v6166_v26 = vmax.f32 %v5920_v38, 0.0 }
0x13a7   : > { %v6037_v52 = vadd.f32 %v6036_v16, %v13328_v50  ;;  %v6181_v63 = vmax.f32 %v5922_v59, 0.0  ;;  %7958 = vmatmul.mubr.bf16.gmra.mrb[52].mxu1 %v13260_v11  ;;  %v6168_v45 = vmax.f32 %v6033_v21, 0.0 }
0x13a8   : > { %v6183_v17 = vmax.f32 %v6035_v51, 0.0  ;;  %8055 = vmatmul.mubr.bf16.gmra.mrb[52].mxu0 %v13262_v5  ;;  %v6182_v25 = vmax.f32 %v5924_v48, 0.0  ;;  %7965 = vmatprep.mubr.bf16.mxu1 %v13294_v36 }
0x13a9   : > { %v6184_v1 = vmax.f32 %v6037_v52, 0.0  ;;  %8062 = vmatprep.mubr.bf16.mxu0 %v13296_v20  ;;  %v13406_v10 = vpack.c.bf16 %v6181_v63, %v6165_v29 }
0x13aa   : > { %v13408_v28 = vpack.c.bf16 %v6183_v17, %v6167_v60  ;;  %v13410_v46 = vpack.c.bf16 %v6182_v25, %v6166_v26  ;;  %v5927_v53 = vpop.f32.mrb[204].mxu1 }
0x13ab   : > { %v13412_v2 = vpack.c.bf16 %v6184_v1, %v6168_v45  ;;  %v6040_v11 = vpop.f32.mrb[204].mxu0  ;;  %v5928_v5 = vadd.f32 %v5927_v53, %v13307_v42  ;;  %v5929_v41 = vpop.f32.mrb[205].mxu1 }
0x13ac   : > { %v6041_v62 = vadd.f32 %v6040_v11, %v13312_v8  ;;  %v6042_v19 = vpop.f32.mrb[205].mxu0  ;;  %v5930_v36 = vadd.f32 %v5929_v41, %v13319_v22  ;;  %v5931_v30 = vpop.f32.mrb[206].mxu1 }
0x13ad   : > { %v6043_v20 = vadd.f32 %v6042_v19, %v13328_v50  ;;  %v6044_v56 = vpop.f32.mrb[206].mxu0  ;;  %v5932_v27 = vadd.f32 %v5931_v30, %v13307_v42  ;;  %v5933_v34 = vpop.f32.mrb[207].mxu1  ;;  %v6197_v32 = vmax.f32 %v5928_v5, 0.0 }
0x13ae   : > { %v6045_v57 = vadd.f32 %v6044_v56, %v13312_v8  ;;  %v6046_v12 = vpop.f32.mrb[207].mxu0  ;;  %v5934_v37 = vadd.f32 %v5933_v34, %v13319_v22  ;;  %v6199_v44 = vmax.f32 %v6041_v62, 0.0  ;;  %v6198_v6 = vmax.f32 %v5930_v36, 0.0 }
0x13af   : > { %v6047_v24 = vadd.f32 %v6046_v12, %v13328_v50  ;;  %v6213_v54 = vmax.f32 %v5932_v27, 0.0  ;;  %7966 = vmatmul.mubr.bf16.gmra.mrb[56].mxu1 %v13288_v43  ;;  %v6200_v4 = vmax.f32 %v6043_v20, 0.0 }
0x13b0   : > { %v6215_v31 = vmax.f32 %v6045_v57, 0.0  ;;  %8063 = vmatmul.mubr.bf16.gmra.mrb[56].mxu0 %v13290_v40  ;;  %v6214_v13 = vmax.f32 %v5934_v37, 0.0  ;;  %7973 = vmatprep.mubr.bf16.mxu1 %v13342_v3 }
0x13b1   : > { %v6216_v14 = vmax.f32 %v6047_v24, 0.0  ;;  %8070 = vmatprep.mubr.bf16.mxu0 %v13344_v35  ;;  %v13426_v38 = vpack.c.bf16 %v6213_v54, %v6197_v32 }
0x13b2   : > { %v13428_v21 = vpack.c.bf16 %v6215_v31, %v6199_v44  ;;  %v13430_v7 = vpack.c.bf16 %v6214_v13, %v6198_v6  ;;  %v5937_v59 = vpop.f32.mrb[208].mxu1 }
0x13b3   : > { %v13432_v39 = vpack.c.bf16 %v6216_v14, %v6200_v4  ;;  %v6050_v43 = vpop.f32.mrb[208].mxu0  ;;  %v5938_v40 = vadd.f32 %v5937_v59, %v13307_v42  ;;  %v5939_v23 = vpop.f32.mrb[209].mxu1 }
0x13b4   : > { %v6051_v51 = vadd.f32 %v6050_v43, %v13312_v8  ;;  %v6052_v16 = vpop.f32.mrb[209].mxu0  ;;  %v5940_v3 = vadd.f32 %v5939_v23, %v13319_v22  ;;  %v5941_v48 = vpop.f32.mrb[210].mxu1 }
0x13b5   : > { %v6053_v35 = vadd.f32 %v6052_v16, %v13328_v50  ;;  %v6054_v52 = vpop.f32.mrb[210].mxu0  ;;  %v5942_v29 = vadd.f32 %v5941_v48, %v13307_v42  ;;  %v5943_v63 = vpop.f32.mrb[211].mxu1  ;;  %v6229_v25 = vmax.f32 %v5938_v40, 0.0 }
0x13b6   : > { %v6055_v60 = vadd.f32 %v6054_v52, %v13312_v8  ;;  %v6056_v17 = vpop.f32.mrb[211].mxu0  ;;  %v5944_v26 = vadd.f32 %v5943_v63, %v13319_v22  ;;  %v6231_v1 = vmax.f32 %v6051_v51, 0.0  ;;  %v6230_v5 = vmax.f32 %v5940_v3, 0.0 }
0x13b7   : > { %v6057_v45 = vadd.f32 %v6056_v17, %v13328_v50  ;;  %v6245_v53 = vmax.f32 %v5942_v29, 0.0  ;;  %7974 = vmatmul.mubr.bf16.gmra.mrb[60].mxu1 %v13336_v33  ;;  %v6232_v62 = vmax.f32 %v6053_v35, 0.0 }
0x13b8   : > { %v6247_v11 = vmax.f32 %v6055_v60, 0.0  ;;  %8071 = vmatmul.mubr.bf16.gmra.mrb[60].mxu0 %v13338_v49  ;;  %v6246_v41 = vmax.f32 %v5944_v26, 0.0  ;;  %8111 = vmatprep.mubr.bf16.mxu1 %v13370_v18 }
0x13b9   : > { %v6248_v19 = vmax.f32 %v6057_v45, 0.0  ;;  %8208 = vmatprep.mubr.bf16.mxu0 %v13372_v15  ;;  %v13446_v36 = vpack.c.bf16 %v6245_v53, %v6229_v25 }
0x13ba   : > { %v13448_v20 = vpack.c.bf16 %v6247_v11, %v6231_v1  ;;  %v13450_v30 = vpack.c.bf16 %v6246_v41, %v6230_v5  ;;  %v5947_v27 = vpop.f32.mrb[212].mxu1 }
0x13bb   : > { %v13452_v56 = vpack.c.bf16 %v6248_v19, %v6232_v62  ;;  %v6060_v33 = vpop.f32.mrb[212].mxu0  ;;  %v5948_v49 = vadd.f32 %v5947_v27, %v13307_v42  ;;  %v5949_v34 = vpop.f32.mrb[213].mxu1 }
0x13bc   : > { %v6061_v57 = vadd.f32 %v6060_v33, %v13312_v8  ;;  %v6062_v12 = vpop.f32.mrb[213].mxu0  ;;  %v5950_v18 = vadd.f32 %v5949_v34, %v13319_v22  ;;  %v5951_v37 = vpop.f32.mrb[214].mxu1 }
0x13bd   : > { %v6063_v15 = vadd.f32 %v6062_v12, %v13328_v50  ;;  %v6064_v24 = vpop.f32.mrb[214].mxu0  ;;  %v5952_v32 = vadd.f32 %v5951_v37, %v13307_v42  ;;  %v5953_v54 = vpop.f32.mrb[215].mxu1  ;;  %v6261_v13 = vmax.f32 %v5948_v49, 0.0 }
0x13be   : > { %v6065_v44 = vadd.f32 %v6064_v24, %v13312_v8  ;;  %v6066_v31 = vpop.f32.mrb[215].mxu0  ;;  %v5954_v6 = vadd.f32 %v5953_v54, %v13319_v22  ;;  %v6263_v14 = vmax.f32 %v6061_v57, 0.0  ;;  %v6262_v40 = vmax.f32 %v5950_v18, 0.0 }
0x13bf   : > { %v6067_v4 = vadd.f32 %v6066_v31, %v13328_v50  ;;  %v6277_v59 = vmax.f32 %v5952_v32, 0.0  ;;  %8112 = vmatmul.mubr.bf16.vlgmr.msra.gmra.mrb[64].mxu1 %v13364_v58  ;;  %v6264_v51 = vmax.f32 %v6063_v15, 0.0 }
0x13c0   : > { %v6279_v43 = vmax.f32 %v6065_v44, 0.0  ;;  %8209 = vmatmul.mubr.bf16.vlgmr.msra.gmra.mrb[64].mxu0 %v13366_v55  ;;  %v6278_v23 = vmax.f32 %v5954_v6, 0.0  ;;  %8119 = vmatprep.mubr.bf16.mxu1 %v13390_v61 }
0x13c1   : > { %v6280_v16 = vmax.f32 %v6067_v4, 0.0  ;;  %8216 = vmatprep.mubr.bf16.mxu0 %v13392_v0  ;;  %v13466_v3 = vpack.c.bf16 %v6277_v59, %v6261_v13 }
0x13c2   : > { %v13468_v35 = vpack.c.bf16 %v6279_v43, %v6263_v14  ;;  %v13470_v48 = vpack.c.bf16 %v6278_v23, %v6262_v40  ;;  %v5957_v29 = vpop.f32.mrb[216].mxu1 }
0x13c3   : > { %v13472_v52 = vpack.c.bf16 %v6280_v16, %v6264_v51  ;;  %v6070_v58 = vpop.f32.mrb[216].mxu0  ;;  %v5958_v55 = vadd.f32 %v5957_v29, %v13307_v42  ;;  %v5959_v63 = vpop.f32.mrb[217].mxu1 }
0x13c4   : > { %v6071_v60 = vadd.f32 %v6070_v58, %v13312_v8  ;;  %v6072_v17 = vpop.f32.mrb[217].mxu0  ;;  %v5960_v61 = vadd.f32 %v5959_v63, %v13319_v22  ;;  %v5961_v26 = vpop.f32.mrb[218].mxu1 }
0x13c5   : > { %v6073_v0 = vadd.f32 %v6072_v17, %v13328_v50  ;;  %v6074_v45 = vpop.f32.mrb[218].mxu0  ;;  %v5962_v25 = vadd.f32 %v5961_v26, %v13307_v42  ;;  %v5963_v53 = vpop.f32.mrb[219].mxu1  ;;  %v6293_v41 = vmax.f32 %v5958_v55, 0.0 }
0x13c6   : > { %v6075_v1 = vadd.f32 %v6074_v45, %v13312_v8  ;;  %v6076_v11 = vpop.f32.mrb[219].mxu0  ;;  %v5964_v5 = vadd.f32 %v5963_v53, %v13319_v22  ;;  %v6295_v19 = vmax.f32 %v6071_v60, 0.0  ;;  %v6294_v49 = vmax.f32 %v5960_v61, 0.0 }
0x13c7   : > { %v6077_v62 = vadd.f32 %v6076_v11, %v13328_v50  ;;  %v6309_v27 = vmax.f32 %v5962_v25, 0.0  ;;  %8120 = vmatmul.mubr.bf16.gmra.mrb[68].mxu1 %v13386_v47  ;;  %v6296_v57 = vmax.f32 %v6073_v0, 0.0 }
0x13c8   : > { %v6311_v33 = vmax.f32 %v6075_v1, 0.0  ;;  %8217 = vmatmul.mubr.bf16.gmra.mrb[68].mxu0 %v13388_v9  ;;  %v6310_v34 = vmax.f32 %v5964_v5, 0.0  ;;  %8127 = vmatprep.mubr.bf16.mxu1 %v13410_v46 }
0x13c9   : > { %v6312_v12 = vmax.f32 %v6077_v62, 0.0  ;;  %8224 = vmatprep.mubr.bf16.mxu0 %v13412_v2  ;;  %v13486_v18 = vpack.c.bf16 %v6309_v27, %v6293_v41 }
0x13ca   : > { %v13488_v15 = vpack.c.bf16 %v6311_v33, %v6295_v19  ;;  %v13490_v37 = vpack.c.bf16 %v6310_v34, %v6294_v49  ;;  %v5967_v32 = vpop.f32.mrb[220].mxu1 }
0x13cb   : > { %v13492_v24 = vpack.c.bf16 %v6312_v12, %v6296_v57  ;;  %v6080_v47 = vpop.f32.mrb[220].mxu0  ;;  %v5968_v9 = vadd.f32 %v5967_v32, %v13307_v42  ;;  %v5969_v54 = vpop.f32.mrb[221].mxu1 }
0x13cc   : > { %v6081_v44 = vadd.f32 %v6080_v47, %v13312_v8  ;;  %v6082_v31 = vpop.f32.mrb[221].mxu0  ;;  %v5970_v46 = vadd.f32 %v5969_v54, %v13319_v22  ;;  %v5971_v6 = vpop.f32.mrb[222].mxu1 }
0x13cd   : > { %v6083_v2 = vadd.f32 %v6082_v31, %v13328_v50  ;;  %v6084_v4 = vpop.f32.mrb[222].mxu0  ;;  %v5972_v13 = vadd.f32 %v5971_v6, %v13307_v42  ;;  %v5973_v59 = vpop.f32.mrb[223].mxu1  ;;  %v6325_v23 = vmax.f32 %v5968_v9, 0.0 }
0x13ce   : > { %v6085_v14 = vadd.f32 %v6084_v4, %v13312_v8  ;;  %v6086_v43 = vpop.f32.mrb[223].mxu0  ;;  %v5974_v40 = vadd.f32 %v5973_v59, %v13319_v22  ;;  %v6327_v16 = vmax.f32 %v6081_v44, 0.0  ;;  %v6326_v55 = vmax.f32 %v5970_v46, 0.0 }
0x13cf   : > { %v6087_v51 = vadd.f32 %v6086_v43, %v13328_v50  ;;  %v6341_v29 = vmax.f32 %v5972_v13, 0.0  ;;  %8128 = vmatmul.mubr.bf16.gmra.mrb[72].mxu1 %v13406_v10  ;;  %v6328_v60 = vmax.f32 %v6083_v2, 0.0 }
0x13d0   : > { %v6343_v58 = vmax.f32 %v6085_v14, 0.0  ;;  %8225 = vmatmul.mubr.bf16.gmra.mrb[72].mxu0 %v13408_v28  ;;  %v6342_v63 = vmax.f32 %v5974_v40, 0.0  ;;  %8135 = vmatprep.mubr.bf16.mxu1 %v13430_v7 }
0x13d1   : > { %v6344_v42 = vmax.f32 %v6087_v51, 0.0  ;;  %8232 = vmatprep.mubr.bf16.mxu0 %v13432_v39  ;;  %v13506_v8 = vpack.c.bf16 %v6341_v29, %v6325_v23 }
0x13d2   : > { %v13508_v22 = vpack.c.bf16 %v6343_v58, %v6327_v16  ;;  %v13510_v50 = vpack.c.bf16 %v6342_v63, %v6326_v55  ;;  %v9069_v61 = vpop.f32.mrb[224].mxu1 }
0x13d3   : > { %v13512_v17 = vpack.c.bf16 %v6344_v42, %v6328_v60  ;;  %v9133_v10 = vpop.f32.mrb[224].mxu0  ;;  %v9070_v0 = vpop.f32.mrb[225].mxu1 }
0x13d4   : > { %v9134_v28 = vpop.f32.mrb[225].mxu0  ;;  %v9071_v26 = vadd.f32 %v9070_v0, %v9069_v61  ;;  %v9072_v25 = vpop.f32.mrb[226].mxu1 }
0x13d5   : > { %v9135_v45 = vadd.f32 %v9134_v28, %v9133_v10  ;;  %v9136_v1 = vpop.f32.mrb[226].mxu0  ;;  %v9073_v53 = vpop.f32.mrb[227].mxu1 }
0x13d6   : > { %v9137_v7 = vpop.f32.mrb[227].mxu0  ;;  %v9074_v39 = vadd.f32 %v9073_v53, %v9072_v25 }
0x13d7   : > { %v13514_v11 = vadd.f32 %v9135_v45, %v9071_v26  ;;  %v9138_v5 = vadd.f32 %v9137_v7, %v9136_v1  ;;  %8136 = vmatmul.mubr.bf16.gmra.mrb[76].mxu1 %v13426_v38 }
0x13d8   : > { %8233 = vmatmul.mubr.bf16.gmra.mrb[76].mxu0 %v13428_v21  ;;  %8143 = vmatprep.mubr.bf16.mxu1 %v13450_v30 }
0x13d9   : > { %v13518_v62 = vadd.f32 %v9138_v5, %v9074_v39  ;;  %8240 = vmatprep.mubr.bf16.mxu0 %v13452_v56 }
0x13da   : > { %v9075_v41 = vpop.f32.mrb[228].mxu1 }
0x13db   : > { %v9139_v19 = vpop.f32.mrb[228].mxu0  ;;  %v9076_v27 = vpop.f32.mrb[229].mxu1 }
0x13dc   : > { %v9140_v33 = vpop.f32.mrb[229].mxu0  ;;  %v9077_v49 = vadd.f32 %v9076_v27, %v9075_v41  ;;  %v9078_v34 = vpop.f32.mrb[230].mxu1 }
0x13dd   : > { %v9141_v57 = vadd.f32 %v9140_v33, %v9139_v19  ;;  %v9142_v12 = vpop.f32.mrb[230].mxu0  ;;  %v9079_v32 = vpop.f32.mrb[231].mxu1 }
0x13de   : > { %v9143_v47 = vpop.f32.mrb[231].mxu0  ;;  %v9080_v38 = vadd.f32 %v9079_v32, %v9078_v34 }
0x13df   : > { %v13522_v9 = vadd.f32 %v9141_v57, %v9077_v49  ;;  %v9144_v21 = vadd.f32 %v9143_v47, %v9142_v12  ;;  %8144 = vmatmul.mubr.bf16.gmra.mrb[80].mxu1 %v13446_v36 }
0x13e0   : > { %8241 = vmatmul.mubr.bf16.gmra.mrb[80].mxu0 %v13448_v20  ;;  %8151 = vmatprep.mubr.bf16.mxu1 %v13470_v48 }
0x13e1   : > { %v13526_v30 = vadd.f32 %v9144_v21, %v9080_v38  ;;  %8248 = vmatprep.mubr.bf16.mxu0 %v13472_v52 }
0x13e2   : > { %v9081_v56 = vpop.f32.mrb[232].mxu1 }
0x13e3   : > { %v9145_v44 = vpop.f32.mrb[232].mxu0  ;;  %v9082_v54 = vpop.f32.mrb[233].mxu1 }
0x13e4   : > { %v9146_v31 = vpop.f32.mrb[233].mxu0  ;;  %v9083_v46 = vadd.f32 %v9082_v54, %v9081_v56  ;;  %v9084_v6 = vpop.f32.mrb[234].mxu1 }
0x13e5   : > { %v9147_v2 = vadd.f32 %v9146_v31, %v9145_v44  ;;  %v9148_v4 = vpop.f32.mrb[234].mxu0  ;;  %v9085_v13 = vpop.f32.mrb[235].mxu1 }
0x13e6   : > { %v9149_v14 = vpop.f32.mrb[235].mxu0  ;;  %v9086_v36 = vadd.f32 %v9085_v13, %v9084_v6 }
0x13e7   : > { %v13530_v59 = vadd.f32 %v9147_v2, %v9083_v46  ;;  %v9150_v20 = vadd.f32 %v9149_v14, %v9148_v4  ;;  %8152 = vmatmul.mubr.bf16.gmra.mrb[84].mxu1 %v13466_v3 }
0x13e8   : > { %8249 = vmatmul.mubr.bf16.gmra.mrb[84].mxu0 %v13468_v35  ;;  %8159 = vmatprep.mubr.bf16.mxu1 %v13490_v37 }
0x13e9   : > { %v13534_v48 = vadd.f32 %v9150_v20, %v9086_v36  ;;  %8256 = vmatprep.mubr.bf16.mxu0 %v13492_v24 }
0x13ea   : > { %v9087_v52 = vpop.f32.mrb[236].mxu1 }
0x13eb   : > { %v9151_v43 = vpop.f32.mrb[236].mxu0  ;;  %v9088_v40 = vpop.f32.mrb[237].mxu1 }
0x13ec   : > { %v9152_v51 = vpop.f32.mrb[237].mxu0  ;;  %v9089_v23 = vadd.f32 %v9088_v40, %v9087_v52  ;;  %v9090_v29 = vpop.f32.mrb[238].mxu1 }
0x13ed   : > { %v9153_v16 = vadd.f32 %v9152_v51, %v9151_v43  ;;  %v9154_v58 = vpop.f32.mrb[238].mxu0  ;;  %v9091_v55 = vpop.f32.mrb[239].mxu1 }
0x13ee   : > { %v9155_v60 = vpop.f32.mrb[239].mxu0  ;;  %v9092_v3 = vadd.f32 %v9091_v55, %v9090_v29 }
0x13ef   : > { %v13538_v63 = vadd.f32 %v9153_v16, %v9089_v23  ;;  %v9156_v35 = vadd.f32 %v9155_v60, %v9154_v58  ;;  %8160 = vmatmul.mubr.bf16.gmra.mrb[88].mxu1 %v13486_v18 }
0x13f0   : > { %8257 = vmatmul.mubr.bf16.gmra.mrb[88].mxu0 %v13488_v15  ;;  %8167 = vmatprep.mubr.bf16.mxu1 %v13510_v50 }
0x13f1   : > { %v13542_v37 = vadd.f32 %v9156_v35, %v9092_v3  ;;  %8264 = vmatprep.mubr.bf16.mxu0 %v13512_v17 }
0x13f2   : > { %v9093_v24 = vpop.f32.mrb[240].mxu1 }
0x13f3   : > { %v9157_v42 = vpop.f32.mrb[240].mxu0  ;;  %v9094_v61 = vpop.f32.mrb[241].mxu1 }
0x13f4   : > { %v9158_v10 = vpop.f32.mrb[241].mxu0  ;;  %v9095_v0 = vadd.f32 %v9094_v61, %v9093_v24  ;;  %v9096_v26 = vpop.f32.mrb[242].mxu1 }
0x13f5   : > { %v9159_v28 = vadd.f32 %v9158_v10, %v9157_v42  ;;  %v9160_v45 = vpop.f32.mrb[242].mxu0  ;;  %v9097_v25 = vpop.f32.mrb[243].mxu1 }
0x13f6   : > { %v9161_v1 = vpop.f32.mrb[243].mxu0  ;;  %v9098_v18 = vadd.f32 %v9097_v25, %v9096_v26 }
0x13f7   : > { %v13546_v53 = vadd.f32 %v9159_v28, %v9095_v0  ;;  %v9162_v15 = vadd.f32 %v9161_v1, %v9160_v45  ;;  %8168 = vmatmul.mubr.bf16.gmra.mrb[92].mxu1 %v13506_v8 }
0x13f8   : > { %8265 = vmatmul.mubr.bf16.gmra.mrb[92].mxu0 %v13508_v22 }
0x13f9   : > { %v13550_v50 = vadd.f32 %v9162_v15, %v9098_v18 }
0x13fa   : > { %v9099_v17 = vpop.f32.mrb[244].mxu1 }
0x13fb   : > { %v9163_v7 = vpop.f32.mrb[244].mxu0  ;;  %v9100_v39 = vpop.f32.mrb[245].mxu1 }
0x13fc   : > { %v9164_v5 = vpop.f32.mrb[245].mxu0  ;;  %v9101_v41 = vadd.f32 %v9100_v39, %v9099_v17  ;;  %v9102_v27 = vpop.f32.mrb[246].mxu1 }
0x13fd   : > { %v9165_v19 = vadd.f32 %v9164_v5, %v9163_v7  ;;  %v9166_v33 = vpop.f32.mrb[246].mxu0  ;;  %v9103_v49 = vpop.f32.mrb[247].mxu1 }
0x13fe   : > { %v9167_v57 = vpop.f32.mrb[247].mxu0  ;;  %v9104_v12 = vadd.f32 %v9103_v49, %v9102_v27 }
0x13ff   : > { %v13552_v34 = vadd.f32 %v9165_v19, %v9101_v41  ;;  %v9168_v32 = vadd.f32 %v9167_v57, %v9166_v33 }
0x1401   : > { %v13554_v47 = vadd.f32 %v9168_v32, %v9104_v12 }
0x1402   : > { %v9105_v8 = vpop.f32.mrb[248].mxu1 }
0x1403   : > { %v9169_v22 = vpop.f32.mrb[248].mxu0  ;;  %v9106_v38 = vpop.f32.mrb[249].mxu1 }
0x1404   : > { %v9170_v21 = vpop.f32.mrb[249].mxu0  ;;  %v9107_v56 = vadd.f32 %v9106_v38, %v9105_v8  ;;  %v9108_v54 = vpop.f32.mrb[250].mxu1 }
0x1405   : > { %v9171_v44 = vadd.f32 %v9170_v21, %v9169_v22  ;;  %v9172_v31 = vpop.f32.mrb[250].mxu0  ;;  %v9109_v46 = vpop.f32.mrb[251].mxu1 }
0x1406   : > { %v9173_v2 = vpop.f32.mrb[251].mxu0  ;;  %v9110_v4 = vadd.f32 %v9109_v46, %v9108_v54 }
0x1407   : > { %v13556_v6 = vadd.f32 %v9171_v44, %v9107_v56  ;;  %v9174_v13 = vadd.f32 %v9173_v2, %v9172_v31 }
0x1409   : > { %v13558_v14 = vadd.f32 %v9174_v13, %v9110_v4 }
0x140a   : > { %v9111_v36 = vpop.f32.mrb[252].mxu1 }
0x140b   : > { %v9175_v20 = vpop.f32.mrb[252].mxu0  ;;  %v9112_v52 = vpop.f32.mrb[253].mxu1 }
0x140c   : > { %v9176_v43 = vpop.f32.mrb[253].mxu0  ;;  %v9113_v40 = vadd.f32 %v9112_v52, %v9111_v36  ;;  %v9114_v23 = vpop.f32.mrb[254].mxu1 }
0x140d   : > { %v9177_v51 = vadd.f32 %v9176_v43, %v9175_v20  ;;  %v9178_v16 = vpop.f32.mrb[254].mxu0  ;;  %v9115_v29 = vpop.f32.mrb[255].mxu1 }
0x140e   : > { %v9179_v58 = vpop.f32.mrb[255].mxu0  ;;  %v9116_v60 = vadd.f32 %v9115_v29, %v9114_v23 }
0x140f   : > { %v13560_v55 = vadd.f32 %v9177_v51, %v9113_v40  ;;  %v9180_v3 = vadd.f32 %v9179_v58, %v9178_v16 }
0x1411   : > { %v13562_v35 = vadd.f32 %v9180_v3, %v9116_v60 }
0x1412   : > { %v9197_v24 = vpop.f32.mrb[0].mxu1 }
0x1413   : > { %v9261_v42 = vpop.f32.mrb[0].mxu0  ;;  %v9198_v61 = vpop.f32.mrb[1].mxu1 }
0x1414   : > { %v9262_v10 = vpop.f32.mrb[1].mxu0  ;;  %v9199_v0 = vadd.f32 %v9198_v61, %v9197_v24  ;;  %v9200_v26 = vpop.f32.mrb[2].mxu1 }
0x1415   : > { %v9263_v28 = vadd.f32 %v9262_v10, %v9261_v42  ;;  %v9264_v45 = vpop.f32.mrb[2].mxu0  ;;  %v9201_v25 = vpop.f32.mrb[3].mxu1 }
0x1416   : > { %v9265_v1 = vpop.f32.mrb[3].mxu0  ;;  %v7726_v18 = vadd.f32 %v9199_v0, %v13514_v11  ;;  %v9202_v15 = vadd.f32 %v9201_v25, %v9200_v26 }
0x1417   : > { %v9266_v17 = vadd.f32 %v9265_v1, %v9264_v45 }
0x1418   : > { %v13565_v7 = vadd.f32 %v9263_v28, %v7726_v18  ;;  %v7729_v39 = vadd.f32 %v9202_v15, %v13518_v62 }
0x141a   : > { %v13568_v5 = vadd.f32 %v9266_v17, %v7729_v39  ;;  %v9203_v41 = vpop.f32.mrb[4].mxu1 }
0x141b   : > { %v9267_v19 = vpop.f32.mrb[4].mxu0  ;;  %v9204_v27 = vpop.f32.mrb[5].mxu1 }
0x141c   : > { %v9268_v33 = vpop.f32.mrb[5].mxu0  ;;  %v9205_v49 = vadd.f32 %v9204_v27, %v9203_v41  ;;  %v9206_v12 = vpop.f32.mrb[6].mxu1 }
0x141d   : > { %v9269_v57 = vadd.f32 %v9268_v33, %v9267_v19  ;;  %v9270_v32 = vpop.f32.mrb[6].mxu0  ;;  %v9207_v8 = vpop.f32.mrb[7].mxu1 }
0x141e   : > { %v9271_v22 = vpop.f32.mrb[7].mxu0  ;;  %v7734_v11 = vadd.f32 %v9205_v49, %v13522_v9  ;;  %v9208_v38 = vadd.f32 %v9207_v8, %v9206_v12 }
0x141f   : > { %v9272_v21 = vadd.f32 %v9271_v22, %v9270_v32 }
0x1420   : > { %v13571_v56 = vadd.f32 %v9269_v57, %v7734_v11  ;;  %v7737_v62 = vadd.f32 %v9208_v38, %v13526_v30 }
0x1422   : > { %v13574_v44 = vadd.f32 %v9272_v21, %v7737_v62  ;;  %v9209_v54 = vpop.f32.mrb[8].mxu1 }
0x1423   : > { %v9273_v31 = vpop.f32.mrb[8].mxu0  ;;  %v9210_v46 = vpop.f32.mrb[9].mxu1 }
0x1424   : > { %v9274_v2 = vpop.f32.mrb[9].mxu0  ;;  %v9211_v4 = vadd.f32 %v9210_v46, %v9209_v54  ;;  %v9212_v36 = vpop.f32.mrb[10].mxu1 }
0x1425   : > { %v9275_v13 = vadd.f32 %v9274_v2, %v9273_v31  ;;  %v9276_v20 = vpop.f32.mrb[10].mxu0  ;;  %v9213_v52 = vpop.f32.mrb[11].mxu1 }
0x1426   : > { %v9277_v43 = vpop.f32.mrb[11].mxu0  ;;  %v7742_v9 = vadd.f32 %v9211_v4, %v13530_v59  ;;  %v9214_v40 = vadd.f32 %v9213_v52, %v9212_v36 }
0x1427   : > { %v9278_v51 = vadd.f32 %v9277_v43, %v9276_v20 }
0x1428   : > { %v13577_v23 = vadd.f32 %v9275_v13, %v7742_v9  ;;  %v7745_v30 = vadd.f32 %v9214_v40, %v13534_v48 }
0x142a   : > { %v13580_v16 = vadd.f32 %v9278_v51, %v7745_v30  ;;  %v9215_v29 = vpop.f32.mrb[12].mxu1 }
0x142b   : > { %v9279_v58 = vpop.f32.mrb[12].mxu0  ;;  %v9216_v60 = vpop.f32.mrb[13].mxu1 }
0x142c   : > { %v9280_v3 = vpop.f32.mrb[13].mxu0  ;;  %v9217_v24 = vadd.f32 %v9216_v60, %v9215_v29  ;;  %v9218_v61 = vpop.f32.mrb[14].mxu1 }
0x142d   : > { %v9281_v42 = vadd.f32 %v9280_v3, %v9279_v58  ;;  %v9282_v10 = vpop.f32.mrb[14].mxu0  ;;  %v9219_v0 = vpop.f32.mrb[15].mxu1 }
0x142e   : > { %v9283_v28 = vpop.f32.mrb[15].mxu0  ;;  %v7750_v59 = vadd.f32 %v9217_v24, %v13538_v63  ;;  %v9220_v26 = vadd.f32 %v9219_v0, %v9218_v61 }
0x142f   : > { %v9284_v45 = vadd.f32 %v9283_v28, %v9282_v10 }
0x1430   : > { %v13583_v25 = vadd.f32 %v9281_v42, %v7750_v59  ;;  %v7753_v48 = vadd.f32 %v9220_v26, %v13542_v37 }
0x1432   : > { %v13586_v1 = vadd.f32 %v9284_v45, %v7753_v48  ;;  %v9221_v18 = vpop.f32.mrb[16].mxu1 }
0x1433   : > { %v9285_v15 = vpop.f32.mrb[16].mxu0  ;;  %v9222_v17 = vpop.f32.mrb[17].mxu1 }
0x1434   : > { %v9286_v39 = vpop.f32.mrb[17].mxu0  ;;  %v9223_v41 = vadd.f32 %v9222_v17, %v9221_v18  ;;  %v9224_v27 = vpop.f32.mrb[18].mxu1 }
0x1435   : > { %v9287_v19 = vadd.f32 %v9286_v39, %v9285_v15  ;;  %v9288_v33 = vpop.f32.mrb[18].mxu0  ;;  %v9225_v49 = vpop.f32.mrb[19].mxu1 }
0x1436   : > { %v9289_v57 = vpop.f32.mrb[19].mxu0  ;;  %v7758_v63 = vadd.f32 %v9223_v41, %v13546_v53  ;;  %v9226_v12 = vadd.f32 %v9225_v49, %v9224_v27 }
0x1437   : > { %v9290_v32 = vadd.f32 %v9289_v57, %v9288_v33 }
0x1438   : > { %v13589_v8 = vadd.f32 %v9287_v19, %v7758_v63  ;;  %v7761_v37 = vadd.f32 %v9226_v12, %v13550_v50 }
0x143a   : > { %v13592_v22 = vadd.f32 %v9290_v32, %v7761_v37  ;;  %v9227_v11 = vpop.f32.mrb[20].mxu1 }
0x143b   : > { %v9291_v38 = vpop.f32.mrb[20].mxu0  ;;  %v9228_v21 = vpop.f32.mrb[21].mxu1 }
0x143c   : > { %v9292_v62 = vpop.f32.mrb[21].mxu0  ;;  %v9229_v54 = vadd.f32 %v9228_v21, %v9227_v11  ;;  %v9230_v46 = vpop.f32.mrb[22].mxu1 }
0x143d   : > { %v9293_v31 = vadd.f32 %v9292_v62, %v9291_v38  ;;  %v9294_v2 = vpop.f32.mrb[22].mxu0  ;;  %v9231_v4 = vpop.f32.mrb[23].mxu1 }
0x143e   : > { %v9295_v13 = vpop.f32.mrb[23].mxu0  ;;  %v7766_v53 = vadd.f32 %v9229_v54, %v13552_v34  ;;  %v9232_v36 = vadd.f32 %v9231_v4, %v9230_v46 }
0x143f   : > { %v9296_v20 = vadd.f32 %v9295_v13, %v9294_v2 }
0x1440   : > { %v13595_v52 = vadd.f32 %v9293_v31, %v7766_v53  ;;  %v7769_v50 = vadd.f32 %v9232_v36, %v13554_v47 }
0x1442   : > { %v13598_v43 = vadd.f32 %v9296_v20, %v7769_v50  ;;  %v9233_v9 = vpop.f32.mrb[24].mxu1 }
0x1443   : > { %v9297_v40 = vpop.f32.mrb[24].mxu0  ;;  %v9234_v51 = vpop.f32.mrb[25].mxu1 }
0x1444   : > { %v9298_v30 = vpop.f32.mrb[25].mxu0  ;;  %v9235_v29 = vadd.f32 %v9234_v51, %v9233_v9  ;;  %v9236_v60 = vpop.f32.mrb[26].mxu1 }
0x1445   : > { %v9299_v58 = vadd.f32 %v9298_v30, %v9297_v40  ;;  %v9300_v3 = vpop.f32.mrb[26].mxu0  ;;  %v9237_v24 = vpop.f32.mrb[27].mxu1 }
0x1446   : > { %v9301_v42 = vpop.f32.mrb[27].mxu0  ;;  %v7774_v34 = vadd.f32 %v9235_v29, %v13556_v6  ;;  %v9238_v61 = vadd.f32 %v9237_v24, %v9236_v60 }
0x1447   : > { %v9302_v10 = vadd.f32 %v9301_v42, %v9300_v3 }
0x1448   : > { %v13601_v0 = vadd.f32 %v9299_v58, %v7774_v34  ;;  %v7777_v47 = vadd.f32 %v9238_v61, %v13558_v14 }
0x144a   : > { %v13604_v28 = vadd.f32 %v9302_v10, %v7777_v47  ;;  %v9239_v59 = vpop.f32.mrb[28].mxu1 }
0x144b   : > { %v9303_v26 = vpop.f32.mrb[28].mxu0  ;;  %v9240_v45 = vpop.f32.mrb[29].mxu1 }
0x144c   : > { %v9304_v48 = vpop.f32.mrb[29].mxu0  ;;  %v9241_v18 = vadd.f32 %v9240_v45, %v9239_v59  ;;  %v9242_v17 = vpop.f32.mrb[30].mxu1 }
0x144d   : > { %v9305_v15 = vadd.f32 %v9304_v48, %v9303_v26  ;;  %v9306_v39 = vpop.f32.mrb[30].mxu0  ;;  %v9243_v41 = vpop.f32.mrb[31].mxu1 }
0x144e   : > { %v9307_v19 = vpop.f32.mrb[31].mxu0  ;;  %v7782_v6 = vadd.f32 %v9241_v18, %v13560_v55  ;;  %v9244_v27 = vadd.f32 %v9243_v41, %v9242_v17 }
0x144f   : > { %v9308_v33 = vadd.f32 %v9307_v19, %v9306_v39 }
0x1450   : > { %v13607_v49 = vadd.f32 %v9305_v15, %v7782_v6  ;;  %v7785_v14 = vadd.f32 %v9244_v27, %v13562_v35 }
0x1452   : > { %v13610_v57 = vadd.f32 %v9308_v33, %v7785_v14  ;;  %v9325_v63 = vpop.f32.mrb[32].mxu1 }
0x1453   : > { %v9389_v12 = vpop.f32.mrb[32].mxu0  ;;  %v9326_v32 = vpop.f32.mrb[33].mxu1 }
0x1454   : > { %v9390_v37 = vpop.f32.mrb[33].mxu0  ;;  %v9327_v11 = vadd.f32 %v9326_v32, %v9325_v63  ;;  %v9328_v21 = vpop.f32.mrb[34].mxu1 }
0x1455   : > { %v9391_v38 = vadd.f32 %v9390_v37, %v9389_v12  ;;  %v9392_v62 = vpop.f32.mrb[34].mxu0  ;;  %v9329_v54 = vpop.f32.mrb[35].mxu1 }
0x1456   : > { %v9393_v31 = vpop.f32.mrb[35].mxu0  ;;  %v7920_v55 = vadd.f32 %v9327_v11, %v13565_v7  ;;  %v9330_v46 = vadd.f32 %v9329_v54, %v9328_v21 }
0x1457   : > { %v9394_v2 = vadd.f32 %v9393_v31, %v9392_v62 }
0x1458   : > { %v13613_v4 = vadd.f32 %v9391_v38, %v7920_v55  ;;  %v7923_v35 = vadd.f32 %v9330_v46, %v13568_v5 }
0x145a   : > { %v13616_v13 = vadd.f32 %v9394_v2, %v7923_v35  ;;  %v9331_v53 = vpop.f32.mrb[36].mxu1 }
0x145b   : > { %v9395_v36 = vpop.f32.mrb[36].mxu0  ;;  %v9332_v20 = vpop.f32.mrb[37].mxu1 }
0x145c   : > { %v9396_v50 = vpop.f32.mrb[37].mxu0  ;;  %v9333_v9 = vadd.f32 %v9332_v20, %v9331_v53  ;;  %v9334_v51 = vpop.f32.mrb[38].mxu1 }
0x145d   : > { %v9397_v40 = vadd.f32 %v9396_v50, %v9395_v36  ;;  %v9398_v30 = vpop.f32.mrb[38].mxu0  ;;  %v9335_v29 = vpop.f32.mrb[39].mxu1 }
0x145e   : > { %v9399_v58 = vpop.f32.mrb[39].mxu0  ;;  %v7928_v7 = vadd.f32 %v9333_v9, %v13571_v56  ;;  %v9336_v60 = vadd.f32 %v9335_v29, %v9334_v51 }
0x145f   : > { %v9400_v3 = vadd.f32 %v9399_v58, %v9398_v30 }
0x1460   : > { %v13619_v24 = vadd.f32 %v9397_v40, %v7928_v7  ;;  %v7931_v5 = vadd.f32 %v9336_v60, %v13574_v44 }
0x1462   : > { %v13622_v42 = vadd.f32 %v9400_v3, %v7931_v5  ;;  %v9337_v34 = vpop.f32.mrb[40].mxu1 }
0x1463   : > { %v9401_v61 = vpop.f32.mrb[40].mxu0  ;;  %v9338_v10 = vpop.f32.mrb[41].mxu1 }
0x1464   : > { %v9402_v47 = vpop.f32.mrb[41].mxu0  ;;  %v9339_v59 = vadd.f32 %v9338_v10, %v9337_v34  ;;  %v9340_v45 = vpop.f32.mrb[42].mxu1 }
0x1465   : > { %v9403_v26 = vadd.f32 %v9402_v47, %v9401_v61  ;;  %v9404_v48 = vpop.f32.mrb[42].mxu0  ;;  %v9341_v18 = vpop.f32.mrb[43].mxu1 }
0x1466   : > { %v9405_v15 = vpop.f32.mrb[43].mxu0  ;;  %v7936_v56 = vadd.f32 %v9339_v59, %v13577_v23  ;;  %v9342_v17 = vadd.f32 %v9341_v18, %v9340_v45 }
0x1467   : > { %v9406_v39 = vadd.f32 %v9405_v15, %v9404_v48 }
0x1468   : > { %v13625_v41 = vadd.f32 %v9403_v26, %v7936_v56  ;;  %v7939_v44 = vadd.f32 %v9342_v17, %v13580_v16 }
0x146a   : > { %v13628_v19 = vadd.f32 %v9406_v39, %v7939_v44  ;;  %v9343_v6 = vpop.f32.mrb[44].mxu1 }
0x146b   : > { %v9407_v27 = vpop.f32.mrb[44].mxu0  ;;  %v9344_v33 = vpop.f32.mrb[45].mxu1 }
0x146c   : > { %v9408_v14 = vpop.f32.mrb[45].mxu0  ;;  %v9345_v63 = vadd.f32 %v9344_v33, %v9343_v6  ;;  %v9346_v32 = vpop.f32.mrb[46].mxu1 }
0x146d   : > { %v9409_v12 = vadd.f32 %v9408_v14, %v9407_v27  ;;  %v9410_v37 = vpop.f32.mrb[46].mxu0  ;;  %v9347_v11 = vpop.f32.mrb[47].mxu1 }
0x146e   : > { %v9411_v38 = vpop.f32.mrb[47].mxu0  ;;  %v7944_v23 = vadd.f32 %v9345_v63, %v13583_v25  ;;  %v9348_v21 = vadd.f32 %v9347_v11, %v9346_v32 }
0x146f   : > { %v9412_v62 = vadd.f32 %v9411_v38, %v9410_v37 }
0x1470   : > { %v13631_v54 = vadd.f32 %v9409_v12, %v7944_v23  ;;  %v7947_v16 = vadd.f32 %v9348_v21, %v13586_v1 }
0x1472   : > { %v13634_v31 = vadd.f32 %v9412_v62, %v7947_v16  ;;  %v9349_v55 = vpop.f32.mrb[48].mxu1 }
0x1473   : > { %v9413_v46 = vpop.f32.mrb[48].mxu0  ;;  %v9350_v2 = vpop.f32.mrb[49].mxu1 }
0x1474   : > { %v9414_v35 = vpop.f32.mrb[49].mxu0  ;;  %v9351_v53 = vadd.f32 %v9350_v2, %v9349_v55  ;;  %v9352_v20 = vpop.f32.mrb[50].mxu1 }
0x1475   : > { %v9415_v36 = vadd.f32 %v9414_v35, %v9413_v46  ;;  %v9416_v50 = vpop.f32.mrb[50].mxu0  ;;  %v9353_v9 = vpop.f32.mrb[51].mxu1 }
0x1476   : > { %v9417_v40 = vpop.f32.mrb[51].mxu0  ;;  %v7952_v25 = vadd.f32 %v9351_v53, %v13589_v8  ;;  %v9354_v51 = vadd.f32 %v9353_v9, %v9352_v20 }
0x1477   : > { %v9418_v30 = vadd.f32 %v9417_v40, %v9416_v50 }
0x1478   : > { %v13637_v29 = vadd.f32 %v9415_v36, %v7952_v25  ;;  %v7955_v1 = vadd.f32 %v9354_v51, %v13592_v22 }
0x147a   : > { %v13640_v58 = vadd.f32 %v9418_v30, %v7955_v1  ;;  %v9355_v7 = vpop.f32.mrb[52].mxu1 }
0x147b   : > { %v9419_v60 = vpop.f32.mrb[52].mxu0  ;;  %v9356_v3 = vpop.f32.mrb[53].mxu1 }
0x147c   : > { %v9420_v5 = vpop.f32.mrb[53].mxu0  ;;  %v9357_v34 = vadd.f32 %v9356_v3, %v9355_v7  ;;  %v9358_v10 = vpop.f32.mrb[54].mxu1 }
0x147d   : > { %v9421_v61 = vadd.f32 %v9420_v5, %v9419_v60  ;;  %v9422_v47 = vpop.f32.mrb[54].mxu0  ;;  %v9359_v59 = vpop.f32.mrb[55].mxu1 }
0x147e   : > { %v9423_v26 = vpop.f32.mrb[55].mxu0  ;;  %v7960_v8 = vadd.f32 %v9357_v34, %v13595_v52  ;;  %v9360_v45 = vadd.f32 %v9359_v59, %v9358_v10 }
0x147f   : > { %v9424_v48 = vadd.f32 %v9423_v26, %v9422_v47  ;;  %v13667_v26 = vld [vmem:[%s613_s21] ss:$0 sm:$0xff] }
0x1480   : > { %v13643_v18 = vadd.f32 %v9421_v61, %v7960_v8  ;;  %v7963_v22 = vadd.f32 %v9360_v45, %v13598_v43  ;;  %v13872_v8 = vld [vmem:[#allocation13_spill] sm:$0xff] }
0x1482   : > { %v13646_v15 = vadd.f32 %v9424_v48, %v7963_v22  ;;  %v9361_v56 = vpop.f32.mrb[56].mxu1 }
0x1483   : > { %v9425_v17 = vpop.f32.mrb[56].mxu0  ;;  %v9362_v39 = vpop.f32.mrb[57].mxu1 }
0x1484   : > { %v9426_v44 = vpop.f32.mrb[57].mxu0  ;;  %v9363_v6 = vadd.f32 %v9362_v39, %v9361_v56  ;;  %v9364_v33 = vpop.f32.mrb[58].mxu1 }
0x1485   : > { %v9427_v27 = vadd.f32 %v9426_v44, %v9425_v17  ;;  %v9428_v14 = vpop.f32.mrb[58].mxu0  ;;  %v9365_v63 = vpop.f32.mrb[59].mxu1  ;;  %v13873_v44 = vld [vmem:[#allocation17_spill] sm:$0xff] }
0x1486   : > { %v9429_v12 = vpop.f32.mrb[59].mxu0  ;;  %v7968_v52 = vadd.f32 %v9363_v6, %v13601_v0  ;;  %v9366_v32 = vadd.f32 %v9365_v63, %v9364_v33 }
0x1487   : > { %v9430_v37 = vadd.f32 %v9429_v12, %v9428_v14 }
0x1488   : > { %v13649_v11 = vadd.f32 %v9427_v27, %v7968_v52  ;;  %v7971_v43 = vadd.f32 %v9366_v32, %v13604_v28 }
0x148a   : > { %v13652_v38 = vadd.f32 %v9430_v37, %v7971_v43  ;;  %v9367_v23 = vpop.f32.mrb[60].mxu1 }
0x148b   : > { %v9431_v21 = vpop.f32.mrb[60].mxu0  ;;  %v9368_v62 = vpop.f32.mrb[61].mxu1 }
0x148c   : > { %v9432_v16 = vpop.f32.mrb[61].mxu0  ;;  %v9369_v55 = vadd.f32 %v9368_v62, %v9367_v23  ;;  %v9370_v2 = vpop.f32.mrb[62].mxu1  ;;  %v13874_v62 = vld [vmem:[#allocation14_spill] sm:$0xff] }
0x148d   : > { %v9433_v46 = vadd.f32 %v9432_v16, %v9431_v21  ;;  %v9434_v35 = vpop.f32.mrb[62].mxu0  ;;  %v9371_v53 = vpop.f32.mrb[63].mxu1 }
0x148e   : > { %v9435_v36 = vpop.f32.mrb[63].mxu0  ;;  %v7976_v0 = vadd.f32 %v9369_v55, %v13607_v49  ;;  %v9372_v20 = vadd.f32 %v9371_v53, %v9370_v2 }
0x148f   : > { %v9436_v50 = vadd.f32 %v9435_v36, %v9434_v35 }
0x1490   : > { %v13655_v9 = vadd.f32 %v9433_v46, %v7976_v0  ;;  %v7979_v28 = vadd.f32 %v9372_v20, %v13610_v57  ;;  %v13875_v0 = vld [vmem:[#allocation19_spill] sm:$0xff] }
0x1492   : > { %v13658_v40 = vadd.f32 %v9436_v50, %v7979_v28  ;;  %v9453_v25 = vpop.f32.mrb[64].mxu1 }
0x1493   : > { %v9517_v51 = vpop.f32.mrb[64].mxu0  ;;  %v9454_v30 = vpop.f32.mrb[65].mxu1 }
0x1494   : > { %v9518_v1 = vpop.f32.mrb[65].mxu0  ;;  %v9455_v7 = vadd.f32 %v9454_v30, %v9453_v25  ;;  %v9456_v3 = vpop.f32.mrb[66].mxu1 }
0x1495   : > { %v9519_v60 = vadd.f32 %v9518_v1, %v9517_v51  ;;  %v9520_v5 = vpop.f32.mrb[66].mxu0  ;;  %v9457_v34 = vpop.f32.mrb[67].mxu1 }
0x1496   : > { %v9521_v61 = vpop.f32.mrb[67].mxu0  ;;  %v8114_v49 = vadd.f32 %v9455_v7, %v13613_v4  ;;  %v9458_v10 = vadd.f32 %v9457_v34, %v9456_v3  ;;  %v13876_v34 = vld [vmem:[#allocation11_spill] sm:$0xff] }
0x1497   : > { %v9522_v47 = vadd.f32 %v9521_v61, %v9520_v5 }
0x1498   : > { %v8211_v59 = vadd.f32 %v9519_v60, %v8114_v49  ;;  %v8117_v57 = vadd.f32 %v9458_v10, %v13616_v13 }
0x149a   : > { %v8273_v45 = vadd.f32 %v8211_v59, %v13872_v8  ;;  %v8214_v48 = vadd.f32 %v9522_v47, %v8117_v57  ;;  %v9459_v22 = vpop.f32.mrb[68].mxu1 }
0x149b   : > { %v9523_v56 = vpop.f32.mrb[68].mxu0  ;;  %v9460_v17 = vpop.f32.mrb[69].mxu1 }
0x149c   : > { %v9524_v39 = vpop.f32.mrb[69].mxu0  ;;  %v8296_v4 = vadd.f32 %v13667_v26, %v8273_v45  ;;  %v8274_v6 = vadd.f32 %v8214_v48, %v13873_v44  ;;  %v9461_v13 = vadd.f32 %v9460_v17, %v9459_v22  ;;  %v9462_v33 = vpop.f32.mrb[70].mxu1  ;;  %v13877_v45 = vld [vmem:[#allocation12_spill] sm:$0xff] }
0x149d   : > { %v9525_v27 = vadd.f32 %v9524_v39, %v9523_v56  ;;  %v9526_v14 = vpop.f32.mrb[70].mxu0  ;;  %v9463_v63 = vpop.f32.mrb[71].mxu1 }
0x149e   : > { %v9527_v12 = vpop.f32.mrb[71].mxu0  ;;  %8312 = vst [vmem:[#allocation2] sm:$0xff] %v8296_v4  ;;  %8328 = vst [vmem:[%s10590_s24] sm:$0xff] %v8296_v4  ;;  %v8297_v52 = vadd.f32 %v13667_v26, %v8274_v6  ;;  %v8122_v32 = vadd.f32 %v9461_v13, %v13619_v24  ;;  %v9464_v37 = vadd.f32 %v9463_v63, %v9462_v33 }
0x149f   : > { %v9528_v43 = vadd.f32 %v9527_v12, %v9526_v14  ;;  %v13878_v14 = vld [vmem:[#allocation15_spill] sm:$0xff] }
0x14a0   : > { %8313 = vst [vmem:[#allocation2 + $0x8] sm:$0xff] %v8297_v52  ;;  %8329 = vst [vmem:[%s10590_s24 + $0x8] sm:$0xff] %v8297_v52  ;;  %v8219_v23 = vadd.f32 %v9525_v27, %v8122_v32  ;;  %v8125_v21 = vadd.f32 %v9464_v37, %v13622_v42 }
0x14a2   : > { %v8275_v16 = vadd.f32 %v8219_v23, %v13874_v62  ;;  %v8222_v55 = vadd.f32 %v9528_v43, %v8125_v21  ;;  %v9465_v46 = vpop.f32.mrb[72].mxu1  ;;  %v13879_v21 = vld [vmem:[#allocation16_spill] sm:$0xff] }
0x14a3   : > { %v9529_v2 = vpop.f32.mrb[72].mxu0  ;;  %v9466_v35 = vpop.f32.mrb[73].mxu1 }
0x14a4   : > { %v9530_v53 = vpop.f32.mrb[73].mxu0  ;;  %v8298_v36 = vadd.f32 %v13667_v26, %v8275_v16  ;;  %v8276_v24 = vadd.f32 %v8222_v55, %v13875_v0  ;;  %v9467_v20 = vadd.f32 %v9466_v35, %v9465_v46  ;;  %v9468_v28 = vpop.f32.mrb[74].mxu1 }
0x14a5   : > { %v9531_v50 = vadd.f32 %v9530_v53, %v9529_v2  ;;  %v9532_v25 = vpop.f32.mrb[74].mxu0  ;;  %v9469_v51 = vpop.f32.mrb[75].mxu1 }
0x14a6   : > { %v9533_v30 = vpop.f32.mrb[75].mxu0  ;;  %8314 = vst [vmem:[#allocation2 + $0x10] sm:$0xff] %v8298_v36  ;;  %8330 = vst [vmem:[%s10590_s24 + $0x10] sm:$0xff] %v8298_v36  ;;  %v8299_v42 = vadd.f32 %v13667_v26, %v8276_v24  ;;  %v8130_v1 = vadd.f32 %v9467_v20, %v13625_v41  ;;  %v9470_v7 = vadd.f32 %v9469_v51, %v9468_v28 }
0x14a7   : > { %v9534_v60 = vadd.f32 %v9533_v30, %v9532_v25 }
0x14a8   : > { %8315 = vst [vmem:[#allocation2 + $0x18] sm:$0xff] %v8299_v42  ;;  %8331 = vst [vmem:[%s10590_s24 + $0x18] sm:$0xff] %v8299_v42  ;;  %v8227_v3 = vadd.f32 %v9531_v50, %v8130_v1  ;;  %v8133_v5 = vadd.f32 %v9470_v7, %v13628_v19  ;;  %v13880_v50 = vld [vmem:[#allocation18_spill] sm:$0xff] }
0x14aa   : > { %v8277_v61 = vadd.f32 %v8227_v3, %v13876_v34  ;;  %v8230_v49 = vadd.f32 %v9534_v60, %v8133_v5  ;;  %v9471_v10 = vpop.f32.mrb[76].mxu1  ;;  %v13881_v60 = vld [vmem:[#allocation9_spill] sm:$0xff] }
0x14ab   : > { %v9535_v47 = vpop.f32.mrb[76].mxu0  ;;  %v9472_v59 = vpop.f32.mrb[77].mxu1 }
0x14ac   : > { %v9536_v57 = vpop.f32.mrb[77].mxu0  ;;  %v8300_v8 = vadd.f32 %v13667_v26, %v8277_v61  ;;  %v8278_v41 = vadd.f32 %v8230_v49, %v13877_v45  ;;  %v9473_v48 = vadd.f32 %v9472_v59, %v9471_v10  ;;  %v9474_v56 = vpop.f32.mrb[78].mxu1 }
0x14ad   : > { %v9537_v22 = vadd.f32 %v9536_v57, %v9535_v47  ;;  %v9538_v17 = vpop.f32.mrb[78].mxu0  ;;  %v9475_v39 = vpop.f32.mrb[79].mxu1 }
0x14ae   : > { %v9539_v4 = vpop.f32.mrb[79].mxu0  ;;  %8316 = vst [vmem:[#allocation2 + $0x20] sm:$0xff] %v8300_v8  ;;  %8332 = vst [vmem:[%s10590_s24 + $0x20] sm:$0xff] %v8300_v8  ;;  %v8301_v19 = vadd.f32 %v13667_v26, %v8278_v41  ;;  %v8138_v44 = vadd.f32 %v9473_v48, %v13631_v54  ;;  %v9476_v6 = vadd.f32 %v9475_v39, %v9474_v56  ;;  %v13882_v41 = vld [vmem:[#allocation10_spill] sm:$0xff] }
0x14af   : > { %v9540_v13 = vadd.f32 %v9539_v4, %v9538_v17 }
0x14b0   : > { %8317 = vst [vmem:[#allocation2 + $0x28] sm:$0xff] %v8301_v19  ;;  %8333 = vst [vmem:[%s10590_s24 + $0x28] sm:$0xff] %v8301_v19  ;;  %v8235_v27 = vadd.f32 %v9537_v22, %v8138_v44  ;;  %v8141_v33 = vadd.f32 %v9476_v6, %v13634_v31  ;;  %v13883_v44 = vld [vmem:[#allocation20_spill] sm:$0xff] }
0x14b2   : > { %v8279_v63 = vadd.f32 %v8235_v27, %v13878_v14  ;;  %v8238_v12 = vadd.f32 %v9540_v13, %v8141_v33  ;;  %v9477_v52 = vpop.f32.mrb[80].mxu1 }
0x14b3   : > { %v9541_v32 = vpop.f32.mrb[80].mxu0  ;;  %v9478_v37 = vpop.f32.mrb[81].mxu1 }
0x14b4   : > { %v9542_v43 = vpop.f32.mrb[81].mxu0  ;;  %v8302_v23 = vadd.f32 %v13667_v26, %v8279_v63  ;;  %v8280_v54 = vadd.f32 %v8238_v12, %v13879_v21  ;;  %v9479_v62 = vadd.f32 %v9478_v37, %v9477_v52  ;;  %v9480_v55 = vpop.f32.mrb[82].mxu1 }
0x14b5   : > { %v9543_v16 = vadd.f32 %v9542_v43, %v9541_v32  ;;  %v9544_v46 = vpop.f32.mrb[82].mxu0  ;;  %v9481_v2 = vpop.f32.mrb[83].mxu1 }
0x14b6   : > { %v9545_v35 = vpop.f32.mrb[83].mxu0  ;;  %8318 = vst [vmem:[#allocation2 + $0x30] sm:$0xff] %v8302_v23  ;;  %8334 = vst [vmem:[%s10590_s24 + $0x30] sm:$0xff] %v8302_v23  ;;  %v8303_v31 = vadd.f32 %v13667_v26, %v8280_v54  ;;  %v8146_v53 = vadd.f32 %v9479_v62, %v13637_v29  ;;  %v9482_v36 = vadd.f32 %v9481_v2, %v9480_v55  ;;  %v13884_v23 = vld [vmem:[#allocation21_spill] sm:$0xff] }
0x14b7   : > { %v9546_v0 = vadd.f32 %v9545_v35, %v9544_v46  ;;  %v13885_v35 = vld [vmem:[#allocation22_spill] sm:$0xff] }
0x14b8   : > { %8319 = vst [vmem:[#allocation2 + $0x38] sm:$0xff] %v8303_v31  ;;  %8335 = vst [vmem:[%s10590_s24 + $0x38] sm:$0xff] %v8303_v31  ;;  %v8243_v24 = vadd.f32 %v9543_v16, %v8146_v53  ;;  %v8149_v20 = vadd.f32 %v9482_v36, %v13640_v58 }
0x14ba   : > { %v8281_v28 = vadd.f32 %v8243_v24, %v13880_v50  ;;  %v8246_v25 = vadd.f32 %v9546_v0, %v8149_v20  ;;  %v9483_v51 = vpop.f32.mrb[84].mxu1 }
0x14bb   : > { %v9547_v30 = vpop.f32.mrb[84].mxu0  ;;  %v9484_v42 = vpop.f32.mrb[85].mxu1 }
0x14bc   : > { %v9548_v1 = vpop.f32.mrb[85].mxu0  ;;  %v8304_v7 = vadd.f32 %v13667_v26, %v8281_v28  ;;  %v8282_v29 = vadd.f32 %v8246_v25, %v13881_v60  ;;  %v9485_v3 = vadd.f32 %v9484_v42, %v9483_v51  ;;  %v9486_v34 = vpop.f32.mrb[86].mxu1  ;;  %v13886_v42 = vld [vmem:[#allocation23_spill] sm:$0xff] }
0x14bd   : > { %v9549_v5 = vadd.f32 %v9548_v1, %v9547_v30  ;;  %v9550_v61 = vpop.f32.mrb[86].mxu0  ;;  %v9487_v49 = vpop.f32.mrb[87].mxu1 }
0x14be   : > { %v9551_v10 = vpop.f32.mrb[87].mxu0  ;;  %8320 = vst [vmem:[#allocation2 + $0x40] sm:$0xff] %v8304_v7  ;;  %8336 = vst [vmem:[%s10590_s24 + $0x40] sm:$0xff] %v8304_v7  ;;  %v8305_v58 = vadd.f32 %v13667_v26, %v8282_v29  ;;  %v8154_v47 = vadd.f32 %v9485_v3, %v13643_v18  ;;  %v9488_v59 = vadd.f32 %v9487_v49, %v9486_v34  ;;  %v13887_v29 = vld [vmem:[#allocation24_spill] sm:$0xff] }
0x14bf   : > { %v9552_v57 = vadd.f32 %v9551_v10, %v9550_v61 }
0x14c0   : > { %8321 = vst [vmem:[#allocation2 + $0x48] sm:$0xff] %v8305_v58  ;;  %8337 = vst [vmem:[%s10590_s24 + $0x48] sm:$0xff] %v8305_v58  ;;  %v8251_v8 = vadd.f32 %v9549_v5, %v8154_v47  ;;  %v8157_v45 = vadd.f32 %v9488_v59, %v13646_v15 }
0x14c2   : > { %v8283_v48 = vadd.f32 %v8251_v8, %v13882_v41  ;;  %v8254_v22 = vadd.f32 %v9552_v57, %v8157_v45  ;;  %v9489_v56 = vpop.f32.mrb[88].mxu1 }
0x14c3   : > { %v9553_v17 = vpop.f32.mrb[88].mxu0  ;;  %v9490_v39 = vpop.f32.mrb[89].mxu1 }
0x14c4   : > { %v9554_v4 = vpop.f32.mrb[89].mxu0  ;;  %v8306_v19 = vadd.f32 %v13667_v26, %v8283_v48  ;;  %v8284_v18 = vadd.f32 %v8254_v22, %v13883_v44  ;;  %v9491_v6 = vadd.f32 %v9490_v39, %v9489_v56  ;;  %v9492_v27 = vpop.f32.mrb[90].mxu1 }
0x14c5   : > { %v9555_v13 = vadd.f32 %v9554_v4, %v9553_v17  ;;  %v9556_v33 = vpop.f32.mrb[90].mxu0  ;;  %v9493_v14 = vpop.f32.mrb[91].mxu1 }
0x14c6   : > { %v9557_v63 = vpop.f32.mrb[91].mxu0  ;;  %8322 = vst [vmem:[#allocation2 + $0x50] sm:$0xff] %v8306_v19  ;;  %8338 = vst [vmem:[%s10590_s24 + $0x50] sm:$0xff] %v8306_v19  ;;  %v8307_v15 = vadd.f32 %v13667_v26, %v8284_v18  ;;  %v8162_v12 = vadd.f32 %v9491_v6, %v13649_v11  ;;  %v9494_v52 = vadd.f32 %v9493_v14, %v9492_v27 }
0x14c7   : > { %v9558_v32 = vadd.f32 %v9557_v63, %v9556_v33 }
0x14c8   : > { %8323 = vst [vmem:[#allocation2 + $0x58] sm:$0xff] %v8307_v15  ;;  %8339 = vst [vmem:[%s10590_s24 + $0x58] sm:$0xff] %v8307_v15  ;;  %v8259_v37 = vadd.f32 %v9555_v13, %v8162_v12  ;;  %v8165_v43 = vadd.f32 %v9494_v52, %v13652_v38 }
0x14ca   : > { %v8285_v21 = vadd.f32 %v8259_v37, %v13884_v23  ;;  %v8262_v54 = vadd.f32 %v9558_v32, %v8165_v43  ;;  %v9495_v62 = vpop.f32.mrb[92].mxu1 }
0x14cb   : > { %v9559_v16 = vpop.f32.mrb[92].mxu0  ;;  %v9496_v55 = vpop.f32.mrb[93].mxu1 }
0x14cc   : > { %v9560_v46 = vpop.f32.mrb[93].mxu0  ;;  %v8308_v2 = vadd.f32 %v13667_v26, %v8285_v21  ;;  %v8286_v11 = vadd.f32 %v8262_v54, %v13885_v35  ;;  %v9497_v31 = vadd.f32 %v9496_v55, %v9495_v62  ;;  %v9498_v36 = vpop.f32.mrb[94].mxu1 }
0x14cd   : > { %v9561_v53 = vadd.f32 %v9560_v46, %v9559_v16  ;;  %v9562_v0 = vpop.f32.mrb[94].mxu0  ;;  %v9499_v24 = vpop.f32.mrb[95].mxu1 }
0x14ce   : > { %v9563_v20 = vpop.f32.mrb[95].mxu0  ;;  %8324 = vst [vmem:[#allocation2 + $0x60] sm:$0xff] %v8308_v2  ;;  %8340 = vst [vmem:[%s10590_s24 + $0x60] sm:$0xff] %v8308_v2  ;;  %v8309_v38 = vadd.f32 %v13667_v26, %v8286_v11  ;;  %v8170_v50 = vadd.f32 %v9497_v31, %v13655_v9  ;;  %v9500_v28 = vadd.f32 %v9499_v24, %v9498_v36 }
0x14cf   : > { %v9564_v25 = vadd.f32 %v9563_v20, %v9562_v0 }
0x14d0   : > { %8325 = vst [vmem:[#allocation2 + $0x68] sm:$0xff] %v8309_v38  ;;  %8341 = vst [vmem:[%s10590_s24 + $0x68] sm:$0xff] %v8309_v38  ;;  %v8267_v51 = vadd.f32 %v9561_v53, %v8170_v50  ;;  %v8173_v30 = vadd.f32 %v9500_v28, %v13658_v40 }
0x14d2   : > { %v8287_v1 = vadd.f32 %v8267_v51, %v13886_v42  ;;  %v8270_v7 = vadd.f32 %v9564_v25, %v8173_v30 }
0x14d4   : > { %v8310_v60 = vadd.f32 %v13667_v26, %v8287_v1  ;;  %v8288_v3 = vadd.f32 %v8270_v7, %v13887_v29 }
0x14d6   : > { %8326 = vst [vmem:[#allocation2 + $0x70] sm:$0xff] %v8310_v60  ;;  %8342 = vst [vmem:[%s10590_s24 + $0x70] sm:$0xff] %v8310_v60  ;;  %v8311_v5 = vadd.f32 %v13667_v26, %v8288_v3 }
0x14d8   : > { %8327 = vst [vmem:[#allocation2 + $0x78] sm:$0xff] %v8311_v5  ;;  %8343 = vst [vmem:[%s10590_s24 + $0x78] sm:$0xff] %v8311_v5 }
0x14d9 PF: > { %s13888_s27 = sld [smem:[#allocation4_spill]] }
0x14df   : > { %s23_s25 = sadd.s32 1, %s13888_s27  }
0x14e0   : > { %p20_p5 = scmp.ge.s32.totalorder %s23_s25, 5  }
0x14e2   :  { %22 = sbr.rel (!%p20_p5) target bundleno = 5 (0x5), region = 139 }

</bundles_post_ra>
